<compile_context>
chip_gen: v7x
topology: tpu7x:2x2x1
jax: 0.10.0
libtpu: 0.0.40
codegen_flags: <defaults>
</compile_context>

<pallas_src>
import functools

import jax
import jax.numpy as jnp
import numpy as np
from jax import lax
from jax.experimental import pallas as pl
from jax.experimental.pallas import tpu as pltpu


def _round_up(x, m):
    return ((x + m - 1) // m) * m


# ----------------------------------------------------------------------------
# Fused forward kernel.
#   x_ref     : (B, H, Hc+K-1, Cin)  NHWC input, W zero-padded
#   w1_ref    : (K, K, Cin, C1),  b1_ref : (1, C1)
#   w2_ref    : (K*K*C1, C2) conv2 weights pre-flattened in im2col order
#   b2_ref    : (1, C2)
#   fw*_ref   : (in, out) fc weights, fb*_ref : (1, out) fc biases
#   o_ref     : (B, num_classes)
#   pool1_ref : (B, He//2, Hc-1, C1) VMEM scratch.  Pooled conv1 activation
#               pooled1[b, h2, w2, c] lives at pool1_ref[b, h2, 2*w2, c].
# ----------------------------------------------------------------------------
def _cnn_fused_kernel(x_ref, w1_ref, b1_ref, w2_ref, b2_ref,
                      fw1_ref, fb1_ref, fw2_ref, fb2_ref, fw3_ref, fb3_ref,
                      o_ref, pool1_ref, *, K, He, Hc):
    B = x_ref.shape[0]
    Cin = x_ref.shape[-1]
    C1 = w1_ref.shape[-1]
    s1 = He // 2                 # pooled conv1 spatial extent (valid)
    n2 = s1 - K + 1              # conv2 spatial extent (wrapper asserts == 2)
    M1 = B * He * Hc

    # ---- conv1: one MXU matmul per (kh, kw) tap, bias-initialized acc -------
    acc = jnp.broadcast_to(b1_ref[...], (M1, C1))        # hoisted bias broadcast
    for kh in range(K):
        for kw in range(K):
            patch = x_ref[:, kh:kh + He, kw:kw + Hc, :]  # (B, He, Hc, Cin)
            patch = patch.reshape(M1, Cin)               # tile-exact (Hc % 8 == 0)
            acc = acc + jnp.dot(patch, w1_ref[kh, kw],
                                preferred_element_type=jnp.float32)
    y = jnp.maximum(acc, 0.0)                            # relu, (M1, C1)

    # ---- maxpool 2x2 stride 2 ------------------------------------------------
    # H-pool: split the (major) H axis into (s1, 2) and max over the pair.
    y = y.reshape(B, He, Hc, C1).reshape(B, s1, 2, Hc, C1)
    yh = jnp.maximum(y[:, :, 0, :, :], y[:, :, 1, :, :])      # (B, s1, Hc, C1)
    # W-pool: neighbour pair-max; even-column selection happens in conv2 below.
    yw = jnp.maximum(yh[:, :, :Hc - 1, :], yh[:, :, 1:, :])   # (B, s1, Hc-1, C1)
    pool1_ref[...] = yw

    # ---- conv2 (+ bias + relu) fused with its 2x2 maxpool --------------------
    w2 = w2_ref[...]                                          # (K*K*C1, C2)
    m = None
    for ho in range(n2):
        for wo in range(n2):
            cols = [pool1_ref[:, ho + kh, 2 * (wo + kw), :]   # (B, C1)
                    for kh in range(K) for kw in range(K)]
            patch = jnp.concatenate(cols, axis=-1)            # (B, K*K*C1)
            pos = jnp.dot(patch, w2, preferred_element_type=jnp.float32)
            m = pos if m is None else jnp.maximum(m, pos)
    h = jnp.maximum(m + b2_ref[...], 0.0)                     # (B, C2)
    # Final pooled spatial extent is 1x1, so PyTorch's NCHW flatten == (B, C2).

    # ---- MLP head (MXU) -------------------------------------------------------
    h = jnp.maximum(jnp.dot(h, fw1_ref[...],
                            preferred_element_type=jnp.float32) + fb1_ref[...],
                    0.0)
    h = jnp.maximum(jnp.dot(h, fw2_ref[...],
                            preferred_element_type=jnp.float32) + fb2_ref[...],
                    0.0)
    o_ref[...] = (jnp.dot(h, fw3_ref[...],
                          preferred_element_type=jnp.float32) + fb3_ref[...])


# ----------------------------------------------------------------------------
# Wrapper: NCHW -> NHWC, pad W, flatten conv2 weights, single pallas_call.
# ----------------------------------------------------------------------------
def cnn_dynamic_forward(x_nchw, p, *, K=5):
    B, Cin, H, W = x_nchw.shape
    assert H == W, "square inputs only"
    n1 = H - K + 1            # conv1 valid output extent
    s1 = n1 // 2              # after pool1
    n2 = s1 - K + 1           # conv2 valid output extent
    s2 = n2 // 2              # after pool2
    # TODO(synk): generalize to configs whose final pooled map is larger than
    # 1x1 (needs NCHW-ordered flatten and grouped pool2 inside the kernel).
    assert n2 == 2 and s2 == 1, "kernel specialized to a 2x2 conv2 output"

    He = 2 * s1               # conv1 output rows actually needed (even)
    Hc = _round_up(n1, 8)     # 8-aligned conv1 column compute extent
    Wp = Hc + K - 1           # padded input width

    C1 = p["conv1_w"].shape[-1]
    C2 = p["conv2_w"].shape[-1]
    nc = p["fc3_w"].shape[-1]

    x = jnp.transpose(x_nchw, (0, 2, 3, 1))                    # NCHW -> NHWC
    x = jnp.pad(x, ((0, 0), (0, 0), (0, Wp - W), (0, 0)))      # pad W only (tiny)
    w2_flat = p["conv2_w"].reshape(K * K * C1, C2)             # im2col order

    vm = pl.BlockSpec(memory_space=pltpu.MemorySpace.VMEM)
    kernel = functools.partial(_cnn_fused_kernel, K=K, He=He, Hc=Hc)
    return pl.pallas_call(
        kernel,
        out_shape=jax.ShapeDtypeStruct((B, nc), jnp.float32),
        in_specs=[vm] * 11,
        out_specs=vm,
        scratch_shapes=[pltpu.VMEM((B, He // 2, Hc - 1, C1), jnp.float32)],
    )(x, p["conv1_w"], p["conv1_b"].reshape(1, C1),
      w2_flat, p["conv2_b"].reshape(1, C2),
      p["fc1_w"], p["fc1_b"].reshape(1, -1),
      p["fc2_w"], p["fc2_b"].reshape(1, -1),
      p["fc3_w"], p["fc3_b"].reshape(1, -1))


# ----------------------------------------------------------------------------
# Deterministic parameter init (PyTorch-like uniform fan-in init; synthetic).
# Conv weights HWIO, Linear weights (in, out).
# ----------------------------------------------------------------------------
def init_params(key, num_classes, input_size, in_ch, c1, c2, f1, f2):
    s1 = (input_size - 4) // 2
    s2 = (s1 - 4) // 2
    flat = c2 * s2 * s2
    ks = jax.random.split(key, 10)

    def u(k, shape, fan_in):
        bound = 1.0 / float(np.sqrt(fan_in))
        return jax.random.uniform(k, shape, jnp.float32, -bound, bound)

    return dict(
        conv1_w=u(ks[0], (5, 5, in_ch, c1), in_ch * 25),
        conv1_b=u(ks[1], (c1,), in_ch * 25),
        conv2_w=u(ks[2], (5, 5, c1, c2), c1 * 25),
        conv2_b=u(ks[3], (c2,), c1 * 25),
        fc1_w=u(ks[4], (flat, f1), flat),
        fc1_b=u(ks[5], (f1,), flat),
        fc2_w=u(ks[6], (f1, f2), f1),
        fc2_b=u(ks[7], (f2,), f1),
        fc3_w=u(ks[8], (f2, num_classes), f2),
        fc3_b=u(ks[9], (num_classes,), f2),
    )


# Pure-JAX reference (same math, via XLA ops) for the correctness check.
def ref_forward(x_nchw, p):
    def conv(x, w_hwio, b):
        y = lax.conv_general_dilated(
            x, w_hwio, (1, 1), "VALID",
            dimension_numbers=("NCHW", "HWIO", "NCHW"))
        return y + b[None, :, None, None]

    y = jnp.maximum(conv(x_nchw, p["conv1_w"], p["conv1_b"]), 0.0)
    y = lax.reduce_window(y, -jnp.inf, lax.max, (1, 1, 2, 2), (1, 1, 2, 2), "VALID")
    y = jnp.maximum(conv(y, p["conv2_w"], p["conv2_b"]), 0.0)
    y = lax.reduce_window(y, -jnp.inf, lax.max, (1, 1, 2, 2), (1, 1, 2, 2), "VALID")
    y = y.reshape(y.shape[0], -1)
    y = jnp.maximum(y @ p["fc1_w"] + p["fc1_b"], 0.0)
    y = jnp.maximum(y @ p["fc2_w"] + p["fc2_b"], 0.0)
    return y @ p["fc3_w"] + p["fc3_b"]


if __name__ == "__main__":
    # Small config consistent with the module: input 16x16, 4 input channels.
    num_classes, input_size, in_ch = 10, 16, 4
    conv1_out, conv2_out, fc1_out, fc2_out = 8, 16, 32, 16
    batch = 2

    key = jax.random.PRNGKey(0)
    kx, kp = jax.random.split(key)
    x = jax.random.normal(kx, (batch, in_ch, input_size, input_size), jnp.float32)
    params = init_params(kp, num_classes, input_size, in_ch,
                         conv1_out, conv2_out, fc1_out, fc2_out)

    out = jax.jit(cnn_dynamic_forward)(x, params)
    out = jax.block_until_ready(out)

    ref = jax.block_until_ready(ref_forward(x, params))
    assert out.shape == (batch, num_classes)
    assert np.max(np.abs(np.asarray(out) - np.asarray(ref))) < 1e-4

    print("KERNEL_OK")
</pallas_src>

<mosaic_0001>
module attributes {stable_mosaic.version = 11 : i64} {
  func.func @_cnn_fused_kernel(%arg0: memref<2x16x20x4xf32, #tpu.memory_space<vmem>>, %arg1: memref<5x5x4x8xf32, #tpu.memory_space<vmem>>, %arg2: memref<1x8xf32, #tpu.memory_space<vmem>>, %arg3: memref<200x16xf32, #tpu.memory_space<vmem>>, %arg4: memref<1x16xf32, #tpu.memory_space<vmem>>, %arg5: memref<16x32xf32, #tpu.memory_space<vmem>>, %arg6: memref<1x32xf32, #tpu.memory_space<vmem>>, %arg7: memref<32x16xf32, #tpu.memory_space<vmem>>, %arg8: memref<1x16xf32, #tpu.memory_space<vmem>>, %arg9: memref<16x10xf32, #tpu.memory_space<vmem>>, %arg10: memref<1x10xf32, #tpu.memory_space<vmem>>, %arg11: memref<2x10xf32, #tpu.memory_space<vmem>>, %arg12: memref<2x6x15x8xf32, #tpu.memory_space<vmem>>) attributes {dimension_semantics = [], scalar_prefetch = 0 : i64, scratch_operands = 1 : i64, tpu.core_type = #tpu.core_type<tc>} {
    %c0 = arith.constant 0 : index
    %c0_0 = arith.constant 0 : index
    %0 = vector.load %arg2[%c0, %c0_0] : memref<1x8xf32, #tpu.memory_space<vmem>>, vector<1x8xf32>
    %1 = vector.shape_cast %0 : vector<1x8xf32> to vector<1x8xf32>
    %2 = vector.broadcast %1 : vector<1x8xf32> to vector<384x8xf32>
    %c0_1 = arith.constant 0 : index
    %c0_2 = arith.constant 0 : index
    %c0_3 = arith.constant 0 : index
    %c0_4 = arith.constant 0 : index
    %3 = vector.load %arg0[%c0_1, %c0_2, %c0_3, %c0_4] : memref<2x16x20x4xf32, #tpu.memory_space<vmem>>, vector<2x12x16x4xf32>
    %4 = vector.shape_cast %3 : vector<2x12x16x4xf32> to vector<384x4xf32>
    %c0_5 = arith.constant 0 : index
    %c0_6 = arith.constant 0 : index
    %c0_7 = arith.constant 0 : index
    %c0_8 = arith.constant 0 : index
    %5 = vector.load %arg1[%c0_5, %c0_6, %c0_7, %c0_8] : memref<5x5x4x8xf32, #tpu.memory_space<vmem>>, vector<1x1x4x8xf32>
    %6 = vector.shape_cast %5 : vector<1x1x4x8xf32> to vector<4x8xf32>
    %cst = arith.constant dense<0.000000e+00> : vector<384x8xf32>
    %7 = tpu.matmul %4, %6, %cst {dimension_numbers = #tpu.dot_dimension_numbers<[1], [0], [0], [1], [0, 0, 1, 1], [], []>} : vector<384x4xf32>, vector<4x8xf32>, vector<384x8xf32> -> vector<384x8xf32>
    %8 = arith.addf %2, %7 : vector<384x8xf32>
    %c0_9 = arith.constant 0 : index
    %c0_10 = arith.constant 0 : index
    %c1 = arith.constant 1 : index
    %c0_11 = arith.constant 0 : index
    %9 = vector.load %arg0[%c0_9, %c0_10, %c1, %c0_11] : memref<2x16x20x4xf32, #tpu.memory_space<vmem>>, vector<2x12x16x4xf32>
    %10 = vector.shape_cast %9 : vector<2x12x16x4xf32> to vector<384x4xf32>
    %c0_12 = arith.constant 0 : index
    %c1_13 = arith.constant 1 : index
    %c0_14 = arith.constant 0 : index
    %c0_15 = arith.constant 0 : index
    %11 = vector.load %arg1[%c0_12, %c1_13, %c0_14, %c0_15] : memref<5x5x4x8xf32, #tpu.memory_space<vmem>>, vector<1x1x4x8xf32>
    %12 = vector.shape_cast %11 : vector<1x1x4x8xf32> to vector<4x8xf32>
    %cst_16 = arith.constant dense<0.000000e+00> : vector<384x8xf32>
    %13 = tpu.matmul %10, %12, %cst_16 {dimension_numbers = #tpu.dot_dimension_numbers<[1], [0], [0], [1], [0, 0, 1, 1], [], []>} : vector<384x4xf32>, vector<4x8xf32>, vector<384x8xf32> -> vector<384x8xf32>
    %14 = arith.addf %8, %13 : vector<384x8xf32>
    %c0_17 = arith.constant 0 : index
    %c0_18 = arith.constant 0 : index
    %c2 = arith.constant 2 : index
    %c0_19 = arith.constant 0 : index
    %15 = vector.load %arg0[%c0_17, %c0_18, %c2, %c0_19] : memref<2x16x20x4xf32, #tpu.memory_space<vmem>>, vector<2x12x16x4xf32>
    %16 = vector.shape_cast %15 : vector<2x12x16x4xf32> to vector<384x4xf32>
    %c0_20 = arith.constant 0 : index
    %c2_21 = arith.constant 2 : index
    %c0_22 = arith.constant 0 : index
    %c0_23 = arith.constant 0 : index
    %17 = vector.load %arg1[%c0_20, %c2_21, %c0_22, %c0_23] : memref<5x5x4x8xf32, #tpu.memory_space<vmem>>, vector<1x1x4x8xf32>
    %18 = vector.shape_cast %17 : vector<1x1x4x8xf32> to vector<4x8xf32>
    %cst_24 = arith.constant dense<0.000000e+00> : vector<384x8xf32>
    %19 = tpu.matmul %16, %18, %cst_24 {dimension_numbers = #tpu.dot_dimension_numbers<[1], [0], [0], [1], [0, 0, 1, 1], [], []>} : vector<384x4xf32>, vector<4x8xf32>, vector<384x8xf32> -> vector<384x8xf32>
    %20 = arith.addf %14, %19 : vector<384x8xf32>
    %c0_25 = arith.constant 0 : index
    %c0_26 = arith.constant 0 : index
    %c3 = arith.constant 3 : index
    %c0_27 = arith.constant 0 : index
    %21 = vector.load %arg0[%c0_25, %c0_26, %c3, %c0_27] : memref<2x16x20x4xf32, #tpu.memory_space<vmem>>, vector<2x12x16x4xf32>
    %22 = vector.shape_cast %21 : vector<2x12x16x4xf32> to vector<384x4xf32>
    %c0_28 = arith.constant 0 : index
    %c3_29 = arith.constant 3 : index
    %c0_30 = arith.constant 0 : index
    %c0_31 = arith.constant 0 : index
    %23 = vector.load %arg1[%c0_28, %c3_29, %c0_30, %c0_31] : memref<5x5x4x8xf32, #tpu.memory_space<vmem>>, vector<1x1x4x8xf32>
    %24 = vector.shape_cast %23 : vector<1x1x4x8xf32> to vector<4x8xf32>
    %cst_32 = arith.constant dense<0.000000e+00> : vector<384x8xf32>
    %25 = tpu.matmul %22, %24, %cst_32 {dimension_numbers = #tpu.dot_dimension_numbers<[1], [0], [0], [1], [0, 0, 1, 1], [], []>} : vector<384x4xf32>, vector<4x8xf32>, vector<384x8xf32> -> vector<384x8xf32>
    %26 = arith.addf %20, %25 : vector<384x8xf32>
    %c0_33 = arith.constant 0 : index
    %c0_34 = arith.constant 0 : index
    %c4 = arith.constant 4 : index
    %c0_35 = arith.constant 0 : index
    %27 = vector.load %arg0[%c0_33, %c0_34, %c4, %c0_35] : memref<2x16x20x4xf32, #tpu.memory_space<vmem>>, vector<2x12x16x4xf32>
    %28 = vector.shape_cast %27 : vector<2x12x16x4xf32> to vector<384x4xf32>
    %c0_36 = arith.constant 0 : index
    %c4_37 = arith.constant 4 : index
    %c0_38 = arith.constant 0 : index
    %c0_39 = arith.constant 0 : index
    %29 = vector.load %arg1[%c0_36, %c4_37, %c0_38, %c0_39] : memref<5x5x4x8xf32, #tpu.memory_space<vmem>>, vector<1x1x4x8xf32>
    %30 = vector.shape_cast %29 : vector<1x1x4x8xf32> to vector<4x8xf32>
    %cst_40 = arith.constant dense<0.000000e+00> : vector<384x8xf32>
    %31 = tpu.matmul %28, %30, %cst_40 {dimension_numbers = #tpu.dot_dimension_numbers<[1], [0], [0], [1], [0, 0, 1, 1], [], []>} : vector<384x4xf32>, vector<4x8xf32>, vector<384x8xf32> -> vector<384x8xf32>
    %32 = arith.addf %26, %31 : vector<384x8xf32>
    %c0_41 = arith.constant 0 : index
    %c1_42 = arith.constant 1 : index
    %c0_43 = arith.constant 0 : index
    %c0_44 = arith.constant 0 : index
    %33 = vector.load %arg0[%c0_41, %c1_42, %c0_43, %c0_44] : memref<2x16x20x4xf32, #tpu.memory_space<vmem>>, vector<2x12x16x4xf32>
    %34 = vector.shape_cast %33 : vector<2x12x16x4xf32> to vector<384x4xf32>
    %c1_45 = arith.constant 1 : index
    %c0_46 = arith.constant 0 : index
    %c0_47 = arith.constant 0 : index
    %c0_48 = arith.constant 0 : index
    %35 = vector.load %arg1[%c1_45, %c0_46, %c0_47, %c0_48] : memref<5x5x4x8xf32, #tpu.memory_space<vmem>>, vector<1x1x4x8xf32>
    %36 = vector.shape_cast %35 : vector<1x1x4x8xf32> to vector<4x8xf32>
    %cst_49 = arith.constant dense<0.000000e+00> : vector<384x8xf32>
    %37 = tpu.matmul %34, %36, %cst_49 {dimension_numbers = #tpu.dot_dimension_numbers<[1], [0], [0], [1], [0, 0, 1, 1], [], []>} : vector<384x4xf32>, vector<4x8xf32>, vector<384x8xf32> -> vector<384x8xf32>
    %38 = arith.addf %32, %37 : vector<384x8xf32>
    %c0_50 = arith.constant 0 : index
    %c1_51 = arith.constant 1 : index
    %c1_52 = arith.constant 1 : index
    %c0_53 = arith.constant 0 : index
    %39 = vector.load %arg0[%c0_50, %c1_51, %c1_52, %c0_53] : memref<2x16x20x4xf32, #tpu.memory_space<vmem>>, vector<2x12x16x4xf32>
    %40 = vector.shape_cast %39 : vector<2x12x16x4xf32> to vector<384x4xf32>
    %c1_54 = arith.constant 1 : index
    %c1_55 = arith.constant 1 : index
    %c0_56 = arith.constant 0 : index
    %c0_57 = arith.constant 0 : index
    %41 = vector.load %arg1[%c1_54, %c1_55, %c0_56, %c0_57] : memref<5x5x4x8xf32, #tpu.memory_space<vmem>>, vector<1x1x4x8xf32>
    %42 = vector.shape_cast %41 : vector<1x1x4x8xf32> to vector<4x8xf32>
    %cst_58 = arith.constant dense<0.000000e+00> : vector<384x8xf32>
    %43 = tpu.matmul %40, %42, %cst_58 {dimension_numbers = #tpu.dot_dimension_numbers<[1], [0], [0], [1], [0, 0, 1, 1], [], []>} : vector<384x4xf32>, vector<4x8xf32>, vector<384x8xf32> -> vector<384x8xf32>
    %44 = arith.addf %38, %43 : vector<384x8xf32>
    %c0_59 = arith.constant 0 : index
    %c1_60 = arith.constant 1 : index
    %c2_61 = arith.constant 2 : index
    %c0_62 = arith.constant 0 : index
    %45 = vector.load %arg0[%c0_59, %c1_60, %c2_61, %c0_62] : memref<2x16x20x4xf32, #tpu.memory_space<vmem>>, vector<2x12x16x4xf32>
    %46 = vector.shape_cast %45 : vector<2x12x16x4xf32> to vector<384x4xf32>
    %c1_63 = arith.constant 1 : index
    %c2_64 = arith.constant 2 : index
    %c0_65 = arith.constant 0 : index
    %c0_66 = arith.constant 0 : index
    %47 = vector.load %arg1[%c1_63, %c2_64, %c0_65, %c0_66] : memref<5x5x4x8xf32, #tpu.memory_space<vmem>>, vector<1x1x4x8xf32>
    %48 = vector.shape_cast %47 : vector<1x1x4x8xf32> to vector<4x8xf32>
    %cst_67 = arith.constant dense<0.000000e+00> : vector<384x8xf32>
    %49 = tpu.matmul %46, %48, %cst_67 {dimension_numbers = #tpu.dot_dimension_numbers<[1], [0], [0], [1], [0, 0, 1, 1], [], []>} : vector<384x4xf32>, vector<4x8xf32>, vector<384x8xf32> -> vector<384x8xf32>
    %50 = arith.addf %44, %49 : vector<384x8xf32>
    %c0_68 = arith.constant 0 : index
    %c1_69 = arith.constant 1 : index
    %c3_70 = arith.constant 3 : index
    %c0_71 = arith.constant 0 : index
    %51 = vector.load %arg0[%c0_68, %c1_69, %c3_70, %c0_71] : memref<2x16x20x4xf32, #tpu.memory_space<vmem>>, vector<2x12x16x4xf32>
    %52 = vector.shape_cast %51 : vector<2x12x16x4xf32> to vector<384x4xf32>
    %c1_72 = arith.constant 1 : index
    %c3_73 = arith.constant 3 : index
    %c0_74 = arith.constant 0 : index
    %c0_75 = arith.constant 0 : index
    %53 = vector.load %arg1[%c1_72, %c3_73, %c0_74, %c0_75] : memref<5x5x4x8xf32, #tpu.memory_space<vmem>>, vector<1x1x4x8xf32>
    %54 = vector.shape_cast %53 : vector<1x1x4x8xf32> to vector<4x8xf32>
    %cst_76 = arith.constant dense<0.000000e+00> : vector<384x8xf32>
    %55 = tpu.matmul %52, %54, %cst_76 {dimension_numbers = #tpu.dot_dimension_numbers<[1], [0], [0], [1], [0, 0, 1, 1], [], []>} : vector<384x4xf32>, vector<4x8xf32>, vector<384x8xf32> -> vector<384x8xf32>
    %56 = arith.addf %50, %55 : vector<384x8xf32>
    %c0_77 = arith.constant 0 : index
    %c1_78 = arith.constant 1 : index
    %c4_79 = arith.constant 4 : index
    %c0_80 = arith.constant 0 : index
    %57 = vector.load %arg0[%c0_77, %c1_78, %c4_79, %c0_80] : memref<2x16x20x4xf32, #tpu.memory_space<vmem>>, vector<2x12x16x4xf32>
    %58 = vector.shape_cast %57 : vector<2x12x16x4xf32> to vector<384x4xf32>
    %c1_81 = arith.constant 1 : index
    %c4_82 = arith.constant 4 : index
    %c0_83 = arith.constant 0 : index
    %c0_84 = arith.constant 0 : index
    %59 = vector.load %arg1[%c1_81, %c4_82, %c0_83, %c0_84] : memref<5x5x4x8xf32, #tpu.memory_space<vmem>>, vector<1x1x4x8xf32>
    %60 = vector.shape_cast %59 : vector<1x1x4x8xf32> to vector<4x8xf32>
    %cst_85 = arith.constant dense<0.000000e+00> : vector<384x8xf32>
    %61 = tpu.matmul %58, %60, %cst_85 {dimension_numbers = #tpu.dot_dimension_numbers<[1], [0], [0], [1], [0, 0, 1, 1], [], []>} : vector<384x4xf32>, vector<4x8xf32>, vector<384x8xf32> -> vector<384x8xf32>
    %62 = arith.addf %56, %61 : vector<384x8xf32>
    %c0_86 = arith.constant 0 : index
    %c2_87 = arith.constant 2 : index
    %c0_88 = arith.constant 0 : index
    %c0_89 = arith.constant 0 : index
    %63 = vector.load %arg0[%c0_86, %c2_87, %c0_88, %c0_89] : memref<2x16x20x4xf32, #tpu.memory_space<vmem>>, vector<2x12x16x4xf32>
    %64 = vector.shape_cast %63 : vector<2x12x16x4xf32> to vector<384x4xf32>
    %c2_90 = arith.constant 2 : index
    %c0_91 = arith.constant 0 : index
    %c0_92 = arith.constant 0 : index
    %c0_93 = arith.constant 0 : index
    %65 = vector.load %arg1[%c2_90, %c0_91, %c0_92, %c0_93] : memref<5x5x4x8xf32, #tpu.memory_space<vmem>>, vector<1x1x4x8xf32>
    %66 = vector.shape_cast %65 : vector<1x1x4x8xf32> to vector<4x8xf32>
    %cst_94 = arith.constant dense<0.000000e+00> : vector<384x8xf32>
    %67 = tpu.matmul %64, %66, %cst_94 {dimension_numbers = #tpu.dot_dimension_numbers<[1], [0], [0], [1], [0, 0, 1, 1], [], []>} : vector<384x4xf32>, vector<4x8xf32>, vector<384x8xf32> -> vector<384x8xf32>
    %68 = arith.addf %62, %67 : vector<384x8xf32>
    %c0_95 = arith.constant 0 : index
    %c2_96 = arith.constant 2 : index
    %c1_97 = arith.constant 1 : index
    %c0_98 = arith.constant 0 : index
    %69 = vector.load %arg0[%c0_95, %c2_96, %c1_97, %c0_98] : memref<2x16x20x4xf32, #tpu.memory_space<vmem>>, vector<2x12x16x4xf32>
    %70 = vector.shape_cast %69 : vector<2x12x16x4xf32> to vector<384x4xf32>
    %c2_99 = arith.constant 2 : index
    %c1_100 = arith.constant 1 : index
    %c0_101 = arith.constant 0 : index
    %c0_102 = arith.constant 0 : index
    %71 = vector.load %arg1[%c2_99, %c1_100, %c0_101, %c0_102] : memref<5x5x4x8xf32, #tpu.memory_space<vmem>>, vector<1x1x4x8xf32>
    %72 = vector.shape_cast %71 : vector<1x1x4x8xf32> to vector<4x8xf32>
    %cst_103 = arith.constant dense<0.000000e+00> : vector<384x8xf32>
    %73 = tpu.matmul %70, %72, %cst_103 {dimension_numbers = #tpu.dot_dimension_numbers<[1], [0], [0], [1], [0, 0, 1, 1], [], []>} : vector<384x4xf32>, vector<4x8xf32>, vector<384x8xf32> -> vector<384x8xf32>
    %74 = arith.addf %68, %73 : vector<384x8xf32>
    %c0_104 = arith.constant 0 : index
    %c2_105 = arith.constant 2 : index
    %c2_106 = arith.constant 2 : index
    %c0_107 = arith.constant 0 : index
    %75 = vector.load %arg0[%c0_104, %c2_105, %c2_106, %c0_107] : memref<2x16x20x4xf32, #tpu.memory_space<vmem>>, vector<2x12x16x4xf32>
    %76 = vector.shape_cast %75 : vector<2x12x16x4xf32> to vector<384x4xf32>
    %c2_108 = arith.constant 2 : index
    %c2_109 = arith.constant 2 : index
    %c0_110 = arith.constant 0 : index
    %c0_111 = arith.constant 0 : index
    %77 = vector.load %arg1[%c2_108, %c2_109, %c0_110, %c0_111] : memref<5x5x4x8xf32, #tpu.memory_space<vmem>>, vector<1x1x4x8xf32>
    %78 = vector.shape_cast %77 : vector<1x1x4x8xf32> to vector<4x8xf32>
    %cst_112 = arith.constant dense<0.000000e+00> : vector<384x8xf32>
    %79 = tpu.matmul %76, %78, %cst_112 {dimension_numbers = #tpu.dot_dimension_numbers<[1], [0], [0], [1], [0, 0, 1, 1], [], []>} : vector<384x4xf32>, vector<4x8xf32>, vector<384x8xf32> -> vector<384x8xf32>
    %80 = arith.addf %74, %79 : vector<384x8xf32>
    %c0_113 = arith.constant 0 : index
    %c2_114 = arith.constant 2 : index
    %c3_115 = arith.constant 3 : index
    %c0_116 = arith.constant 0 : index
    %81 = vector.load %arg0[%c0_113, %c2_114, %c3_115, %c0_116] : memref<2x16x20x4xf32, #tpu.memory_space<vmem>>, vector<2x12x16x4xf32>
    %82 = vector.shape_cast %81 : vector<2x12x16x4xf32> to vector<384x4xf32>
    %c2_117 = arith.constant 2 : index
    %c3_118 = arith.constant 3 : index
    %c0_119 = arith.constant 0 : index
    %c0_120 = arith.constant 0 : index
    %83 = vector.load %arg1[%c2_117, %c3_118, %c0_119, %c0_120] : memref<5x5x4x8xf32, #tpu.memory_space<vmem>>, vector<1x1x4x8xf32>
    %84 = vector.shape_cast %83 : vector<1x1x4x8xf32> to vector<4x8xf32>
    %cst_121 = arith.constant dense<0.000000e+00> : vector<384x8xf32>
    %85 = tpu.matmul %82, %84, %cst_121 {dimension_numbers = #tpu.dot_dimension_numbers<[1], [0], [0], [1], [0, 0, 1, 1], [], []>} : vector<384x4xf32>, vector<4x8xf32>, vector<384x8xf32> -> vector<384x8xf32>
    %86 = arith.addf %80, %85 : vector<384x8xf32>
    %c0_122 = arith.constant 0 : index
    %c2_123 = arith.constant 2 : index
    %c4_124 = arith.constant 4 : index
    %c0_125 = arith.constant 0 : index
    %87 = vector.load %arg0[%c0_122, %c2_123, %c4_124, %c0_125] : memref<2x16x20x4xf32, #tpu.memory_space<vmem>>, vector<2x12x16x4xf32>
    %88 = vector.shape_cast %87 : vector<2x12x16x4xf32> to vector<384x4xf32>
    %c2_126 = arith.constant 2 : index
    %c4_127 = arith.constant 4 : index
    %c0_128 = arith.constant 0 : index
    %c0_129 = arith.constant 0 : index
    %89 = vector.load %arg1[%c2_126, %c4_127, %c0_128, %c0_129] : memref<5x5x4x8xf32, #tpu.memory_space<vmem>>, vector<1x1x4x8xf32>
    %90 = vector.shape_cast %89 : vector<1x1x4x8xf32> to vector<4x8xf32>
    %cst_130 = arith.constant dense<0.000000e+00> : vector<384x8xf32>
    %91 = tpu.matmul %88, %90, %cst_130 {dimension_numbers = #tpu.dot_dimension_numbers<[1], [0], [0], [1], [0, 0, 1, 1], [], []>} : vector<384x4xf32>, vector<4x8xf32>, vector<384x8xf32> -> vector<384x8xf32>
    %92 = arith.addf %86, %91 : vector<384x8xf32>
    %c0_131 = arith.constant 0 : index
    %c3_132 = arith.constant 3 : index
    %c0_133 = arith.constant 0 : index
    %c0_134 = arith.constant 0 : index
    %93 = vector.load %arg0[%c0_131, %c3_132, %c0_133, %c0_134] : memref<2x16x20x4xf32, #tpu.memory_space<vmem>>, vector<2x12x16x4xf32>
    %94 = vector.shape_cast %93 : vector<2x12x16x4xf32> to vector<384x4xf32>
    %c3_135 = arith.constant 3 : index
    %c0_136 = arith.constant 0 : index
    %c0_137 = arith.constant 0 : index
    %c0_138 = arith.constant 0 : index
    %95 = vector.load %arg1[%c3_135, %c0_136, %c0_137, %c0_138] : memref<5x5x4x8xf32, #tpu.memory_space<vmem>>, vector<1x1x4x8xf32>
    %96 = vector.shape_cast %95 : vector<1x1x4x8xf32> to vector<4x8xf32>
    %cst_139 = arith.constant dense<0.000000e+00> : vector<384x8xf32>
    %97 = tpu.matmul %94, %96, %cst_139 {dimension_numbers = #tpu.dot_dimension_numbers<[1], [0], [0], [1], [0, 0, 1, 1], [], []>} : vector<384x4xf32>, vector<4x8xf32>, vector<384x8xf32> -> vector<384x8xf32>
    %98 = arith.addf %92, %97 : vector<384x8xf32>
    %c0_140 = arith.constant 0 : index
    %c3_141 = arith.constant 3 : index
    %c1_142 = arith.constant 1 : index
    %c0_143 = arith.constant 0 : index
    %99 = vector.load %arg0[%c0_140, %c3_141, %c1_142, %c0_143] : memref<2x16x20x4xf32, #tpu.memory_space<vmem>>, vector<2x12x16x4xf32>
    %100 = vector.shape_cast %99 : vector<2x12x16x4xf32> to vector<384x4xf32>
    %c3_144 = arith.constant 3 : index
    %c1_145 = arith.constant 1 : index
    %c0_146 = arith.constant 0 : index
    %c0_147 = arith.constant 0 : index
    %101 = vector.load %arg1[%c3_144, %c1_145, %c0_146, %c0_147] : memref<5x5x4x8xf32, #tpu.memory_space<vmem>>, vector<1x1x4x8xf32>
    %102 = vector.shape_cast %101 : vector<1x1x4x8xf32> to vector<4x8xf32>
    %cst_148 = arith.constant dense<0.000000e+00> : vector<384x8xf32>
    %103 = tpu.matmul %100, %102, %cst_148 {dimension_numbers = #tpu.dot_dimension_numbers<[1], [0], [0], [1], [0, 0, 1, 1], [], []>} : vector<384x4xf32>, vector<4x8xf32>, vector<384x8xf32> -> vector<384x8xf32>
    %104 = arith.addf %98, %103 : vector<384x8xf32>
    %c0_149 = arith.constant 0 : index
    %c3_150 = arith.constant 3 : index
    %c2_151 = arith.constant 2 : index
    %c0_152 = arith.constant 0 : index
    %105 = vector.load %arg0[%c0_149, %c3_150, %c2_151, %c0_152] : memref<2x16x20x4xf32, #tpu.memory_space<vmem>>, vector<2x12x16x4xf32>
    %106 = vector.shape_cast %105 : vector<2x12x16x4xf32> to vector<384x4xf32>
    %c3_153 = arith.constant 3 : index
    %c2_154 = arith.constant 2 : index
    %c0_155 = arith.constant 0 : index
    %c0_156 = arith.constant 0 : index
    %107 = vector.load %arg1[%c3_153, %c2_154, %c0_155, %c0_156] : memref<5x5x4x8xf32, #tpu.memory_space<vmem>>, vector<1x1x4x8xf32>
    %108 = vector.shape_cast %107 : vector<1x1x4x8xf32> to vector<4x8xf32>
    %cst_157 = arith.constant dense<0.000000e+00> : vector<384x8xf32>
    %109 = tpu.matmul %106, %108, %cst_157 {dimension_numbers = #tpu.dot_dimension_numbers<[1], [0], [0], [1], [0, 0, 1, 1], [], []>} : vector<384x4xf32>, vector<4x8xf32>, vector<384x8xf32> -> vector<384x8xf32>
    %110 = arith.addf %104, %109 : vector<384x8xf32>
    %c0_158 = arith.constant 0 : index
    %c3_159 = arith.constant 3 : index
    %c3_160 = arith.constant 3 : index
    %c0_161 = arith.constant 0 : index
    %111 = vector.load %arg0[%c0_158, %c3_159, %c3_160, %c0_161] : memref<2x16x20x4xf32, #tpu.memory_space<vmem>>, vector<2x12x16x4xf32>
    %112 = vector.shape_cast %111 : vector<2x12x16x4xf32> to vector<384x4xf32>
    %c3_162 = arith.constant 3 : index
    %c3_163 = arith.constant 3 : index
    %c0_164 = arith.constant 0 : index
    %c0_165 = arith.constant 0 : index
    %113 = vector.load %arg1[%c3_162, %c3_163, %c0_164, %c0_165] : memref<5x5x4x8xf32, #tpu.memory_space<vmem>>, vector<1x1x4x8xf32>
    %114 = vector.shape_cast %113 : vector<1x1x4x8xf32> to vector<4x8xf32>
    %cst_166 = arith.constant dense<0.000000e+00> : vector<384x8xf32>
    %115 = tpu.matmul %112, %114, %cst_166 {dimension_numbers = #tpu.dot_dimension_numbers<[1], [0], [0], [1], [0, 0, 1, 1], [], []>} : vector<384x4xf32>, vector<4x8xf32>, vector<384x8xf32> -> vector<384x8xf32>
    %116 = arith.addf %110, %115 : vector<384x8xf32>
    %c0_167 = arith.constant 0 : index
    %c3_168 = arith.constant 3 : index
    %c4_169 = arith.constant 4 : index
    %c0_170 = arith.constant 0 : index
    %117 = vector.load %arg0[%c0_167, %c3_168, %c4_169, %c0_170] : memref<2x16x20x4xf32, #tpu.memory_space<vmem>>, vector<2x12x16x4xf32>
    %118 = vector.shape_cast %117 : vector<2x12x16x4xf32> to vector<384x4xf32>
    %c3_171 = arith.constant 3 : index
    %c4_172 = arith.constant 4 : index
    %c0_173 = arith.constant 0 : index
    %c0_174 = arith.constant 0 : index
    %119 = vector.load %arg1[%c3_171, %c4_172, %c0_173, %c0_174] : memref<5x5x4x8xf32, #tpu.memory_space<vmem>>, vector<1x1x4x8xf32>
    %120 = vector.shape_cast %119 : vector<1x1x4x8xf32> to vector<4x8xf32>
    %cst_175 = arith.constant dense<0.000000e+00> : vector<384x8xf32>
    %121 = tpu.matmul %118, %120, %cst_175 {dimension_numbers = #tpu.dot_dimension_numbers<[1], [0], [0], [1], [0, 0, 1, 1], [], []>} : vector<384x4xf32>, vector<4x8xf32>, vector<384x8xf32> -> vector<384x8xf32>
    %122 = arith.addf %116, %121 : vector<384x8xf32>
    %c0_176 = arith.constant 0 : index
    %c4_177 = arith.constant 4 : index
    %c0_178 = arith.constant 0 : index
    %c0_179 = arith.constant 0 : index
    %123 = vector.load %arg0[%c0_176, %c4_177, %c0_178, %c0_179] : memref<2x16x20x4xf32, #tpu.memory_space<vmem>>, vector<2x12x16x4xf32>
    %124 = vector.shape_cast %123 : vector<2x12x16x4xf32> to vector<384x4xf32>
    %c4_180 = arith.constant 4 : index
    %c0_181 = arith.constant 0 : index
    %c0_182 = arith.constant 0 : index
    %c0_183 = arith.constant 0 : index
    %125 = vector.load %arg1[%c4_180, %c0_181, %c0_182, %c0_183] : memref<5x5x4x8xf32, #tpu.memory_space<vmem>>, vector<1x1x4x8xf32>
    %126 = vector.shape_cast %125 : vector<1x1x4x8xf32> to vector<4x8xf32>
    %cst_184 = arith.constant dense<0.000000e+00> : vector<384x8xf32>
    %127 = tpu.matmul %124, %126, %cst_184 {dimension_numbers = #tpu.dot_dimension_numbers<[1], [0], [0], [1], [0, 0, 1, 1], [], []>} : vector<384x4xf32>, vector<4x8xf32>, vector<384x8xf32> -> vector<384x8xf32>
    %128 = arith.addf %122, %127 : vector<384x8xf32>
    %c0_185 = arith.constant 0 : index
    %c4_186 = arith.constant 4 : index
    %c1_187 = arith.constant 1 : index
    %c0_188 = arith.constant 0 : index
    %129 = vector.load %arg0[%c0_185, %c4_186, %c1_187, %c0_188] : memref<2x16x20x4xf32, #tpu.memory_space<vmem>>, vector<2x12x16x4xf32>
    %130 = vector.shape_cast %129 : vector<2x12x16x4xf32> to vector<384x4xf32>
    %c4_189 = arith.constant 4 : index
    %c1_190 = arith.constant 1 : index
    %c0_191 = arith.constant 0 : index
    %c0_192 = arith.constant 0 : index
    %131 = vector.load %arg1[%c4_189, %c1_190, %c0_191, %c0_192] : memref<5x5x4x8xf32, #tpu.memory_space<vmem>>, vector<1x1x4x8xf32>
    %132 = vector.shape_cast %131 : vector<1x1x4x8xf32> to vector<4x8xf32>
    %cst_193 = arith.constant dense<0.000000e+00> : vector<384x8xf32>
    %133 = tpu.matmul %130, %132, %cst_193 {dimension_numbers = #tpu.dot_dimension_numbers<[1], [0], [0], [1], [0, 0, 1, 1], [], []>} : vector<384x4xf32>, vector<4x8xf32>, vector<384x8xf32> -> vector<384x8xf32>
    %134 = arith.addf %128, %133 : vector<384x8xf32>
    %c0_194 = arith.constant 0 : index
    %c4_195 = arith.constant 4 : index
    %c2_196 = arith.constant 2 : index
    %c0_197 = arith.constant 0 : index
    %135 = vector.load %arg0[%c0_194, %c4_195, %c2_196, %c0_197] : memref<2x16x20x4xf32, #tpu.memory_space<vmem>>, vector<2x12x16x4xf32>
    %136 = vector.shape_cast %135 : vector<2x12x16x4xf32> to vector<384x4xf32>
    %c4_198 = arith.constant 4 : index
    %c2_199 = arith.constant 2 : index
    %c0_200 = arith.constant 0 : index
    %c0_201 = arith.constant 0 : index
    %137 = vector.load %arg1[%c4_198, %c2_199, %c0_200, %c0_201] : memref<5x5x4x8xf32, #tpu.memory_space<vmem>>, vector<1x1x4x8xf32>
    %138 = vector.shape_cast %137 : vector<1x1x4x8xf32> to vector<4x8xf32>
    %cst_202 = arith.constant dense<0.000000e+00> : vector<384x8xf32>
    %139 = tpu.matmul %136, %138, %cst_202 {dimension_numbers = #tpu.dot_dimension_numbers<[1], [0], [0], [1], [0, 0, 1, 1], [], []>} : vector<384x4xf32>, vector<4x8xf32>, vector<384x8xf32> -> vector<384x8xf32>
    %140 = arith.addf %134, %139 : vector<384x8xf32>
    %c0_203 = arith.constant 0 : index
    %c4_204 = arith.constant 4 : index
    %c3_205 = arith.constant 3 : index
    %c0_206 = arith.constant 0 : index
    %141 = vector.load %arg0[%c0_203, %c4_204, %c3_205, %c0_206] : memref<2x16x20x4xf32, #tpu.memory_space<vmem>>, vector<2x12x16x4xf32>
    %142 = vector.shape_cast %141 : vector<2x12x16x4xf32> to vector<384x4xf32>
    %c4_207 = arith.constant 4 : index
    %c3_208 = arith.constant 3 : index
    %c0_209 = arith.constant 0 : index
    %c0_210 = arith.constant 0 : index
    %143 = vector.load %arg1[%c4_207, %c3_208, %c0_209, %c0_210] : memref<5x5x4x8xf32, #tpu.memory_space<vmem>>, vector<1x1x4x8xf32>
    %144 = vector.shape_cast %143 : vector<1x1x4x8xf32> to vector<4x8xf32>
    %cst_211 = arith.constant dense<0.000000e+00> : vector<384x8xf32>
    %145 = tpu.matmul %142, %144, %cst_211 {dimension_numbers = #tpu.dot_dimension_numbers<[1], [0], [0], [1], [0, 0, 1, 1], [], []>} : vector<384x4xf32>, vector<4x8xf32>, vector<384x8xf32> -> vector<384x8xf32>
    %146 = arith.addf %140, %145 : vector<384x8xf32>
    %c0_212 = arith.constant 0 : index
    %c4_213 = arith.constant 4 : index
    %c4_214 = arith.constant 4 : index
    %c0_215 = arith.constant 0 : index
    %147 = vector.load %arg0[%c0_212, %c4_213, %c4_214, %c0_215] : memref<2x16x20x4xf32, #tpu.memory_space<vmem>>, vector<2x12x16x4xf32>
    %148 = vector.shape_cast %147 : vector<2x12x16x4xf32> to vector<384x4xf32>
    %c4_216 = arith.constant 4 : index
    %c4_217 = arith.constant 4 : index
    %c0_218 = arith.constant 0 : index
    %c0_219 = arith.constant 0 : index
    %149 = vector.load %arg1[%c4_216, %c4_217, %c0_218, %c0_219] : memref<5x5x4x8xf32, #tpu.memory_space<vmem>>, vector<1x1x4x8xf32>
    %150 = vector.shape_cast %149 : vector<1x1x4x8xf32> to vector<4x8xf32>
    %cst_220 = arith.constant dense<0.000000e+00> : vector<384x8xf32>
    %151 = tpu.matmul %148, %150, %cst_220 {dimension_numbers = #tpu.dot_dimension_numbers<[1], [0], [0], [1], [0, 0, 1, 1], [], []>} : vector<384x4xf32>, vector<4x8xf32>, vector<384x8xf32> -> vector<384x8xf32>
    %152 = arith.addf %146, %151 : vector<384x8xf32>
    %cst_221 = arith.constant 0.000000e+00 : f32
    %153 = vector.broadcast %cst_221 : f32 to vector<384x8xf32>
    %154 = arith.maximumf %152, %153 : vector<384x8xf32>
    %155 = vector.shape_cast %154 : vector<384x8xf32> to vector<2x12x16x8xf32>
    %156 = vector.shape_cast %155 : vector<2x12x16x8xf32> to vector<2x6x2x16x8xf32>
    %157 = vector.extract_strided_slice %156 {offsets = [0, 0, 0, 0, 0], sizes = [2, 6, 1, 16, 8], strides = [1, 1, 1, 1, 1]} : vector<2x6x2x16x8xf32> to vector<2x6x1x16x8xf32>
    %158 = vector.shape_cast %157 : vector<2x6x1x16x8xf32> to vector<2x6x16x8xf32>
    %159 = vector.extract_strided_slice %156 {offsets = [0, 0, 1, 0, 0], sizes = [2, 6, 1, 16, 8], strides = [1, 1, 1, 1, 1]} : vector<2x6x2x16x8xf32> to vector<2x6x1x16x8xf32>
    %160 = vector.shape_cast %159 : vector<2x6x1x16x8xf32> to vector<2x6x16x8xf32>
    %161 = arith.maximumf %158, %160 : vector<2x6x16x8xf32>
    %162 = vector.extract_strided_slice %161 {offsets = [0, 0, 0, 0], sizes = [2, 6, 15, 8], strides = [1, 1, 1, 1]} : vector<2x6x16x8xf32> to vector<2x6x15x8xf32>
    %163 = vector.extract_strided_slice %161 {offsets = [0, 0, 1, 0], sizes = [2, 6, 15, 8], strides = [1, 1, 1, 1]} : vector<2x6x16x8xf32> to vector<2x6x15x8xf32>
    %164 = arith.maximumf %162, %163 : vector<2x6x15x8xf32>
    %c0_222 = arith.constant 0 : index
    %c0_223 = arith.constant 0 : index
    %c0_224 = arith.constant 0 : index
    %c0_225 = arith.constant 0 : index
    %165 = vector.load %arg12[%c0_222, %c0_223, %c0_224, %c0_225] : memref<2x6x15x8xf32, #tpu.memory_space<vmem>>, vector<2x6x15x8xf32>
    tpu.vector_store %arg12[%c0_222, %c0_223, %c0_224, %c0_225], %164 {strides = array<i32>} : memref<2x6x15x8xf32, #tpu.memory_space<vmem>>, vector<2x6x15x8xf32>,
    %c0_226 = arith.constant 0 : index
    %c0_227 = arith.constant 0 : index
    %166 = vector.load %arg3[%c0_226, %c0_227] : memref<200x16xf32, #tpu.memory_space<vmem>>, vector<200x16xf32>
    %c0_228 = arith.constant 0 : index
    %c0_229 = arith.constant 0 : index
    %c0_230 = arith.constant 0 : index
    %c0_231 = arith.constant 0 : index
    %167 = vector.load %arg12[%c0_228, %c0_229, %c0_230, %c0_231] : memref<2x6x15x8xf32, #tpu.memory_space<vmem>>, vector<2x1x1x8xf32>
    %168 = vector.shape_cast %167 : vector<2x1x1x8xf32> to vector<2x8xf32>
    %c0_232 = arith.constant 0 : index
    %c0_233 = arith.constant 0 : index
    %c2_234 = arith.constant 2 : index
    %c0_235 = arith.constant 0 : index
    %169 = vector.load %arg12[%c0_232, %c0_233, %c2_234, %c0_235] : memref<2x6x15x8xf32, #tpu.memory_space<vmem>>, vector<2x1x1x8xf32>
    %170 = vector.shape_cast %169 : vector<2x1x1x8xf32> to vector<2x8xf32>
    %c0_236 = arith.constant 0 : index
    %c0_237 = arith.constant 0 : index
    %c4_238 = arith.constant 4 : index
    %c0_239 = arith.constant 0 : index
    %171 = vector.load %arg12[%c0_236, %c0_237, %c4_238, %c0_239] : memref<2x6x15x8xf32, #tpu.memory_space<vmem>>, vector<2x1x1x8xf32>
    %172 = vector.shape_cast %171 : vector<2x1x1x8xf32> to vector<2x8xf32>
    %c0_240 = arith.constant 0 : index
    %c0_241 = arith.constant 0 : index
    %c6 = arith.constant 6 : index
    %c0_242 = arith.constant 0 : index
    %173 = vector.load %arg12[%c0_240, %c0_241, %c6, %c0_242] : memref<2x6x15x8xf32, #tpu.memory_space<vmem>>, vector<2x1x1x8xf32>
    %174 = vector.shape_cast %173 : vector<2x1x1x8xf32> to vector<2x8xf32>
    %c0_243 = arith.constant 0 : index
    %c0_244 = arith.constant 0 : index
    %c8 = arith.constant 8 : index
    %c0_245 = arith.constant 0 : index
    %175 = vector.load %arg12[%c0_243, %c0_244, %c8, %c0_245] : memref<2x6x15x8xf32, #tpu.memory_space<vmem>>, vector<2x1x1x8xf32>
    %176 = vector.shape_cast %175 : vector<2x1x1x8xf32> to vector<2x8xf32>
    %c0_246 = arith.constant 0 : index
    %c1_247 = arith.constant 1 : index
    %c0_248 = arith.constant 0 : index
    %c0_249 = arith.constant 0 : index
    %177 = vector.load %arg12[%c0_246, %c1_247, %c0_248, %c0_249] : memref<2x6x15x8xf32, #tpu.memory_space<vmem>>, vector<2x1x1x8xf32>
    %178 = vector.shape_cast %177 : vector<2x1x1x8xf32> to vector<2x8xf32>
    %c0_250 = arith.constant 0 : index
    %c1_251 = arith.constant 1 : index
    %c2_252 = arith.constant 2 : index
    %c0_253 = arith.constant 0 : index
    %179 = vector.load %arg12[%c0_250, %c1_251, %c2_252, %c0_253] : memref<2x6x15x8xf32, #tpu.memory_space<vmem>>, vector<2x1x1x8xf32>
    %180 = vector.shape_cast %179 : vector<2x1x1x8xf32> to vector<2x8xf32>
    %c0_254 = arith.constant 0 : index
    %c1_255 = arith.constant 1 : index
    %c4_256 = arith.constant 4 : index
    %c0_257 = arith.constant 0 : index
    %181 = vector.load %arg12[%c0_254, %c1_255, %c4_256, %c0_257] : memref<2x6x15x8xf32, #tpu.memory_space<vmem>>, vector<2x1x1x8xf32>
    %182 = vector.shape_cast %181 : vector<2x1x1x8xf32> to vector<2x8xf32>
    %c0_258 = arith.constant 0 : index
    %c1_259 = arith.constant 1 : index
    %c6_260 = arith.constant 6 : index
    %c0_261 = arith.constant 0 : index
    %183 = vector.load %arg12[%c0_258, %c1_259, %c6_260, %c0_261] : memref<2x6x15x8xf32, #tpu.memory_space<vmem>>, vector<2x1x1x8xf32>
    %184 = vector.shape_cast %183 : vector<2x1x1x8xf32> to vector<2x8xf32>
    %c0_262 = arith.constant 0 : index
    %c1_263 = arith.constant 1 : index
    %c8_264 = arith.constant 8 : index
    %c0_265 = arith.constant 0 : index
    %185 = vector.load %arg12[%c0_262, %c1_263, %c8_264, %c0_265] : memref<2x6x15x8xf32, #tpu.memory_space<vmem>>, vector<2x1x1x8xf32>
    %186 = vector.shape_cast %185 : vector<2x1x1x8xf32> to vector<2x8xf32>
    %c0_266 = arith.constant 0 : index
    %c2_267 = arith.constant 2 : index
    %c0_268 = arith.constant 0 : index
    %c0_269 = arith.constant 0 : index
    %187 = vector.load %arg12[%c0_266, %c2_267, %c0_268, %c0_269] : memref<2x6x15x8xf32, #tpu.memory_space<vmem>>, vector<2x1x1x8xf32>
    %188 = vector.shape_cast %187 : vector<2x1x1x8xf32> to vector<2x8xf32>
    %c0_270 = arith.constant 0 : index
    %c2_271 = arith.constant 2 : index
    %c2_272 = arith.constant 2 : index
    %c0_273 = arith.constant 0 : index
    %189 = vector.load %arg12[%c0_270, %c2_271, %c2_272, %c0_273] : memref<2x6x15x8xf32, #tpu.memory_space<vmem>>, vector<2x1x1x8xf32>
    %190 = vector.shape_cast %189 : vector<2x1x1x8xf32> to vector<2x8xf32>
    %c0_274 = arith.constant 0 : index
    %c2_275 = arith.constant 2 : index
    %c4_276 = arith.constant 4 : index
    %c0_277 = arith.constant 0 : index
    %191 = vector.load %arg12[%c0_274, %c2_275, %c4_276, %c0_277] : memref<2x6x15x8xf32, #tpu.memory_space<vmem>>, vector<2x1x1x8xf32>
    %192 = vector.shape_cast %191 : vector<2x1x1x8xf32> to vector<2x8xf32>
    %c0_278 = arith.constant 0 : index
    %c2_279 = arith.constant 2 : index
    %c6_280 = arith.constant 6 : index
    %c0_281 = arith.constant 0 : index
    %193 = vector.load %arg12[%c0_278, %c2_279, %c6_280, %c0_281] : memref<2x6x15x8xf32, #tpu.memory_space<vmem>>, vector<2x1x1x8xf32>
    %194 = vector.shape_cast %193 : vector<2x1x1x8xf32> to vector<2x8xf32>
    %c0_282 = arith.constant 0 : index
    %c2_283 = arith.constant 2 : index
    %c8_284 = arith.constant 8 : index
    %c0_285 = arith.constant 0 : index
    %195 = vector.load %arg12[%c0_282, %c2_283, %c8_284, %c0_285] : memref<2x6x15x8xf32, #tpu.memory_space<vmem>>, vector<2x1x1x8xf32>
    %196 = vector.shape_cast %195 : vector<2x1x1x8xf32> to vector<2x8xf32>
    %c0_286 = arith.constant 0 : index
    %c3_287 = arith.constant 3 : index
    %c0_288 = arith.constant 0 : index
    %c0_289 = arith.constant 0 : index
    %197 = vector.load %arg12[%c0_286, %c3_287, %c0_288, %c0_289] : memref<2x6x15x8xf32, #tpu.memory_space<vmem>>, vector<2x1x1x8xf32>
    %198 = vector.shape_cast %197 : vector<2x1x1x8xf32> to vector<2x8xf32>
    %c0_290 = arith.constant 0 : index
    %c3_291 = arith.constant 3 : index
    %c2_292 = arith.constant 2 : index
    %c0_293 = arith.constant 0 : index
    %199 = vector.load %arg12[%c0_290, %c3_291, %c2_292, %c0_293] : memref<2x6x15x8xf32, #tpu.memory_space<vmem>>, vector<2x1x1x8xf32>
    %200 = vector.shape_cast %199 : vector<2x1x1x8xf32> to vector<2x8xf32>
    %c0_294 = arith.constant 0 : index
    %c3_295 = arith.constant 3 : index
    %c4_296 = arith.constant 4 : index
    %c0_297 = arith.constant 0 : index
    %201 = vector.load %arg12[%c0_294, %c3_295, %c4_296, %c0_297] : memref<2x6x15x8xf32, #tpu.memory_space<vmem>>, vector<2x1x1x8xf32>
    %202 = vector.shape_cast %201 : vector<2x1x1x8xf32> to vector<2x8xf32>
    %c0_298 = arith.constant 0 : index
    %c3_299 = arith.constant 3 : index
    %c6_300 = arith.constant 6 : index
    %c0_301 = arith.constant 0 : index
    %203 = vector.load %arg12[%c0_298, %c3_299, %c6_300, %c0_301] : memref<2x6x15x8xf32, #tpu.memory_space<vmem>>, vector<2x1x1x8xf32>
    %204 = vector.shape_cast %203 : vector<2x1x1x8xf32> to vector<2x8xf32>
    %c0_302 = arith.constant 0 : index
    %c3_303 = arith.constant 3 : index
    %c8_304 = arith.constant 8 : index
    %c0_305 = arith.constant 0 : index
    %205 = vector.load %arg12[%c0_302, %c3_303, %c8_304, %c0_305] : memref<2x6x15x8xf32, #tpu.memory_space<vmem>>, vector<2x1x1x8xf32>
    %206 = vector.shape_cast %205 : vector<2x1x1x8xf32> to vector<2x8xf32>
    %c0_306 = arith.constant 0 : index
    %c4_307 = arith.constant 4 : index
    %c0_308 = arith.constant 0 : index
    %c0_309 = arith.constant 0 : index
    %207 = vector.load %arg12[%c0_306, %c4_307, %c0_308, %c0_309] : memref<2x6x15x8xf32, #tpu.memory_space<vmem>>, vector<2x1x1x8xf32>
    %208 = vector.shape_cast %207 : vector<2x1x1x8xf32> to vector<2x8xf32>
    %c0_310 = arith.constant 0 : index
    %c4_311 = arith.constant 4 : index
    %c2_312 = arith.constant 2 : index
    %c0_313 = arith.constant 0 : index
    %209 = vector.load %arg12[%c0_310, %c4_311, %c2_312, %c0_313] : memref<2x6x15x8xf32, #tpu.memory_space<vmem>>, vector<2x1x1x8xf32>
    %210 = vector.shape_cast %209 : vector<2x1x1x8xf32> to vector<2x8xf32>
    %c0_314 = arith.constant 0 : index
    %c4_315 = arith.constant 4 : index
    %c4_316 = arith.constant 4 : index
    %c0_317 = arith.constant 0 : index
    %211 = vector.load %arg12[%c0_314, %c4_315, %c4_316, %c0_317] : memref<2x6x15x8xf32, #tpu.memory_space<vmem>>, vector<2x1x1x8xf32>
    %212 = vector.shape_cast %211 : vector<2x1x1x8xf32> to vector<2x8xf32>
    %c0_318 = arith.constant 0 : index
    %c4_319 = arith.constant 4 : index
    %c6_320 = arith.constant 6 : index
    %c0_321 = arith.constant 0 : index
    %213 = vector.load %arg12[%c0_318, %c4_319, %c6_320, %c0_321] : memref<2x6x15x8xf32, #tpu.memory_space<vmem>>, vector<2x1x1x8xf32>
    %214 = vector.shape_cast %213 : vector<2x1x1x8xf32> to vector<2x8xf32>
    %c0_322 = arith.constant 0 : index
    %c4_323 = arith.constant 4 : index
    %c8_324 = arith.constant 8 : index
    %c0_325 = arith.constant 0 : index
    %215 = vector.load %arg12[%c0_322, %c4_323, %c8_324, %c0_325] : memref<2x6x15x8xf32, #tpu.memory_space<vmem>>, vector<2x1x1x8xf32>
    %216 = vector.shape_cast %215 : vector<2x1x1x8xf32> to vector<2x8xf32>
    %217 = tpu.concatenate %168, %170, %172, %174, %176, %178, %180, %182, %184, %186, %188, %190, %192, %194, %196, %198 in 1 : vector<2x8xf32>, vector<2x8xf32>, vector<2x8xf32>, vector<2x8xf32>, vector<2x8xf32>, vector<2x8xf32>, vector<2x8xf32>, vector<2x8xf32>, vector<2x8xf32>, vector<2x8xf32>, vector<2x8xf32>, vector<2x8xf32>, vector<2x8xf32>, vector<2x8xf32>, vector<2x8xf32>, vector<2x8xf32> -> vector<2x128xf32>
    %218 = tpu.concatenate %200, %202, %204, %206, %208, %210, %212, %214, %216 in 1 : vector<2x8xf32>, vector<2x8xf32>, vector<2x8xf32>, vector<2x8xf32>, vector<2x8xf32>, vector<2x8xf32>, vector<2x8xf32>, vector<2x8xf32>, vector<2x8xf32> -> vector<2x72xf32>
    %219 = tpu.concatenate %217, %218 in 1 : vector<2x128xf32>, vector<2x72xf32> -> vector<2x200xf32>
    %cst_326 = arith.constant dense<0.000000e+00> : vector<2x16xf32>
    %220 = tpu.matmul %219, %166, %cst_326 {dimension_numbers = #tpu.dot_dimension_numbers<[1], [0], [0], [1], [0, 0, 1, 1], [], []>} : vector<2x200xf32>, vector<200x16xf32>, vector<2x16xf32> -> vector<2x16xf32>
    %c0_327 = arith.constant 0 : index
    %c0_328 = arith.constant 0 : index
    %c2_329 = arith.constant 2 : index
    %c0_330 = arith.constant 0 : index
    %221 = vector.load %arg12[%c0_327, %c0_328, %c2_329, %c0_330] : memref<2x6x15x8xf32, #tpu.memory_space<vmem>>, vector<2x1x1x8xf32>
    %222 = vector.shape_cast %221 : vector<2x1x1x8xf32> to vector<2x8xf32>
    %c0_331 = arith.constant 0 : index
    %c0_332 = arith.constant 0 : index
    %c4_333 = arith.constant 4 : index
    %c0_334 = arith.constant 0 : index
    %223 = vector.load %arg12[%c0_331, %c0_332, %c4_333, %c0_334] : memref<2x6x15x8xf32, #tpu.memory_space<vmem>>, vector<2x1x1x8xf32>
    %224 = vector.shape_cast %223 : vector<2x1x1x8xf32> to vector<2x8xf32>
    %c0_335 = arith.constant 0 : index
    %c0_336 = arith.constant 0 : index
    %c6_337 = arith.constant 6 : index
    %c0_338 = arith.constant 0 : index
    %225 = vector.load %arg12[%c0_335, %c0_336, %c6_337, %c0_338] : memref<2x6x15x8xf32, #tpu.memory_space<vmem>>, vector<2x1x1x8xf32>
    %226 = vector.shape_cast %225 : vector<2x1x1x8xf32> to vector<2x8xf32>
    %c0_339 = arith.constant 0 : index
    %c0_340 = arith.constant 0 : index
    %c8_341 = arith.constant 8 : index
    %c0_342 = arith.constant 0 : index
    %227 = vector.load %arg12[%c0_339, %c0_340, %c8_341, %c0_342] : memref<2x6x15x8xf32, #tpu.memory_space<vmem>>, vector<2x1x1x8xf32>
    %228 = vector.shape_cast %227 : vector<2x1x1x8xf32> to vector<2x8xf32>
    %c0_343 = arith.constant 0 : index
    %c0_344 = arith.constant 0 : index
    %c10 = arith.constant 10 : index
    %c0_345 = arith.constant 0 : index
    %229 = vector.load %arg12[%c0_343, %c0_344, %c10, %c0_345] : memref<2x6x15x8xf32, #tpu.memory_space<vmem>>, vector<2x1x1x8xf32>
    %230 = vector.shape_cast %229 : vector<2x1x1x8xf32> to vector<2x8xf32>
    %c0_346 = arith.constant 0 : index
    %c1_347 = arith.constant 1 : index
    %c2_348 = arith.constant 2 : index
    %c0_349 = arith.constant 0 : index
    %231 = vector.load %arg12[%c0_346, %c1_347, %c2_348, %c0_349] : memref<2x6x15x8xf32, #tpu.memory_space<vmem>>, vector<2x1x1x8xf32>
    %232 = vector.shape_cast %231 : vector<2x1x1x8xf32> to vector<2x8xf32>
    %c0_350 = arith.constant 0 : index
    %c1_351 = arith.constant 1 : index
    %c4_352 = arith.constant 4 : index
    %c0_353 = arith.constant 0 : index
    %233 = vector.load %arg12[%c0_350, %c1_351, %c4_352, %c0_353] : memref<2x6x15x8xf32, #tpu.memory_space<vmem>>, vector<2x1x1x8xf32>
    %234 = vector.shape_cast %233 : vector<2x1x1x8xf32> to vector<2x8xf32>
    %c0_354 = arith.constant 0 : index
    %c1_355 = arith.constant 1 : index
    %c6_356 = arith.constant 6 : index
    %c0_357 = arith.constant 0 : index
    %235 = vector.load %arg12[%c0_354, %c1_355, %c6_356, %c0_357] : memref<2x6x15x8xf32, #tpu.memory_space<vmem>>, vector<2x1x1x8xf32>
    %236 = vector.shape_cast %235 : vector<2x1x1x8xf32> to vector<2x8xf32>
    %c0_358 = arith.constant 0 : index
    %c1_359 = arith.constant 1 : index
    %c8_360 = arith.constant 8 : index
    %c0_361 = arith.constant 0 : index
    %237 = vector.load %arg12[%c0_358, %c1_359, %c8_360, %c0_361] : memref<2x6x15x8xf32, #tpu.memory_space<vmem>>, vector<2x1x1x8xf32>
    %238 = vector.shape_cast %237 : vector<2x1x1x8xf32> to vector<2x8xf32>
    %c0_362 = arith.constant 0 : index
    %c1_363 = arith.constant 1 : index
    %c10_364 = arith.constant 10 : index
    %c0_365 = arith.constant 0 : index
    %239 = vector.load %arg12[%c0_362, %c1_363, %c10_364, %c0_365] : memref<2x6x15x8xf32, #tpu.memory_space<vmem>>, vector<2x1x1x8xf32>
    %240 = vector.shape_cast %239 : vector<2x1x1x8xf32> to vector<2x8xf32>
    %c0_366 = arith.constant 0 : index
    %c2_367 = arith.constant 2 : index
    %c2_368 = arith.constant 2 : index
    %c0_369 = arith.constant 0 : index
    %241 = vector.load %arg12[%c0_366, %c2_367, %c2_368, %c0_369] : memref<2x6x15x8xf32, #tpu.memory_space<vmem>>, vector<2x1x1x8xf32>
    %242 = vector.shape_cast %241 : vector<2x1x1x8xf32> to vector<2x8xf32>
    %c0_370 = arith.constant 0 : index
    %c2_371 = arith.constant 2 : index
    %c4_372 = arith.constant 4 : index
    %c0_373 = arith.constant 0 : index
    %243 = vector.load %arg12[%c0_370, %c2_371, %c4_372, %c0_373] : memref<2x6x15x8xf32, #tpu.memory_space<vmem>>, vector<2x1x1x8xf32>
    %244 = vector.shape_cast %243 : vector<2x1x1x8xf32> to vector<2x8xf32>
    %c0_374 = arith.constant 0 : index
    %c2_375 = arith.constant 2 : index
    %c6_376 = arith.constant 6 : index
    %c0_377 = arith.constant 0 : index
    %245 = vector.load %arg12[%c0_374, %c2_375, %c6_376, %c0_377] : memref<2x6x15x8xf32, #tpu.memory_space<vmem>>, vector<2x1x1x8xf32>
    %246 = vector.shape_cast %245 : vector<2x1x1x8xf32> to vector<2x8xf32>
    %c0_378 = arith.constant 0 : index
    %c2_379 = arith.constant 2 : index
    %c8_380 = arith.constant 8 : index
    %c0_381 = arith.constant 0 : index
    %247 = vector.load %arg12[%c0_378, %c2_379, %c8_380, %c0_381] : memref<2x6x15x8xf32, #tpu.memory_space<vmem>>, vector<2x1x1x8xf32>
    %248 = vector.shape_cast %247 : vector<2x1x1x8xf32> to vector<2x8xf32>
    %c0_382 = arith.constant 0 : index
    %c2_383 = arith.constant 2 : index
    %c10_384 = arith.constant 10 : index
    %c0_385 = arith.constant 0 : index
    %249 = vector.load %arg12[%c0_382, %c2_383, %c10_384, %c0_385] : memref<2x6x15x8xf32, #tpu.memory_space<vmem>>, vector<2x1x1x8xf32>
    %250 = vector.shape_cast %249 : vector<2x1x1x8xf32> to vector<2x8xf32>
    %c0_386 = arith.constant 0 : index
    %c3_387 = arith.constant 3 : index
    %c2_388 = arith.constant 2 : index
    %c0_389 = arith.constant 0 : index
    %251 = vector.load %arg12[%c0_386, %c3_387, %c2_388, %c0_389] : memref<2x6x15x8xf32, #tpu.memory_space<vmem>>, vector<2x1x1x8xf32>
    %252 = vector.shape_cast %251 : vector<2x1x1x8xf32> to vector<2x8xf32>
    %c0_390 = arith.constant 0 : index
    %c3_391 = arith.constant 3 : index
    %c4_392 = arith.constant 4 : index
    %c0_393 = arith.constant 0 : index
    %253 = vector.load %arg12[%c0_390, %c3_391, %c4_392, %c0_393] : memref<2x6x15x8xf32, #tpu.memory_space<vmem>>, vector<2x1x1x8xf32>
    %254 = vector.shape_cast %253 : vector<2x1x1x8xf32> to vector<2x8xf32>
    %c0_394 = arith.constant 0 : index
    %c3_395 = arith.constant 3 : index
    %c6_396 = arith.constant 6 : index
    %c0_397 = arith.constant 0 : index
    %255 = vector.load %arg12[%c0_394, %c3_395, %c6_396, %c0_397] : memref<2x6x15x8xf32, #tpu.memory_space<vmem>>, vector<2x1x1x8xf32>
    %256 = vector.shape_cast %255 : vector<2x1x1x8xf32> to vector<2x8xf32>
    %c0_398 = arith.constant 0 : index
    %c3_399 = arith.constant 3 : index
    %c8_400 = arith.constant 8 : index
    %c0_401 = arith.constant 0 : index
    %257 = vector.load %arg12[%c0_398, %c3_399, %c8_400, %c0_401] : memref<2x6x15x8xf32, #tpu.memory_space<vmem>>, vector<2x1x1x8xf32>
    %258 = vector.shape_cast %257 : vector<2x1x1x8xf32> to vector<2x8xf32>
    %c0_402 = arith.constant 0 : index
    %c3_403 = arith.constant 3 : index
    %c10_404 = arith.constant 10 : index
    %c0_405 = arith.constant 0 : index
    %259 = vector.load %arg12[%c0_402, %c3_403, %c10_404, %c0_405] : memref<2x6x15x8xf32, #tpu.memory_space<vmem>>, vector<2x1x1x8xf32>
    %260 = vector.shape_cast %259 : vector<2x1x1x8xf32> to vector<2x8xf32>
    %c0_406 = arith.constant 0 : index
    %c4_407 = arith.constant 4 : index
    %c2_408 = arith.constant 2 : index
    %c0_409 = arith.constant 0 : index
    %261 = vector.load %arg12[%c0_406, %c4_407, %c2_408, %c0_409] : memref<2x6x15x8xf32, #tpu.memory_space<vmem>>, vector<2x1x1x8xf32>
    %262 = vector.shape_cast %261 : vector<2x1x1x8xf32> to vector<2x8xf32>
    %c0_410 = arith.constant 0 : index
    %c4_411 = arith.constant 4 : index
    %c4_412 = arith.constant 4 : index
    %c0_413 = arith.constant 0 : index
    %263 = vector.load %arg12[%c0_410, %c4_411, %c4_412, %c0_413] : memref<2x6x15x8xf32, #tpu.memory_space<vmem>>, vector<2x1x1x8xf32>
    %264 = vector.shape_cast %263 : vector<2x1x1x8xf32> to vector<2x8xf32>
    %c0_414 = arith.constant 0 : index
    %c4_415 = arith.constant 4 : index
    %c6_416 = arith.constant 6 : index
    %c0_417 = arith.constant 0 : index
    %265 = vector.load %arg12[%c0_414, %c4_415, %c6_416, %c0_417] : memref<2x6x15x8xf32, #tpu.memory_space<vmem>>, vector<2x1x1x8xf32>
    %266 = vector.shape_cast %265 : vector<2x1x1x8xf32> to vector<2x8xf32>
    %c0_418 = arith.constant 0 : index
    %c4_419 = arith.constant 4 : index
    %c8_420 = arith.constant 8 : index
    %c0_421 = arith.constant 0 : index
    %267 = vector.load %arg12[%c0_418, %c4_419, %c8_420, %c0_421] : memref<2x6x15x8xf32, #tpu.memory_space<vmem>>, vector<2x1x1x8xf32>
    %268 = vector.shape_cast %267 : vector<2x1x1x8xf32> to vector<2x8xf32>
    %c0_422 = arith.constant 0 : index
    %c4_423 = arith.constant 4 : index
    %c10_424 = arith.constant 10 : index
    %c0_425 = arith.constant 0 : index
    %269 = vector.load %arg12[%c0_422, %c4_423, %c10_424, %c0_425] : memref<2x6x15x8xf32, #tpu.memory_space<vmem>>, vector<2x1x1x8xf32>
    %270 = vector.shape_cast %269 : vector<2x1x1x8xf32> to vector<2x8xf32>
    %271 = tpu.concatenate %222, %224, %226, %228, %230, %232, %234, %236, %238, %240, %242, %244, %246, %248, %250, %252 in 1 : vector<2x8xf32>, vector<2x8xf32>, vector<2x8xf32>, vector<2x8xf32>, vector<2x8xf32>, vector<2x8xf32>, vector<2x8xf32>, vector<2x8xf32>, vector<2x8xf32>, vector<2x8xf32>, vector<2x8xf32>, vector<2x8xf32>, vector<2x8xf32>, vector<2x8xf32>, vector<2x8xf32>, vector<2x8xf32> -> vector<2x128xf32>
    %272 = tpu.concatenate %254, %256, %258, %260, %262, %264, %266, %268, %270 in 1 : vector<2x8xf32>, vector<2x8xf32>, vector<2x8xf32>, vector<2x8xf32>, vector<2x8xf32>, vector<2x8xf32>, vector<2x8xf32>, vector<2x8xf32>, vector<2x8xf32> -> vector<2x72xf32>
    %273 = tpu.concatenate %271, %272 in 1 : vector<2x128xf32>, vector<2x72xf32> -> vector<2x200xf32>
    %cst_426 = arith.constant dense<0.000000e+00> : vector<2x16xf32>
    %274 = tpu.matmul %273, %166, %cst_426 {dimension_numbers = #tpu.dot_dimension_numbers<[1], [0], [0], [1], [0, 0, 1, 1], [], []>} : vector<2x200xf32>, vector<200x16xf32>, vector<2x16xf32> -> vector<2x16xf32>
    %275 = arith.maximumf %220, %274 : vector<2x16xf32>
    %c0_427 = arith.constant 0 : index
    %c1_428 = arith.constant 1 : index
    %c0_429 = arith.constant 0 : index
    %c0_430 = arith.constant 0 : index
    %276 = vector.load %arg12[%c0_427, %c1_428, %c0_429, %c0_430] : memref<2x6x15x8xf32, #tpu.memory_space<vmem>>, vector<2x1x1x8xf32>
    %277 = vector.shape_cast %276 : vector<2x1x1x8xf32> to vector<2x8xf32>
    %c0_431 = arith.constant 0 : index
    %c1_432 = arith.constant 1 : index
    %c2_433 = arith.constant 2 : index
    %c0_434 = arith.constant 0 : index
    %278 = vector.load %arg12[%c0_431, %c1_432, %c2_433, %c0_434] : memref<2x6x15x8xf32, #tpu.memory_space<vmem>>, vector<2x1x1x8xf32>
    %279 = vector.shape_cast %278 : vector<2x1x1x8xf32> to vector<2x8xf32>
    %c0_435 = arith.constant 0 : index
    %c1_436 = arith.constant 1 : index
    %c4_437 = arith.constant 4 : index
    %c0_438 = arith.constant 0 : index
    %280 = vector.load %arg12[%c0_435, %c1_436, %c4_437, %c0_438] : memref<2x6x15x8xf32, #tpu.memory_space<vmem>>, vector<2x1x1x8xf32>
    %281 = vector.shape_cast %280 : vector<2x1x1x8xf32> to vector<2x8xf32>
    %c0_439 = arith.constant 0 : index
    %c1_440 = arith.constant 1 : index
    %c6_441 = arith.constant 6 : index
    %c0_442 = arith.constant 0 : index
    %282 = vector.load %arg12[%c0_439, %c1_440, %c6_441, %c0_442] : memref<2x6x15x8xf32, #tpu.memory_space<vmem>>, vector<2x1x1x8xf32>
    %283 = vector.shape_cast %282 : vector<2x1x1x8xf32> to vector<2x8xf32>
    %c0_443 = arith.constant 0 : index
    %c1_444 = arith.constant 1 : index
    %c8_445 = arith.constant 8 : index
    %c0_446 = arith.constant 0 : index
    %284 = vector.load %arg12[%c0_443, %c1_444, %c8_445, %c0_446] : memref<2x6x15x8xf32, #tpu.memory_space<vmem>>, vector<2x1x1x8xf32>
    %285 = vector.shape_cast %284 : vector<2x1x1x8xf32> to vector<2x8xf32>
    %c0_447 = arith.constant 0 : index
    %c2_448 = arith.constant 2 : index
    %c0_449 = arith.constant 0 : index
    %c0_450 = arith.constant 0 : index
    %286 = vector.load %arg12[%c0_447, %c2_448, %c0_449, %c0_450] : memref<2x6x15x8xf32, #tpu.memory_space<vmem>>, vector<2x1x1x8xf32>
    %287 = vector.shape_cast %286 : vector<2x1x1x8xf32> to vector<2x8xf32>
    %c0_451 = arith.constant 0 : index
    %c2_452 = arith.constant 2 : index
    %c2_453 = arith.constant 2 : index
    %c0_454 = arith.constant 0 : index
    %288 = vector.load %arg12[%c0_451, %c2_452, %c2_453, %c0_454] : memref<2x6x15x8xf32, #tpu.memory_space<vmem>>, vector<2x1x1x8xf32>
    %289 = vector.shape_cast %288 : vector<2x1x1x8xf32> to vector<2x8xf32>
    %c0_455 = arith.constant 0 : index
    %c2_456 = arith.constant 2 : index
    %c4_457 = arith.constant 4 : index
    %c0_458 = arith.constant 0 : index
    %290 = vector.load %arg12[%c0_455, %c2_456, %c4_457, %c0_458] : memref<2x6x15x8xf32, #tpu.memory_space<vmem>>, vector<2x1x1x8xf32>
    %291 = vector.shape_cast %290 : vector<2x1x1x8xf32> to vector<2x8xf32>
    %c0_459 = arith.constant 0 : index
    %c2_460 = arith.constant 2 : index
    %c6_461 = arith.constant 6 : index
    %c0_462 = arith.constant 0 : index
    %292 = vector.load %arg12[%c0_459, %c2_460, %c6_461, %c0_462] : memref<2x6x15x8xf32, #tpu.memory_space<vmem>>, vector<2x1x1x8xf32>
    %293 = vector.shape_cast %292 : vector<2x1x1x8xf32> to vector<2x8xf32>
    %c0_463 = arith.constant 0 : index
    %c2_464 = arith.constant 2 : index
    %c8_465 = arith.constant 8 : index
    %c0_466 = arith.constant 0 : index
    %294 = vector.load %arg12[%c0_463, %c2_464, %c8_465, %c0_466] : memref<2x6x15x8xf32, #tpu.memory_space<vmem>>, vector<2x1x1x8xf32>
    %295 = vector.shape_cast %294 : vector<2x1x1x8xf32> to vector<2x8xf32>
    %c0_467 = arith.constant 0 : index
    %c3_468 = arith.constant 3 : index
    %c0_469 = arith.constant 0 : index
    %c0_470 = arith.constant 0 : index
    %296 = vector.load %arg12[%c0_467, %c3_468, %c0_469, %c0_470] : memref<2x6x15x8xf32, #tpu.memory_space<vmem>>, vector<2x1x1x8xf32>
    %297 = vector.shape_cast %296 : vector<2x1x1x8xf32> to vector<2x8xf32>
    %c0_471 = arith.constant 0 : index
    %c3_472 = arith.constant 3 : index
    %c2_473 = arith.constant 2 : index
    %c0_474 = arith.constant 0 : index
    %298 = vector.load %arg12[%c0_471, %c3_472, %c2_473, %c0_474] : memref<2x6x15x8xf32, #tpu.memory_space<vmem>>, vector<2x1x1x8xf32>
    %299 = vector.shape_cast %298 : vector<2x1x1x8xf32> to vector<2x8xf32>
    %c0_475 = arith.constant 0 : index
    %c3_476 = arith.constant 3 : index
    %c4_477 = arith.constant 4 : index
    %c0_478 = arith.constant 0 : index
    %300 = vector.load %arg12[%c0_475, %c3_476, %c4_477, %c0_478] : memref<2x6x15x8xf32, #tpu.memory_space<vmem>>, vector<2x1x1x8xf32>
    %301 = vector.shape_cast %300 : vector<2x1x1x8xf32> to vector<2x8xf32>
    %c0_479 = arith.constant 0 : index
    %c3_480 = arith.constant 3 : index
    %c6_481 = arith.constant 6 : index
    %c0_482 = arith.constant 0 : index
    %302 = vector.load %arg12[%c0_479, %c3_480, %c6_481, %c0_482] : memref<2x6x15x8xf32, #tpu.memory_space<vmem>>, vector<2x1x1x8xf32>
    %303 = vector.shape_cast %302 : vector<2x1x1x8xf32> to vector<2x8xf32>
    %c0_483 = arith.constant 0 : index
    %c3_484 = arith.constant 3 : index
    %c8_485 = arith.constant 8 : index
    %c0_486 = arith.constant 0 : index
    %304 = vector.load %arg12[%c0_483, %c3_484, %c8_485, %c0_486] : memref<2x6x15x8xf32, #tpu.memory_space<vmem>>, vector<2x1x1x8xf32>
    %305 = vector.shape_cast %304 : vector<2x1x1x8xf32> to vector<2x8xf32>
    %c0_487 = arith.constant 0 : index
    %c4_488 = arith.constant 4 : index
    %c0_489 = arith.constant 0 : index
    %c0_490 = arith.constant 0 : index
    %306 = vector.load %arg12[%c0_487, %c4_488, %c0_489, %c0_490] : memref<2x6x15x8xf32, #tpu.memory_space<vmem>>, vector<2x1x1x8xf32>
    %307 = vector.shape_cast %306 : vector<2x1x1x8xf32> to vector<2x8xf32>
    %c0_491 = arith.constant 0 : index
    %c4_492 = arith.constant 4 : index
    %c2_493 = arith.constant 2 : index
    %c0_494 = arith.constant 0 : index
    %308 = vector.load %arg12[%c0_491, %c4_492, %c2_493, %c0_494] : memref<2x6x15x8xf32, #tpu.memory_space<vmem>>, vector<2x1x1x8xf32>
    %309 = vector.shape_cast %308 : vector<2x1x1x8xf32> to vector<2x8xf32>
    %c0_495 = arith.constant 0 : index
    %c4_496 = arith.constant 4 : index
    %c4_497 = arith.constant 4 : index
    %c0_498 = arith.constant 0 : index
    %310 = vector.load %arg12[%c0_495, %c4_496, %c4_497, %c0_498] : memref<2x6x15x8xf32, #tpu.memory_space<vmem>>, vector<2x1x1x8xf32>
    %311 = vector.shape_cast %310 : vector<2x1x1x8xf32> to vector<2x8xf32>
    %c0_499 = arith.constant 0 : index
    %c4_500 = arith.constant 4 : index
    %c6_501 = arith.constant 6 : index
    %c0_502 = arith.constant 0 : index
    %312 = vector.load %arg12[%c0_499, %c4_500, %c6_501, %c0_502] : memref<2x6x15x8xf32, #tpu.memory_space<vmem>>, vector<2x1x1x8xf32>
    %313 = vector.shape_cast %312 : vector<2x1x1x8xf32> to vector<2x8xf32>
    %c0_503 = arith.constant 0 : index
    %c4_504 = arith.constant 4 : index
    %c8_505 = arith.constant 8 : index
    %c0_506 = arith.constant 0 : index
    %314 = vector.load %arg12[%c0_503, %c4_504, %c8_505, %c0_506] : memref<2x6x15x8xf32, #tpu.memory_space<vmem>>, vector<2x1x1x8xf32>
    %315 = vector.shape_cast %314 : vector<2x1x1x8xf32> to vector<2x8xf32>
    %c0_507 = arith.constant 0 : index
    %c5 = arith.constant 5 : index
    %c0_508 = arith.constant 0 : index
    %c0_509 = arith.constant 0 : index
    %316 = vector.load %arg12[%c0_507, %c5, %c0_508, %c0_509] : memref<2x6x15x8xf32, #tpu.memory_space<vmem>>, vector<2x1x1x8xf32>
    %317 = vector.shape_cast %316 : vector<2x1x1x8xf32> to vector<2x8xf32>
    %c0_510 = arith.constant 0 : index
    %c5_511 = arith.constant 5 : index
    %c2_512 = arith.constant 2 : index
    %c0_513 = arith.constant 0 : index
    %318 = vector.load %arg12[%c0_510, %c5_511, %c2_512, %c0_513] : memref<2x6x15x8xf32, #tpu.memory_space<vmem>>, vector<2x1x1x8xf32>
    %319 = vector.shape_cast %318 : vector<2x1x1x8xf32> to vector<2x8xf32>
    %c0_514 = arith.constant 0 : index
    %c5_515 = arith.constant 5 : index
    %c4_516 = arith.constant 4 : index
    %c0_517 = arith.constant 0 : index
    %320 = vector.load %arg12[%c0_514, %c5_515, %c4_516, %c0_517] : memref<2x6x15x8xf32, #tpu.memory_space<vmem>>, vector<2x1x1x8xf32>
    %321 = vector.shape_cast %320 : vector<2x1x1x8xf32> to vector<2x8xf32>
    %c0_518 = arith.constant 0 : index
    %c5_519 = arith.constant 5 : index
    %c6_520 = arith.constant 6 : index
    %c0_521 = arith.constant 0 : index
    %322 = vector.load %arg12[%c0_518, %c5_519, %c6_520, %c0_521] : memref<2x6x15x8xf32, #tpu.memory_space<vmem>>, vector<2x1x1x8xf32>
    %323 = vector.shape_cast %322 : vector<2x1x1x8xf32> to vector<2x8xf32>
    %c0_522 = arith.constant 0 : index
    %c5_523 = arith.constant 5 : index
    %c8_524 = arith.constant 8 : index
    %c0_525 = arith.constant 0 : index
    %324 = vector.load %arg12[%c0_522, %c5_523, %c8_524, %c0_525] : memref<2x6x15x8xf32, #tpu.memory_space<vmem>>, vector<2x1x1x8xf32>
    %325 = vector.shape_cast %324 : vector<2x1x1x8xf32> to vector<2x8xf32>
    %326 = tpu.concatenate %277, %279, %281, %283, %285, %287, %289, %291, %293, %295, %297, %299, %301, %303, %305, %307 in 1 : vector<2x8xf32>, vector<2x8xf32>, vector<2x8xf32>, vector<2x8xf32>, vector<2x8xf32>, vector<2x8xf32>, vector<2x8xf32>, vector<2x8xf32>, vector<2x8xf32>, vector<2x8xf32>, vector<2x8xf32>, vector<2x8xf32>, vector<2x8xf32>, vector<2x8xf32>, vector<2x8xf32>, vector<2x8xf32> -> vector<2x128xf32>
    %327 = tpu.concatenate %309, %311, %313, %315, %317, %319, %321, %323, %325 in 1 : vector<2x8xf32>, vector<2x8xf32>, vector<2x8xf32>, vector<2x8xf32>, vector<2x8xf32>, vector<2x8xf32>, vector<2x8xf32>, vector<2x8xf32>, vector<2x8xf32> -> vector<2x72xf32>
    %328 = tpu.concatenate %326, %327 in 1 : vector<2x128xf32>, vector<2x72xf32> -> vector<2x200xf32>
    %cst_526 = arith.constant dense<0.000000e+00> : vector<2x16xf32>
    %329 = tpu.matmul %328, %166, %cst_526 {dimension_numbers = #tpu.dot_dimension_numbers<[1], [0], [0], [1], [0, 0, 1, 1], [], []>} : vector<2x200xf32>, vector<200x16xf32>, vector<2x16xf32> -> vector<2x16xf32>
    %330 = arith.maximumf %275, %329 : vector<2x16xf32>
    %c0_527 = arith.constant 0 : index
    %c1_528 = arith.constant 1 : index
    %c2_529 = arith.constant 2 : index
    %c0_530 = arith.constant 0 : index
    %331 = vector.load %arg12[%c0_527, %c1_528, %c2_529, %c0_530] : memref<2x6x15x8xf32, #tpu.memory_space<vmem>>, vector<2x1x1x8xf32>
    %332 = vector.shape_cast %331 : vector<2x1x1x8xf32> to vector<2x8xf32>
    %c0_531 = arith.constant 0 : index
    %c1_532 = arith.constant 1 : index
    %c4_533 = arith.constant 4 : index
    %c0_534 = arith.constant 0 : index
    %333 = vector.load %arg12[%c0_531, %c1_532, %c4_533, %c0_534] : memref<2x6x15x8xf32, #tpu.memory_space<vmem>>, vector<2x1x1x8xf32>
    %334 = vector.shape_cast %333 : vector<2x1x1x8xf32> to vector<2x8xf32>
    %c0_535 = arith.constant 0 : index
    %c1_536 = arith.constant 1 : index
    %c6_537 = arith.constant 6 : index
    %c0_538 = arith.constant 0 : index
    %335 = vector.load %arg12[%c0_535, %c1_536, %c6_537, %c0_538] : memref<2x6x15x8xf32, #tpu.memory_space<vmem>>, vector<2x1x1x8xf32>
    %336 = vector.shape_cast %335 : vector<2x1x1x8xf32> to vector<2x8xf32>
    %c0_539 = arith.constant 0 : index
    %c1_540 = arith.constant 1 : index
    %c8_541 = arith.constant 8 : index
    %c0_542 = arith.constant 0 : index
    %337 = vector.load %arg12[%c0_539, %c1_540, %c8_541, %c0_542] : memref<2x6x15x8xf32, #tpu.memory_space<vmem>>, vector<2x1x1x8xf32>
    %338 = vector.shape_cast %337 : vector<2x1x1x8xf32> to vector<2x8xf32>
    %c0_543 = arith.constant 0 : index
    %c1_544 = arith.constant 1 : index
    %c10_545 = arith.constant 10 : index
    %c0_546 = arith.constant 0 : index
    %339 = vector.load %arg12[%c0_543, %c1_544, %c10_545, %c0_546] : memref<2x6x15x8xf32, #tpu.memory_space<vmem>>, vector<2x1x1x8xf32>
    %340 = vector.shape_cast %339 : vector<2x1x1x8xf32> to vector<2x8xf32>
    %c0_547 = arith.constant 0 : index
    %c2_548 = arith.constant 2 : index
    %c2_549 = arith.constant 2 : index
    %c0_550 = arith.constant 0 : index
    %341 = vector.load %arg12[%c0_547, %c2_548, %c2_549, %c0_550] : memref<2x6x15x8xf32, #tpu.memory_space<vmem>>, vector<2x1x1x8xf32>
    %342 = vector.shape_cast %341 : vector<2x1x1x8xf32> to vector<2x8xf32>
    %c0_551 = arith.constant 0 : index
    %c2_552 = arith.constant 2 : index
    %c4_553 = arith.constant 4 : index
    %c0_554 = arith.constant 0 : index
    %343 = vector.load %arg12[%c0_551, %c2_552, %c4_553, %c0_554] : memref<2x6x15x8xf32, #tpu.memory_space<vmem>>, vector<2x1x1x8xf32>
    %344 = vector.shape_cast %343 : vector<2x1x1x8xf32> to vector<2x8xf32>
    %c0_555 = arith.constant 0 : index
    %c2_556 = arith.constant 2 : index
    %c6_557 = arith.constant 6 : index
    %c0_558 = arith.constant 0 : index
    %345 = vector.load %arg12[%c0_555, %c2_556, %c6_557, %c0_558] : memref<2x6x15x8xf32, #tpu.memory_space<vmem>>, vector<2x1x1x8xf32>
    %346 = vector.shape_cast %345 : vector<2x1x1x8xf32> to vector<2x8xf32>
    %c0_559 = arith.constant 0 : index
    %c2_560 = arith.constant 2 : index
    %c8_561 = arith.constant 8 : index
    %c0_562 = arith.constant 0 : index
    %347 = vector.load %arg12[%c0_559, %c2_560, %c8_561, %c0_562] : memref<2x6x15x8xf32, #tpu.memory_space<vmem>>, vector<2x1x1x8xf32>
    %348 = vector.shape_cast %347 : vector<2x1x1x8xf32> to vector<2x8xf32>
    %c0_563 = arith.constant 0 : index
    %c2_564 = arith.constant 2 : index
    %c10_565 = arith.constant 10 : index
    %c0_566 = arith.constant 0 : index
    %349 = vector.load %arg12[%c0_563, %c2_564, %c10_565, %c0_566] : memref<2x6x15x8xf32, #tpu.memory_space<vmem>>, vector<2x1x1x8xf32>
    %350 = vector.shape_cast %349 : vector<2x1x1x8xf32> to vector<2x8xf32>
    %c0_567 = arith.constant 0 : index
    %c3_568 = arith.constant 3 : index
    %c2_569 = arith.constant 2 : index
    %c0_570 = arith.constant 0 : index
    %351 = vector.load %arg12[%c0_567, %c3_568, %c2_569, %c0_570] : memref<2x6x15x8xf32, #tpu.memory_space<vmem>>, vector<2x1x1x8xf32>
    %352 = vector.shape_cast %351 : vector<2x1x1x8xf32> to vector<2x8xf32>
    %c0_571 = arith.constant 0 : index
    %c3_572 = arith.constant 3 : index
    %c4_573 = arith.constant 4 : index
    %c0_574 = arith.constant 0 : index
    %353 = vector.load %arg12[%c0_571, %c3_572, %c4_573, %c0_574] : memref<2x6x15x8xf32, #tpu.memory_space<vmem>>, vector<2x1x1x8xf32>
    %354 = vector.shape_cast %353 : vector<2x1x1x8xf32> to vector<2x8xf32>
    %c0_575 = arith.constant 0 : index
    %c3_576 = arith.constant 3 : index
    %c6_577 = arith.constant 6 : index
    %c0_578 = arith.constant 0 : index
    %355 = vector.load %arg12[%c0_575, %c3_576, %c6_577, %c0_578] : memref<2x6x15x8xf32, #tpu.memory_space<vmem>>, vector<2x1x1x8xf32>
    %356 = vector.shape_cast %355 : vector<2x1x1x8xf32> to vector<2x8xf32>
    %c0_579 = arith.constant 0 : index
    %c3_580 = arith.constant 3 : index
    %c8_581 = arith.constant 8 : index
    %c0_582 = arith.constant 0 : index
    %357 = vector.load %arg12[%c0_579, %c3_580, %c8_581, %c0_582] : memref<2x6x15x8xf32, #tpu.memory_space<vmem>>, vector<2x1x1x8xf32>
    %358 = vector.shape_cast %357 : vector<2x1x1x8xf32> to vector<2x8xf32>
    %c0_583 = arith.constant 0 : index
    %c3_584 = arith.constant 3 : index
    %c10_585 = arith.constant 10 : index
    %c0_586 = arith.constant 0 : index
    %359 = vector.load %arg12[%c0_583, %c3_584, %c10_585, %c0_586] : memref<2x6x15x8xf32, #tpu.memory_space<vmem>>, vector<2x1x1x8xf32>
    %360 = vector.shape_cast %359 : vector<2x1x1x8xf32> to vector<2x8xf32>
    %c0_587 = arith.constant 0 : index
    %c4_588 = arith.constant 4 : index
    %c2_589 = arith.constant 2 : index
    %c0_590 = arith.constant 0 : index
    %361 = vector.load %arg12[%c0_587, %c4_588, %c2_589, %c0_590] : memref<2x6x15x8xf32, #tpu.memory_space<vmem>>, vector<2x1x1x8xf32>
    %362 = vector.shape_cast %361 : vector<2x1x1x8xf32> to vector<2x8xf32>
    %c0_591 = arith.constant 0 : index
    %c4_592 = arith.constant 4 : index
    %c4_593 = arith.constant 4 : index
    %c0_594 = arith.constant 0 : index
    %363 = vector.load %arg12[%c0_591, %c4_592, %c4_593, %c0_594] : memref<2x6x15x8xf32, #tpu.memory_space<vmem>>, vector<2x1x1x8xf32>
    %364 = vector.shape_cast %363 : vector<2x1x1x8xf32> to vector<2x8xf32>
    %c0_595 = arith.constant 0 : index
    %c4_596 = arith.constant 4 : index
    %c6_597 = arith.constant 6 : index
    %c0_598 = arith.constant 0 : index
    %365 = vector.load %arg12[%c0_595, %c4_596, %c6_597, %c0_598] : memref<2x6x15x8xf32, #tpu.memory_space<vmem>>, vector<2x1x1x8xf32>
    %366 = vector.shape_cast %365 : vector<2x1x1x8xf32> to vector<2x8xf32>
    %c0_599 = arith.constant 0 : index
    %c4_600 = arith.constant 4 : index
    %c8_601 = arith.constant 8 : index
    %c0_602 = arith.constant 0 : index
    %367 = vector.load %arg12[%c0_599, %c4_600, %c8_601, %c0_602] : memref<2x6x15x8xf32, #tpu.memory_space<vmem>>, vector<2x1x1x8xf32>
    %368 = vector.shape_cast %367 : vector<2x1x1x8xf32> to vector<2x8xf32>
    %c0_603 = arith.constant 0 : index
    %c4_604 = arith.constant 4 : index
    %c10_605 = arith.constant 10 : index
    %c0_606 = arith.constant 0 : index
    %369 = vector.load %arg12[%c0_603, %c4_604, %c10_605, %c0_606] : memref<2x6x15x8xf32, #tpu.memory_space<vmem>>, vector<2x1x1x8xf32>
    %370 = vector.shape_cast %369 : vector<2x1x1x8xf32> to vector<2x8xf32>
    %c0_607 = arith.constant 0 : index
    %c5_608 = arith.constant 5 : index
    %c2_609 = arith.constant 2 : index
    %c0_610 = arith.constant 0 : index
    %371 = vector.load %arg12[%c0_607, %c5_608, %c2_609, %c0_610] : memref<2x6x15x8xf32, #tpu.memory_space<vmem>>, vector<2x1x1x8xf32>
    %372 = vector.shape_cast %371 : vector<2x1x1x8xf32> to vector<2x8xf32>
    %c0_611 = arith.constant 0 : index
    %c5_612 = arith.constant 5 : index
    %c4_613 = arith.constant 4 : index
    %c0_614 = arith.constant 0 : index
    %373 = vector.load %arg12[%c0_611, %c5_612, %c4_613, %c0_614] : memref<2x6x15x8xf32, #tpu.memory_space<vmem>>, vector<2x1x1x8xf32>
    %374 = vector.shape_cast %373 : vector<2x1x1x8xf32> to vector<2x8xf32>
    %c0_615 = arith.constant 0 : index
    %c5_616 = arith.constant 5 : index
    %c6_617 = arith.constant 6 : index
    %c0_618 = arith.constant 0 : index
    %375 = vector.load %arg12[%c0_615, %c5_616, %c6_617, %c0_618] : memref<2x6x15x8xf32, #tpu.memory_space<vmem>>, vector<2x1x1x8xf32>
    %376 = vector.shape_cast %375 : vector<2x1x1x8xf32> to vector<2x8xf32>
    %c0_619 = arith.constant 0 : index
    %c5_620 = arith.constant 5 : index
    %c8_621 = arith.constant 8 : index
    %c0_622 = arith.constant 0 : index
    %377 = vector.load %arg12[%c0_619, %c5_620, %c8_621, %c0_622] : memref<2x6x15x8xf32, #tpu.memory_space<vmem>>, vector<2x1x1x8xf32>
    %378 = vector.shape_cast %377 : vector<2x1x1x8xf32> to vector<2x8xf32>
    %c0_623 = arith.constant 0 : index
    %c5_624 = arith.constant 5 : index
    %c10_625 = arith.constant 10 : index
    %c0_626 = arith.constant 0 : index
    %379 = vector.load %arg12[%c0_623, %c5_624, %c10_625, %c0_626] : memref<2x6x15x8xf32, #tpu.memory_space<vmem>>, vector<2x1x1x8xf32>
    %380 = vector.shape_cast %379 : vector<2x1x1x8xf32> to vector<2x8xf32>
    %381 = tpu.concatenate %332, %334, %336, %338, %340, %342, %344, %346, %348, %350, %352, %354, %356, %358, %360, %362 in 1 : vector<2x8xf32>, vector<2x8xf32>, vector<2x8xf32>, vector<2x8xf32>, vector<2x8xf32>, vector<2x8xf32>, vector<2x8xf32>, vector<2x8xf32>, vector<2x8xf32>, vector<2x8xf32>, vector<2x8xf32>, vector<2x8xf32>, vector<2x8xf32>, vector<2x8xf32>, vector<2x8xf32>, vector<2x8xf32> -> vector<2x128xf32>
    %382 = tpu.concatenate %364, %366, %368, %370, %372, %374, %376, %378, %380 in 1 : vector<2x8xf32>, vector<2x8xf32>, vector<2x8xf32>, vector<2x8xf32>, vector<2x8xf32>, vector<2x8xf32>, vector<2x8xf32>, vector<2x8xf32>, vector<2x8xf32> -> vector<2x72xf32>
    %383 = tpu.concatenate %381, %382 in 1 : vector<2x128xf32>, vector<2x72xf32> -> vector<2x200xf32>
    %cst_627 = arith.constant dense<0.000000e+00> : vector<2x16xf32>
    %384 = tpu.matmul %383, %166, %cst_627 {dimension_numbers = #tpu.dot_dimension_numbers<[1], [0], [0], [1], [0, 0, 1, 1], [], []>} : vector<2x200xf32>, vector<200x16xf32>, vector<2x16xf32> -> vector<2x16xf32>
    %385 = arith.maximumf %330, %384 : vector<2x16xf32>
    %c0_628 = arith.constant 0 : index
    %c0_629 = arith.constant 0 : index
    %386 = vector.load %arg4[%c0_628, %c0_629] : memref<1x16xf32, #tpu.memory_space<vmem>>, vector<1x16xf32>
    %387 = vector.broadcast %386 : vector<1x16xf32> to vector<2x16xf32>
    %388 = arith.addf %385, %387 : vector<2x16xf32>
    %cst_630 = arith.constant 0.000000e+00 : f32
    %389 = vector.broadcast %cst_630 : f32 to vector<2x16xf32>
    %390 = arith.maximumf %388, %389 : vector<2x16xf32>
    %c0_631 = arith.constant 0 : index
    %c0_632 = arith.constant 0 : index
    %391 = vector.load %arg5[%c0_631, %c0_632] : memref<16x32xf32, #tpu.memory_space<vmem>>, vector<16x32xf32>
    %cst_633 = arith.constant dense<0.000000e+00> : vector<2x32xf32>
    %392 = tpu.matmul %390, %391, %cst_633 {dimension_numbers = #tpu.dot_dimension_numbers<[1], [0], [0], [1], [0, 0, 1, 1], [], []>} : vector<2x16xf32>, vector<16x32xf32>, vector<2x32xf32> -> vector<2x32xf32>
    %c0_634 = arith.constant 0 : index
    %c0_635 = arith.constant 0 : index
    %393 = vector.load %arg6[%c0_634, %c0_635] : memref<1x32xf32, #tpu.memory_space<vmem>>, vector<1x32xf32>
    %394 = vector.broadcast %393 : vector<1x32xf32> to vector<2x32xf32>
    %395 = arith.addf %392, %394 : vector<2x32xf32>
    %cst_636 = arith.constant 0.000000e+00 : f32
    %396 = vector.broadcast %cst_636 : f32 to vector<2x32xf32>
    %397 = arith.maximumf %395, %396 : vector<2x32xf32>
    %c0_637 = arith.constant 0 : index
    %c0_638 = arith.constant 0 : index
    %398 = vector.load %arg7[%c0_637, %c0_638] : memref<32x16xf32, #tpu.memory_space<vmem>>, vector<32x16xf32>
    %cst_639 = arith.constant dense<0.000000e+00> : vector<2x16xf32>
    %399 = tpu.matmul %397, %398, %cst_639 {dimension_numbers = #tpu.dot_dimension_numbers<[1], [0], [0], [1], [0, 0, 1, 1], [], []>} : vector<2x32xf32>, vector<32x16xf32>, vector<2x16xf32> -> vector<2x16xf32>
    %c0_640 = arith.constant 0 : index
    %c0_641 = arith.constant 0 : index
    %400 = vector.load %arg8[%c0_640, %c0_641] : memref<1x16xf32, #tpu.memory_space<vmem>>, vector<1x16xf32>
    %401 = vector.broadcast %400 : vector<1x16xf32> to vector<2x16xf32>
    %402 = arith.addf %399, %401 : vector<2x16xf32>
    %cst_642 = arith.constant 0.000000e+00 : f32
    %403 = vector.broadcast %cst_642 : f32 to vector<2x16xf32>
    %404 = arith.maximumf %402, %403 : vector<2x16xf32>
    %c0_643 = arith.constant 0 : index
    %c0_644 = arith.constant 0 : index
    %405 = vector.load %arg9[%c0_643, %c0_644] : memref<16x10xf32, #tpu.memory_space<vmem>>, vector<16x10xf32>
    %cst_645 = arith.constant dense<0.000000e+00> : vector<2x10xf32>
    %406 = tpu.matmul %404, %405, %cst_645 {dimension_numbers = #tpu.dot_dimension_numbers<[1], [0], [0], [1], [0, 0, 1, 1], [], []>} : vector<2x16xf32>, vector<16x10xf32>, vector<2x10xf32> -> vector<2x10xf32>
    %c0_646 = arith.constant 0 : index
    %c0_647 = arith.constant 0 : index
    %407 = vector.load %arg10[%c0_646, %c0_647] : memref<1x10xf32, #tpu.memory_space<vmem>>, vector<1x10xf32>
    %408 = vector.broadcast %407 : vector<1x10xf32> to vector<2x10xf32>
    %409 = arith.addf %406, %408 : vector<2x10xf32>
    %c0_648 = arith.constant 0 : index
    %c0_649 = arith.constant 0 : index
    %410 = vector.load %arg11[%c0_648, %c0_649] : memref<2x10xf32, #tpu.memory_space<vmem>>, vector<2x10xf32>
    tpu.vector_store %arg11[%c0_648, %c0_649], %409 {strides = array<i32>} : memref<2x10xf32, #tpu.memory_space<vmem>>, vector<2x10xf32>,
    return
  }
}

</mosaic_0001>

<bundles_post_ra>
// kernel: cnn_dynamic_forward.1
= control target key start
LH: loop header
LB: loop body
LE: loop exit
PB: predicated region body
PF: predicated region fallthrough
CT: control target
= control target key end

     0   :  { %vm240_vm0 = vcmask 1043456   ;;  %vm95_vm1 = vcmask 31744   ;;  %s28350_s0 = inlined_call_operand.vmem [shape: f32[2,16,20,4], index: 0, kind: input, shape index: {}]   ;;  %s28351_s1 = inlined_call_operand.vmem [shape: f32[5,5,4,8], index: 1, kind: input, shape index: {}]   ;;  %s28352_s2 = inlined_call_operand.vmem [shape: f32[1,8], index: 2, kind: input, shape index: {}]   ;;  %s28353_s3 = inlined_call_operand.vmem [shape: f32[200,16], index: 3, kind: input, shape index: {}]   ;;  %s28354_s4 = inlined_call_operand.vmem [shape: f32[1,16], index: 4, kind: input, shape index: {}]   ;;  %s28355_s5 = inlined_call_operand.vmem [shape: f32[16,32], index: 5, kind: input, shape index: {}]   ;;  %s28356_s6 = inlined_call_operand.vmem [shape: f32[1,32], index: 6, kind: input, shape index: {}]   ;;  %s28357_s7 = inlined_call_operand.vmem [shape: f32[32,16], index: 7, kind: input, shape index: {}]   ;;  %s28358_s8 = inlined_call_operand.vmem [shape: f32[1,16], index: 8, kind: input, shape index: {}]   ;;  %s28359_s9 = inlined_call_operand.vmem [shape: f32[16,10], index: 9, kind: input, shape index: {}]   ;;  %s28360_s10 = inlined_call_operand.vmem [shape: f32[1,10], index: 10, kind: input, shape index: {}]   ;;  %s28361_s11 = inlined_call_operand.hbm [shape: f32[2,10], index: 11, kind: output, shape index: {}]  }
   0x1   :  { %v94_v0 = vld [vmem:[%s28351_s1] sm:$0xf]  ;;  %v16101_v1 = vld [vmem:[%s28351_s1 + $0x2c] sm:$0xf]  ;;  %v22042_v3 = vld [vmem:[%s28350_s0 + $0x31] sm:$0xff] }
   0x2   :  { %v46_v2 = vld [vmem:[%s28350_s0] sm:$0xff]  ;;  %18672 = vmatprep.subr.msk.mxu1 %vm240_vm0, %v94_v0  ;;  %19486 = vmatprep.subr.msk.mxu0 %vm240_vm0, %v16101_v1  ;;  %v47_v4 = vld [vmem:[%s28350_s0 + $0x8] sm:$0xff]  ;;  %v16199_v6 = vld [vmem:[%s28351_s1 + $0x30] sm:$0xf] }
   0x3   :  { %v22050_v5 = vld [vmem:[%s28350_s0 + $0x39] sm:$0xff]  ;;  %18673 = vmatpush3.msk.msra.mxu1 %vm240_vm0, %v94_v0  ;;  %18674 = vmatprep.mubr.msk.f32.mxu1 %vm95_vm1, %v46_v2  ;;  %v22066_v8 = vld [vmem:[%s28350_s0 + $0x49] sm:$0xff]  ;;  %v22079_v10 = vld [vmem:[%s28350_s0 + $0x51] sm:$0xff] }
   0x4   :  { %v48_v7 = vld [vmem:[%s28350_s0 + $0x18] sm:$0xff]  ;;  %19487 = vmatpush3.msk.msra.mxu0 %vm240_vm0, %v16101_v1  ;;  %19488 = vmatprep.mubr.msk.f32.mxu0 %vm95_vm1, %v22042_v3  ;;  %v49_v9 = vld [vmem:[%s28350_s0 + $0x20] sm:$0xff]  ;;  %v50_v11 = vld [vmem:[%s28350_s0 + $0x30] sm:$0xff] }
   0x5   :  { %18675 = vmatmul.mubr.msk.f32.vlgmr.msra.gmra.mrb[0].mxu1 %vm95_vm1, %v47_v4  ;;  %19489 = vmatmul.mubr.msk.f32.vlgmr.msra.gmra.mrb[0].mxu0 %vm95_vm1, %v22050_v5  ;;  %v22090_v12 = vld [vmem:[%s28350_s0 + $0x61] sm:$0xff]  ;;  %v51_v13 = vld [vmem:[%s28350_s0 + $0x38] sm:$0xff]  ;;  %v22104_v14 = vld [vmem:[%s28350_s0 + $0x69] sm:$0xff] }
   0x6   :  { %19560 = vmatprep.subr.msk.mxu0 %vm240_vm0, %v16199_v6  ;;  %18677 = vmatprep.mubr.msk.f32.mxu1 %vm95_vm1, %v48_v7  ;;  %v52_v15 = vld [vmem:[%s28350_s0 + $0x48] sm:$0xff]  ;;  %v22112_v16 = vld [vmem:[%s28350_s0 + $0x79] sm:$0xff]  ;;  %v53_v17 = vld [vmem:[%s28350_s0 + $0x50] sm:$0xff] }
   0x7   :  { %19561 = vmatpush3.msk.msra.mxu0 %vm240_vm0, %v16199_v6  ;;  %19491 = vmatprep.mubr.msk.f32.mxu0 %vm95_vm1, %v22066_v8  ;;  %v22126_v18 = vld [vmem:[%s28350_s0 + $0x81] sm:$0xff]  ;;  %v22134_v20 = vld [vmem:[%s28350_s0 + $0x91] sm:$0xff]  ;;  %v22153_v23 = vld [vmem:[%s28350_s0 + $0x99] sm:$0xff] }
   0x8   :  { %v54_v19 = vld [vmem:[%s28350_s0 + $0x60] sm:$0xff]  ;;  %v22139_v21 = vld [vmem:[%s28351_s1 + $0x34] sm:$0xf]  ;;  %v55_v22 = vld [vmem:[%s28350_s0 + $0x68] sm:$0xff] }
   0x9   :  { %18678 = vmatmul.mubr.msk.f32.gmra.mrb[2].mxu1 %vm95_vm1, %v49_v9  ;;  %19492 = vmatmul.mubr.msk.f32.gmra.mrb[2].mxu0 %vm95_vm1, %v22079_v10  ;;  %v56_v24 = vld [vmem:[%s28350_s0 + $0x78] sm:$0xff]  ;;  %v22161_v25 = vld [vmem:[%s28350_s0 + $0xa9] sm:$0xff]  ;;  %v57_v26 = vld [vmem:[%s28350_s0 + $0x80] sm:$0xff] }
   0xa   :  { %18680 = vmatprep.mubr.msk.f32.mxu1 %vm95_vm1, %v50_v11  ;;  %19494 = vmatprep.mubr.msk.f32.mxu0 %vm95_vm1, %v22090_v12  ;;  %v22177_v27 = vld [vmem:[%s28350_s0 + $0xb1] sm:$0xff]  ;;  %v22185_v29 = vld [vmem:[%s28350_s0 + $0xc1] sm:$0xff]  ;;  %v22199_v31 = vld [vmem:[%s28350_s0 + $0xc9] sm:$0xff] }
   0xb   :  { %19634 = vmatprep.subr.msk.mxu0 %vm240_vm0, %v22139_v21  ;;  %v58_v28 = vld [vmem:[%s28350_s0 + $0x90] sm:$0xff]  ;;  %v59_v30 = vld [vmem:[%s28350_s0 + $0x98] sm:$0xff]  ;;  %v60_v32 = vld [vmem:[%s28350_s0 + $0xa8] sm:$0xff] }
   0xc   :  { %v22207_v33 = vld [vmem:[%s28350_s0 + $0xd9] sm:$0xff]  ;;  %v61_v34 = vld [vmem:[%s28350_s0 + $0xb0] sm:$0xff]  ;;  %v22221_v35 = vld [vmem:[%s28350_s0 + $0xe1] sm:$0xff] }
   0xd   :  { %18681 = vmatmul.mubr.msk.f32.gmra.mrb[4].mxu1 %vm95_vm1, %v51_v13  ;;  %19495 = vmatmul.mubr.msk.f32.gmra.mrb[4].mxu0 %vm95_vm1, %v22104_v14  ;;  %v62_v36 = vld [vmem:[%s28350_s0 + $0xc0] sm:$0xff]  ;;  %v22229_v37 = vld [vmem:[%s28350_s0 + $0xf1] sm:$0xff]  ;;  %v63_v38 = vld [vmem:[%s28350_s0 + $0xc8] sm:$0xff] }
   0xe   :  { %18683 = vmatprep.mubr.msk.f32.mxu1 %vm95_vm1, %v52_v15  ;;  %19497 = vmatprep.mubr.msk.f32.mxu0 %vm95_vm1, %v22112_v16  ;;  %v22243_v39 = vld [vmem:[%s28350_s0 + $0xf9] sm:$0xff]  ;;  %v15265_v40 = vld [vmem:[%s28351_s1 + $0x4] sm:$0xf]  ;;  %v22254_v42 = vld [vmem:[%s28350_s0 + $0x109] sm:$0xff] }
   0xf   :  { %v64_v41 = vld [vmem:[%s28350_s0 + $0xd8] sm:$0xff]  ;;  %18746 = vmatprep.subr.msk.mxu1 %vm240_vm0, %v15265_v40  ;;  %v65_v43 = vld [vmem:[%s28350_s0 + $0xe0] sm:$0xff]  ;;  %v66_v45 = vld [vmem:[%s28350_s0 + $0xf0] sm:$0xff] }
  0x10   :  { %18747 = vmatpush3.msk.msra.mxu1 %vm240_vm0, %v15265_v40  ;;  %v22270_v44 = vld [vmem:[%s28350_s0 + $0x111] sm:$0xff]  ;;  %v22292_v48 = vld [vmem:[%s28350_s0 + $0x3a] sm:$0xff]  ;;  %v68_v49 = vld [vmem:[%s28350_s0 + $0x108] sm:$0xff] }
  0x11   :  { %18684 = vmatmul.mubr.msk.f32.gmra.mrb[6].mxu1 %vm95_vm1, %v53_v17  ;;  %19498 = vmatmul.mubr.msk.f32.gmra.mrb[6].mxu0 %vm95_vm1, %v22126_v18  ;;  %v22278_v46 = vld [vmem:[%s28350_s0 + $0x32] sm:$0xff]  ;;  %v22300_v50 = vld [vmem:[%s28350_s0 + $0x4a] sm:$0xff]  ;;  %v70_v54 = vld [vmem:[%s28350_s0 + $0x180] sm:$0xff] }
  0x12   :  { %18686 = vmatprep.mubr.msk.f32.mxu1 %vm95_vm1, %v54_v19  ;;  %19500 = vmatprep.mubr.msk.f32.mxu0 %vm95_vm1, %v22134_v20  ;;  %v67_v47 = vld [vmem:[%s28350_s0 + $0xf8] sm:$0xff]  ;;  %v69_v52 = vld [vmem:[%s28350_s0 + $0x110] sm:$0xff]  ;;  %v22329_v55 = vld [vmem:[%s28350_s0 + $0x62] sm:$0xff] }
  0x13   :  { %v22305_v51 = vld [vmem:[%s28351_s1 + $0x38] sm:$0xf]  ;;  %v71_v56 = vld [vmem:[%s28350_s0 + $0x188] sm:$0xff]  ;;  %v73_v60 = vld [vmem:[%s28350_s0 + $0x1a0] sm:$0xff] }
  0x14   :  { %v22319_v53 = vld [vmem:[%s28350_s0 + $0x52] sm:$0xff]  ;;  %v22345_v57 = vld [vmem:[%s28350_s0 + $0x6a] sm:$0xff]  ;;  %v22353_v59 = vld [vmem:[%s28350_s0 + $0x7a] sm:$0xff] }
  0x15   :  { %18687 = vmatmul.mubr.msk.f32.gmra.mrb[8].mxu1 %vm95_vm1, %v55_v22  ;;  %19501 = vmatmul.mubr.msk.f32.gmra.mrb[8].mxu0 %vm95_vm1, %v22153_v23  ;;  %v72_v58 = vld [vmem:[%s28350_s0 + $0x198] sm:$0xff]  ;;  %v22367_v61 = vld [vmem:[%s28350_s0 + $0x82] sm:$0xff]  ;;  %v74_v62 = vld [vmem:[%s28350_s0 + $0x1b0] sm:$0xff] }
  0x16   :  { %18689 = vmatprep.mubr.msk.f32.mxu1 %vm95_vm1, %v56_v24  ;;  %19503 = vmatprep.mubr.msk.f32.mxu0 %vm95_vm1, %v22161_v25  ;;  %v22375_v63 = vld [vmem:[%s28350_s0 + $0x92] sm:$0xff]  ;;  %v22389_v1 = vld [vmem:[%s28350_s0 + $0x9a] sm:$0xff] }
  0x17   :  { %v75_v0 = vld [vmem:[%s28350_s0 + $0x1b8] sm:$0xff] }
  0x19   :  { %18690 = vmatmul.mubr.msk.f32.gmra.mrb[10].mxu1 %vm95_vm1, %v57_v26  ;;  %19504 = vmatmul.mubr.msk.f32.gmra.mrb[10].mxu0 %vm95_vm1, %v22177_v27 }
  0x1a   :  { %18692 = vmatprep.mubr.msk.f32.mxu1 %vm95_vm1, %v58_v28  ;;  %19506 = vmatprep.mubr.msk.f32.mxu0 %vm95_vm1, %v22185_v29 }
  0x1d   :  { %18693 = vmatmul.mubr.msk.f32.gmra.mrb[12].mxu1 %vm95_vm1, %v59_v30  ;;  %19507 = vmatmul.mubr.msk.f32.gmra.mrb[12].mxu0 %vm95_vm1, %v22199_v31 }
  0x1e   :  { %18695 = vmatprep.mubr.msk.f32.mxu1 %vm95_vm1, %v60_v32  ;;  %19509 = vmatprep.mubr.msk.f32.mxu0 %vm95_vm1, %v22207_v33 }
  0x21   :  { %18696 = vmatmul.mubr.msk.f32.gmra.mrb[14].mxu1 %vm95_vm1, %v61_v34  ;;  %19510 = vmatmul.mubr.msk.f32.gmra.mrb[14].mxu0 %vm95_vm1, %v22221_v35 }
  0x22   :  { %18698 = vmatprep.mubr.msk.f32.mxu1 %vm95_vm1, %v62_v36  ;;  %19512 = vmatprep.mubr.msk.f32.mxu0 %vm95_vm1, %v22229_v37 }
  0x25   :  { %18699 = vmatmul.mubr.msk.f32.gmra.mrb[16].mxu1 %vm95_vm1, %v63_v38  ;;  %19513 = vmatmul.mubr.msk.f32.gmra.mrb[16].mxu0 %vm95_vm1, %v22243_v39 }
  0x26   :  { %18701 = vmatprep.mubr.msk.f32.mxu1 %vm95_vm1, %v64_v41  ;;  %19515 = vmatprep.mubr.msk.f32.mxu0 %vm95_vm1, %v22254_v42 }
  0x29   :  { %18702 = vmatmul.mubr.msk.f32.gmra.mrb[18].mxu1 %vm95_vm1, %v65_v43  ;;  %19516 = vmatmul.mubr.msk.f32.gmra.mrb[18].mxu0 %vm95_vm1, %v22270_v44 }
  0x2a   :  { %18704 = vmatprep.mubr.msk.f32.mxu1 %vm95_vm1, %v66_v45  ;;  %19562 = vmatprep.mubr.msk.f32.mxu0 %vm95_vm1, %v22278_v46 }
  0x2d   :  { %18705 = vmatmul.mubr.msk.f32.gmra.mrb[20].mxu1 %vm95_vm1, %v67_v47  ;;  %19563 = vmatmul.mubr.msk.f32.vlgmr.msra.gmra.mrb[0].mxu0 %vm95_vm1, %v22292_v48 }
  0x2e   :  { %19635 = vmatpush3.msk.msra.mxu0 %vm240_vm0, %v22139_v21  ;;  %18707 = vmatprep.mubr.msk.f32.mxu1 %vm95_vm1, %v68_v49 }
  0x2f   :  { %19565 = vmatprep.mubr.msk.f32.mxu0 %vm95_vm1, %v22300_v50  ;;  %19708 = vmatprep.subr.msk.mxu0 %vm240_vm0, %v22305_v51 }
  0x31   :  { %18708 = vmatmul.mubr.msk.f32.gmra.mrb[22].mxu1 %vm95_vm1, %v69_v52  ;;  %19566 = vmatmul.mubr.msk.f32.gmra.mrb[2].mxu0 %vm95_vm1, %v22319_v53 }
  0x32   :  { %18710 = vmatprep.mubr.msk.f32.mxu1 %vm95_vm1, %v70_v54  ;;  %19568 = vmatprep.mubr.msk.f32.mxu0 %vm95_vm1, %v22329_v55 }
  0x35   :  { %18711 = vmatmul.mubr.msk.f32.gmra.mrb[24].mxu1 %vm95_vm1, %v71_v56  ;;  %19569 = vmatmul.mubr.msk.f32.gmra.mrb[4].mxu0 %vm95_vm1, %v22345_v57 }
  0x36   :  { %18713 = vmatprep.mubr.msk.f32.mxu1 %vm95_vm1, %v72_v58  ;;  %19571 = vmatprep.mubr.msk.f32.mxu0 %vm95_vm1, %v22353_v59 }
  0x39   :  { %18714 = vmatmul.mubr.msk.f32.gmra.mrb[26].mxu1 %vm95_vm1, %v73_v60  ;;  %19572 = vmatmul.mubr.msk.f32.gmra.mrb[6].mxu0 %vm95_vm1, %v22367_v61 }
  0x3a   :  { %18716 = vmatprep.mubr.msk.f32.mxu1 %vm95_vm1, %v74_v62  ;;  %19574 = vmatprep.mubr.msk.f32.mxu0 %vm95_vm1, %v22375_v63 }
  0x3b   :  { %16 = vsyncpa [#allocation4], 0  ;;  %v76_v2 = vld [vmem:[%s28350_s0 + $0x1c8] sm:$0xff]  ;;  %v77_v6 = vld [vmem:[%s28350_s0 + $0x1d0] sm:$0xff]  ;;  %vm13897_vm2 = vcmask 1046528   ;;  %vm13984_vm3 = vcmask 63488  }
  0x3c   :  { %v22397_v4 = vld [vmem:[%s28350_s0 + $0xaa] sm:$0xff]  ;;  %v22411_v7 = vld [vmem:[%s28350_s0 + $0xb2] sm:$0xff]  ;;  %v78_v9 = vld [vmem:[%s28350_s0 + $0x1e0] sm:$0xff]  ;;  %vm13982_vm4 = vcmask 64512   ;;  %vm14090_vm5 = vcmask 1041409   ;;  %s21950_s23 = smov 32  }
  0x3d   :  { %18717 = vmatmul.mubr.msk.f32.gmra.mrb[28].mxu1 %vm95_vm1, %v75_v0  ;;  %19575 = vmatmul.mubr.msk.f32.gmra.mrb[8].mxu0 %vm95_vm1, %v22389_v1  ;;  %v22419_v11 = vld [vmem:[%s28350_s0 + $0xc2] sm:$0xff]  ;;  %v22438_v17 = vld [vmem:[%s28350_s0 + $0xca] sm:$0xff]  ;;  %v80_v19 = vld [vmem:[%s28350_s0 + $0x1f8] sm:$0xff]  ;;  %s21951_s28 = smov 8   ;;  %s21953_s13 = smov 16   ;;  %vm14199_vm6 = vcmask 130048  }
  0x3e   :  { %18719 = vmatprep.mubr.msk.f32.mxu1 %vm95_vm1, %v76_v2  ;;  %19577 = vmatprep.mubr.msk.f32.mxu0 %vm95_vm1, %v22397_v4  ;;  %v22427_v13 = vld [vmem:[%s28351_s1 + $0x8] sm:$0xf]  ;;  %v22446_v21 = vld [vmem:[%s28350_s0 + $0xda] sm:$0xff]  ;;  %v82_v26 = vld [vmem:[%s28350_s0 + $0x210] sm:$0xff]  ;;  %s21954_s14 = smov 48   ;;  %s21955_s15 = smov 72  }
  0x3f   :  { %v79_v15 = vld [vmem:[%s28350_s0 + $0x1e8] sm:$0xff]  ;;  %18820 = vmatprep.subr.msk.mxu1 %vm240_vm0, %v22427_v13  ;;  %v81_v22 = vld [vmem:[%s28350_s0 + $0x200] sm:$0xff]  ;;  %v22470_v28 = vld [vmem:[%s28350_s0 + $0xf2] sm:$0xff]  ;;  %s21956_s24 = smov 40   ;;  %s21957_s25 = smov 56   ;;  %vm14201_vm7 = vcmask 195584  }
  0x40   :  { %v22462_v24 = vld [vmem:[%s28350_s0 + $0xe2] sm:$0xff]  ;;  %v83_v30 = vld [vmem:[%s28350_s0 + $0x218] sm:$0xff]  ;;  %v22492_v36 = vld [vmem:[%s28350_s0 + $0x10a] sm:$0xff]  ;;  %s21958_s17 = smov 64   ;;  %s21959_s22 = smov 112   ;;  %vm14203_vm8 = vcmask 261120  }
  0x41   :  { %18720 = vmatmul.mubr.msk.f32.gmra.mrb[30].mxu1 %vm95_vm1, %v77_v6  ;;  %19578 = vmatmul.mubr.msk.f32.gmra.mrb[10].mxu0 %vm95_vm1, %v22411_v7  ;;  %v22484_v32 = vld [vmem:[%s28350_s0 + $0xfa] sm:$0xff]  ;;  %v84_v34 = vld [vmem:[%s28350_s0 + $0x228] sm:$0xff]  ;;  %v85_v38 = vld [vmem:[%s28350_s0 + $0x230] sm:$0xff]  ;;  %s21961_s19 = smov 88   ;;  %s21962_s20 = smov 96   ;;  %vm14205_vm9 = vcmask 326656  }
  0x42   :  { %18722 = vmatprep.mubr.msk.f32.mxu1 %vm95_vm1, %v78_v9  ;;  %19580 = vmatprep.mubr.msk.f32.mxu0 %vm95_vm1, %v22419_v11  ;;  %v22506_v40 = vld [vmem:[%s28350_s0 + $0x112] sm:$0xff]  ;;  %v86_v41 = vld [vmem:[%s28350_s0 + $0x240] sm:$0xff]  ;;  %v87_v45 = vld [vmem:[%s28350_s0 + $0x248] sm:$0xff]  ;;  %s21964_s27 = smov 104   ;;  %vm14207_vm10 = vcmask 392192   ;;  %vm14209_vm11 = vcmask 457728  }
  0x43   :  { %v16171_v43 = vld [vmem:[%s28350_s0 + $0x122] sm:$0xff]  ;;  %v16172_v47 = vld [vmem:[%s28350_s0 + $0x12a] sm:$0xff]  ;;  %v88_v49 = vld [vmem:[%s28350_s0 + $0x258] sm:$0xff]  ;;  %vm14211_vm12 = vcmask 523264   ;;  %vm14213_vm13 = vcmask 588800   ;;  %vm14215_vm14 = vcmask 654336  }
  0x44   :  { %v16173_v52 = vld [vmem:[%s28350_s0 + $0x13a] sm:$0xff]  ;;  %v16174_v56 = vld [vmem:[%s28350_s0 + $0x142] sm:$0xff]  ;;  %v90_v58 = vld [vmem:[%s28350_s0 + $0x270] sm:$0xff]  ;;  %vm14217_vm15 = vcmask 719872   ;;  %s21967_s26 = smov [#allocation3]  }
  0x45   :  { %18723 = vmatmul.mubr.msk.f32.gmra.mrb[32].mxu1 %vm95_vm1, %v79_v15  ;;  %19581 = vmatmul.mubr.msk.f32.gmra.mrb[12].mxu0 %vm95_vm1, %v22438_v17  ;;  %v89_v54 = vld [vmem:[%s28350_s0 + $0x260] sm:$0xff]  ;;  %v22547_v60 = vld [vmem:[%s28350_s0 + $0x1b2] sm:$0xff]  ;;  %v92_v2 = vld [vmem:[%s28350_s0 + $0x288] sm:$0xff] }
  0x46   :  { %18725 = vmatprep.mubr.msk.f32.mxu1 %vm95_vm1, %v80_v19  ;;  %19583 = vmatprep.mubr.msk.f32.mxu0 %vm95_vm1, %v22446_v21  ;;  %v91_v62 = vld [vmem:[%s28350_s0 + $0x278] sm:$0xff]  ;;  %v22568_v6 = vld [vmem:[%s28350_s0 + $0x1ca] sm:$0xff]  ;;  %v597_v19 = vld [vmem:[%s28350_s0 + $0x1] sm:$0xff] }
  0x47   :  { %v22560_v0 = vld [vmem:[%s28350_s0 + $0x1ba] sm:$0xff]  ;;  %v93_v9 = vld [vmem:[%s28350_s0 + $0x290] sm:$0xff] }
  0x48   :  { %v22582_v15 = vld [vmem:[%s28350_s0 + $0x1d2] sm:$0xff] }
  0x49   :  { %18726 = vmatmul.mubr.msk.f32.gmra.mrb[34].mxu1 %vm95_vm1, %v81_v22  ;;  %19584 = vmatmul.mubr.msk.f32.gmra.mrb[14].mxu0 %vm95_vm1, %v22462_v24  ;;  %v22590_v22 = vld [vmem:[%s28350_s0 + $0x1e2] sm:$0xff] }
  0x4a   :  { %18728 = vmatprep.mubr.msk.f32.mxu1 %vm95_vm1, %v82_v26  ;;  %19586 = vmatprep.mubr.msk.f32.mxu0 %vm95_vm1, %v22470_v28  ;;  %v598_v26 = vld [vmem:[%s28350_s0 + $0x9] sm:$0xff] }
  0x4d   :  { %18729 = vmatmul.mubr.msk.f32.gmra.mrb[36].mxu1 %vm95_vm1, %v83_v30  ;;  %19587 = vmatmul.mubr.msk.f32.gmra.mrb[16].mxu0 %vm95_vm1, %v22484_v32  ;;  %v22604_v30 = vld [vmem:[%s28350_s0 + $0x1ea] sm:$0xff] }
  0x4e   :  { %18731 = vmatprep.mubr.msk.f32.mxu1 %vm95_vm1, %v84_v34  ;;  %19589 = vmatprep.mubr.msk.f32.mxu0 %vm95_vm1, %v22492_v36  ;;  %v599_v34 = vld [vmem:[%s28350_s0 + $0x19] sm:$0xff] }
  0x51   :  { %18732 = vmatmul.mubr.msk.f32.gmra.mrb[38].mxu1 %vm95_vm1, %v85_v38  ;;  %19590 = vmatmul.mubr.msk.f32.gmra.mrb[18].mxu0 %vm95_vm1, %v22506_v40  ;;  %v22612_v38 = vld [vmem:[%s28350_s0 + $0x1fa] sm:$0xff] }
  0x52   :  { %18734 = vmatprep.mubr.msk.f32.mxu1 %vm95_vm1, %v86_v41  ;;  %19592 = vmatprep.mubr.msk.f32.mxu0 %vm95_vm1, %v16171_v43  ;;  %v600_v41 = vld [vmem:[%s28350_s0 + $0x21] sm:$0xff] }
  0x53   :  { %v22626_v43 = vld [vmem:[%s28350_s0 + $0x202] sm:$0xff] }
  0x55   :  { %18735 = vmatmul.mubr.msk.f32.gmra.mrb[40].mxu1 %vm95_vm1, %v87_v45  ;;  %19593 = vmatmul.mubr.msk.f32.gmra.mrb[20].mxu0 %vm95_vm1, %v16172_v47  ;;  %v22631_v45 = vld [vmem:[%s28350_s0 + $0x212] sm:$0xff]  ;;  %v22645_v47 = vld [vmem:[%s28350_s0 + $0x21a] sm:$0xff] }
  0x56   :  { %18737 = vmatprep.mubr.msk.f32.mxu1 %vm95_vm1, %v88_v49  ;;  %19595 = vmatprep.mubr.msk.f32.mxu0 %vm95_vm1, %v16173_v52  ;;  %v22668_v49 = vld [vmem:[%s28350_s0 + $0x242] sm:$0xff] }
  0x57   :  { %v22810_v52 = vld [vmem:[%s28350_s0 + $0x63] sm:$0xff] }
  0x59   :  { %18738 = vmatmul.mubr.msk.f32.gmra.mrb[42].mxu1 %vm95_vm1, %v89_v54  ;;  %19596 = vmatmul.mubr.msk.f32.gmra.mrb[22].mxu0 %vm95_vm1, %v16174_v56  ;;  %v22835_v54 = vld [vmem:[%s28350_s0 + $0x7b] sm:$0xff] }
  0x5a   :  { %18740 = vmatprep.mubr.msk.f32.mxu1 %vm95_vm1, %v90_v58  ;;  %19598 = vmatprep.mubr.msk.f32.mxu0 %vm95_vm1, %v22547_v60  ;;  %v624_v56 = vld [vmem:[%s28350_s0 + $0x1a1] sm:$0xff] }
  0x5b   :  { %v22849_v58 = vld [vmem:[%s28350_s0 + $0x83] sm:$0xff] }
  0x5d   :  { %18741 = vmatmul.mubr.msk.f32.gmra.mrb[44].mxu1 %vm95_vm1, %v91_v62  ;;  %19599 = vmatmul.mubr.msk.f32.gmra.mrb[24].mxu0 %vm95_vm1, %v22560_v0  ;;  %v625_v62 = vld [vmem:[%s28350_s0 + $0x1b1] sm:$0xff] }
  0x5e   :  { %18743 = vmatprep.mubr.msk.f32.mxu1 %vm95_vm1, %v92_v2  ;;  %19601 = vmatprep.mubr.msk.f32.mxu0 %vm95_vm1, %v22568_v6  ;;  %v22857_v2 = vld [vmem:[%s28350_s0 + $0x93] sm:$0xff] }
  0x61   :  { %18744 = vmatmul.mubr.msk.f32.gmra.mrb[46].mxu1 %vm95_vm1, %v93_v9  ;;  %19602 = vmatmul.mubr.msk.f32.gmra.mrb[26].mxu0 %vm95_vm1, %v22582_v15  ;;  %v626_v9 = vld [vmem:[%s28350_s0 + $0x1b9] sm:$0xff] }
  0x62   :  { %18748 = vmatprep.mubr.msk.f32.mxu1 %vm95_vm1, %v597_v19  ;;  %19604 = vmatprep.mubr.msk.f32.mxu0 %vm95_vm1, %v22590_v22  ;;  %v22871_v19 = vld [vmem:[%s28350_s0 + $0x9b] sm:$0xff] }
  0x65   :  { %18749 = vmatmul.mubr.msk.f32.vlgmr.msra.gmra.mrb[0].mxu1 %vm95_vm1, %v598_v26  ;;  %19605 = vmatmul.mubr.msk.f32.gmra.mrb[28].mxu0 %vm95_vm1, %v22604_v30  ;;  %v627_v26 = vld [vmem:[%s28350_s0 + $0x1c9] sm:$0xff] }
  0x66   :  { %18751 = vmatprep.mubr.msk.f32.mxu1 %vm95_vm1, %v599_v34  ;;  %19607 = vmatprep.mubr.msk.f32.mxu0 %vm95_vm1, %v22612_v38  ;;  %v22879_v34 = vld [vmem:[%s28350_s0 + $0xab] sm:$0xff] }
  0x67   :  { %18821 = vmatpush3.msk.msra.mxu1 %vm240_vm0, %v22427_v13  ;;  %v22650_v13 = vld [vmem:[%s28350_s0 + $0x22a] sm:$0xff] }
  0x69   :  { %18752 = vmatmul.mubr.msk.f32.gmra.mrb[2].mxu1 %vm95_vm1, %v600_v41  ;;  %19608 = vmatmul.mubr.msk.f32.gmra.mrb[30].mxu0 %vm95_vm1, %v22626_v43  ;;  %v628_v41 = vld [vmem:[%s28350_s0 + $0x1d1] sm:$0xff] }
  0x6a   :  { %18754 = vmatprep.mubr.msk.f32.mxu1 %vm95_vm1, %v22042_v3  ;;  %19610 = vmatprep.mubr.msk.f32.mxu0 %vm95_vm1, %v22631_v45  ;;  %v22663_v3 = vld [vmem:[%s28350_s0 + $0x232] sm:$0xff] }
  0x6d   :  { %18755 = vmatmul.mubr.msk.f32.gmra.mrb[4].mxu1 %vm95_vm1, %v22050_v5  ;;  %19611 = vmatmul.mubr.msk.f32.gmra.mrb[32].mxu0 %vm95_vm1, %v22645_v47  ;;  %v22681_v5 = vld [vmem:[%s28350_s0 + $0x24a] sm:$0xff] }
  0x6e   :  { %18757 = vmatprep.mubr.msk.f32.mxu1 %vm95_vm1, %v22066_v8  ;;  %19613 = vmatprep.mubr.msk.f32.mxu0 %vm95_vm1, %v22650_v13  ;;  %v22686_v8 = vld [vmem:[%s28350_s0 + $0x25a] sm:$0xff] }
  0x71   :  { %18758 = vmatmul.mubr.msk.f32.gmra.mrb[6].mxu1 %vm95_vm1, %v22079_v10  ;;  %19614 = vmatmul.mubr.msk.f32.gmra.mrb[34].mxu0 %vm95_vm1, %v22663_v3  ;;  %v22699_v10 = vld [vmem:[%s28350_s0 + $0x262] sm:$0xff] }
  0x72   :  { %18760 = vmatprep.mubr.msk.f32.mxu1 %vm95_vm1, %v22090_v12  ;;  %19616 = vmatprep.mubr.msk.f32.mxu0 %vm95_vm1, %v22668_v49  ;;  %v22704_v12 = vld [vmem:[%s28350_s0 + $0x272] sm:$0xff] }
  0x75   :  { %18761 = vmatmul.mubr.msk.f32.gmra.mrb[8].mxu1 %vm95_vm1, %v22104_v14  ;;  %19617 = vmatmul.mubr.msk.f32.gmra.mrb[36].mxu0 %vm95_vm1, %v22681_v5  ;;  %v22717_v14 = vld [vmem:[%s28350_s0 + $0x27a] sm:$0xff] }
  0x76   :  { %18763 = vmatprep.mubr.msk.f32.mxu1 %vm95_vm1, %v22112_v16  ;;  %19619 = vmatprep.mubr.msk.f32.mxu0 %vm95_vm1, %v22686_v8  ;;  %v22722_v16 = vld [vmem:[%s28350_s0 + $0x28a] sm:$0xff] }
  0x79   :  { %18764 = vmatmul.mubr.msk.f32.gmra.mrb[10].mxu1 %vm95_vm1, %v22126_v18  ;;  %19620 = vmatmul.mubr.msk.f32.gmra.mrb[38].mxu0 %vm95_vm1, %v22699_v10  ;;  %v22735_v18 = vld [vmem:[%s28350_s0 + $0x292] sm:$0xff] }
  0x7a   :  { %18766 = vmatprep.mubr.msk.f32.mxu1 %vm95_vm1, %v22134_v20  ;;  %19622 = vmatprep.mubr.msk.f32.mxu0 %vm95_vm1, %v22704_v12  ;;  %v16195_v20 = vld [vmem:[%s28350_s0 + $0x2a2] sm:$0xff] }
  0x7d   :  { %18767 = vmatmul.mubr.msk.f32.gmra.mrb[12].mxu1 %vm95_vm1, %v22153_v23  ;;  %19623 = vmatmul.mubr.msk.f32.gmra.mrb[40].mxu0 %vm95_vm1, %v22717_v14  ;;  %v16196_v23 = vld [vmem:[%s28350_s0 + $0x2aa] sm:$0xff] }
  0x7e   :  { %18769 = vmatprep.mubr.msk.f32.mxu1 %vm95_vm1, %v22161_v25  ;;  %19625 = vmatprep.mubr.msk.f32.mxu0 %vm95_vm1, %v22722_v16  ;;  %v16197_v25 = vld [vmem:[%s28350_s0 + $0x2ba] sm:$0xff] }
  0x81   :  { %18770 = vmatmul.mubr.msk.f32.gmra.mrb[14].mxu1 %vm95_vm1, %v22177_v27  ;;  %19626 = vmatmul.mubr.msk.f32.gmra.mrb[42].mxu0 %vm95_vm1, %v22735_v18  ;;  %v16198_v27 = vld [vmem:[%s28350_s0 + $0x2c2] sm:$0xff] }
  0x82   :  { %18772 = vmatprep.mubr.msk.f32.mxu1 %vm95_vm1, %v22185_v29  ;;  %19628 = vmatprep.mubr.msk.f32.mxu0 %vm95_vm1, %v16195_v20  ;;  %v22765_v29 = vld [vmem:[%s28350_s0 + $0x33] sm:$0xff] }
  0x83   :  { %v22893_v20 = vld [vmem:[%s28350_s0 + $0xb3] sm:$0xff] }
  0x85   :  { %18773 = vmatmul.mubr.msk.f32.gmra.mrb[16].mxu1 %vm95_vm1, %v22199_v31  ;;  %19629 = vmatmul.mubr.msk.f32.gmra.mrb[44].mxu0 %vm95_vm1, %v16196_v23  ;;  %v22777_v31 = vld [vmem:[%s28350_s0 + $0x3b] sm:$0xff] }
  0x86   :  { %18775 = vmatprep.mubr.msk.f32.mxu1 %vm95_vm1, %v22207_v33  ;;  %19631 = vmatprep.mubr.msk.f32.mxu0 %vm95_vm1, %v16197_v25  ;;  %v22782_v33 = vld [vmem:[%s28350_s0 + $0x4b] sm:$0xff]  ;;  %v629_v23 = vld [vmem:[%s28350_s0 + $0x1e1] sm:$0xff] }
  0x87   :  { %v22901_v25 = vld [vmem:[%s28350_s0 + $0xc3] sm:$0xff] }
  0x89   :  { %18776 = vmatmul.mubr.msk.f32.gmra.mrb[18].mxu1 %vm95_vm1, %v22221_v35  ;;  %19632 = vmatmul.mubr.msk.f32.gmra.mrb[46].mxu0 %vm95_vm1, %v16198_v27  ;;  %v22787_v35 = vld [vmem:[%s28351_s1 + $0x3c] sm:$0xf]  ;;  %v22909_v27 = vld [vmem:[%s28351_s1 + $0xc] sm:$0xf] }
  0x8a   :  { %18778 = vmatprep.mubr.msk.f32.mxu1 %vm95_vm1, %v22229_v37  ;;  %19636 = vmatprep.mubr.msk.f32.mxu0 %vm95_vm1, %v22765_v29  ;;  %v22800_v37 = vld [vmem:[%s28350_s0 + $0x53] sm:$0xff] }
  0x8b   :  { %18894 = vmatprep.subr.msk.mxu1 %vm240_vm0, %v22909_v27 }
  0x8d   :  { %18779 = vmatmul.mubr.msk.f32.gmra.mrb[20].mxu1 %vm95_vm1, %v22243_v39  ;;  %19637 = vmatmul.mubr.msk.f32.vlgmr.msra.gmra.mrb[0].mxu0 %vm95_vm1, %v22777_v31  ;;  %v621_v39 = vld [vmem:[%s28350_s0 + $0x181] sm:$0xff] }
  0x8e   :  { %19709 = vmatpush3.msk.msra.mxu0 %vm240_vm0, %v22305_v51  ;;  %18781 = vmatprep.mubr.msk.f32.mxu1 %vm95_vm1, %v22254_v42  ;;  %v622_v42 = vld [vmem:[%s28350_s0 + $0x189] sm:$0xff] }
  0x8f   :  { %19639 = vmatprep.mubr.msk.f32.mxu0 %vm95_vm1, %v22782_v33  ;;  %19782 = vmatprep.subr.msk.mxu0 %vm240_vm0, %v22787_v35  ;;  %v22827_v51 = vld [vmem:[%s28350_s0 + $0x6b] sm:$0xff] }
  0x91   :  { %18782 = vmatmul.mubr.msk.f32.gmra.mrb[22].mxu1 %vm95_vm1, %v22270_v44  ;;  %19640 = vmatmul.mubr.msk.f32.gmra.mrb[2].mxu0 %vm95_vm1, %v22800_v37  ;;  %v623_v44 = vld [vmem:[%s28350_s0 + $0x199] sm:$0xff] }
  0x92   :  { %18784 = vmatprep.mubr.msk.f32.mxu1 %vm95_vm1, %v621_v39  ;;  %19642 = vmatprep.mubr.msk.f32.mxu0 %vm95_vm1, %v22810_v52  ;;  %v630_v39 = vld [vmem:[%s28350_s0 + $0x1e9] sm:$0xff] }
  0x95   :  { %18785 = vmatmul.mubr.msk.f32.gmra.mrb[24].mxu1 %vm95_vm1, %v622_v42  ;;  %19643 = vmatmul.mubr.msk.f32.gmra.mrb[4].mxu0 %vm95_vm1, %v22827_v51  ;;  %v22920_v42 = vld [vmem:[%s28350_s0 + $0xcb] sm:$0xff] }
  0x96   :  { %18787 = vmatprep.mubr.msk.f32.mxu1 %vm95_vm1, %v623_v44  ;;  %19645 = vmatprep.mubr.msk.f32.mxu0 %vm95_vm1, %v22835_v54  ;;  %v631_v44 = vld [vmem:[%s28350_s0 + $0x1f9] sm:$0xff] }
  0x99   :  { %18788 = vmatmul.mubr.msk.f32.gmra.mrb[26].mxu1 %vm95_vm1, %v624_v56  ;;  %19646 = vmatmul.mubr.msk.f32.gmra.mrb[6].mxu0 %vm95_vm1, %v22849_v58  ;;  %v22928_v56 = vld [vmem:[%s28350_s0 + $0xdb] sm:$0xff] }
  0x9a   :  { %18790 = vmatprep.mubr.msk.f32.mxu1 %vm95_vm1, %v625_v62  ;;  %19648 = vmatprep.mubr.msk.f32.mxu0 %vm95_vm1, %v22857_v2  ;;  %v632_v62 = vld [vmem:[%s28350_s0 + $0x201] sm:$0xff] }
  0x9d   :  { %18791 = vmatmul.mubr.msk.f32.gmra.mrb[28].mxu1 %vm95_vm1, %v626_v9  ;;  %19649 = vmatmul.mubr.msk.f32.gmra.mrb[8].mxu0 %vm95_vm1, %v22871_v19  ;;  %v22944_v9 = vld [vmem:[%s28350_s0 + $0xe3] sm:$0xff] }
  0x9e   :  { %18793 = vmatprep.mubr.msk.f32.mxu1 %vm95_vm1, %v627_v26  ;;  %19651 = vmatprep.mubr.msk.f32.mxu0 %vm95_vm1, %v22879_v34  ;;  %28411 = vst [vmem:[#allocation6_spill] sm:$0xff] %v22944_v9  ;;  %v633_v26 = vld [vmem:[%s28350_s0 + $0x211] sm:$0xff] }
  0xa1   :  { %18794 = vmatmul.mubr.msk.f32.gmra.mrb[30].mxu1 %vm95_vm1, %v628_v41  ;;  %19652 = vmatmul.mubr.msk.f32.gmra.mrb[10].mxu0 %vm95_vm1, %v22893_v20  ;;  %v22952_v41 = vld [vmem:[%s28350_s0 + $0xf3] sm:$0xff] }
  0xa2   :  { %18796 = vmatprep.mubr.msk.f32.mxu1 %vm95_vm1, %v629_v23  ;;  %19654 = vmatprep.mubr.msk.f32.mxu0 %vm95_vm1, %v22901_v25  ;;  %28412 = vst [vmem:[#allocation7_spill] sm:$0xff] %v22952_v41  ;;  %v634_v23 = vld [vmem:[%s28350_s0 + $0x219] sm:$0xff] }
  0xa5   :  { %18797 = vmatmul.mubr.msk.f32.gmra.mrb[32].mxu1 %vm95_vm1, %v630_v39  ;;  %19655 = vmatmul.mubr.msk.f32.gmra.mrb[12].mxu0 %vm95_vm1, %v22920_v42  ;;  %v22966_v39 = vld [vmem:[%s28350_s0 + $0xfb] sm:$0xff] }
  0xa6   :  { %18799 = vmatprep.mubr.msk.f32.mxu1 %vm95_vm1, %v631_v44  ;;  %19657 = vmatprep.mubr.msk.f32.mxu0 %vm95_vm1, %v22928_v56  ;;  %28413 = vst [vmem:[#allocation8_spill] sm:$0xff] %v22966_v39  ;;  %v635_v44 = vld [vmem:[%s28350_s0 + $0x229] sm:$0xff] }
  0xa9   :  { %18800 = vmatmul.mubr.msk.f32.gmra.mrb[34].mxu1 %vm95_vm1, %v632_v62  ;;  %19658 = vmatmul.mubr.msk.f32.gmra.mrb[14].mxu0 %vm95_vm1, %v22944_v9  ;;  %v22974_v62 = vld [vmem:[%s28350_s0 + $0x10b] sm:$0xff]  ;;  %v639_v9 = vld [vmem:[%s28350_s0 + $0x259] sm:$0xff] }
  0xaa   :  { %18802 = vmatprep.mubr.msk.f32.mxu1 %vm95_vm1, %v633_v26  ;;  %19660 = vmatprep.mubr.msk.f32.mxu0 %vm95_vm1, %v22952_v41  ;;  %28414 = vst [vmem:[#allocation9_spill] sm:$0xff] %v22974_v62  ;;  %v636_v26 = vld [vmem:[%s28350_s0 + $0x231] sm:$0xff] }
  0xab   :  { %v22988_v41 = vld [vmem:[%s28350_s0 + $0x113] sm:$0xff] }
  0xac   :  { %28415 = vst [vmem:[#allocation10_spill] sm:$0xff] %v22988_v41 }
  0xad   :  { %18803 = vmatmul.mubr.msk.f32.gmra.mrb[36].mxu1 %vm95_vm1, %v634_v23  ;;  %19661 = vmatmul.mubr.msk.f32.gmra.mrb[16].mxu0 %vm95_vm1, %v22966_v39  ;;  %v637_v23 = vld [vmem:[%s28350_s0 + $0x241] sm:$0xff]  ;;  %v16270_v39 = vld [vmem:[%s28350_s0 + $0x12b] sm:$0xff] }
  0xae   :  { %18805 = vmatprep.mubr.msk.f32.mxu1 %vm95_vm1, %v635_v44  ;;  %19663 = vmatprep.mubr.msk.f32.mxu0 %vm95_vm1, %v22974_v62  ;;  %v16269_v44 = vld [vmem:[%s28350_s0 + $0x123] sm:$0xff] }
  0xaf   :  { %v638_v62 = vld [vmem:[%s28350_s0 + $0x249] sm:$0xff] }
  0xb1   :  { %18806 = vmatmul.mubr.msk.f32.gmra.mrb[38].mxu1 %vm95_vm1, %v636_v26  ;;  %19664 = vmatmul.mubr.msk.f32.gmra.mrb[18].mxu0 %vm95_vm1, %v22988_v41  ;;  %v16271_v26 = vld [vmem:[%s28350_s0 + $0x13b] sm:$0xff]  ;;  %v641_v41 = vld [vmem:[%s28350_s0 + $0x271] sm:$0xff] }
  0xb2   :  { %18808 = vmatprep.mubr.msk.f32.mxu1 %vm95_vm1, %v637_v23  ;;  %19666 = vmatprep.mubr.msk.f32.mxu0 %vm95_vm1, %v16269_v44  ;;  %v640_v23 = vld [vmem:[%s28350_s0 + $0x261] sm:$0xff] }
  0xb3   :  { %v16272_v44 = vld [vmem:[%s28350_s0 + $0x143] sm:$0xff] }
  0xb5   :  { %18809 = vmatmul.mubr.msk.f32.gmra.mrb[40].mxu1 %vm95_vm1, %v638_v62  ;;  %19667 = vmatmul.mubr.msk.f32.gmra.mrb[20].mxu0 %vm95_vm1, %v16270_v39  ;;  %v23029_v39 = vld [vmem:[%s28350_s0 + $0x1b3] sm:$0xff]  ;;  %v23042_v62 = vld [vmem:[%s28350_s0 + $0x1bb] sm:$0xff] }
  0xb6   :  { %18811 = vmatprep.mubr.msk.f32.mxu1 %vm95_vm1, %v639_v9  ;;  %19669 = vmatprep.mubr.msk.f32.mxu0 %vm95_vm1, %v16271_v26  ;;  %v642_v9 = vld [vmem:[%s28350_s0 + $0x279] sm:$0xff]  ;;  %28416 = vst [vmem:[#allocation11_spill] sm:$0xff] %v23042_v62  ;;  %v643_v26 = vld [vmem:[%s28350_s0 + $0x289] sm:$0xff] }
  0xb9   :  { %18812 = vmatmul.mubr.msk.f32.gmra.mrb[42].mxu1 %vm95_vm1, %v640_v23  ;;  %19670 = vmatmul.mubr.msk.f32.gmra.mrb[22].mxu0 %vm95_vm1, %v16272_v44  ;;  %v644_v23 = vld [vmem:[%s28350_s0 + $0x291] sm:$0xff] }
  0xba   :  { %18814 = vmatprep.mubr.msk.f32.mxu1 %vm95_vm1, %v641_v41  ;;  %19672 = vmatprep.mubr.msk.f32.mxu0 %vm95_vm1, %v23029_v39  ;;  %v23050_v41 = vld [vmem:[%s28350_s0 + $0x1cb] sm:$0xff]  ;;  %v23064_v44 = vld [vmem:[%s28350_s0 + $0x1d3] sm:$0xff] }
  0xbb   :  { %28417 = vst [vmem:[#allocation12_spill] sm:$0xff] %v23050_v41  ;;  %28418 = vst [vmem:[#allocation13_spill] sm:$0xff] %v23064_v44 }
  0xbd   :  { %18815 = vmatmul.mubr.msk.f32.gmra.mrb[44].mxu1 %vm95_vm1, %v642_v9  ;;  %19673 = vmatmul.mubr.msk.f32.gmra.mrb[24].mxu0 %vm95_vm1, %v23042_v62  ;;  %v1147_v9 = vld [vmem:[%s28350_s0 + $0x2] sm:$0xff]  ;;  %v23086_v62 = vld [vmem:[%s28350_s0 + $0x1eb] sm:$0xff] }
  0xbe   :  { %18817 = vmatprep.mubr.msk.f32.mxu1 %vm95_vm1, %v643_v26  ;;  %19675 = vmatprep.mubr.msk.f32.mxu0 %vm95_vm1, %v23050_v41  ;;  %v23072_v26 = vld [vmem:[%s28350_s0 + $0x1e3] sm:$0xff] }
  0xbf   :  { %28419 = vst [vmem:[#allocation14_spill] sm:$0xff] %v23072_v26  ;;  %v1148_v41 = vld [vmem:[%s28350_s0 + $0xa] sm:$0xff] }
  0xc1   :  { %18818 = vmatmul.mubr.msk.f32.gmra.mrb[46].mxu1 %vm95_vm1, %v644_v23  ;;  %19676 = vmatmul.mubr.msk.f32.gmra.mrb[26].mxu0 %vm95_vm1, %v23064_v44  ;;  %v1149_v23 = vld [vmem:[%s28350_s0 + $0x1a] sm:$0xff]  ;;  %v23108_v44 = vld [vmem:[%s28350_s0 + $0x203] sm:$0xff] }
  0xc2   :  { %18822 = vmatprep.mubr.msk.f32.mxu1 %vm95_vm1, %v1147_v9  ;;  %19678 = vmatprep.mubr.msk.f32.mxu0 %vm95_vm1, %v23072_v26  ;;  %v23094_v9 = vld [vmem:[%s28350_s0 + $0x1fb] sm:$0xff] }
  0xc3   :  { %v1150_v26 = vld [vmem:[%s28350_s0 + $0x22] sm:$0xff] }
  0xc5   :  { %18823 = vmatmul.mubr.msk.f32.vlgmr.msra.gmra.mrb[0].mxu1 %vm95_vm1, %v1148_v41  ;;  %19679 = vmatmul.mubr.msk.f32.gmra.mrb[28].mxu0 %vm95_vm1, %v23086_v62  ;;  %v23113_v41 = vld [vmem:[%s28350_s0 + $0x213] sm:$0xff] }
  0xc6   :  { %18825 = vmatprep.mubr.msk.f32.mxu1 %vm95_vm1, %v1149_v23  ;;  %19681 = vmatprep.mubr.msk.f32.mxu0 %vm95_vm1, %v23094_v9  ;;  %v23127_v23 = vld [vmem:[%s28350_s0 + $0x21b] sm:$0xff] }
  0xc7   :  { %18895 = vmatpush3.msk.msra.mxu1 %vm240_vm0, %v22909_v27  ;;  %v23132_v27 = vld [vmem:[%s28350_s0 + $0x22b] sm:$0xff] }
  0xc9   :  { %18826 = vmatmul.mubr.msk.f32.gmra.mrb[2].mxu1 %vm95_vm1, %v1150_v26  ;;  %19682 = vmatmul.mubr.msk.f32.gmra.mrb[30].mxu0 %vm95_vm1, %v23108_v44  ;;  %v23150_v26 = vld [vmem:[%s28350_s0 + $0x243] sm:$0xff] }
  0xca   :  { %18828 = vmatprep.mubr.msk.f32.mxu1 %vm95_vm1, %v22278_v46  ;;  %19684 = vmatprep.mubr.msk.f32.mxu0 %vm95_vm1, %v23113_v41  ;;  %v23145_v46 = vld [vmem:[%s28350_s0 + $0x233] sm:$0xff] }
  0xcd   :  { %18829 = vmatmul.mubr.msk.f32.gmra.mrb[4].mxu1 %vm95_vm1, %v22292_v48  ;;  %19685 = vmatmul.mubr.msk.f32.gmra.mrb[32].mxu0 %vm95_vm1, %v23127_v23  ;;  %v23163_v48 = vld [vmem:[%s28350_s0 + $0x24b] sm:$0xff] }
  0xce   :  { %18831 = vmatprep.mubr.msk.f32.mxu1 %vm95_vm1, %v22300_v50  ;;  %19687 = vmatprep.mubr.msk.f32.mxu0 %vm95_vm1, %v23132_v27  ;;  %v23168_v50 = vld [vmem:[%s28350_s0 + $0x25b] sm:$0xff] }
  0xd1   :  { %18832 = vmatmul.mubr.msk.f32.gmra.mrb[6].mxu1 %vm95_vm1, %v22319_v53  ;;  %19688 = vmatmul.mubr.msk.f32.gmra.mrb[34].mxu0 %vm95_vm1, %v23145_v46  ;;  %v23181_v53 = vld [vmem:[%s28350_s0 + $0x263] sm:$0xff] }
  0xd2   :  { %18834 = vmatprep.mubr.msk.f32.mxu1 %vm95_vm1, %v22329_v55  ;;  %19690 = vmatprep.mubr.msk.f32.mxu0 %vm95_vm1, %v23150_v26  ;;  %v23186_v55 = vld [vmem:[%s28350_s0 + $0x273] sm:$0xff] }
  0xd5   :  { %18835 = vmatmul.mubr.msk.f32.gmra.mrb[8].mxu1 %vm95_vm1, %v22345_v57  ;;  %19691 = vmatmul.mubr.msk.f32.gmra.mrb[36].mxu0 %vm95_vm1, %v23163_v48  ;;  %v23199_v57 = vld [vmem:[%s28350_s0 + $0x27b] sm:$0xff] }
  0xd6   :  { %18837 = vmatprep.mubr.msk.f32.mxu1 %vm95_vm1, %v22353_v59  ;;  %19693 = vmatprep.mubr.msk.f32.mxu0 %vm95_vm1, %v23168_v50  ;;  %v23204_v59 = vld [vmem:[%s28350_s0 + $0x28b] sm:$0xff] }
  0xd9   :  { %18838 = vmatmul.mubr.msk.f32.gmra.mrb[10].mxu1 %vm95_vm1, %v22367_v61  ;;  %19694 = vmatmul.mubr.msk.f32.gmra.mrb[38].mxu0 %vm95_vm1, %v23181_v53  ;;  %v23217_v61 = vld [vmem:[%s28350_s0 + $0x293] sm:$0xff] }
  0xda   :  { %18840 = vmatprep.mubr.msk.f32.mxu1 %vm95_vm1, %v22375_v63  ;;  %19696 = vmatprep.mubr.msk.f32.mxu0 %vm95_vm1, %v23186_v55  ;;  %v16293_v63 = vld [vmem:[%s28350_s0 + $0x2a3] sm:$0xff] }
  0xdd   :  { %18841 = vmatmul.mubr.msk.f32.gmra.mrb[12].mxu1 %vm95_vm1, %v22389_v1  ;;  %19697 = vmatmul.mubr.msk.f32.gmra.mrb[40].mxu0 %vm95_vm1, %v23199_v57  ;;  %v16294_v1 = vld [vmem:[%s28350_s0 + $0x2ab] sm:$0xff] }
  0xde   :  { %18843 = vmatprep.mubr.msk.f32.mxu1 %vm95_vm1, %v22397_v4  ;;  %19699 = vmatprep.mubr.msk.f32.mxu0 %vm95_vm1, %v23204_v59  ;;  %v16295_v4 = vld [vmem:[%s28350_s0 + $0x2bb] sm:$0xff] }
  0xe1   :  { %18844 = vmatmul.mubr.msk.f32.gmra.mrb[14].mxu1 %vm95_vm1, %v22411_v7  ;;  %19700 = vmatmul.mubr.msk.f32.gmra.mrb[42].mxu0 %vm95_vm1, %v23217_v61  ;;  %v16296_v7 = vld [vmem:[%s28350_s0 + $0x2c3] sm:$0xff] }
  0xe2   :  { %18846 = vmatprep.mubr.msk.f32.mxu1 %vm95_vm1, %v22419_v11  ;;  %19702 = vmatprep.mubr.msk.f32.mxu0 %vm95_vm1, %v16293_v63  ;;  %v23247_v11 = vld [vmem:[%s28350_s0 + $0x34] sm:$0xff]  ;;  %v23292_v63 = vld [vmem:[%s28350_s0 + $0x64] sm:$0xff] }
  0xe5   :  { %18847 = vmatmul.mubr.msk.f32.gmra.mrb[16].mxu1 %vm95_vm1, %v22438_v17  ;;  %19703 = vmatmul.mubr.msk.f32.gmra.mrb[44].mxu0 %vm95_vm1, %v16294_v1  ;;  %v23259_v17 = vld [vmem:[%s28350_s0 + $0x3c] sm:$0xff] }
  0xe6   :  { %18849 = vmatprep.mubr.msk.f32.mxu1 %vm95_vm1, %v22446_v21  ;;  %19705 = vmatprep.mubr.msk.f32.mxu0 %vm95_vm1, %v16295_v4  ;;  %v23264_v21 = vld [vmem:[%s28350_s0 + $0x4c] sm:$0xff]  ;;  %v23317_v1 = vld [vmem:[%s28350_s0 + $0x7c] sm:$0xff] }
  0xe7   :  { %v1174_v4 = vld [vmem:[%s28350_s0 + $0x1a2] sm:$0xff] }
  0xe9   :  { %18850 = vmatmul.mubr.msk.f32.gmra.mrb[18].mxu1 %vm95_vm1, %v22462_v24  ;;  %19706 = vmatmul.mubr.msk.f32.gmra.mrb[46].mxu0 %vm95_vm1, %v16296_v7  ;;  %v23269_v24 = vld [vmem:[%s28351_s1 + $0x40] sm:$0xf]  ;;  %v23331_v7 = vld [vmem:[%s28350_s0 + $0x84] sm:$0xff] }
  0xea   :  { %18852 = vmatprep.mubr.msk.f32.mxu1 %vm95_vm1, %v22470_v28  ;;  %19710 = vmatprep.mubr.msk.f32.mxu0 %vm95_vm1, %v23247_v11  ;;  %v23282_v28 = vld [vmem:[%s28350_s0 + $0x54] sm:$0xff] }
  0xed   :  { %18853 = vmatmul.mubr.msk.f32.gmra.mrb[20].mxu1 %vm95_vm1, %v22484_v32  ;;  %19711 = vmatmul.mubr.msk.f32.vlgmr.msra.gmra.mrb[0].mxu0 %vm95_vm1, %v23259_v17  ;;  %v1171_v32 = vld [vmem:[%s28350_s0 + $0x182] sm:$0xff] }
  0xee   :  { %19783 = vmatpush3.msk.msra.mxu0 %vm240_vm0, %v22787_v35  ;;  %18855 = vmatprep.mubr.msk.f32.mxu1 %vm95_vm1, %v22492_v36  ;;  %v1172_v36 = vld [vmem:[%s28350_s0 + $0x18a] sm:$0xff] }
  0xef   :  { %19713 = vmatprep.mubr.msk.f32.mxu0 %vm95_vm1, %v23264_v21  ;;  %19856 = vmatprep.subr.msk.mxu0 %vm240_vm0, %v23269_v24  ;;  %v23309_v35 = vld [vmem:[%s28350_s0 + $0x6c] sm:$0xff] }
  0xf1   :  { %18856 = vmatmul.mubr.msk.f32.gmra.mrb[22].mxu1 %vm95_vm1, %v22506_v40  ;;  %19714 = vmatmul.mubr.msk.f32.gmra.mrb[2].mxu0 %vm95_vm1, %v23282_v28  ;;  %v1173_v40 = vld [vmem:[%s28350_s0 + $0x19a] sm:$0xff] }
  0xf2   :  { %18858 = vmatprep.mubr.msk.f32.mxu1 %vm95_vm1, %v1171_v32  ;;  %19716 = vmatprep.mubr.msk.f32.mxu0 %vm95_vm1, %v23292_v63  ;;  %v23336_v32 = vld [vmem:[%s28350_s0 + $0x94] sm:$0xff] }
  0xf5   :  { %18859 = vmatmul.mubr.msk.f32.gmra.mrb[24].mxu1 %vm95_vm1, %v1172_v36  ;;  %19717 = vmatmul.mubr.msk.f32.gmra.mrb[4].mxu0 %vm95_vm1, %v23309_v35  ;;  %v23348_v36 = vld [vmem:[%s28350_s0 + $0x9c] sm:$0xff] }
  0xf6   :  { %18861 = vmatprep.mubr.msk.f32.mxu1 %vm95_vm1, %v1173_v40  ;;  %19719 = vmatprep.mubr.msk.f32.mxu0 %vm95_vm1, %v23317_v1  ;;  %v23353_v40 = vld [vmem:[%s28350_s0 + $0xac] sm:$0xff] }
  0xf9   :  { %18862 = vmatmul.mubr.msk.f32.gmra.mrb[26].mxu1 %vm95_vm1, %v1174_v4  ;;  %19720 = vmatmul.mubr.msk.f32.gmra.mrb[6].mxu0 %vm95_vm1, %v23331_v7  ;;  %v23371_v4 = vld [vmem:[%s28350_s0 + $0xc4] sm:$0xff] }
  0xfa   :  { %18864 = vmatprep.mubr.msk.f32.mxu1 %vm95_vm1, %v22547_v60  ;;  %19722 = vmatprep.mubr.msk.f32.mxu0 %vm95_vm1, %v23336_v32  ;;  %v23366_v60 = vld [vmem:[%s28350_s0 + $0xb4] sm:$0xff]  ;;  %28420 = vst [vmem:[#allocation15_spill] sm:$0xff] %v23371_v4 }
  0xfd   :  { %18865 = vmatmul.mubr.msk.f32.gmra.mrb[28].mxu1 %vm95_vm1, %v22560_v0  ;;  %19723 = vmatmul.mubr.msk.f32.gmra.mrb[8].mxu0 %vm95_vm1, %v23348_v36  ;;  %v23380_v0 = vld [vmem:[%s28351_s1 + $0x10] sm:$0xf] }
  0xfe   :  { %18867 = vmatprep.mubr.msk.f32.mxu1 %vm95_vm1, %v22568_v6  ;;  %19725 = vmatprep.mubr.msk.f32.mxu0 %vm95_vm1, %v23353_v40  ;;  %v23389_v6 = vld [vmem:[%s28350_s0 + $0xcc] sm:$0xff] }
  0xff   :  { %18968 = vmatprep.subr.msk.mxu1 %vm240_vm0, %v23380_v0 }
 0x101   :  { %18868 = vmatmul.mubr.msk.f32.gmra.mrb[30].mxu1 %vm95_vm1, %v22582_v15  ;;  %19726 = vmatmul.mubr.msk.f32.gmra.mrb[10].mxu0 %vm95_vm1, %v23366_v60  ;;  %v23394_v15 = vld [vmem:[%s28350_s0 + $0xdc] sm:$0xff] }
 0x102   :  { %18870 = vmatprep.mubr.msk.f32.mxu1 %vm95_vm1, %v22590_v22  ;;  %19728 = vmatprep.mubr.msk.f32.mxu0 %vm95_vm1, %v23371_v4  ;;  %v23409_v22 = vld [vmem:[%s28350_s0 + $0xe4] sm:$0xff]  ;;  %v23414_v4 = vld [vmem:[%s28350_s0 + $0xf4] sm:$0xff] }
 0x105   :  { %18871 = vmatmul.mubr.msk.f32.gmra.mrb[32].mxu1 %vm95_vm1, %v22604_v30  ;;  %19729 = vmatmul.mubr.msk.f32.gmra.mrb[12].mxu0 %vm95_vm1, %v23389_v6  ;;  %v23427_v30 = vld [vmem:[%s28350_s0 + $0xfc] sm:$0xff] }
 0x106   :  { %18873 = vmatprep.mubr.msk.f32.mxu1 %vm95_vm1, %v22612_v38  ;;  %19731 = vmatprep.mubr.msk.f32.mxu0 %vm95_vm1, %v23394_v15  ;;  %v23432_v38 = vld [vmem:[%s28350_s0 + $0x10c] sm:$0xff] }
 0x109   :  { %18874 = vmatmul.mubr.msk.f32.gmra.mrb[34].mxu1 %vm95_vm1, %v22626_v43  ;;  %19732 = vmatmul.mubr.msk.f32.gmra.mrb[14].mxu0 %vm95_vm1, %v23409_v22  ;;  %v23445_v43 = vld [vmem:[%s28350_s0 + $0x114] sm:$0xff] }
 0x10a   :  { %18876 = vmatprep.mubr.msk.f32.mxu1 %vm95_vm1, %v22631_v45  ;;  %19734 = vmatprep.mubr.msk.f32.mxu0 %vm95_vm1, %v23414_v4  ;;  %v16367_v45 = vld [vmem:[%s28350_s0 + $0x124] sm:$0xff] }
 0x10d   :  { %18877 = vmatmul.mubr.msk.f32.gmra.mrb[36].mxu1 %vm95_vm1, %v22645_v47  ;;  %19735 = vmatmul.mubr.msk.f32.gmra.mrb[16].mxu0 %vm95_vm1, %v23427_v30  ;;  %v16368_v47 = vld [vmem:[%s28350_s0 + $0x12c] sm:$0xff] }
 0x10e   :  { %18879 = vmatprep.mubr.msk.f32.mxu1 %vm95_vm1, %v22650_v13  ;;  %19737 = vmatprep.mubr.msk.f32.mxu0 %vm95_vm1, %v23432_v38  ;;  %v16369_v13 = vld [vmem:[%s28350_s0 + $0x13c] sm:$0xff] }
 0x111   :  { %18880 = vmatmul.mubr.msk.f32.gmra.mrb[38].mxu1 %vm95_vm1, %v22663_v3  ;;  %19738 = vmatmul.mubr.msk.f32.gmra.mrb[18].mxu0 %vm95_vm1, %v23445_v43  ;;  %v16370_v3 = vld [vmem:[%s28350_s0 + $0x144] sm:$0xff] }
 0x112   :  { %18882 = vmatprep.mubr.msk.f32.mxu1 %vm95_vm1, %v22668_v49  ;;  %19740 = vmatprep.mubr.msk.f32.mxu0 %vm95_vm1, %v16367_v45  ;;  %v23475_v49 = vld [vmem:[%s28350_s0 + $0x1b4] sm:$0xff]  ;;  %v23528_v45 = vld [vmem:[%s28350_s0 + $0x1ec] sm:$0xff] }
 0x115   :  { %18883 = vmatmul.mubr.msk.f32.gmra.mrb[40].mxu1 %vm95_vm1, %v22681_v5  ;;  %19741 = vmatmul.mubr.msk.f32.gmra.mrb[20].mxu0 %vm95_vm1, %v16368_v47  ;;  %v23487_v5 = vld [vmem:[%s28350_s0 + $0x1bc] sm:$0xff] }
 0x116   :  { %18885 = vmatprep.mubr.msk.f32.mxu1 %vm95_vm1, %v22686_v8  ;;  %19743 = vmatprep.mubr.msk.f32.mxu0 %vm95_vm1, %v16369_v13  ;;  %v23492_v8 = vld [vmem:[%s28350_s0 + $0x1cc] sm:$0xff]  ;;  %v23536_v47 = vld [vmem:[%s28350_s0 + $0x1fc] sm:$0xff] }
 0x117   :  { %v1700_v13 = vld [vmem:[%s28350_s0 + $0x23] sm:$0xff] }
 0x119   :  { %18886 = vmatmul.mubr.msk.f32.gmra.mrb[42].mxu1 %vm95_vm1, %v22699_v10  ;;  %19744 = vmatmul.mubr.msk.f32.gmra.mrb[22].mxu0 %vm95_vm1, %v16370_v3  ;;  %v23505_v10 = vld [vmem:[%s28350_s0 + $0x1d4] sm:$0xff]  ;;  %v23550_v3 = vld [vmem:[%s28350_s0 + $0x204] sm:$0xff] }
 0x11a   :  { %18888 = vmatprep.mubr.msk.f32.mxu1 %vm95_vm1, %v22704_v12  ;;  %19746 = vmatprep.mubr.msk.f32.mxu0 %vm95_vm1, %v23475_v49  ;;  %v1697_v12 = vld [vmem:[%s28350_s0 + $0x3] sm:$0xff] }
 0x11d   :  { %18889 = vmatmul.mubr.msk.f32.gmra.mrb[44].mxu1 %vm95_vm1, %v22717_v14  ;;  %19747 = vmatmul.mubr.msk.f32.gmra.mrb[24].mxu0 %vm95_vm1, %v23487_v5  ;;  %v23513_v14 = vld [vmem:[%s28350_s0 + $0x1e4] sm:$0xff] }
 0x11e   :  { %18891 = vmatprep.mubr.msk.f32.mxu1 %vm95_vm1, %v22722_v16  ;;  %19749 = vmatprep.mubr.msk.f32.mxu0 %vm95_vm1, %v23492_v8  ;;  %v1698_v16 = vld [vmem:[%s28350_s0 + $0xb] sm:$0xff] }
 0x121   :  { %18892 = vmatmul.mubr.msk.f32.gmra.mrb[46].mxu1 %vm95_vm1, %v22735_v18  ;;  %19750 = vmatmul.mubr.msk.f32.gmra.mrb[26].mxu0 %vm95_vm1, %v23505_v10  ;;  %v1699_v18 = vld [vmem:[%s28350_s0 + $0x1b] sm:$0xff] }
 0x122   :  { %18896 = vmatprep.mubr.msk.f32.mxu1 %vm95_vm1, %v1697_v12  ;;  %19752 = vmatprep.mubr.msk.f32.mxu0 %vm95_vm1, %v23513_v14  ;;  %v23555_v12 = vld [vmem:[%s28350_s0 + $0x214] sm:$0xff] }
 0x125   :  { %18897 = vmatmul.mubr.msk.f32.vlgmr.msra.gmra.mrb[0].mxu1 %vm95_vm1, %v1698_v16  ;;  %19753 = vmatmul.mubr.msk.f32.gmra.mrb[28].mxu0 %vm95_vm1, %v23528_v45  ;;  %v23569_v16 = vld [vmem:[%s28350_s0 + $0x21c] sm:$0xff] }
 0x126   :  { %18899 = vmatprep.mubr.msk.f32.mxu1 %vm95_vm1, %v1699_v18  ;;  %19755 = vmatprep.mubr.msk.f32.mxu0 %vm95_vm1, %v23536_v47  ;;  %v23592_v18 = vld [vmem:[%s28350_s0 + $0x244] sm:$0xff] }
 0x127   :  { %18969 = vmatpush3.msk.msra.mxu1 %vm240_vm0, %v23380_v0  ;;  %v23574_v0 = vld [vmem:[%s28350_s0 + $0x22c] sm:$0xff] }
 0x129   :  { %18900 = vmatmul.mubr.msk.f32.gmra.mrb[2].mxu1 %vm95_vm1, %v1700_v13  ;;  %19756 = vmatmul.mubr.msk.f32.gmra.mrb[30].mxu0 %vm95_vm1, %v23550_v3  ;;  %v28421_v13 = vld [vmem:[#allocation6_spill] sm:$0xff] }
 0x12a   :  { %18902 = vmatprep.mubr.msk.f32.mxu1 %vm95_vm1, %v22765_v29  ;;  %19758 = vmatprep.mubr.msk.f32.mxu0 %vm95_vm1, %v23555_v12  ;;  %v23587_v29 = vld [vmem:[%s28350_s0 + $0x234] sm:$0xff] }
 0x12d   :  { %18903 = vmatmul.mubr.msk.f32.gmra.mrb[4].mxu1 %vm95_vm1, %v22777_v31  ;;  %19759 = vmatmul.mubr.msk.f32.gmra.mrb[32].mxu0 %vm95_vm1, %v23569_v16  ;;  %v23605_v31 = vld [vmem:[%s28350_s0 + $0x24c] sm:$0xff] }
 0x12e   :  { %18905 = vmatprep.mubr.msk.f32.mxu1 %vm95_vm1, %v22782_v33  ;;  %19761 = vmatprep.mubr.msk.f32.mxu0 %vm95_vm1, %v23574_v0  ;;  %v23610_v33 = vld [vmem:[%s28350_s0 + $0x25c] sm:$0xff] }
 0x131   :  { %18906 = vmatmul.mubr.msk.f32.gmra.mrb[6].mxu1 %vm95_vm1, %v22800_v37  ;;  %19762 = vmatmul.mubr.msk.f32.gmra.mrb[34].mxu0 %vm95_vm1, %v23587_v29  ;;  %v23623_v37 = vld [vmem:[%s28350_s0 + $0x264] sm:$0xff] }
 0x132   :  { %18908 = vmatprep.mubr.msk.f32.mxu1 %vm95_vm1, %v22810_v52  ;;  %19764 = vmatprep.mubr.msk.f32.mxu0 %vm95_vm1, %v23592_v18  ;;  %v23628_v52 = vld [vmem:[%s28350_s0 + $0x274] sm:$0xff] }
 0x135   :  { %18909 = vmatmul.mubr.msk.f32.gmra.mrb[8].mxu1 %vm95_vm1, %v22827_v51  ;;  %19765 = vmatmul.mubr.msk.f32.gmra.mrb[36].mxu0 %vm95_vm1, %v23605_v31  ;;  %v23641_v51 = vld [vmem:[%s28350_s0 + $0x27c] sm:$0xff] }
 0x136   :  { %18911 = vmatprep.mubr.msk.f32.mxu1 %vm95_vm1, %v22835_v54  ;;  %19767 = vmatprep.mubr.msk.f32.mxu0 %vm95_vm1, %v23610_v33  ;;  %v23646_v54 = vld [vmem:[%s28350_s0 + $0x28c] sm:$0xff] }
 0x139   :  { %18912 = vmatmul.mubr.msk.f32.gmra.mrb[10].mxu1 %vm95_vm1, %v22849_v58  ;;  %19768 = vmatmul.mubr.msk.f32.gmra.mrb[38].mxu0 %vm95_vm1, %v23623_v37  ;;  %v23659_v58 = vld [vmem:[%s28350_s0 + $0x294] sm:$0xff] }
 0x13a   :  { %18914 = vmatprep.mubr.msk.f32.mxu1 %vm95_vm1, %v22857_v2  ;;  %19770 = vmatprep.mubr.msk.f32.mxu0 %vm95_vm1, %v23628_v52  ;;  %v16391_v2 = vld [vmem:[%s28350_s0 + $0x2a4] sm:$0xff] }
 0x13d   :  { %18915 = vmatmul.mubr.msk.f32.gmra.mrb[12].mxu1 %vm95_vm1, %v22871_v19  ;;  %19771 = vmatmul.mubr.msk.f32.gmra.mrb[40].mxu0 %vm95_vm1, %v23641_v51  ;;  %v16392_v19 = vld [vmem:[%s28350_s0 + $0x2ac] sm:$0xff] }
 0x13e   :  { %18917 = vmatprep.mubr.msk.f32.mxu1 %vm95_vm1, %v22879_v34  ;;  %19773 = vmatprep.mubr.msk.f32.mxu0 %vm95_vm1, %v23646_v54  ;;  %v16393_v34 = vld [vmem:[%s28350_s0 + $0x2bc] sm:$0xff] }
 0x141   :  { %18918 = vmatmul.mubr.msk.f32.gmra.mrb[14].mxu1 %vm95_vm1, %v22893_v20  ;;  %19774 = vmatmul.mubr.msk.f32.gmra.mrb[42].mxu0 %vm95_vm1, %v23659_v58  ;;  %v16394_v20 = vld [vmem:[%s28350_s0 + $0x2c4] sm:$0xff] }
 0x142   :  { %18920 = vmatprep.mubr.msk.f32.mxu1 %vm95_vm1, %v22901_v25  ;;  %19776 = vmatprep.mubr.msk.f32.mxu0 %vm95_vm1, %v16391_v2  ;;  %v23689_v25 = vld [vmem:[%s28350_s0 + $0x48] sm:$0xff]  ;;  %v23706_v2 = vld [vmem:[%s28350_s0 + $0x60] sm:$0xff] }
 0x143   :  { %28423 = vst [vmem:[#allocation6_spill] sm:$0xff] %v23706_v2 }
 0x145   :  { %18921 = vmatmul.mubr.msk.f32.gmra.mrb[16].mxu1 %vm95_vm1, %v22920_v42  ;;  %19777 = vmatmul.mubr.msk.f32.gmra.mrb[44].mxu0 %vm95_vm1, %v16392_v19  ;;  %v28422_v42 = vld [vmem:[#allocation7_spill] sm:$0xff]  ;;  %v23711_v19 = vld [vmem:[%s28351_s1 + $0x44] sm:$0xf] }
 0x146   :  { %18923 = vmatprep.mubr.msk.f32.mxu1 %vm95_vm1, %v22928_v56  ;;  %19779 = vmatprep.mubr.msk.f32.mxu0 %vm95_vm1, %v16393_v34  ;;  %v23701_v56 = vld [vmem:[%s28350_s0 + $0x50] sm:$0xff] }
 0x147   :  { %v28424_v34 = vld [vmem:[#allocation8_spill] sm:$0xff] }
 0x149   :  { %18924 = vmatmul.mubr.msk.f32.gmra.mrb[18].mxu1 %vm95_vm1, %v28421_v13  ;;  %19780 = vmatmul.mubr.msk.f32.gmra.mrb[46].mxu0 %vm95_vm1, %v16394_v20  ;;  %v28425_v20 = vld [vmem:[#allocation9_spill] sm:$0xff]  ;;  %v23724_v13 = vld [vmem:[%s28350_s0 + $0x68] sm:$0xff] }
 0x14a   :  { %18926 = vmatprep.mubr.msk.f32.mxu1 %vm95_vm1, %v28422_v42  ;;  %19784 = vmatprep.mubr.msk.f32.mxu0 %vm95_vm1, %v23689_v25  ;;  %28426 = vst [vmem:[#allocation7_spill] sm:$0xff] %v23724_v13  ;;  %v1721_v42 = vld [vmem:[%s28350_s0 + $0x183] sm:$0xff] }
 0x14d   :  { %18927 = vmatmul.mubr.msk.f32.gmra.mrb[20].mxu1 %vm95_vm1, %v28424_v34  ;;  %19785 = vmatmul.mubr.msk.f32.vlgmr.msra.gmra.mrb[0].mxu0 %vm95_vm1, %v23701_v56  ;;  %v23734_v34 = vld [vmem:[%s28350_s0 + $0x78] sm:$0xff] }
 0x14e   :  { %19857 = vmatpush3.msk.msra.mxu0 %vm240_vm0, %v23269_v24  ;;  %18929 = vmatprep.mubr.msk.f32.mxu1 %vm95_vm1, %v28425_v20  ;;  %28427 = vst [vmem:[#allocation8_spill] sm:$0xff] %v23734_v34  ;;  %v28428_v24 = vld [vmem:[#allocation10_spill] sm:$0xff]  ;;  %v1722_v20 = vld [vmem:[%s28350_s0 + $0x18b] sm:$0xff] }
 0x14f   :  { %19787 = vmatprep.mubr.msk.f32.mxu0 %vm95_vm1, %v23706_v2  ;;  %19930 = vmatprep.subr.msk.mxu0 %vm240_vm0, %v23711_v19  ;;  %v23751_v2 = vld [vmem:[%s28350_s0 + $0x80] sm:$0xff] }
 0x151   :  { %18930 = vmatmul.mubr.msk.f32.gmra.mrb[22].mxu1 %vm95_vm1, %v28428_v24  ;;  %19788 = vmatmul.mubr.msk.f32.gmra.mrb[2].mxu0 %vm95_vm1, %v23724_v13  ;;  %v1723_v24 = vld [vmem:[%s28350_s0 + $0x19b] sm:$0xff] }
 0x152   :  { %18932 = vmatprep.mubr.msk.f32.mxu1 %vm95_vm1, %v1721_v42  ;;  %19790 = vmatprep.mubr.msk.f32.mxu0 %vm95_vm1, %v23734_v34  ;;  %v23759_v42 = vld [vmem:[%s28350_s0 + $0x90] sm:$0xff]  ;;  %v1724_v34 = vld [vmem:[%s28350_s0 + $0x1a3] sm:$0xff]  ;;  %v23773_v13 = vld [vmem:[%s28350_s0 + $0x98] sm:$0xff] }
 0x153   :  { %28429 = vst [vmem:[#allocation9_spill] sm:$0xff] %v23759_v42  ;;  %28430 = vst [vmem:[#allocation10_spill] sm:$0xff] %v23773_v13 }
 0x155   :  { %18933 = vmatmul.mubr.msk.f32.gmra.mrb[24].mxu1 %vm95_vm1, %v1722_v20  ;;  %19791 = vmatmul.mubr.msk.f32.gmra.mrb[4].mxu0 %vm95_vm1, %v23751_v2  ;;  %v23778_v20 = vld [vmem:[%s28350_s0 + $0xa8] sm:$0xff] }
 0x156   :  { %18935 = vmatprep.mubr.msk.f32.mxu1 %vm95_vm1, %v1723_v24  ;;  %19793 = vmatprep.mubr.msk.f32.mxu0 %vm95_vm1, %v23759_v42  ;;  %28431 = vst [vmem:[#allocation16_spill] sm:$0xff] %v23778_v20  ;;  %v23790_v24 = vld [vmem:[%s28350_s0 + $0xb0] sm:$0xff]  ;;  %v23795_v42 = vld [vmem:[%s28350_s0 + $0xc0] sm:$0xff] }
 0x157   :  { %28432 = vst [vmem:[#allocation17_spill] sm:$0xff] %v23790_v24  ;;  %28433 = vst [vmem:[#allocation18_spill] sm:$0xff] %v23795_v42 }
 0x159   :  { %18936 = vmatmul.mubr.msk.f32.gmra.mrb[26].mxu1 %vm95_vm1, %v1724_v34  ;;  %19794 = vmatmul.mubr.msk.f32.gmra.mrb[6].mxu0 %vm95_vm1, %v23773_v13  ;;  %v28434_v34 = vld [vmem:[#allocation11_spill] sm:$0xff]  ;;  %v23813_v13 = vld [vmem:[%s28350_s0 + $0xd8] sm:$0xff] }
 0x15a   :  { %18938 = vmatprep.mubr.msk.f32.mxu1 %vm95_vm1, %v23029_v39  ;;  %19796 = vmatprep.mubr.msk.f32.mxu0 %vm95_vm1, %v23778_v20  ;;  %v28435_v39 = vld [vmem:[#allocation12_spill] sm:$0xff]  ;;  %v23808_v20 = vld [vmem:[%s28350_s0 + $0xc8] sm:$0xff]  ;;  %28436 = vst [vmem:[#allocation11_spill] sm:$0xff] %v23813_v13 }
 0x15d   :  { %18939 = vmatmul.mubr.msk.f32.gmra.mrb[28].mxu1 %vm95_vm1, %v28434_v34  ;;  %19797 = vmatmul.mubr.msk.f32.gmra.mrb[8].mxu0 %vm95_vm1, %v23790_v24  ;;  %v28437_v34 = vld [vmem:[#allocation13_spill] sm:$0xff] }
 0x15e   :  { %18941 = vmatprep.mubr.msk.f32.mxu1 %vm95_vm1, %v28435_v39  ;;  %19799 = vmatprep.mubr.msk.f32.mxu0 %vm95_vm1, %v23795_v42  ;;  %v23822_v39 = vld [vmem:[%s28351_s1 + $0x14] sm:$0xf]  ;;  %v28438_v42 = vld [vmem:[#allocation14_spill] sm:$0xff] }
 0x15f   :  { %v23831_v24 = vld [vmem:[%s28350_s0 + $0xe0] sm:$0xff]  ;;  %19042 = vmatprep.subr.msk.mxu1 %vm240_vm0, %v23822_v39 }
 0x161   :  { %18942 = vmatmul.mubr.msk.f32.gmra.mrb[30].mxu1 %vm95_vm1, %v28437_v34  ;;  %19800 = vmatmul.mubr.msk.f32.gmra.mrb[10].mxu0 %vm95_vm1, %v23808_v20  ;;  %v23836_v34 = vld [vmem:[%s28350_s0 + $0xf0] sm:$0xff] }
 0x162   :  { %18944 = vmatprep.mubr.msk.f32.mxu1 %vm95_vm1, %v28438_v42  ;;  %19802 = vmatprep.mubr.msk.f32.mxu0 %vm95_vm1, %v23813_v13  ;;  %v23851_v42 = vld [vmem:[%s28350_s0 + $0xf8] sm:$0xff]  ;;  %v23856_v13 = vld [vmem:[%s28350_s0 + $0x108] sm:$0xff] }
 0x165   :  { %18945 = vmatmul.mubr.msk.f32.gmra.mrb[32].mxu1 %vm95_vm1, %v23086_v62  ;;  %19803 = vmatmul.mubr.msk.f32.gmra.mrb[12].mxu0 %vm95_vm1, %v23831_v24  ;;  %v23869_v62 = vld [vmem:[%s28350_s0 + $0x110] sm:$0xff] }
 0x166   :  { %18947 = vmatprep.mubr.msk.f32.mxu1 %vm95_vm1, %v23094_v9  ;;  %19805 = vmatprep.mubr.msk.f32.mxu0 %vm95_vm1, %v23836_v34  ;;  %v23874_v9 = vld [vmem:[%s28350_s0 + $0x120] sm:$0xff] }
 0x169   :  { %18948 = vmatmul.mubr.msk.f32.gmra.mrb[34].mxu1 %vm95_vm1, %v23108_v44  ;;  %19806 = vmatmul.mubr.msk.f32.gmra.mrb[14].mxu0 %vm95_vm1, %v23851_v42  ;;  %v23887_v44 = vld [vmem:[%s28350_s0 + $0x128] sm:$0xff] }
 0x16a   :  { %18950 = vmatprep.mubr.msk.f32.mxu1 %vm95_vm1, %v23113_v41  ;;  %19808 = vmatprep.mubr.msk.f32.mxu0 %vm95_vm1, %v23856_v13  ;;  %v16465_v41 = vld [vmem:[%s28350_s0 + $0x138] sm:$0xff] }
 0x16d   :  { %18951 = vmatmul.mubr.msk.f32.gmra.mrb[36].mxu1 %vm95_vm1, %v23127_v23  ;;  %19809 = vmatmul.mubr.msk.f32.gmra.mrb[16].mxu0 %vm95_vm1, %v23869_v62  ;;  %v16466_v23 = vld [vmem:[%s28350_s0 + $0x140] sm:$0xff] }
 0x16e   :  { %18953 = vmatprep.mubr.msk.f32.mxu1 %vm95_vm1, %v23132_v27  ;;  %19811 = vmatprep.mubr.msk.f32.mxu0 %vm95_vm1, %v23874_v9  ;;  %v16467_v27 = vld [vmem:[%s28350_s0 + $0x150] sm:$0xff] }
 0x171   :  { %18954 = vmatmul.mubr.msk.f32.gmra.mrb[38].mxu1 %vm95_vm1, %v23145_v46  ;;  %19812 = vmatmul.mubr.msk.f32.gmra.mrb[18].mxu0 %vm95_vm1, %v23887_v44  ;;  %v16468_v46 = vld [vmem:[%s28350_s0 + $0x158] sm:$0xff] }
 0x172   :  { %18956 = vmatprep.mubr.msk.f32.mxu1 %vm95_vm1, %v23150_v26  ;;  %19814 = vmatprep.mubr.msk.f32.mxu0 %vm95_vm1, %v16465_v41  ;;  %v23917_v26 = vld [vmem:[%s28350_s0 + $0x1c8] sm:$0xff]  ;;  %v23970_v41 = vld [vmem:[%s28350_s0 + $0x200] sm:$0xff] }
 0x175   :  { %18957 = vmatmul.mubr.msk.f32.gmra.mrb[40].mxu1 %vm95_vm1, %v23163_v48  ;;  %19815 = vmatmul.mubr.msk.f32.gmra.mrb[20].mxu0 %vm95_vm1, %v16466_v23  ;;  %v23929_v48 = vld [vmem:[%s28350_s0 + $0x1d0] sm:$0xff] }
 0x176   :  { %18959 = vmatprep.mubr.msk.f32.mxu1 %vm95_vm1, %v23168_v50  ;;  %19817 = vmatprep.mubr.msk.f32.mxu0 %vm95_vm1, %v16467_v27  ;;  %v23934_v50 = vld [vmem:[%s28350_s0 + $0x1e0] sm:$0xff]  ;;  %v23978_v23 = vld [vmem:[%s28350_s0 + $0x210] sm:$0xff] }
 0x177   :  { %v2250_v27 = vld [vmem:[%s28350_s0 + $0x24] sm:$0xff] }
 0x179   :  { %18960 = vmatmul.mubr.msk.f32.gmra.mrb[42].mxu1 %vm95_vm1, %v23181_v53  ;;  %19818 = vmatmul.mubr.msk.f32.gmra.mrb[22].mxu0 %vm95_vm1, %v16468_v46  ;;  %v23947_v53 = vld [vmem:[%s28350_s0 + $0x1e8] sm:$0xff]  ;;  %v23992_v46 = vld [vmem:[%s28350_s0 + $0x218] sm:$0xff] }
 0x17a   :  { %18962 = vmatprep.mubr.msk.f32.mxu1 %vm95_vm1, %v23186_v55  ;;  %19820 = vmatprep.mubr.msk.f32.mxu0 %vm95_vm1, %v23917_v26  ;;  %v2247_v55 = vld [vmem:[%s28350_s0 + $0x4] sm:$0xff] }
 0x17d   :  { %18963 = vmatmul.mubr.msk.f32.gmra.mrb[44].mxu1 %vm95_vm1, %v23199_v57  ;;  %19821 = vmatmul.mubr.msk.f32.gmra.mrb[24].mxu0 %vm95_vm1, %v23929_v48  ;;  %v23955_v57 = vld [vmem:[%s28350_s0 + $0x1f8] sm:$0xff] }
 0x17e   :  { %18965 = vmatprep.mubr.msk.f32.mxu1 %vm95_vm1, %v23204_v59  ;;  %19823 = vmatprep.mubr.msk.f32.mxu0 %vm95_vm1, %v23934_v50  ;;  %v2248_v59 = vld [vmem:[%s28350_s0 + $0xc] sm:$0xff] }
 0x181   :  { %18966 = vmatmul.mubr.msk.f32.gmra.mrb[46].mxu1 %vm95_vm1, %v23217_v61  ;;  %19824 = vmatmul.mubr.msk.f32.gmra.mrb[26].mxu0 %vm95_vm1, %v23947_v53  ;;  %v2249_v61 = vld [vmem:[%s28350_s0 + $0x1c] sm:$0xff] }
 0x182   :  { %18970 = vmatprep.mubr.msk.f32.mxu1 %vm95_vm1, %v2247_v55  ;;  %19826 = vmatprep.mubr.msk.f32.mxu0 %vm95_vm1, %v23955_v57  ;;  %v23997_v55 = vld [vmem:[%s28350_s0 + $0x228] sm:$0xff] }
 0x185   :  { %18971 = vmatmul.mubr.msk.f32.vlgmr.msra.gmra.mrb[0].mxu1 %vm95_vm1, %v2248_v59  ;;  %19827 = vmatmul.mubr.msk.f32.gmra.mrb[28].mxu0 %vm95_vm1, %v23970_v41  ;;  %v24011_v59 = vld [vmem:[%s28350_s0 + $0x230] sm:$0xff] }
 0x186   :  { %18973 = vmatprep.mubr.msk.f32.mxu1 %vm95_vm1, %v2249_v61  ;;  %19829 = vmatprep.mubr.msk.f32.mxu0 %vm95_vm1, %v23978_v23  ;;  %v24034_v61 = vld [vmem:[%s28350_s0 + $0x258] sm:$0xff] }
 0x187   :  { %19043 = vmatpush3.msk.msra.mxu1 %vm240_vm0, %v23822_v39  ;;  %v24016_v39 = vld [vmem:[%s28350_s0 + $0x240] sm:$0xff] }
 0x189   :  { %18974 = vmatmul.mubr.msk.f32.gmra.mrb[2].mxu1 %vm95_vm1, %v2250_v27  ;;  %19830 = vmatmul.mubr.msk.f32.gmra.mrb[30].mxu0 %vm95_vm1, %v23992_v46  ;;  %v16491_v27 = vld [vmem:[%s28350_s0 + $0x2d0] sm:$0xff] }
 0x18a   :  { %18976 = vmatprep.mubr.msk.f32.mxu1 %vm95_vm1, %v23247_v11  ;;  %19832 = vmatprep.mubr.msk.f32.mxu0 %vm95_vm1, %v23997_v55  ;;  %v24029_v11 = vld [vmem:[%s28350_s0 + $0x248] sm:$0xff] }
 0x18d   :  { %18977 = vmatmul.mubr.msk.f32.gmra.mrb[4].mxu1 %vm95_vm1, %v23259_v17  ;;  %19833 = vmatmul.mubr.msk.f32.gmra.mrb[32].mxu0 %vm95_vm1, %v24011_v59  ;;  %v24047_v17 = vld [vmem:[%s28350_s0 + $0x260] sm:$0xff] }
 0x18e   :  { %18979 = vmatprep.mubr.msk.f32.mxu1 %vm95_vm1, %v23264_v21  ;;  %19835 = vmatprep.mubr.msk.f32.mxu0 %vm95_vm1, %v24016_v39  ;;  %v24052_v21 = vld [vmem:[%s28350_s0 + $0x270] sm:$0xff] }
 0x191   :  { %18980 = vmatmul.mubr.msk.f32.gmra.mrb[6].mxu1 %vm95_vm1, %v23282_v28  ;;  %19836 = vmatmul.mubr.msk.f32.gmra.mrb[34].mxu0 %vm95_vm1, %v24029_v11  ;;  %v24065_v28 = vld [vmem:[%s28350_s0 + $0x278] sm:$0xff] }
 0x192   :  { %18982 = vmatprep.mubr.msk.f32.mxu1 %vm95_vm1, %v23292_v63  ;;  %19838 = vmatprep.mubr.msk.f32.mxu0 %vm95_vm1, %v24034_v61  ;;  %v24070_v63 = vld [vmem:[%s28350_s0 + $0x288] sm:$0xff] }
 0x195   :  { %18983 = vmatmul.mubr.msk.f32.gmra.mrb[8].mxu1 %vm95_vm1, %v23309_v35  ;;  %19839 = vmatmul.mubr.msk.f32.gmra.mrb[36].mxu0 %vm95_vm1, %v24047_v17  ;;  %v24083_v35 = vld [vmem:[%s28350_s0 + $0x290] sm:$0xff] }
 0x196   :  { %18985 = vmatprep.mubr.msk.f32.mxu1 %vm95_vm1, %v23317_v1  ;;  %19841 = vmatprep.mubr.msk.f32.mxu0 %vm95_vm1, %v24052_v21  ;;  %v24088_v1 = vld [vmem:[%s28350_s0 + $0x2a0] sm:$0xff] }
 0x199   :  { %18986 = vmatmul.mubr.msk.f32.gmra.mrb[10].mxu1 %vm95_vm1, %v23331_v7  ;;  %19842 = vmatmul.mubr.msk.f32.gmra.mrb[38].mxu0 %vm95_vm1, %v24065_v28  ;;  %v24101_v7 = vld [vmem:[%s28350_s0 + $0x2a8] sm:$0xff] }
 0x19a   :  { %18988 = vmatprep.mubr.msk.f32.mxu1 %vm95_vm1, %v23336_v32  ;;  %19844 = vmatprep.mubr.msk.f32.mxu0 %vm95_vm1, %v24070_v63  ;;  %v16489_v32 = vld [vmem:[%s28350_s0 + $0x2b8] sm:$0xff] }
 0x19d   :  { %18989 = vmatmul.mubr.msk.f32.gmra.mrb[12].mxu1 %vm95_vm1, %v23348_v36  ;;  %19845 = vmatmul.mubr.msk.f32.gmra.mrb[40].mxu0 %vm95_vm1, %v24083_v35  ;;  %v28439_v36 = vld [vmem:[#allocation15_spill] sm:$0xff] }
 0x19e   :  { %18991 = vmatprep.mubr.msk.f32.mxu1 %vm95_vm1, %v23353_v40  ;;  %19847 = vmatprep.mubr.msk.f32.mxu0 %vm95_vm1, %v24088_v1  ;;  %v16490_v40 = vld [vmem:[%s28350_s0 + $0x2c0] sm:$0xff] }
 0x1a1   :  { %18992 = vmatmul.mubr.msk.f32.gmra.mrb[14].mxu1 %vm95_vm1, %v23366_v60  ;;  %19848 = vmatmul.mubr.msk.f32.gmra.mrb[42].mxu0 %vm95_vm1, %v24101_v7  ;;  %v16492_v60 = vld [vmem:[%s28350_s0 + $0x2d8] sm:$0xff] }
 0x1a2   :  { %18994 = vmatprep.mubr.msk.f32.mxu1 %vm95_vm1, %v28439_v36  ;;  %19850 = vmatprep.mubr.msk.f32.mxu0 %vm95_vm1, %v16489_v32  ;;  %v24131_v32 = vld [vmem:[%s28350_s0 + $0x49] sm:$0xff]  ;;  %v24176_v36 = vld [vmem:[%s28350_s0 + $0x79] sm:$0xff] }
 0x1a5   :  { %18995 = vmatmul.mubr.msk.f32.gmra.mrb[16].mxu1 %vm95_vm1, %v23389_v6  ;;  %19851 = vmatmul.mubr.msk.f32.gmra.mrb[44].mxu0 %vm95_vm1, %v16490_v40  ;;  %v24143_v6 = vld [vmem:[%s28350_s0 + $0x51] sm:$0xff] }
 0x1a6   :  { %18997 = vmatprep.mubr.msk.f32.mxu1 %vm95_vm1, %v23394_v15  ;;  %19853 = vmatprep.mubr.msk.f32.mxu0 %vm95_vm1, %v16491_v27  ;;  %v24148_v15 = vld [vmem:[%s28350_s0 + $0x61] sm:$0xff]  ;;  %v24201_v40 = vld [vmem:[%s28350_s0 + $0x91] sm:$0xff] }
 0x1a7   :  { %v2274_v27 = vld [vmem:[%s28350_s0 + $0x1a4] sm:$0xff] }
 0x1a9   :  { %18998 = vmatmul.mubr.msk.f32.gmra.mrb[18].mxu1 %vm95_vm1, %v23409_v22  ;;  %19854 = vmatmul.mubr.msk.f32.gmra.mrb[46].mxu0 %vm95_vm1, %v16492_v60  ;;  %v24153_v22 = vld [vmem:[%s28351_s1 + $0x48] sm:$0xf]  ;;  %v24215_v60 = vld [vmem:[%s28350_s0 + $0x99] sm:$0xff] }
 0x1aa   :  { %19000 = vmatprep.mubr.msk.f32.mxu1 %vm95_vm1, %v23414_v4  ;;  %19858 = vmatprep.mubr.msk.f32.mxu0 %vm95_vm1, %v24131_v32  ;;  %v24166_v4 = vld [vmem:[%s28350_s0 + $0x69] sm:$0xff] }
 0x1ad   :  { %19001 = vmatmul.mubr.msk.f32.gmra.mrb[20].mxu1 %vm95_vm1, %v23427_v30  ;;  %19859 = vmatmul.mubr.msk.f32.vlgmr.msra.gmra.mrb[0].mxu0 %vm95_vm1, %v24143_v6  ;;  %v2271_v30 = vld [vmem:[%s28350_s0 + $0x184] sm:$0xff] }
 0x1ae   :  { %19931 = vmatpush3.msk.msra.mxu0 %vm240_vm0, %v23711_v19  ;;  %19003 = vmatprep.mubr.msk.f32.mxu1 %vm95_vm1, %v23432_v38  ;;  %v2272_v38 = vld [vmem:[%s28350_s0 + $0x18c] sm:$0xff]  ;;  %v24193_v19 = vld [vmem:[%s28350_s0 + $0x81] sm:$0xff] }
 0x1af   :  { %19861 = vmatprep.mubr.msk.f32.mxu0 %vm95_vm1, %v24148_v15  ;;  %20004 = vmatprep.subr.msk.mxu0 %vm240_vm0, %v24153_v22 }
 0x1b1   :  { %19004 = vmatmul.mubr.msk.f32.gmra.mrb[22].mxu1 %vm95_vm1, %v23445_v43  ;;  %19862 = vmatmul.mubr.msk.f32.gmra.mrb[2].mxu0 %vm95_vm1, %v24166_v4  ;;  %v2273_v43 = vld [vmem:[%s28350_s0 + $0x19c] sm:$0xff] }
 0x1b2   :  { %19006 = vmatprep.mubr.msk.f32.mxu1 %vm95_vm1, %v2271_v30  ;;  %19864 = vmatprep.mubr.msk.f32.mxu0 %vm95_vm1, %v24176_v36  ;;  %v24220_v30 = vld [vmem:[%s28350_s0 + $0xa9] sm:$0xff] }
 0x1b5   :  { %19007 = vmatmul.mubr.msk.f32.gmra.mrb[24].mxu1 %vm95_vm1, %v2272_v38  ;;  %19865 = vmatmul.mubr.msk.f32.gmra.mrb[4].mxu0 %vm95_vm1, %v24193_v19  ;;  %v24232_v38 = vld [vmem:[%s28350_s0 + $0xb1] sm:$0xff] }
 0x1b6   :  { %19009 = vmatprep.mubr.msk.f32.mxu1 %vm95_vm1, %v2273_v43  ;;  %19867 = vmatprep.mubr.msk.f32.mxu0 %vm95_vm1, %v24201_v40  ;;  %v24237_v43 = vld [vmem:[%s28350_s0 + $0xc1] sm:$0xff] }
 0x1b9   :  { %19010 = vmatmul.mubr.msk.f32.gmra.mrb[26].mxu1 %vm95_vm1, %v2274_v27  ;;  %19868 = vmatmul.mubr.msk.f32.gmra.mrb[6].mxu0 %vm95_vm1, %v24215_v60  ;;  %v24255_v27 = vld [vmem:[%s28350_s0 + $0xd9] sm:$0xff] }
 0x1ba   :  { %19012 = vmatprep.mubr.msk.f32.mxu1 %vm95_vm1, %v23475_v49  ;;  %19870 = vmatprep.mubr.msk.f32.mxu0 %vm95_vm1, %v24220_v30  ;;  %v24250_v49 = vld [vmem:[%s28350_s0 + $0xc9] sm:$0xff]  ;;  %28440 = vst [vmem:[#allocation12_spill] sm:$0xff] %v24255_v27 }
 0x1bd   :  { %19013 = vmatmul.mubr.msk.f32.gmra.mrb[28].mxu1 %vm95_vm1, %v23487_v5  ;;  %19871 = vmatmul.mubr.msk.f32.gmra.mrb[8].mxu0 %vm95_vm1, %v24232_v38  ;;  %v24264_v5 = vld [vmem:[%s28351_s1 + $0x18] sm:$0xf] }
 0x1be   :  { %19015 = vmatprep.mubr.msk.f32.mxu1 %vm95_vm1, %v23492_v8  ;;  %19873 = vmatprep.mubr.msk.f32.mxu0 %vm95_vm1, %v24237_v43  ;;  %v24273_v8 = vld [vmem:[%s28350_s0 + $0xe1] sm:$0xff] }
 0x1bf   :  { %19116 = vmatprep.subr.msk.mxu1 %vm240_vm0, %v24264_v5 }
 0x1c1   :  { %19016 = vmatmul.mubr.msk.f32.gmra.mrb[30].mxu1 %vm95_vm1, %v23505_v10  ;;  %19874 = vmatmul.mubr.msk.f32.gmra.mrb[10].mxu0 %vm95_vm1, %v24250_v49  ;;  %v24278_v10 = vld [vmem:[%s28350_s0 + $0xf1] sm:$0xff] }
 0x1c2   :  { %19018 = vmatprep.mubr.msk.f32.mxu1 %vm95_vm1, %v23513_v14  ;;  %19876 = vmatprep.mubr.msk.f32.mxu0 %vm95_vm1, %v24255_v27  ;;  %v24293_v14 = vld [vmem:[%s28350_s0 + $0xf9] sm:$0xff]  ;;  %v24298_v27 = vld [vmem:[%s28350_s0 + $0x109] sm:$0xff] }
 0x1c5   :  { %19019 = vmatmul.mubr.msk.f32.gmra.mrb[32].mxu1 %vm95_vm1, %v23528_v45  ;;  %19877 = vmatmul.mubr.msk.f32.gmra.mrb[12].mxu0 %vm95_vm1, %v24273_v8  ;;  %v24311_v45 = vld [vmem:[%s28350_s0 + $0x111] sm:$0xff] }
 0x1c6   :  { %19021 = vmatprep.mubr.msk.f32.mxu1 %vm95_vm1, %v23536_v47  ;;  %19879 = vmatprep.mubr.msk.f32.mxu0 %vm95_vm1, %v24278_v10  ;;  %v24316_v47 = vld [vmem:[%s28350_s0 + $0x121] sm:$0xff] }
 0x1c9   :  { %19022 = vmatmul.mubr.msk.f32.gmra.mrb[34].mxu1 %vm95_vm1, %v23550_v3  ;;  %19880 = vmatmul.mubr.msk.f32.gmra.mrb[14].mxu0 %vm95_vm1, %v24293_v14  ;;  %v24329_v3 = vld [vmem:[%s28350_s0 + $0x129] sm:$0xff] }
 0x1ca   :  { %19024 = vmatprep.mubr.msk.f32.mxu1 %vm95_vm1, %v23555_v12  ;;  %19882 = vmatprep.mubr.msk.f32.mxu0 %vm95_vm1, %v24298_v27  ;;  %v16563_v12 = vld [vmem:[%s28350_s0 + $0x139] sm:$0xff] }
 0x1cd   :  { %19025 = vmatmul.mubr.msk.f32.gmra.mrb[36].mxu1 %vm95_vm1, %v23569_v16  ;;  %19883 = vmatmul.mubr.msk.f32.gmra.mrb[16].mxu0 %vm95_vm1, %v24311_v45  ;;  %v16564_v16 = vld [vmem:[%s28350_s0 + $0x141] sm:$0xff] }
 0x1ce   :  { %19027 = vmatprep.mubr.msk.f32.mxu1 %vm95_vm1, %v23574_v0  ;;  %19885 = vmatprep.mubr.msk.f32.mxu0 %vm95_vm1, %v24316_v47  ;;  %v16565_v0 = vld [vmem:[%s28350_s0 + $0x151] sm:$0xff] }
 0x1d1   :  { %19028 = vmatmul.mubr.msk.f32.gmra.mrb[38].mxu1 %vm95_vm1, %v23587_v29  ;;  %19886 = vmatmul.mubr.msk.f32.gmra.mrb[18].mxu0 %vm95_vm1, %v24329_v3  ;;  %v16566_v29 = vld [vmem:[%s28350_s0 + $0x159] sm:$0xff] }
 0x1d2   :  { %19030 = vmatprep.mubr.msk.f32.mxu1 %vm95_vm1, %v23592_v18  ;;  %19888 = vmatprep.mubr.msk.f32.mxu0 %vm95_vm1, %v16563_v12  ;;  %v24359_v18 = vld [vmem:[%s28350_s0 + $0x1c9] sm:$0xff]  ;;  %v24412_v12 = vld [vmem:[%s28350_s0 + $0x201] sm:$0xff] }
 0x1d5   :  { %19031 = vmatmul.mubr.msk.f32.gmra.mrb[40].mxu1 %vm95_vm1, %v23605_v31  ;;  %19889 = vmatmul.mubr.msk.f32.gmra.mrb[20].mxu0 %vm95_vm1, %v16564_v16  ;;  %v24371_v31 = vld [vmem:[%s28350_s0 + $0x1d1] sm:$0xff] }
 0x1d6   :  { %19033 = vmatprep.mubr.msk.f32.mxu1 %vm95_vm1, %v23610_v33  ;;  %19891 = vmatprep.mubr.msk.f32.mxu0 %vm95_vm1, %v16565_v0  ;;  %v24376_v33 = vld [vmem:[%s28350_s0 + $0x1e1] sm:$0xff]  ;;  %v24420_v16 = vld [vmem:[%s28350_s0 + $0x211] sm:$0xff] }
 0x1d7   :  { %v15468_v0 = vld [vmem:[%s28350_s0 + $0x38] sm:$0xff] }
 0x1d9   :  { %19034 = vmatmul.mubr.msk.f32.gmra.mrb[42].mxu1 %vm95_vm1, %v23623_v37  ;;  %19892 = vmatmul.mubr.msk.f32.gmra.mrb[22].mxu0 %vm95_vm1, %v16566_v29  ;;  %v24389_v37 = vld [vmem:[%s28350_s0 + $0x1e9] sm:$0xff]  ;;  %v24434_v29 = vld [vmem:[%s28350_s0 + $0x219] sm:$0xff] }
 0x1da   :  { %19036 = vmatprep.mubr.msk.f32.mxu1 %vm95_vm1, %v23628_v52  ;;  %19894 = vmatprep.mubr.msk.f32.mxu0 %vm95_vm1, %v24359_v18  ;;  %v15465_v52 = vld [vmem:[%s28350_s0 + $0x18] sm:$0xff] }
 0x1dd   :  { %19037 = vmatmul.mubr.msk.f32.gmra.mrb[44].mxu1 %vm95_vm1, %v23641_v51  ;;  %19895 = vmatmul.mubr.msk.f32.gmra.mrb[24].mxu0 %vm95_vm1, %v24371_v31  ;;  %v24397_v51 = vld [vmem:[%s28350_s0 + $0x1f9] sm:$0xff] }
 0x1de   :  { %19039 = vmatprep.mubr.msk.f32.mxu1 %vm95_vm1, %v23646_v54  ;;  %19897 = vmatprep.mubr.msk.f32.mxu0 %vm95_vm1, %v24376_v33  ;;  %v15466_v54 = vld [vmem:[%s28350_s0 + $0x20] sm:$0xff] }
 0x1e1   :  { %19040 = vmatmul.mubr.msk.f32.gmra.mrb[46].mxu1 %vm95_vm1, %v23659_v58  ;;  %19898 = vmatmul.mubr.msk.f32.gmra.mrb[26].mxu0 %vm95_vm1, %v24389_v37  ;;  %v15467_v58 = vld [vmem:[%s28350_s0 + $0x30] sm:$0xff] }
 0x1e2   :  { %19044 = vmatprep.mubr.msk.f32.mxu1 %vm95_vm1, %v15465_v52  ;;  %19900 = vmatprep.mubr.msk.f32.mxu0 %vm95_vm1, %v24397_v51  ;;  %v24439_v52 = vld [vmem:[%s28350_s0 + $0x229] sm:$0xff] }
 0x1e5   :  { %19045 = vmatmul.mubr.msk.f32.vlgmr.msra.gmra.mrb[0].mxu1 %vm95_vm1, %v15466_v54  ;;  %19901 = vmatmul.mubr.msk.f32.gmra.mrb[28].mxu0 %vm95_vm1, %v24412_v12  ;;  %v24453_v54 = vld [vmem:[%s28350_s0 + $0x231] sm:$0xff] }
 0x1e6   :  { %19047 = vmatprep.mubr.msk.f32.mxu1 %vm95_vm1, %v15467_v58  ;;  %19903 = vmatprep.mubr.msk.f32.mxu0 %vm95_vm1, %v24420_v16  ;;  %28441 = vst [vmem:[#allocation13_spill] sm:$0xff] %v24453_v54  ;;  %v24471_v58 = vld [vmem:[%s28350_s0 + $0x249] sm:$0xff] }
 0x1e7   :  { %19117 = vmatpush3.msk.msra.mxu1 %vm240_vm0, %v24264_v5  ;;  %v24458_v5 = vld [vmem:[%s28350_s0 + $0x241] sm:$0xff] }
 0x1e8   :  { %28442 = vst [vmem:[#allocation14_spill] sm:$0xff] %v24458_v5 }
 0x1e9   :  { %19048 = vmatmul.mubr.msk.f32.gmra.mrb[2].mxu1 %vm95_vm1, %v15468_v0  ;;  %19904 = vmatmul.mubr.msk.f32.gmra.mrb[30].mxu0 %vm95_vm1, %v24434_v29  ;;  %v24476_v0 = vld [vmem:[%s28350_s0 + $0x259] sm:$0xff] }
 0x1ea   :  { %19050 = vmatprep.mubr.msk.f32.mxu1 %vm95_vm1, %v23689_v25  ;;  %19906 = vmatprep.mubr.msk.f32.mxu0 %vm95_vm1, %v24439_v52  ;;  %v28443_v25 = vld [vmem:[#allocation6_spill] sm:$0xff]  ;;  %28444 = vst [vmem:[#allocation15_spill] sm:$0xff] %v24476_v0 }
 0x1ed   :  { %19051 = vmatmul.mubr.msk.f32.gmra.mrb[4].mxu1 %vm95_vm1, %v23701_v56  ;;  %19907 = vmatmul.mubr.msk.f32.gmra.mrb[32].mxu0 %vm95_vm1, %v24453_v54  ;;  %v28445_v56 = vld [vmem:[#allocation7_spill] sm:$0xff] }
 0x1ee   :  { %19053 = vmatprep.mubr.msk.f32.mxu1 %vm95_vm1, %v28443_v25  ;;  %19909 = vmatprep.mubr.msk.f32.mxu0 %vm95_vm1, %v24458_v5  ;;  %v28446_v25 = vld [vmem:[#allocation8_spill] sm:$0xff]  ;;  %v24489_v5 = vld [vmem:[%s28350_s0 + $0x261] sm:$0xff] }
 0x1ef   :  { %28447 = vst [vmem:[#allocation6_spill] sm:$0xff] %v24489_v5  ;;  %v24494_v54 = vld [vmem:[%s28350_s0 + $0x271] sm:$0xff] }
 0x1f0   :  { %28448 = vst [vmem:[#allocation7_spill] sm:$0xff] %v24494_v54 }
 0x1f1   :  { %19054 = vmatmul.mubr.msk.f32.gmra.mrb[6].mxu1 %vm95_vm1, %v28445_v56  ;;  %19910 = vmatmul.mubr.msk.f32.gmra.mrb[34].mxu0 %vm95_vm1, %v24471_v58  ;;  %v28449_v56 = vld [vmem:[#allocation9_spill] sm:$0xff] }
 0x1f2   :  { %19056 = vmatprep.mubr.msk.f32.mxu1 %vm95_vm1, %v28446_v25  ;;  %19912 = vmatprep.mubr.msk.f32.mxu0 %vm95_vm1, %v24476_v0  ;;  %v24507_v25 = vld [vmem:[%s28350_s0 + $0x279] sm:$0xff]  ;;  %v24512_v0 = vld [vmem:[%s28350_s0 + $0x289] sm:$0xff] }
 0x1f3   :  { %28450 = vst [vmem:[#allocation8_spill] sm:$0xff] %v24507_v25  ;;  %28451 = vst [vmem:[#allocation9_spill] sm:$0xff] %v24512_v0 }
 0x1f5   :  { %19057 = vmatmul.mubr.msk.f32.gmra.mrb[8].mxu1 %vm95_vm1, %v23751_v2  ;;  %19913 = vmatmul.mubr.msk.f32.gmra.mrb[36].mxu0 %vm95_vm1, %v24489_v5  ;;  %v28452_v2 = vld [vmem:[#allocation10_spill] sm:$0xff] }
 0x1f6   :  { %19059 = vmatprep.mubr.msk.f32.mxu1 %vm95_vm1, %v28449_v56  ;;  %19915 = vmatprep.mubr.msk.f32.mxu0 %vm95_vm1, %v24494_v54  ;;  %v28453_v56 = vld [vmem:[#allocation16_spill] sm:$0xff]  ;;  %v24530_v5 = vld [vmem:[%s28350_s0 + $0x2a1] sm:$0xff] }
 0x1f7   :  { %v24525_v54 = vld [vmem:[%s28350_s0 + $0x291] sm:$0xff]  ;;  %28454 = vst [vmem:[#allocation10_spill] sm:$0xff] %v24530_v5 }
 0x1f9   :  { %19060 = vmatmul.mubr.msk.f32.gmra.mrb[10].mxu1 %vm95_vm1, %v28452_v2  ;;  %19916 = vmatmul.mubr.msk.f32.gmra.mrb[38].mxu0 %vm95_vm1, %v24507_v25  ;;  %v28455_v2 = vld [vmem:[#allocation17_spill] sm:$0xff] }
 0x1fa   :  { %19062 = vmatprep.mubr.msk.f32.mxu1 %vm95_vm1, %v28453_v56  ;;  %19918 = vmatprep.mubr.msk.f32.mxu0 %vm95_vm1, %v24512_v0  ;;  %v28456_v56 = vld [vmem:[#allocation18_spill] sm:$0xff]  ;;  %v16587_v25 = vld [vmem:[%s28350_s0 + $0x2b9] sm:$0xff] }
 0x1fb   :  { %v24543_v0 = vld [vmem:[%s28350_s0 + $0x2a9] sm:$0xff] }
 0x1fd   :  { %19063 = vmatmul.mubr.msk.f32.gmra.mrb[12].mxu1 %vm95_vm1, %v28455_v2  ;;  %19919 = vmatmul.mubr.msk.f32.gmra.mrb[40].mxu0 %vm95_vm1, %v24525_v54  ;;  %v28457_v2 = vld [vmem:[#allocation11_spill] sm:$0xff] }
 0x1fe   :  { %19065 = vmatprep.mubr.msk.f32.mxu1 %vm95_vm1, %v28456_v56  ;;  %19921 = vmatprep.mubr.msk.f32.mxu0 %vm95_vm1, %v24530_v5  ;;  %v16588_v56 = vld [vmem:[%s28350_s0 + $0x2c1] sm:$0xff]  ;;  %v16589_v5 = vld [vmem:[%s28350_s0 + $0x2d1] sm:$0xff] }
 0x201   :  { %19066 = vmatmul.mubr.msk.f32.gmra.mrb[14].mxu1 %vm95_vm1, %v23808_v20  ;;  %19922 = vmatmul.mubr.msk.f32.gmra.mrb[42].mxu0 %vm95_vm1, %v24543_v0  ;;  %v16590_v20 = vld [vmem:[%s28350_s0 + $0x2d9] sm:$0xff] }
 0x202   :  { %19068 = vmatprep.mubr.msk.f32.mxu1 %vm95_vm1, %v28457_v2  ;;  %19924 = vmatprep.mubr.msk.f32.mxu0 %vm95_vm1, %v16587_v25  ;;  %v24573_v25 = vld [vmem:[%s28350_s0 + $0x4a] sm:$0xff]  ;;  %v24643_v2 = vld [vmem:[%s28350_s0 + $0x92] sm:$0xff] }
 0x205   :  { %19069 = vmatmul.mubr.msk.f32.gmra.mrb[16].mxu1 %vm95_vm1, %v23831_v24  ;;  %19925 = vmatmul.mubr.msk.f32.gmra.mrb[44].mxu0 %vm95_vm1, %v16588_v56  ;;  %v24585_v24 = vld [vmem:[%s28350_s0 + $0x52] sm:$0xff] }
 0x206   :  { %19071 = vmatprep.mubr.msk.f32.mxu1 %vm95_vm1, %v23836_v34  ;;  %19927 = vmatprep.mubr.msk.f32.mxu0 %vm95_vm1, %v16589_v5  ;;  %v24590_v34 = vld [vmem:[%s28350_s0 + $0x62] sm:$0xff]  ;;  %v24618_v5 = vld [vmem:[%s28350_s0 + $0x7a] sm:$0xff] }
 0x207   :  { %v15492_v56 = vld [vmem:[%s28350_s0 + $0x1b8] sm:$0xff] }
 0x209   :  { %19072 = vmatmul.mubr.msk.f32.gmra.mrb[18].mxu1 %vm95_vm1, %v23851_v42  ;;  %19928 = vmatmul.mubr.msk.f32.gmra.mrb[46].mxu0 %vm95_vm1, %v16590_v20  ;;  %v24595_v42 = vld [vmem:[%s28351_s1 + $0x4c] sm:$0xf]  ;;  %v24657_v20 = vld [vmem:[%s28350_s0 + $0x9a] sm:$0xff] }
 0x20a   :  { %19074 = vmatprep.mubr.msk.f32.mxu1 %vm95_vm1, %v23856_v13  ;;  %19932 = vmatprep.mubr.msk.f32.mxu0 %vm95_vm1, %v24573_v25  ;;  %v24608_v13 = vld [vmem:[%s28350_s0 + $0x6a] sm:$0xff] }
 0x20d   :  { %19075 = vmatmul.mubr.msk.f32.gmra.mrb[20].mxu1 %vm95_vm1, %v23869_v62  ;;  %19933 = vmatmul.mubr.msk.f32.vlgmr.msra.gmra.mrb[0].mxu0 %vm95_vm1, %v24585_v24  ;;  %v15489_v62 = vld [vmem:[%s28350_s0 + $0x198] sm:$0xff] }
 0x20e   :  { %20005 = vmatpush3.msk.msra.mxu0 %vm240_vm0, %v24153_v22  ;;  %19077 = vmatprep.mubr.msk.f32.mxu1 %vm95_vm1, %v23874_v9  ;;  %v15490_v9 = vld [vmem:[%s28350_s0 + $0x1a0] sm:$0xff] }
 0x20f   :  { %19935 = vmatprep.mubr.msk.f32.mxu0 %vm95_vm1, %v24590_v34  ;;  %20078 = vmatprep.subr.msk.mxu0 %vm240_vm0, %v24595_v42  ;;  %v24635_v22 = vld [vmem:[%s28350_s0 + $0x82] sm:$0xff] }
 0x211   :  { %19078 = vmatmul.mubr.msk.f32.gmra.mrb[22].mxu1 %vm95_vm1, %v23887_v44  ;;  %19936 = vmatmul.mubr.msk.f32.gmra.mrb[2].mxu0 %vm95_vm1, %v24608_v13  ;;  %v15491_v44 = vld [vmem:[%s28350_s0 + $0x1b0] sm:$0xff] }
 0x212   :  { %19080 = vmatprep.mubr.msk.f32.mxu1 %vm95_vm1, %v15489_v62  ;;  %19938 = vmatprep.mubr.msk.f32.mxu0 %vm95_vm1, %v24618_v5  ;;  %v24662_v62 = vld [vmem:[%s28350_s0 + $0xaa] sm:$0xff] }
 0x215   :  { %19081 = vmatmul.mubr.msk.f32.gmra.mrb[24].mxu1 %vm95_vm1, %v15490_v9  ;;  %19939 = vmatmul.mubr.msk.f32.gmra.mrb[4].mxu0 %vm95_vm1, %v24635_v22  ;;  %v24674_v9 = vld [vmem:[%s28350_s0 + $0xb2] sm:$0xff] }
 0x216   :  { %19083 = vmatprep.mubr.msk.f32.mxu1 %vm95_vm1, %v15491_v44  ;;  %19941 = vmatprep.mubr.msk.f32.mxu0 %vm95_vm1, %v24643_v2  ;;  %v24679_v44 = vld [vmem:[%s28350_s0 + $0xc2] sm:$0xff] }
 0x219   :  { %19084 = vmatmul.mubr.msk.f32.gmra.mrb[26].mxu1 %vm95_vm1, %v15492_v56  ;;  %19942 = vmatmul.mubr.msk.f32.gmra.mrb[6].mxu0 %vm95_vm1, %v24657_v20  ;;  %v24697_v56 = vld [vmem:[%s28350_s0 + $0xda] sm:$0xff] }
 0x21a   :  { %19086 = vmatprep.mubr.msk.f32.mxu1 %vm95_vm1, %v23917_v26  ;;  %19944 = vmatprep.mubr.msk.f32.mxu0 %vm95_vm1, %v24662_v62  ;;  %v24692_v26 = vld [vmem:[%s28350_s0 + $0xca] sm:$0xff]  ;;  %28458 = vst [vmem:[#allocation16_spill] sm:$0xff] %v24697_v56 }
 0x21d   :  { %19087 = vmatmul.mubr.msk.f32.gmra.mrb[28].mxu1 %vm95_vm1, %v23929_v48  ;;  %19945 = vmatmul.mubr.msk.f32.gmra.mrb[8].mxu0 %vm95_vm1, %v24674_v9  ;;  %v24706_v48 = vld [vmem:[%s28351_s1 + $0x1c] sm:$0xf] }
 0x21e   :  { %19089 = vmatprep.mubr.msk.f32.mxu1 %vm95_vm1, %v23934_v50  ;;  %19947 = vmatprep.mubr.msk.f32.mxu0 %vm95_vm1, %v24679_v44  ;;  %v24715_v50 = vld [vmem:[%s28350_s0 + $0xe2] sm:$0xff] }
 0x21f   :  { %19190 = vmatprep.subr.msk.mxu1 %vm240_vm0, %v24706_v48 }
 0x221   :  { %19090 = vmatmul.mubr.msk.f32.gmra.mrb[30].mxu1 %vm95_vm1, %v23947_v53  ;;  %19948 = vmatmul.mubr.msk.f32.gmra.mrb[10].mxu0 %vm95_vm1, %v24692_v26  ;;  %v24720_v53 = vld [vmem:[%s28350_s0 + $0xf2] sm:$0xff] }
 0x222   :  { %19092 = vmatprep.mubr.msk.f32.mxu1 %vm95_vm1, %v23955_v57  ;;  %19950 = vmatprep.mubr.msk.f32.mxu0 %vm95_vm1, %v24697_v56  ;;  %v24735_v57 = vld [vmem:[%s28350_s0 + $0xfa] sm:$0xff]  ;;  %v24740_v56 = vld [vmem:[%s28350_s0 + $0x10a] sm:$0xff] }
 0x225   :  { %19093 = vmatmul.mubr.msk.f32.gmra.mrb[32].mxu1 %vm95_vm1, %v23970_v41  ;;  %19951 = vmatmul.mubr.msk.f32.gmra.mrb[12].mxu0 %vm95_vm1, %v24715_v50  ;;  %v24753_v41 = vld [vmem:[%s28350_s0 + $0x112] sm:$0xff] }
 0x226   :  { %19095 = vmatprep.mubr.msk.f32.mxu1 %vm95_vm1, %v23978_v23  ;;  %19953 = vmatprep.mubr.msk.f32.mxu0 %vm95_vm1, %v24720_v53  ;;  %v24758_v23 = vld [vmem:[%s28350_s0 + $0x122] sm:$0xff] }
 0x229   :  { %19096 = vmatmul.mubr.msk.f32.gmra.mrb[34].mxu1 %vm95_vm1, %v23992_v46  ;;  %19954 = vmatmul.mubr.msk.f32.gmra.mrb[14].mxu0 %vm95_vm1, %v24735_v57  ;;  %v24771_v46 = vld [vmem:[%s28350_s0 + $0x12a] sm:$0xff] }
 0x22a   :  { %19098 = vmatprep.mubr.msk.f32.mxu1 %vm95_vm1, %v23997_v55  ;;  %19956 = vmatprep.mubr.msk.f32.mxu0 %vm95_vm1, %v24740_v56  ;;  %v16661_v55 = vld [vmem:[%s28350_s0 + $0x13a] sm:$0xff] }
 0x22d   :  { %19099 = vmatmul.mubr.msk.f32.gmra.mrb[36].mxu1 %vm95_vm1, %v24011_v59  ;;  %19957 = vmatmul.mubr.msk.f32.gmra.mrb[16].mxu0 %vm95_vm1, %v24753_v41  ;;  %v16662_v59 = vld [vmem:[%s28350_s0 + $0x142] sm:$0xff] }
 0x22e   :  { %19101 = vmatprep.mubr.msk.f32.mxu1 %vm95_vm1, %v24016_v39  ;;  %19959 = vmatprep.mubr.msk.f32.mxu0 %vm95_vm1, %v24758_v23  ;;  %v16663_v39 = vld [vmem:[%s28350_s0 + $0x152] sm:$0xff] }
 0x231   :  { %19102 = vmatmul.mubr.msk.f32.gmra.mrb[38].mxu1 %vm95_vm1, %v24029_v11  ;;  %19960 = vmatmul.mubr.msk.f32.gmra.mrb[18].mxu0 %vm95_vm1, %v24771_v46  ;;  %v16664_v11 = vld [vmem:[%s28350_s0 + $0x15a] sm:$0xff] }
 0x232   :  { %19104 = vmatprep.mubr.msk.f32.mxu1 %vm95_vm1, %v24034_v61  ;;  %19962 = vmatprep.mubr.msk.f32.mxu0 %vm95_vm1, %v16661_v55  ;;  %v24801_v61 = vld [vmem:[%s28350_s0 + $0x1ca] sm:$0xff]  ;;  %v24854_v55 = vld [vmem:[%s28350_s0 + $0x202] sm:$0xff] }
 0x235   :  { %19105 = vmatmul.mubr.msk.f32.gmra.mrb[40].mxu1 %vm95_vm1, %v24047_v17  ;;  %19963 = vmatmul.mubr.msk.f32.gmra.mrb[20].mxu0 %vm95_vm1, %v16662_v59  ;;  %v24813_v17 = vld [vmem:[%s28350_s0 + $0x1d2] sm:$0xff] }
 0x236   :  { %19107 = vmatprep.mubr.msk.f32.mxu1 %vm95_vm1, %v24052_v21  ;;  %19965 = vmatprep.mubr.msk.f32.mxu0 %vm95_vm1, %v16663_v39  ;;  %v24818_v21 = vld [vmem:[%s28350_s0 + $0x1e2] sm:$0xff]  ;;  %v24862_v59 = vld [vmem:[%s28350_s0 + $0x212] sm:$0xff] }
 0x237   :  { %v15566_v39 = vld [vmem:[%s28350_s0 + $0x39] sm:$0xff] }
 0x239   :  { %19108 = vmatmul.mubr.msk.f32.gmra.mrb[42].mxu1 %vm95_vm1, %v24065_v28  ;;  %19966 = vmatmul.mubr.msk.f32.gmra.mrb[22].mxu0 %vm95_vm1, %v16664_v11  ;;  %v24831_v28 = vld [vmem:[%s28350_s0 + $0x1ea] sm:$0xff]  ;;  %v24876_v11 = vld [vmem:[%s28350_s0 + $0x21a] sm:$0xff] }
 0x23a   :  { %19110 = vmatprep.mubr.msk.f32.mxu1 %vm95_vm1, %v24070_v63  ;;  %19968 = vmatprep.mubr.msk.f32.mxu0 %vm95_vm1, %v24801_v61  ;;  %v15563_v63 = vld [vmem:[%s28350_s0 + $0x19] sm:$0xff] }
 0x23d   :  { %19111 = vmatmul.mubr.msk.f32.gmra.mrb[44].mxu1 %vm95_vm1, %v24083_v35  ;;  %19969 = vmatmul.mubr.msk.f32.gmra.mrb[24].mxu0 %vm95_vm1, %v24813_v17  ;;  %v24839_v35 = vld [vmem:[%s28350_s0 + $0x1fa] sm:$0xff] }
 0x23e   :  { %19113 = vmatprep.mubr.msk.f32.mxu1 %vm95_vm1, %v24088_v1  ;;  %19971 = vmatprep.mubr.msk.f32.mxu0 %vm95_vm1, %v24818_v21  ;;  %v15564_v1 = vld [vmem:[%s28350_s0 + $0x21] sm:$0xff] }
 0x241   :  { %19114 = vmatmul.mubr.msk.f32.gmra.mrb[46].mxu1 %vm95_vm1, %v24101_v7  ;;  %19972 = vmatmul.mubr.msk.f32.gmra.mrb[26].mxu0 %vm95_vm1, %v24831_v28  ;;  %v15565_v7 = vld [vmem:[%s28350_s0 + $0x31] sm:$0xff] }
 0x242   :  { %19118 = vmatprep.mubr.msk.f32.mxu1 %vm95_vm1, %v15563_v63  ;;  %19974 = vmatprep.mubr.msk.f32.mxu0 %vm95_vm1, %v24839_v35  ;;  %v24881_v63 = vld [vmem:[%s28350_s0 + $0x22a] sm:$0xff] }
 0x245   :  { %19119 = vmatmul.mubr.msk.f32.vlgmr.msra.gmra.mrb[0].mxu1 %vm95_vm1, %v15564_v1  ;;  %19975 = vmatmul.mubr.msk.f32.gmra.mrb[28].mxu0 %vm95_vm1, %v24854_v55  ;;  %v24895_v1 = vld [vmem:[%s28350_s0 + $0x232] sm:$0xff] }
 0x246   :  { %19121 = vmatprep.mubr.msk.f32.mxu1 %vm95_vm1, %v15565_v7  ;;  %19977 = vmatprep.mubr.msk.f32.mxu0 %vm95_vm1, %v24862_v59  ;;  %v24918_v7 = vld [vmem:[%s28350_s0 + $0x25a] sm:$0xff] }
 0x247   :  { %19191 = vmatpush3.msk.msra.mxu1 %vm240_vm0, %v24706_v48  ;;  %v24900_v48 = vld [vmem:[%s28350_s0 + $0x242] sm:$0xff] }
 0x249   :  { %19122 = vmatmul.mubr.msk.f32.gmra.mrb[2].mxu1 %vm95_vm1, %v15566_v39  ;;  %19978 = vmatmul.mubr.msk.f32.gmra.mrb[30].mxu0 %vm95_vm1, %v24876_v11  ;;  %v16687_v39 = vld [vmem:[%s28350_s0 + $0x2d2] sm:$0xff] }
 0x24a   :  { %19124 = vmatprep.mubr.msk.f32.mxu1 %vm95_vm1, %v24131_v32  ;;  %19980 = vmatprep.mubr.msk.f32.mxu0 %vm95_vm1, %v24881_v63  ;;  %v24913_v32 = vld [vmem:[%s28350_s0 + $0x24a] sm:$0xff] }
 0x24d   :  { %19125 = vmatmul.mubr.msk.f32.gmra.mrb[4].mxu1 %vm95_vm1, %v24143_v6  ;;  %19981 = vmatmul.mubr.msk.f32.gmra.mrb[32].mxu0 %vm95_vm1, %v24895_v1  ;;  %v24931_v6 = vld [vmem:[%s28350_s0 + $0x262] sm:$0xff] }
 0x24e   :  { %19127 = vmatprep.mubr.msk.f32.mxu1 %vm95_vm1, %v24148_v15  ;;  %19983 = vmatprep.mubr.msk.f32.mxu0 %vm95_vm1, %v24900_v48  ;;  %v24936_v15 = vld [vmem:[%s28350_s0 + $0x272] sm:$0xff] }
 0x251   :  { %19128 = vmatmul.mubr.msk.f32.gmra.mrb[6].mxu1 %vm95_vm1, %v24166_v4  ;;  %19984 = vmatmul.mubr.msk.f32.gmra.mrb[34].mxu0 %vm95_vm1, %v24913_v32  ;;  %v24949_v4 = vld [vmem:[%s28350_s0 + $0x27a] sm:$0xff] }
 0x252   :  { %19130 = vmatprep.mubr.msk.f32.mxu1 %vm95_vm1, %v24176_v36  ;;  %19986 = vmatprep.mubr.msk.f32.mxu0 %vm95_vm1, %v24918_v7  ;;  %v24954_v36 = vld [vmem:[%s28350_s0 + $0x28a] sm:$0xff] }
 0x255   :  { %19131 = vmatmul.mubr.msk.f32.gmra.mrb[8].mxu1 %vm95_vm1, %v24193_v19  ;;  %19987 = vmatmul.mubr.msk.f32.gmra.mrb[36].mxu0 %vm95_vm1, %v24931_v6  ;;  %v24967_v19 = vld [vmem:[%s28350_s0 + $0x292] sm:$0xff] }
 0x256   :  { %19133 = vmatprep.mubr.msk.f32.mxu1 %vm95_vm1, %v24201_v40  ;;  %19989 = vmatprep.mubr.msk.f32.mxu0 %vm95_vm1, %v24936_v15  ;;  %v24972_v40 = vld [vmem:[%s28350_s0 + $0x2a2] sm:$0xff] }
 0x259   :  { %19134 = vmatmul.mubr.msk.f32.gmra.mrb[10].mxu1 %vm95_vm1, %v24215_v60  ;;  %19990 = vmatmul.mubr.msk.f32.gmra.mrb[38].mxu0 %vm95_vm1, %v24949_v4  ;;  %v24985_v60 = vld [vmem:[%s28350_s0 + $0x2aa] sm:$0xff] }
 0x25a   :  { %19136 = vmatprep.mubr.msk.f32.mxu1 %vm95_vm1, %v24220_v30  ;;  %19992 = vmatprep.mubr.msk.f32.mxu0 %vm95_vm1, %v24954_v36  ;;  %v16685_v30 = vld [vmem:[%s28350_s0 + $0x2ba] sm:$0xff] }
 0x25d   :  { %19137 = vmatmul.mubr.msk.f32.gmra.mrb[12].mxu1 %vm95_vm1, %v24232_v38  ;;  %19993 = vmatmul.mubr.msk.f32.gmra.mrb[40].mxu0 %vm95_vm1, %v24967_v19  ;;  %v28459_v38 = vld [vmem:[#allocation12_spill] sm:$0xff] }
 0x25e   :  { %19139 = vmatprep.mubr.msk.f32.mxu1 %vm95_vm1, %v24237_v43  ;;  %19995 = vmatprep.mubr.msk.f32.mxu0 %vm95_vm1, %v24972_v40  ;;  %v16686_v43 = vld [vmem:[%s28350_s0 + $0x2c2] sm:$0xff] }
 0x261   :  { %19140 = vmatmul.mubr.msk.f32.gmra.mrb[14].mxu1 %vm95_vm1, %v24250_v49  ;;  %19996 = vmatmul.mubr.msk.f32.gmra.mrb[42].mxu0 %vm95_vm1, %v24985_v60  ;;  %v16688_v49 = vld [vmem:[%s28350_s0 + $0x2da] sm:$0xff] }
 0x262   :  { %19142 = vmatprep.mubr.msk.f32.mxu1 %vm95_vm1, %v28459_v38  ;;  %19998 = vmatprep.mubr.msk.f32.mxu0 %vm95_vm1, %v16685_v30  ;;  %v25015_v30 = vld [vmem:[%s28350_s0 + $0x4b] sm:$0xff]  ;;  %v25060_v38 = vld [vmem:[%s28350_s0 + $0x7b] sm:$0xff] }
 0x265   :  { %19143 = vmatmul.mubr.msk.f32.gmra.mrb[16].mxu1 %vm95_vm1, %v24273_v8  ;;  %19999 = vmatmul.mubr.msk.f32.gmra.mrb[44].mxu0 %vm95_vm1, %v16686_v43  ;;  %v25027_v8 = vld [vmem:[%s28350_s0 + $0x53] sm:$0xff] }
 0x266   :  { %19145 = vmatprep.mubr.msk.f32.mxu1 %vm95_vm1, %v24278_v10  ;;  %20001 = vmatprep.mubr.msk.f32.mxu0 %vm95_vm1, %v16687_v39  ;;  %v25032_v10 = vld [vmem:[%s28350_s0 + $0x63] sm:$0xff]  ;;  %v25085_v43 = vld [vmem:[%s28350_s0 + $0x93] sm:$0xff] }
 0x267   :  { %v15590_v39 = vld [vmem:[%s28350_s0 + $0x1b9] sm:$0xff] }
 0x269   :  { %19146 = vmatmul.mubr.msk.f32.gmra.mrb[18].mxu1 %vm95_vm1, %v24293_v14  ;;  %20002 = vmatmul.mubr.msk.f32.gmra.mrb[46].mxu0 %vm95_vm1, %v16688_v49  ;;  %v25037_v14 = vld [vmem:[%s28351_s1 + $0x50] sm:$0xf]  ;;  %v25099_v49 = vld [vmem:[%s28350_s0 + $0x9b] sm:$0xff] }
 0x26a   :  { %19148 = vmatprep.mubr.msk.f32.mxu1 %vm95_vm1, %v24298_v27  ;;  %20006 = vmatprep.mubr.msk.f32.mxu0 %vm95_vm1, %v25015_v30  ;;  %v25050_v27 = vld [vmem:[%s28350_s0 + $0x6b] sm:$0xff] }
 0x26d   :  { %19149 = vmatmul.mubr.msk.f32.gmra.mrb[20].mxu1 %vm95_vm1, %v24311_v45  ;;  %20007 = vmatmul.mubr.msk.f32.vlgmr.msra.gmra.mrb[0].mxu0 %vm95_vm1, %v25027_v8  ;;  %v15587_v45 = vld [vmem:[%s28350_s0 + $0x199] sm:$0xff] }
 0x26e   :  { %20079 = vmatpush3.msk.msra.mxu0 %vm240_vm0, %v24595_v42  ;;  %19151 = vmatprep.mubr.msk.f32.mxu1 %vm95_vm1, %v24316_v47  ;;  %v15588_v47 = vld [vmem:[%s28350_s0 + $0x1a1] sm:$0xff] }
 0x26f   :  { %20009 = vmatprep.mubr.msk.f32.mxu0 %vm95_vm1, %v25032_v10  ;;  %20152 = vmatprep.subr.msk.mxu0 %vm240_vm0, %v25037_v14  ;;  %v25077_v42 = vld [vmem:[%s28350_s0 + $0x83] sm:$0xff] }
 0x271   :  { %19152 = vmatmul.mubr.msk.f32.gmra.mrb[22].mxu1 %vm95_vm1, %v24329_v3  ;;  %20010 = vmatmul.mubr.msk.f32.gmra.mrb[2].mxu0 %vm95_vm1, %v25050_v27  ;;  %v15589_v3 = vld [vmem:[%s28350_s0 + $0x1b1] sm:$0xff] }
 0x272   :  { %19154 = vmatprep.mubr.msk.f32.mxu1 %vm95_vm1, %v15587_v45  ;;  %20012 = vmatprep.mubr.msk.f32.mxu0 %vm95_vm1, %v25060_v38  ;;  %v25104_v45 = vld [vmem:[%s28350_s0 + $0xab] sm:$0xff] }
 0x275   :  { %19155 = vmatmul.mubr.msk.f32.gmra.mrb[24].mxu1 %vm95_vm1, %v15588_v47  ;;  %20013 = vmatmul.mubr.msk.f32.gmra.mrb[4].mxu0 %vm95_vm1, %v25077_v42  ;;  %v25116_v47 = vld [vmem:[%s28350_s0 + $0xb3] sm:$0xff] }
 0x276   :  { %19157 = vmatprep.mubr.msk.f32.mxu1 %vm95_vm1, %v15589_v3  ;;  %20015 = vmatprep.mubr.msk.f32.mxu0 %vm95_vm1, %v25085_v43  ;;  %v25121_v3 = vld [vmem:[%s28350_s0 + $0xc3] sm:$0xff] }
 0x279   :  { %19158 = vmatmul.mubr.msk.f32.gmra.mrb[26].mxu1 %vm95_vm1, %v15590_v39  ;;  %20016 = vmatmul.mubr.msk.f32.gmra.mrb[6].mxu0 %vm95_vm1, %v25099_v49  ;;  %v25139_v39 = vld [vmem:[%s28350_s0 + $0xdb] sm:$0xff] }
 0x27a   :  { %19160 = vmatprep.mubr.msk.f32.mxu1 %vm95_vm1, %v24359_v18  ;;  %20018 = vmatprep.mubr.msk.f32.mxu0 %vm95_vm1, %v25104_v45  ;;  %v25134_v18 = vld [vmem:[%s28350_s0 + $0xcb] sm:$0xff]  ;;  %28460 = vst [vmem:[#allocation17_spill] sm:$0xff] %v25139_v39 }
 0x27d   :  { %19161 = vmatmul.mubr.msk.f32.gmra.mrb[28].mxu1 %vm95_vm1, %v24371_v31  ;;  %20019 = vmatmul.mubr.msk.f32.gmra.mrb[8].mxu0 %vm95_vm1, %v25116_v47  ;;  %v25148_v31 = vld [vmem:[%s28351_s1 + $0x20] sm:$0xf] }
 0x27e   :  { %19163 = vmatprep.mubr.msk.f32.mxu1 %vm95_vm1, %v24376_v33  ;;  %20021 = vmatprep.mubr.msk.f32.mxu0 %vm95_vm1, %v25121_v3  ;;  %v25157_v33 = vld [vmem:[%s28350_s0 + $0xe3] sm:$0xff] }
 0x27f   :  { %19264 = vmatprep.subr.msk.mxu1 %vm240_vm0, %v25148_v31 }
 0x281   :  { %19164 = vmatmul.mubr.msk.f32.gmra.mrb[30].mxu1 %vm95_vm1, %v24389_v37  ;;  %20022 = vmatmul.mubr.msk.f32.gmra.mrb[10].mxu0 %vm95_vm1, %v25134_v18  ;;  %v25162_v37 = vld [vmem:[%s28350_s0 + $0xf3] sm:$0xff] }
 0x282   :  { %19166 = vmatprep.mubr.msk.f32.mxu1 %vm95_vm1, %v24397_v51  ;;  %20024 = vmatprep.mubr.msk.f32.mxu0 %vm95_vm1, %v25139_v39  ;;  %v25177_v51 = vld [vmem:[%s28350_s0 + $0xfb] sm:$0xff]  ;;  %v25182_v39 = vld [vmem:[%s28350_s0 + $0x10b] sm:$0xff] }
 0x283   :  { %28461 = vst [vmem:[#allocation18_spill] sm:$0xff] %v25177_v51  ;;  %28462 = vst [vmem:[#allocation11_spill] sm:$0xff] %v25182_v39 }
 0x285   :  { %19167 = vmatmul.mubr.msk.f32.gmra.mrb[32].mxu1 %vm95_vm1, %v24412_v12  ;;  %20025 = vmatmul.mubr.msk.f32.gmra.mrb[12].mxu0 %vm95_vm1, %v25157_v33  ;;  %v25195_v12 = vld [vmem:[%s28350_s0 + $0x113] sm:$0xff] }
 0x286   :  { %19169 = vmatprep.mubr.msk.f32.mxu1 %vm95_vm1, %v24420_v16  ;;  %20027 = vmatprep.mubr.msk.f32.mxu0 %vm95_vm1, %v25162_v37  ;;  %28463 = vst [vmem:[#allocation12_spill] sm:$0xff] %v25195_v12  ;;  %v25200_v16 = vld [vmem:[%s28350_s0 + $0x123] sm:$0xff] }
 0x287   :  { %28464 = vst [vmem:[#allocation19_spill] sm:$0xff] %v25200_v16 }
 0x289   :  { %19170 = vmatmul.mubr.msk.f32.gmra.mrb[34].mxu1 %vm95_vm1, %v24434_v29  ;;  %20028 = vmatmul.mubr.msk.f32.gmra.mrb[14].mxu0 %vm95_vm1, %v25177_v51  ;;  %v28465_v29 = vld [vmem:[#allocation13_spill] sm:$0xff] }
 0x28a   :  { %19172 = vmatprep.mubr.msk.f32.mxu1 %vm95_vm1, %v24439_v52  ;;  %20030 = vmatprep.mubr.msk.f32.mxu0 %vm95_vm1, %v25182_v39  ;;  %v28466_v52 = vld [vmem:[#allocation14_spill] sm:$0xff]  ;;  %v25213_v39 = vld [vmem:[%s28350_s0 + $0x12b] sm:$0xff] }
 0x28b   :  { %28467 = vst [vmem:[#allocation13_spill] sm:$0xff] %v25213_v39  ;;  %v16759_v51 = vld [vmem:[%s28350_s0 + $0x13b] sm:$0xff] }
 0x28d   :  { %19173 = vmatmul.mubr.msk.f32.gmra.mrb[36].mxu1 %vm95_vm1, %v28465_v29  ;;  %20031 = vmatmul.mubr.msk.f32.gmra.mrb[16].mxu0 %vm95_vm1, %v25195_v12  ;;  %v28468_v29 = vld [vmem:[#allocation15_spill] sm:$0xff]  ;;  %v28469_v12 = vld [vmem:[#allocation6_spill] sm:$0xff] }
 0x28e   :  { %19175 = vmatprep.mubr.msk.f32.mxu1 %vm95_vm1, %v28466_v52  ;;  %20033 = vmatprep.mubr.msk.f32.mxu0 %vm95_vm1, %v25200_v16  ;;  %v16760_v52 = vld [vmem:[%s28350_s0 + $0x143] sm:$0xff]  ;;  %v16761_v16 = vld [vmem:[%s28350_s0 + $0x153] sm:$0xff] }
 0x291   :  { %19176 = vmatmul.mubr.msk.f32.gmra.mrb[38].mxu1 %vm95_vm1, %v24471_v58  ;;  %20034 = vmatmul.mubr.msk.f32.gmra.mrb[18].mxu0 %vm95_vm1, %v25213_v39  ;;  %v28470_v58 = vld [vmem:[#allocation7_spill] sm:$0xff]  ;;  %v28471_v39 = vld [vmem:[#allocation8_spill] sm:$0xff] }
 0x292   :  { %19178 = vmatprep.mubr.msk.f32.mxu1 %vm95_vm1, %v28468_v29  ;;  %20036 = vmatprep.mubr.msk.f32.mxu0 %vm95_vm1, %v16759_v51  ;;  %v16762_v51 = vld [vmem:[%s28350_s0 + $0x15b] sm:$0xff]  ;;  %v25243_v29 = vld [vmem:[%s28350_s0 + $0x1cb] sm:$0xff] }
 0x295   :  { %19179 = vmatmul.mubr.msk.f32.gmra.mrb[40].mxu1 %vm95_vm1, %v28469_v12  ;;  %20037 = vmatmul.mubr.msk.f32.gmra.mrb[20].mxu0 %vm95_vm1, %v16760_v52  ;;  %v28472_v12 = vld [vmem:[#allocation9_spill] sm:$0xff]  ;;  %v25260_v52 = vld [vmem:[%s28350_s0 + $0x1e3] sm:$0xff] }
 0x296   :  { %19181 = vmatprep.mubr.msk.f32.mxu1 %vm95_vm1, %v28470_v58  ;;  %20039 = vmatprep.mubr.msk.f32.mxu0 %vm95_vm1, %v16761_v16  ;;  %v25255_v16 = vld [vmem:[%s28350_s0 + $0x1d3] sm:$0xff]  ;;  %v25273_v58 = vld [vmem:[%s28350_s0 + $0x1eb] sm:$0xff] }
 0x297   :  { %28474 = vst [vmem:[#allocation14_spill] sm:$0xff] %v25273_v58 }
 0x299   :  { %19182 = vmatmul.mubr.msk.f32.gmra.mrb[42].mxu1 %vm95_vm1, %v28471_v39  ;;  %20040 = vmatmul.mubr.msk.f32.gmra.mrb[22].mxu0 %vm95_vm1, %v16762_v51  ;;  %v28473_v39 = vld [vmem:[#allocation10_spill] sm:$0xff]  ;;  %v15661_v51 = vld [vmem:[%s28350_s0 + $0x1a] sm:$0xff] }
 0x29a   :  { %19184 = vmatprep.mubr.msk.f32.mxu1 %vm95_vm1, %v28472_v12  ;;  %20042 = vmatprep.mubr.msk.f32.mxu0 %vm95_vm1, %v25243_v29  ;;  %v15662_v12 = vld [vmem:[%s28350_s0 + $0x22] sm:$0xff] }
 0x29d   :  { %19185 = vmatmul.mubr.msk.f32.gmra.mrb[44].mxu1 %vm95_vm1, %v24525_v54  ;;  %20043 = vmatmul.mubr.msk.f32.gmra.mrb[24].mxu0 %vm95_vm1, %v25255_v16  ;;  %v25281_v54 = vld [vmem:[%s28350_s0 + $0x1fb] sm:$0xff] }
 0x29e   :  { %19187 = vmatprep.mubr.msk.f32.mxu1 %vm95_vm1, %v28473_v39  ;;  %20045 = vmatprep.mubr.msk.f32.mxu0 %vm95_vm1, %v25260_v52  ;;  %28475 = vst [vmem:[#allocation15_spill] sm:$0xff] %v25281_v54  ;;  %v25296_v39 = vld [vmem:[%s28350_s0 + $0x203] sm:$0xff] }
 0x2a1   :  { %19188 = vmatmul.mubr.msk.f32.gmra.mrb[46].mxu1 %vm95_vm1, %v24543_v0  ;;  %20046 = vmatmul.mubr.msk.f32.gmra.mrb[26].mxu0 %vm95_vm1, %v25273_v58  ;;  %v15663_v0 = vld [vmem:[%s28350_s0 + $0x32] sm:$0xff]  ;;  %v25318_v58 = vld [vmem:[%s28350_s0 + $0x21b] sm:$0xff] }
 0x2a2   :  { %19192 = vmatprep.mubr.msk.f32.mxu1 %vm95_vm1, %v15661_v51  ;;  %20048 = vmatprep.mubr.msk.f32.mxu0 %vm95_vm1, %v25281_v54  ;;  %v25304_v51 = vld [vmem:[%s28350_s0 + $0x213] sm:$0xff] }
 0x2a3   :  { %v15664_v54 = vld [vmem:[%s28350_s0 + $0x3a] sm:$0xff] }
 0x2a5   :  { %19193 = vmatmul.mubr.msk.f32.vlgmr.msra.gmra.mrb[0].mxu1 %vm95_vm1, %v15662_v12  ;;  %20049 = vmatmul.mubr.msk.f32.gmra.mrb[28].mxu0 %vm95_vm1, %v25296_v39  ;;  %v25323_v12 = vld [vmem:[%s28350_s0 + $0x22b] sm:$0xff] }
 0x2a6   :  { %19195 = vmatprep.mubr.msk.f32.mxu1 %vm95_vm1, %v15663_v0  ;;  %20051 = vmatprep.mubr.msk.f32.mxu0 %vm95_vm1, %v25304_v51  ;;  %v25337_v0 = vld [vmem:[%s28350_s0 + $0x233] sm:$0xff] }
 0x2a7   :  { %19265 = vmatpush3.msk.msra.mxu1 %vm240_vm0, %v25148_v31  ;;  %v25342_v31 = vld [vmem:[%s28350_s0 + $0x243] sm:$0xff] }
 0x2a9   :  { %19196 = vmatmul.mubr.msk.f32.gmra.mrb[2].mxu1 %vm95_vm1, %v15664_v54  ;;  %20052 = vmatmul.mubr.msk.f32.gmra.mrb[30].mxu0 %vm95_vm1, %v25318_v58  ;;  %v25360_v54 = vld [vmem:[%s28350_s0 + $0x25b] sm:$0xff] }
 0x2aa   :  { %19198 = vmatprep.mubr.msk.f32.mxu1 %vm95_vm1, %v24573_v25  ;;  %20054 = vmatprep.mubr.msk.f32.mxu0 %vm95_vm1, %v25323_v12  ;;  %v25355_v25 = vld [vmem:[%s28350_s0 + $0x24b] sm:$0xff] }
 0x2ad   :  { %19199 = vmatmul.mubr.msk.f32.gmra.mrb[4].mxu1 %vm95_vm1, %v24585_v24  ;;  %20055 = vmatmul.mubr.msk.f32.gmra.mrb[32].mxu0 %vm95_vm1, %v25337_v0  ;;  %v25373_v24 = vld [vmem:[%s28350_s0 + $0x263] sm:$0xff] }
 0x2ae   :  { %19201 = vmatprep.mubr.msk.f32.mxu1 %vm95_vm1, %v24590_v34  ;;  %20057 = vmatprep.mubr.msk.f32.mxu0 %vm95_vm1, %v25342_v31  ;;  %v25378_v34 = vld [vmem:[%s28350_s0 + $0x273] sm:$0xff] }
 0x2b1   :  { %19202 = vmatmul.mubr.msk.f32.gmra.mrb[6].mxu1 %vm95_vm1, %v24608_v13  ;;  %20058 = vmatmul.mubr.msk.f32.gmra.mrb[34].mxu0 %vm95_vm1, %v25355_v25  ;;  %v25391_v13 = vld [vmem:[%s28350_s0 + $0x27b] sm:$0xff] }
 0x2b2   :  { %19204 = vmatprep.mubr.msk.f32.mxu1 %vm95_vm1, %v24618_v5  ;;  %20060 = vmatprep.mubr.msk.f32.mxu0 %vm95_vm1, %v25360_v54  ;;  %v25396_v5 = vld [vmem:[%s28350_s0 + $0x28b] sm:$0xff] }
 0x2b5   :  { %19205 = vmatmul.mubr.msk.f32.gmra.mrb[8].mxu1 %vm95_vm1, %v24635_v22  ;;  %20061 = vmatmul.mubr.msk.f32.gmra.mrb[36].mxu0 %vm95_vm1, %v25373_v24  ;;  %v25409_v22 = vld [vmem:[%s28350_s0 + $0x293] sm:$0xff] }
 0x2b6   :  { %19207 = vmatprep.mubr.msk.f32.mxu1 %vm95_vm1, %v24643_v2  ;;  %20063 = vmatprep.mubr.msk.f32.mxu0 %vm95_vm1, %v25378_v34  ;;  %v25414_v2 = vld [vmem:[%s28350_s0 + $0x2a3] sm:$0xff] }
 0x2b7   :  { %28476 = vst [vmem:[#allocation6_spill] sm:$0xff] %v25414_v2 }
 0x2b9   :  { %19208 = vmatmul.mubr.msk.f32.gmra.mrb[10].mxu1 %vm95_vm1, %v24657_v20  ;;  %20064 = vmatmul.mubr.msk.f32.gmra.mrb[38].mxu0 %vm95_vm1, %v25391_v13  ;;  %v25427_v20 = vld [vmem:[%s28350_s0 + $0x2ab] sm:$0xff] }
 0x2ba   :  { %19210 = vmatprep.mubr.msk.f32.mxu1 %vm95_vm1, %v24662_v62  ;;  %20066 = vmatprep.mubr.msk.f32.mxu0 %vm95_vm1, %v25396_v5  ;;  %v16783_v62 = vld [vmem:[%s28350_s0 + $0x2bb] sm:$0xff] }
 0x2bd   :  { %19211 = vmatmul.mubr.msk.f32.gmra.mrb[12].mxu1 %vm95_vm1, %v24674_v9  ;;  %20067 = vmatmul.mubr.msk.f32.gmra.mrb[40].mxu0 %vm95_vm1, %v25409_v22  ;;  %v28477_v9 = vld [vmem:[#allocation16_spill] sm:$0xff] }
 0x2be   :  { %19213 = vmatprep.mubr.msk.f32.mxu1 %vm95_vm1, %v24679_v44  ;;  %20069 = vmatprep.mubr.msk.f32.mxu0 %vm95_vm1, %v25414_v2  ;;  %v16784_v44 = vld [vmem:[%s28350_s0 + $0x2c3] sm:$0xff]  ;;  %v16785_v2 = vld [vmem:[%s28350_s0 + $0x2d3] sm:$0xff] }
 0x2c1   :  { %19214 = vmatmul.mubr.msk.f32.gmra.mrb[14].mxu1 %vm95_vm1, %v24692_v26  ;;  %20070 = vmatmul.mubr.msk.f32.gmra.mrb[42].mxu0 %vm95_vm1, %v25427_v20  ;;  %v16786_v26 = vld [vmem:[%s28350_s0 + $0x2db] sm:$0xff] }
 0x2c2   :  { %19216 = vmatprep.mubr.msk.f32.mxu1 %vm95_vm1, %v28477_v9  ;;  %20072 = vmatprep.mubr.msk.f32.mxu0 %vm95_vm1, %v16783_v62  ;;  %v25457_v62 = vld [vmem:[%s28350_s0 + $0x4c] sm:$0xff]  ;;  %v25527_v9 = vld [vmem:[%s28350_s0 + $0x94] sm:$0xff] }
 0x2c5   :  { %19217 = vmatmul.mubr.msk.f32.gmra.mrb[16].mxu1 %vm95_vm1, %v24715_v50  ;;  %20073 = vmatmul.mubr.msk.f32.gmra.mrb[44].mxu0 %vm95_vm1, %v16784_v44  ;;  %v25469_v50 = vld [vmem:[%s28350_s0 + $0x54] sm:$0xff] }
 0x2c6   :  { %19219 = vmatprep.mubr.msk.f32.mxu1 %vm95_vm1, %v24720_v53  ;;  %20075 = vmatprep.mubr.msk.f32.mxu0 %vm95_vm1, %v16785_v2  ;;  %v25474_v53 = vld [vmem:[%s28350_s0 + $0x64] sm:$0xff]  ;;  %v25502_v2 = vld [vmem:[%s28350_s0 + $0x7c] sm:$0xff] }
 0x2c7   :  { %v15688_v44 = vld [vmem:[%s28350_s0 + $0x1ba] sm:$0xff] }
 0x2c9   :  { %19220 = vmatmul.mubr.msk.f32.gmra.mrb[18].mxu1 %vm95_vm1, %v24735_v57  ;;  %20076 = vmatmul.mubr.msk.f32.gmra.mrb[46].mxu0 %vm95_vm1, %v16786_v26  ;;  %v25479_v57 = vld [vmem:[%s28351_s1 + $0x54] sm:$0xf]  ;;  %v25541_v26 = vld [vmem:[%s28350_s0 + $0x9c] sm:$0xff] }
 0x2ca   :  { %19222 = vmatprep.mubr.msk.f32.mxu1 %vm95_vm1, %v24740_v56  ;;  %20080 = vmatprep.mubr.msk.f32.mxu0 %vm95_vm1, %v25457_v62  ;;  %v25492_v56 = vld [vmem:[%s28350_s0 + $0x6c] sm:$0xff] }
 0x2cd   :  { %19223 = vmatmul.mubr.msk.f32.gmra.mrb[20].mxu1 %vm95_vm1, %v24753_v41  ;;  %20081 = vmatmul.mubr.msk.f32.vlgmr.msra.gmra.mrb[0].mxu0 %vm95_vm1, %v25469_v50  ;;  %v15685_v41 = vld [vmem:[%s28350_s0 + $0x19a] sm:$0xff] }
 0x2ce   :  { %20153 = vmatpush3.msk.msra.mxu0 %vm240_vm0, %v25037_v14  ;;  %19225 = vmatprep.mubr.msk.f32.mxu1 %vm95_vm1, %v24758_v23  ;;  %v15686_v23 = vld [vmem:[%s28350_s0 + $0x1a2] sm:$0xff] }
 0x2cf   :  { %20083 = vmatprep.mubr.msk.f32.mxu0 %vm95_vm1, %v25474_v53  ;;  %20226 = vmatprep.subr.msk.mxu0 %vm240_vm0, %v25479_v57  ;;  %v25519_v14 = vld [vmem:[%s28350_s0 + $0x84] sm:$0xff] }
 0x2d1   :  { %19226 = vmatmul.mubr.msk.f32.gmra.mrb[22].mxu1 %vm95_vm1, %v24771_v46  ;;  %20084 = vmatmul.mubr.msk.f32.gmra.mrb[2].mxu0 %vm95_vm1, %v25492_v56  ;;  %v15687_v46 = vld [vmem:[%s28350_s0 + $0x1b2] sm:$0xff] }
 0x2d2   :  { %19228 = vmatprep.mubr.msk.f32.mxu1 %vm95_vm1, %v15685_v41  ;;  %20086 = vmatprep.mubr.msk.f32.mxu0 %vm95_vm1, %v25502_v2  ;;  %v25546_v41 = vld [vmem:[%s28350_s0 + $0xac] sm:$0xff] }
 0x2d5   :  { %19229 = vmatmul.mubr.msk.f32.gmra.mrb[24].mxu1 %vm95_vm1, %v15686_v23  ;;  %20087 = vmatmul.mubr.msk.f32.gmra.mrb[4].mxu0 %vm95_vm1, %v25519_v14  ;;  %v25558_v23 = vld [vmem:[%s28350_s0 + $0xb4] sm:$0xff] }
 0x2d6   :  { %19231 = vmatprep.mubr.msk.f32.mxu1 %vm95_vm1, %v15687_v46  ;;  %20089 = vmatprep.mubr.msk.f32.mxu0 %vm95_vm1, %v25527_v9  ;;  %v25563_v46 = vld [vmem:[%s28350_s0 + $0xc4] sm:$0xff] }
 0x2d9   :  { %19232 = vmatmul.mubr.msk.f32.gmra.mrb[26].mxu1 %vm95_vm1, %v15688_v44  ;;  %20090 = vmatmul.mubr.msk.f32.gmra.mrb[6].mxu0 %vm95_vm1, %v25541_v26  ;;  %v25581_v44 = vld [vmem:[%s28350_s0 + $0xdc] sm:$0xff] }
 0x2da   :  { %19234 = vmatprep.mubr.msk.f32.mxu1 %vm95_vm1, %v24801_v61  ;;  %20092 = vmatprep.mubr.msk.f32.mxu0 %vm95_vm1, %v25546_v41  ;;  %v25576_v61 = vld [vmem:[%s28350_s0 + $0xcc] sm:$0xff]  ;;  %28478 = vst [vmem:[#allocation7_spill] sm:$0xff] %v25581_v44 }
 0x2dd   :  { %19235 = vmatmul.mubr.msk.f32.gmra.mrb[28].mxu1 %vm95_vm1, %v24813_v17  ;;  %20093 = vmatmul.mubr.msk.f32.gmra.mrb[8].mxu0 %vm95_vm1, %v25558_v23  ;;  %v25590_v17 = vld [vmem:[%s28351_s1 + $0x24] sm:$0xf] }
 0x2de   :  { %19237 = vmatprep.mubr.msk.f32.mxu1 %vm95_vm1, %v24818_v21  ;;  %20095 = vmatprep.mubr.msk.f32.mxu0 %vm95_vm1, %v25563_v46  ;;  %v25599_v21 = vld [vmem:[%s28350_s0 + $0xe4] sm:$0xff] }
 0x2df   :  { %19338 = vmatprep.subr.msk.mxu1 %vm240_vm0, %v25590_v17 }
 0x2e1   :  { %19238 = vmatmul.mubr.msk.f32.gmra.mrb[30].mxu1 %vm95_vm1, %v24831_v28  ;;  %20096 = vmatmul.mubr.msk.f32.gmra.mrb[10].mxu0 %vm95_vm1, %v25576_v61  ;;  %v25604_v28 = vld [vmem:[%s28350_s0 + $0xf4] sm:$0xff] }
 0x2e2   :  { %19240 = vmatprep.mubr.msk.f32.mxu1 %vm95_vm1, %v24839_v35  ;;  %20098 = vmatprep.mubr.msk.f32.mxu0 %vm95_vm1, %v25581_v44  ;;  %v25619_v35 = vld [vmem:[%s28350_s0 + $0xfc] sm:$0xff]  ;;  %v25624_v44 = vld [vmem:[%s28350_s0 + $0x10c] sm:$0xff] }
 0x2e5   :  { %19241 = vmatmul.mubr.msk.f32.gmra.mrb[32].mxu1 %vm95_vm1, %v24854_v55  ;;  %20099 = vmatmul.mubr.msk.f32.gmra.mrb[12].mxu0 %vm95_vm1, %v25599_v21  ;;  %v25637_v55 = vld [vmem:[%s28350_s0 + $0x114] sm:$0xff] }
 0x2e6   :  { %19243 = vmatprep.mubr.msk.f32.mxu1 %vm95_vm1, %v24862_v59  ;;  %20101 = vmatprep.mubr.msk.f32.mxu0 %vm95_vm1, %v25604_v28  ;;  %v25642_v59 = vld [vmem:[%s28350_s0 + $0x124] sm:$0xff] }
 0x2e9   :  { %19244 = vmatmul.mubr.msk.f32.gmra.mrb[34].mxu1 %vm95_vm1, %v24876_v11  ;;  %20102 = vmatmul.mubr.msk.f32.gmra.mrb[14].mxu0 %vm95_vm1, %v25619_v35  ;;  %v25655_v11 = vld [vmem:[%s28350_s0 + $0x12c] sm:$0xff] }
 0x2ea   :  { %19246 = vmatprep.mubr.msk.f32.mxu1 %vm95_vm1, %v24881_v63  ;;  %20104 = vmatprep.mubr.msk.f32.mxu0 %vm95_vm1, %v25624_v44  ;;  %v16857_v63 = vld [vmem:[%s28350_s0 + $0x13c] sm:$0xff] }
 0x2ed   :  { %19247 = vmatmul.mubr.msk.f32.gmra.mrb[36].mxu1 %vm95_vm1, %v24895_v1  ;;  %20105 = vmatmul.mubr.msk.f32.gmra.mrb[16].mxu0 %vm95_vm1, %v25637_v55  ;;  %v16858_v1 = vld [vmem:[%s28350_s0 + $0x144] sm:$0xff] }
 0x2ee   :  { %19249 = vmatprep.mubr.msk.f32.mxu1 %vm95_vm1, %v24900_v48  ;;  %20107 = vmatprep.mubr.msk.f32.mxu0 %vm95_vm1, %v25642_v59  ;;  %v16859_v48 = vld [vmem:[%s28350_s0 + $0x154] sm:$0xff] }
 0x2f1   :  { %19250 = vmatmul.mubr.msk.f32.gmra.mrb[38].mxu1 %vm95_vm1, %v24913_v32  ;;  %20108 = vmatmul.mubr.msk.f32.gmra.mrb[18].mxu0 %vm95_vm1, %v25655_v11  ;;  %v16860_v32 = vld [vmem:[%s28350_s0 + $0x15c] sm:$0xff] }
 0x2f2   :  { %19252 = vmatprep.mubr.msk.f32.mxu1 %vm95_vm1, %v24918_v7  ;;  %20110 = vmatprep.mubr.msk.f32.mxu0 %vm95_vm1, %v16857_v63  ;;  %v25685_v7 = vld [vmem:[%s28350_s0 + $0x1cc] sm:$0xff]  ;;  %v25738_v63 = vld [vmem:[%s28350_s0 + $0x204] sm:$0xff] }
 0x2f5   :  { %19253 = vmatmul.mubr.msk.f32.gmra.mrb[40].mxu1 %vm95_vm1, %v24931_v6  ;;  %20111 = vmatmul.mubr.msk.f32.gmra.mrb[20].mxu0 %vm95_vm1, %v16858_v1  ;;  %v25697_v6 = vld [vmem:[%s28350_s0 + $0x1d4] sm:$0xff] }
 0x2f6   :  { %19255 = vmatprep.mubr.msk.f32.mxu1 %vm95_vm1, %v24936_v15  ;;  %20113 = vmatprep.mubr.msk.f32.mxu0 %vm95_vm1, %v16859_v48  ;;  %v25702_v15 = vld [vmem:[%s28350_s0 + $0x1e4] sm:$0xff]  ;;  %v25746_v1 = vld [vmem:[%s28350_s0 + $0x214] sm:$0xff] }
 0x2f7   :  { %v15762_v48 = vld [vmem:[%s28350_s0 + $0x3b] sm:$0xff] }
 0x2f9   :  { %19256 = vmatmul.mubr.msk.f32.gmra.mrb[42].mxu1 %vm95_vm1, %v24949_v4  ;;  %20114 = vmatmul.mubr.msk.f32.gmra.mrb[22].mxu0 %vm95_vm1, %v16860_v32  ;;  %v25715_v4 = vld [vmem:[%s28350_s0 + $0x1ec] sm:$0xff]  ;;  %v25760_v32 = vld [vmem:[%s28350_s0 + $0x21c] sm:$0xff] }
 0x2fa   :  { %19258 = vmatprep.mubr.msk.f32.mxu1 %vm95_vm1, %v24954_v36  ;;  %20116 = vmatprep.mubr.msk.f32.mxu0 %vm95_vm1, %v25685_v7  ;;  %v15759_v36 = vld [vmem:[%s28350_s0 + $0x1b] sm:$0xff] }
 0x2fd   :  { %19259 = vmatmul.mubr.msk.f32.gmra.mrb[44].mxu1 %vm95_vm1, %v24967_v19  ;;  %20117 = vmatmul.mubr.msk.f32.gmra.mrb[24].mxu0 %vm95_vm1, %v25697_v6  ;;  %v25723_v19 = vld [vmem:[%s28350_s0 + $0x1fc] sm:$0xff] }
 0x2fe   :  { %19261 = vmatprep.mubr.msk.f32.mxu1 %vm95_vm1, %v24972_v40  ;;  %20119 = vmatprep.mubr.msk.f32.mxu0 %vm95_vm1, %v25702_v15  ;;  %v15760_v40 = vld [vmem:[%s28350_s0 + $0x23] sm:$0xff] }
 0x301   :  { %19262 = vmatmul.mubr.msk.f32.gmra.mrb[46].mxu1 %vm95_vm1, %v24985_v60  ;;  %20120 = vmatmul.mubr.msk.f32.gmra.mrb[26].mxu0 %vm95_vm1, %v25715_v4  ;;  %v15761_v60 = vld [vmem:[%s28350_s0 + $0x33] sm:$0xff] }
 0x302   :  { %19266 = vmatprep.mubr.msk.f32.mxu1 %vm95_vm1, %v15759_v36  ;;  %20122 = vmatprep.mubr.msk.f32.mxu0 %vm95_vm1, %v25723_v19  ;;  %v25765_v36 = vld [vmem:[%s28350_s0 + $0x22c] sm:$0xff] }
 0x305   :  { %19267 = vmatmul.mubr.msk.f32.vlgmr.msra.gmra.mrb[0].mxu1 %vm95_vm1, %v15760_v40  ;;  %20123 = vmatmul.mubr.msk.f32.gmra.mrb[28].mxu0 %vm95_vm1, %v25738_v63  ;;  %v25779_v40 = vld [vmem:[%s28350_s0 + $0x234] sm:$0xff] }
 0x306   :  { %19269 = vmatprep.mubr.msk.f32.mxu1 %vm95_vm1, %v15761_v60  ;;  %20125 = vmatprep.mubr.msk.f32.mxu0 %vm95_vm1, %v25746_v1  ;;  %v25802_v60 = vld [vmem:[%s28350_s0 + $0x25c] sm:$0xff] }
 0x307   :  { %19339 = vmatpush3.msk.msra.mxu1 %vm240_vm0, %v25590_v17  ;;  %v25784_v17 = vld [vmem:[%s28350_s0 + $0x244] sm:$0xff] }
 0x309   :  { %19270 = vmatmul.mubr.msk.f32.gmra.mrb[2].mxu1 %vm95_vm1, %v15762_v48  ;;  %20126 = vmatmul.mubr.msk.f32.gmra.mrb[30].mxu0 %vm95_vm1, %v25760_v32  ;;  %v16883_v48 = vld [vmem:[%s28350_s0 + $0x2d4] sm:$0xff] }
 0x30a   :  { %19272 = vmatprep.mubr.msk.f32.mxu1 %vm95_vm1, %v25015_v30  ;;  %20128 = vmatprep.mubr.msk.f32.mxu0 %vm95_vm1, %v25765_v36  ;;  %v25797_v30 = vld [vmem:[%s28350_s0 + $0x24c] sm:$0xff] }
 0x30d   :  { %19273 = vmatmul.mubr.msk.f32.gmra.mrb[4].mxu1 %vm95_vm1, %v25027_v8  ;;  %20129 = vmatmul.mubr.msk.f32.gmra.mrb[32].mxu0 %vm95_vm1, %v25779_v40  ;;  %v25815_v8 = vld [vmem:[%s28350_s0 + $0x264] sm:$0xff] }
 0x30e   :  { %19275 = vmatprep.mubr.msk.f32.mxu1 %vm95_vm1, %v25032_v10  ;;  %20131 = vmatprep.mubr.msk.f32.mxu0 %vm95_vm1, %v25784_v17  ;;  %v25820_v10 = vld [vmem:[%s28350_s0 + $0x274] sm:$0xff] }
 0x311   :  { %19276 = vmatmul.mubr.msk.f32.gmra.mrb[6].mxu1 %vm95_vm1, %v25050_v27  ;;  %20132 = vmatmul.mubr.msk.f32.gmra.mrb[34].mxu0 %vm95_vm1, %v25797_v30  ;;  %v25833_v27 = vld [vmem:[%s28350_s0 + $0x27c] sm:$0xff] }
 0x312   :  { %19278 = vmatprep.mubr.msk.f32.mxu1 %vm95_vm1, %v25060_v38  ;;  %20134 = vmatprep.mubr.msk.f32.mxu0 %vm95_vm1, %v25802_v60  ;;  %v25838_v38 = vld [vmem:[%s28350_s0 + $0x28c] sm:$0xff] }
 0x315   :  { %19279 = vmatmul.mubr.msk.f32.gmra.mrb[8].mxu1 %vm95_vm1, %v25077_v42  ;;  %20135 = vmatmul.mubr.msk.f32.gmra.mrb[36].mxu0 %vm95_vm1, %v25815_v8  ;;  %v25851_v42 = vld [vmem:[%s28350_s0 + $0x294] sm:$0xff] }
 0x316   :  { %19281 = vmatprep.mubr.msk.f32.mxu1 %vm95_vm1, %v25085_v43  ;;  %20137 = vmatprep.mubr.msk.f32.mxu0 %vm95_vm1, %v25820_v10  ;;  %v25856_v43 = vld [vmem:[%s28350_s0 + $0x2a4] sm:$0xff] }
 0x319   :  { %19282 = vmatmul.mubr.msk.f32.gmra.mrb[10].mxu1 %vm95_vm1, %v25099_v49  ;;  %20138 = vmatmul.mubr.msk.f32.gmra.mrb[38].mxu0 %vm95_vm1, %v25833_v27  ;;  %v25869_v49 = vld [vmem:[%s28350_s0 + $0x2ac] sm:$0xff] }
 0x31a   :  { %19284 = vmatprep.mubr.msk.f32.mxu1 %vm95_vm1, %v25104_v45  ;;  %20140 = vmatprep.mubr.msk.f32.mxu0 %vm95_vm1, %v25838_v38  ;;  %v16881_v45 = vld [vmem:[%s28350_s0 + $0x2bc] sm:$0xff] }
 0x31d   :  { %19285 = vmatmul.mubr.msk.f32.gmra.mrb[12].mxu1 %vm95_vm1, %v25116_v47  ;;  %20141 = vmatmul.mubr.msk.f32.gmra.mrb[40].mxu0 %vm95_vm1, %v25851_v42  ;;  %v28479_v47 = vld [vmem:[#allocation17_spill] sm:$0xff] }
 0x31e   :  { %19287 = vmatprep.mubr.msk.f32.mxu1 %vm95_vm1, %v25121_v3  ;;  %20143 = vmatprep.mubr.msk.f32.mxu0 %vm95_vm1, %v25856_v43  ;;  %v16882_v3 = vld [vmem:[%s28350_s0 + $0x2c4] sm:$0xff] }
 0x321   :  { %19288 = vmatmul.mubr.msk.f32.gmra.mrb[14].mxu1 %vm95_vm1, %v25134_v18  ;;  %20144 = vmatmul.mubr.msk.f32.gmra.mrb[42].mxu0 %vm95_vm1, %v25869_v49  ;;  %v16884_v18 = vld [vmem:[%s28350_s0 + $0x2dc] sm:$0xff] }
 0x322   :  { %19290 = vmatprep.mubr.msk.f32.mxu1 %vm95_vm1, %v28479_v47  ;;  %20146 = vmatprep.mubr.msk.f32.mxu0 %vm95_vm1, %v16881_v45  ;;  %v25899_v45 = vld [vmem:[%s28350_s0 + $0x60] sm:$0xff] }
 0x323   :  { %v28480_v47 = vld [vmem:[#allocation18_spill] sm:$0xff] }
 0x325   :  { %19291 = vmatmul.mubr.msk.f32.gmra.mrb[16].mxu1 %vm95_vm1, %v25157_v33  ;;  %20147 = vmatmul.mubr.msk.f32.gmra.mrb[44].mxu0 %vm95_vm1, %v16882_v3  ;;  %v28481_v33 = vld [vmem:[#allocation11_spill] sm:$0xff]  ;;  %v25916_v3 = vld [vmem:[%s28350_s0 + $0x78] sm:$0xff] }
 0x326   :  { %19293 = vmatprep.mubr.msk.f32.mxu1 %vm95_vm1, %v25162_v37  ;;  %20149 = vmatprep.mubr.msk.f32.mxu0 %vm95_vm1, %v16883_v48  ;;  %v25911_v37 = vld [vmem:[%s28350_s0 + $0x68] sm:$0xff]  ;;  %28483 = vst [vmem:[#allocation9_spill] sm:$0xff] %v25916_v3  ;;  %v25921_v48 = vld [vmem:[%s28351_s1 + $0x58] sm:$0xf] }
 0x327   :  { %28482 = vst [vmem:[#allocation8_spill] sm:$0xff] %v25911_v37 }
 0x329   :  { %19294 = vmatmul.mubr.msk.f32.gmra.mrb[18].mxu1 %vm95_vm1, %v28480_v47  ;;  %20150 = vmatmul.mubr.msk.f32.gmra.mrb[46].mxu0 %vm95_vm1, %v16884_v18  ;;  %v28484_v18 = vld [vmem:[#allocation12_spill] sm:$0xff]  ;;  %v28485_v47 = vld [vmem:[#allocation19_spill] sm:$0xff] }
 0x32a   :  { %19296 = vmatprep.mubr.msk.f32.mxu1 %vm95_vm1, %v28481_v33  ;;  %20154 = vmatprep.mubr.msk.f32.mxu0 %vm95_vm1, %v25899_v45  ;;  %v25934_v33 = vld [vmem:[%s28350_s0 + $0x80] sm:$0xff] }
 0x32b   :  { %28486 = vst [vmem:[#allocation10_spill] sm:$0xff] %v25934_v33 }
 0x32d   :  { %19297 = vmatmul.mubr.msk.f32.gmra.mrb[20].mxu1 %vm95_vm1, %v28484_v18  ;;  %20155 = vmatmul.mubr.msk.f32.vlgmr.msra.gmra.mrb[0].mxu0 %vm95_vm1, %v25911_v37  ;;  %v15783_v18 = vld [vmem:[%s28350_s0 + $0x19b] sm:$0xff]  ;;  %v25944_v37 = vld [vmem:[%s28350_s0 + $0x90] sm:$0xff] }
 0x32e   :  { %20227 = vmatpush3.msk.msra.mxu0 %vm240_vm0, %v25479_v57  ;;  %19299 = vmatprep.mubr.msk.f32.mxu1 %vm95_vm1, %v28485_v47  ;;  %28487 = vst [vmem:[#allocation16_spill] sm:$0xff] %v25944_v37  ;;  %v28488_v57 = vld [vmem:[#allocation13_spill] sm:$0xff]  ;;  %v15784_v47 = vld [vmem:[%s28350_s0 + $0x1a3] sm:$0xff] }
 0x32f   :  { %20157 = vmatprep.mubr.msk.f32.mxu0 %vm95_vm1, %v25916_v3  ;;  %20300 = vmatprep.subr.msk.mxu0 %vm240_vm0, %v25921_v48  ;;  %v25961_v3 = vld [vmem:[%s28350_s0 + $0x98] sm:$0xff] }
 0x331   :  { %19300 = vmatmul.mubr.msk.f32.gmra.mrb[22].mxu1 %vm95_vm1, %v28488_v57  ;;  %20158 = vmatmul.mubr.msk.f32.gmra.mrb[2].mxu0 %vm95_vm1, %v25934_v33  ;;  %v15785_v57 = vld [vmem:[%s28350_s0 + $0x1b3] sm:$0xff] }
 0x332   :  { %19302 = vmatprep.mubr.msk.f32.mxu1 %vm95_vm1, %v15783_v18  ;;  %20160 = vmatprep.mubr.msk.f32.mxu0 %vm95_vm1, %v25944_v37  ;;  %v25969_v18 = vld [vmem:[%s28350_s0 + $0xa8] sm:$0xff]  ;;  %v15786_v37 = vld [vmem:[%s28350_s0 + $0x1bb] sm:$0xff]  ;;  %v25983_v33 = vld [vmem:[%s28350_s0 + $0xb0] sm:$0xff] }
 0x333   :  { %28489 = vst [vmem:[#allocation17_spill] sm:$0xff] %v25969_v18 }
 0x335   :  { %19303 = vmatmul.mubr.msk.f32.gmra.mrb[24].mxu1 %vm95_vm1, %v15784_v47  ;;  %20161 = vmatmul.mubr.msk.f32.gmra.mrb[4].mxu0 %vm95_vm1, %v25961_v3  ;;  %v25988_v47 = vld [vmem:[%s28350_s0 + $0xc0] sm:$0xff] }
 0x336   :  { %19305 = vmatprep.mubr.msk.f32.mxu1 %vm95_vm1, %v15785_v57  ;;  %20163 = vmatprep.mubr.msk.f32.mxu0 %vm95_vm1, %v25969_v18  ;;  %v26000_v57 = vld [vmem:[%s28350_s0 + $0xc8] sm:$0xff]  ;;  %v26005_v18 = vld [vmem:[%s28350_s0 + $0xd8] sm:$0xff] }
 0x337   :  { %28490 = vst [vmem:[#allocation18_spill] sm:$0xff] %v26000_v57  ;;  %28491 = vst [vmem:[#allocation11_spill] sm:$0xff] %v26005_v18 }
 0x339   :  { %19306 = vmatmul.mubr.msk.f32.gmra.mrb[26].mxu1 %vm95_vm1, %v15786_v37  ;;  %20164 = vmatmul.mubr.msk.f32.gmra.mrb[6].mxu0 %vm95_vm1, %v25983_v33  ;;  %v26023_v37 = vld [vmem:[%s28350_s0 + $0xf0] sm:$0xff] }
 0x33a   :  { %19308 = vmatprep.mubr.msk.f32.mxu1 %vm95_vm1, %v25243_v29  ;;  %20166 = vmatprep.mubr.msk.f32.mxu0 %vm95_vm1, %v25988_v47  ;;  %v26018_v29 = vld [vmem:[%s28350_s0 + $0xe0] sm:$0xff]  ;;  %28492 = vst [vmem:[#allocation12_spill] sm:$0xff] %v26023_v37 }
 0x33d   :  { %19309 = vmatmul.mubr.msk.f32.gmra.mrb[28].mxu1 %vm95_vm1, %v25255_v16  ;;  %20167 = vmatmul.mubr.msk.f32.gmra.mrb[8].mxu0 %vm95_vm1, %v26000_v57  ;;  %v28493_v16 = vld [vmem:[#allocation14_spill] sm:$0xff]  ;;  %v26041_v57 = vld [vmem:[%s28350_s0 + $0xf8] sm:$0xff] }
 0x33e   :  { %19311 = vmatprep.mubr.msk.f32.mxu1 %vm95_vm1, %v25260_v52  ;;  %20169 = vmatprep.mubr.msk.f32.mxu0 %vm95_vm1, %v26005_v18  ;;  %v26032_v52 = vld [vmem:[%s28351_s1 + $0x28] sm:$0xf] }
 0x33f   :  { %v28494_v18 = vld [vmem:[#allocation15_spill] sm:$0xff]  ;;  %19412 = vmatprep.subr.msk.mxu1 %vm240_vm0, %v26032_v52 }
 0x341   :  { %19312 = vmatmul.mubr.msk.f32.gmra.mrb[30].mxu1 %vm95_vm1, %v28493_v16  ;;  %20170 = vmatmul.mubr.msk.f32.gmra.mrb[10].mxu0 %vm95_vm1, %v26018_v29  ;;  %v26046_v16 = vld [vmem:[%s28350_s0 + $0x108] sm:$0xff] }
 0x342   :  { %19314 = vmatprep.mubr.msk.f32.mxu1 %vm95_vm1, %v28494_v18  ;;  %20172 = vmatprep.mubr.msk.f32.mxu0 %vm95_vm1, %v26023_v37  ;;  %v26061_v18 = vld [vmem:[%s28350_s0 + $0x110] sm:$0xff]  ;;  %v26066_v37 = vld [vmem:[%s28350_s0 + $0x120] sm:$0xff] }
 0x345   :  { %19315 = vmatmul.mubr.msk.f32.gmra.mrb[32].mxu1 %vm95_vm1, %v25296_v39  ;;  %20173 = vmatmul.mubr.msk.f32.gmra.mrb[12].mxu0 %vm95_vm1, %v26041_v57  ;;  %v26079_v39 = vld [vmem:[%s28350_s0 + $0x128] sm:$0xff] }
 0x346   :  { %19317 = vmatprep.mubr.msk.f32.mxu1 %vm95_vm1, %v25304_v51  ;;  %20175 = vmatprep.mubr.msk.f32.mxu0 %vm95_vm1, %v26046_v16  ;;  %v26084_v51 = vld [vmem:[%s28350_s0 + $0x138] sm:$0xff] }
 0x349   :  { %19318 = vmatmul.mubr.msk.f32.gmra.mrb[34].mxu1 %vm95_vm1, %v25318_v58  ;;  %20176 = vmatmul.mubr.msk.f32.gmra.mrb[14].mxu0 %vm95_vm1, %v26061_v18  ;;  %v26097_v58 = vld [vmem:[%s28350_s0 + $0x140] sm:$0xff] }
 0x34a   :  { %19320 = vmatprep.mubr.msk.f32.mxu1 %vm95_vm1, %v25323_v12  ;;  %20178 = vmatprep.mubr.msk.f32.mxu0 %vm95_vm1, %v26066_v37  ;;  %v16955_v12 = vld [vmem:[%s28350_s0 + $0x150] sm:$0xff] }
 0x34d   :  { %19321 = vmatmul.mubr.msk.f32.gmra.mrb[36].mxu1 %vm95_vm1, %v25337_v0  ;;  %20179 = vmatmul.mubr.msk.f32.gmra.mrb[16].mxu0 %vm95_vm1, %v26079_v39  ;;  %v16956_v0 = vld [vmem:[%s28350_s0 + $0x158] sm:$0xff] }
 0x34e   :  { %19323 = vmatprep.mubr.msk.f32.mxu1 %vm95_vm1, %v25342_v31  ;;  %20181 = vmatprep.mubr.msk.f32.mxu0 %vm95_vm1, %v26084_v51  ;;  %v16957_v31 = vld [vmem:[%s28350_s0 + $0x168] sm:$0xff] }
 0x351   :  { %19324 = vmatmul.mubr.msk.f32.gmra.mrb[38].mxu1 %vm95_vm1, %v25355_v25  ;;  %20182 = vmatmul.mubr.msk.f32.gmra.mrb[18].mxu0 %vm95_vm1, %v26097_v58  ;;  %v16958_v25 = vld [vmem:[%s28350_s0 + $0x170] sm:$0xff] }
 0x352   :  { %19326 = vmatprep.mubr.msk.f32.mxu1 %vm95_vm1, %v25360_v54  ;;  %20184 = vmatprep.mubr.msk.f32.mxu0 %vm95_vm1, %v16955_v12  ;;  %v26127_v54 = vld [vmem:[%s28350_s0 + $0x1e0] sm:$0xff] }
 0x353   :  { %v15857_v12 = vld [vmem:[%s28350_s0 + $0x1c] sm:$0xff] }
 0x355   :  { %19327 = vmatmul.mubr.msk.f32.gmra.mrb[40].mxu1 %vm95_vm1, %v25373_v24  ;;  %20185 = vmatmul.mubr.msk.f32.gmra.mrb[20].mxu0 %vm95_vm1, %v16956_v0  ;;  %v26139_v24 = vld [vmem:[%s28350_s0 + $0x1e8] sm:$0xff] }
 0x356   :  { %19329 = vmatprep.mubr.msk.f32.mxu1 %vm95_vm1, %v25378_v34  ;;  %20187 = vmatprep.mubr.msk.f32.mxu0 %vm95_vm1, %v16957_v31  ;;  %v26144_v34 = vld [vmem:[%s28350_s0 + $0x1f8] sm:$0xff]  ;;  %v15858_v0 = vld [vmem:[%s28350_s0 + $0x24] sm:$0xff] }
 0x357   :  { %v26180_v31 = vld [vmem:[%s28350_s0 + $0x218] sm:$0xff] }
 0x359   :  { %19330 = vmatmul.mubr.msk.f32.gmra.mrb[42].mxu1 %vm95_vm1, %v25391_v13  ;;  %20188 = vmatmul.mubr.msk.f32.gmra.mrb[22].mxu0 %vm95_vm1, %v16958_v25  ;;  %v28495_v13 = vld [vmem:[#allocation6_spill] sm:$0xff] }
 0x35a   :  { %19332 = vmatprep.mubr.msk.f32.mxu1 %vm95_vm1, %v25396_v5  ;;  %20190 = vmatprep.mubr.msk.f32.mxu0 %vm95_vm1, %v26127_v54  ;;  %v26157_v5 = vld [vmem:[%s28350_s0 + $0x200] sm:$0xff]  ;;  %v26188_v25 = vld [vmem:[%s28350_s0 + $0x228] sm:$0xff] }
 0x35b   :  { %28496 = vst [vmem:[#allocation19_spill] sm:$0xff] %v26188_v25 }
 0x35d   :  { %19333 = vmatmul.mubr.msk.f32.gmra.mrb[44].mxu1 %vm95_vm1, %v25409_v22  ;;  %20191 = vmatmul.mubr.msk.f32.gmra.mrb[24].mxu0 %vm95_vm1, %v26139_v24  ;;  %v26165_v22 = vld [vmem:[%s28350_s0 + $0x210] sm:$0xff] }
 0x35e   :  { %19335 = vmatprep.mubr.msk.f32.mxu1 %vm95_vm1, %v28495_v13  ;;  %20193 = vmatprep.mubr.msk.f32.mxu0 %vm95_vm1, %v26144_v34  ;;  %v15860_v13 = vld [vmem:[%s28350_s0 + $0x3c] sm:$0xff] }
 0x361   :  { %19336 = vmatmul.mubr.msk.f32.gmra.mrb[46].mxu1 %vm95_vm1, %v25427_v20  ;;  %20194 = vmatmul.mubr.msk.f32.gmra.mrb[26].mxu0 %vm95_vm1, %v26157_v5  ;;  %v15859_v20 = vld [vmem:[%s28350_s0 + $0x34] sm:$0xff] }
 0x362   :  { %19340 = vmatprep.mubr.msk.f32.mxu1 %vm95_vm1, %v15857_v12  ;;  %20196 = vmatprep.mubr.msk.f32.mxu0 %vm95_vm1, %v26165_v22  ;;  %v26202_v12 = vld [vmem:[%s28350_s0 + $0x230] sm:$0xff] }
 0x365   :  { %19341 = vmatmul.mubr.msk.f32.vlgmr.msra.gmra.mrb[0].mxu1 %vm95_vm1, %v15858_v0  ;;  %20197 = vmatmul.mubr.msk.f32.gmra.mrb[28].mxu0 %vm95_vm1, %v26180_v31  ;;  %v26207_v0 = vld [vmem:[%s28350_s0 + $0x240] sm:$0xff] }
 0x366   :  { %19343 = vmatprep.mubr.msk.f32.mxu1 %vm95_vm1, %v15859_v20  ;;  %20199 = vmatprep.mubr.msk.f32.mxu0 %vm95_vm1, %v26188_v25  ;;  %v26214_v20 = vld [vmem:[%s28351_s1 + $0x2c] sm:$0xf]  ;;  %v26233_v25 = vld [vmem:[%s28350_s0 + $0x258] sm:$0xff] }
 0x367   :  { %19413 = vmatpush3.msk.msra.mxu1 %vm240_vm0, %v26032_v52  ;;  %v26228_v52 = vld [vmem:[%s28350_s0 + $0x248] sm:$0xff] }
 0x368   :  { %20703 = vmatprep.subr.msk.mxu1 %vm240_vm0, %v26214_v20 }
 0x369   :  { %19344 = vmatmul.mubr.msk.f32.gmra.mrb[2].mxu1 %vm95_vm1, %v15860_v13  ;;  %20200 = vmatmul.mubr.msk.f32.gmra.mrb[30].mxu0 %vm95_vm1, %v26202_v12  ;;  %v26251_v13 = vld [vmem:[%s28350_s0 + $0x270] sm:$0xff] }
 0x36a   :  { %19346 = vmatprep.mubr.msk.f32.mxu1 %vm95_vm1, %v25457_v62  ;;  %20202 = vmatprep.mubr.msk.f32.mxu0 %vm95_vm1, %v26207_v0  ;;  %v26246_v62 = vld [vmem:[%s28350_s0 + $0x260] sm:$0xff] }
 0x36d   :  { %19347 = vmatmul.mubr.msk.f32.gmra.mrb[4].mxu1 %vm95_vm1, %v25469_v50  ;;  %20203 = vmatmul.mubr.msk.f32.gmra.mrb[32].mxu0 %vm95_vm1, %v26228_v52  ;;  %v26264_v50 = vld [vmem:[%s28350_s0 + $0x278] sm:$0xff] }
 0x36e   :  { %19349 = vmatprep.mubr.msk.f32.mxu1 %vm95_vm1, %v25474_v53  ;;  %20205 = vmatprep.mubr.msk.f32.mxu0 %vm95_vm1, %v26233_v25  ;;  %v26269_v53 = vld [vmem:[%s28350_s0 + $0x288] sm:$0xff] }
 0x371   :  { %19350 = vmatmul.mubr.msk.f32.gmra.mrb[6].mxu1 %vm95_vm1, %v25492_v56  ;;  %20206 = vmatmul.mubr.msk.f32.gmra.mrb[34].mxu0 %vm95_vm1, %v26246_v62  ;;  %v26282_v56 = vld [vmem:[%s28350_s0 + $0x290] sm:$0xff] }
 0x372   :  { %19352 = vmatprep.mubr.msk.f32.mxu1 %vm95_vm1, %v25502_v2  ;;  %20208 = vmatprep.mubr.msk.f32.mxu0 %vm95_vm1, %v26251_v13  ;;  %v26287_v2 = vld [vmem:[%s28350_s0 + $0x2a0] sm:$0xff] }
 0x375   :  { %19353 = vmatmul.mubr.msk.f32.gmra.mrb[8].mxu1 %vm95_vm1, %v25519_v14  ;;  %20209 = vmatmul.mubr.msk.f32.gmra.mrb[36].mxu0 %vm95_vm1, %v26264_v50  ;;  %v26300_v14 = vld [vmem:[%s28350_s0 + $0x2a8] sm:$0xff] }
 0x376   :  { %19355 = vmatprep.mubr.msk.f32.mxu1 %vm95_vm1, %v25527_v9  ;;  %20211 = vmatprep.mubr.msk.f32.mxu0 %vm95_vm1, %v26269_v53  ;;  %v26305_v9 = vld [vmem:[%s28350_s0 + $0x2b8] sm:$0xff] }
 0x377   :  { %28497 = vst [vmem:[#allocation13_spill] sm:$0xff] %v26305_v9 }
 0x379   :  { %19356 = vmatmul.mubr.msk.f32.gmra.mrb[10].mxu1 %vm95_vm1, %v25541_v26  ;;  %20212 = vmatmul.mubr.msk.f32.gmra.mrb[38].mxu0 %vm95_vm1, %v26282_v56  ;;  %v26318_v26 = vld [vmem:[%s28350_s0 + $0x2c0] sm:$0xff] }
 0x37a   :  { %19358 = vmatprep.mubr.msk.f32.mxu1 %vm95_vm1, %v25546_v41  ;;  %20214 = vmatprep.mubr.msk.f32.mxu0 %vm95_vm1, %v26287_v2  ;;  %v16979_v41 = vld [vmem:[%s28350_s0 + $0x2d0] sm:$0xff] }
 0x37d   :  { %19359 = vmatmul.mubr.msk.f32.gmra.mrb[12].mxu1 %vm95_vm1, %v25558_v23  ;;  %20215 = vmatmul.mubr.msk.f32.gmra.mrb[40].mxu0 %vm95_vm1, %v26300_v14  ;;  %v28498_v23 = vld [vmem:[#allocation7_spill] sm:$0xff] }
 0x37e   :  { %19361 = vmatprep.mubr.msk.f32.mxu1 %vm95_vm1, %v25563_v46  ;;  %20217 = vmatprep.mubr.msk.f32.mxu0 %vm95_vm1, %v26305_v9  ;;  %v16980_v46 = vld [vmem:[%s28350_s0 + $0x2d8] sm:$0xff]  ;;  %v16981_v9 = vld [vmem:[%s28350_s0 + $0x2e8] sm:$0xff] }
 0x381   :  { %19362 = vmatmul.mubr.msk.f32.gmra.mrb[14].mxu1 %vm95_vm1, %v25576_v61  ;;  %20218 = vmatmul.mubr.msk.f32.gmra.mrb[42].mxu0 %vm95_vm1, %v26318_v26  ;;  %v16982_v61 = vld [vmem:[%s28350_s0 + $0x2f0] sm:$0xff] }
 0x382   :  { %19364 = vmatprep.mubr.msk.f32.mxu1 %vm95_vm1, %v28498_v23  ;;  %20220 = vmatprep.mubr.msk.f32.mxu0 %vm95_vm1, %v16979_v41  ;;  %v17033_v41 = vld [vmem:[%s28350_s0 + $0x61] sm:$0xff]  ;;  %v15883_v23 = vld [vmem:[%s28350_s0 + $0x1b4] sm:$0xff] }
 0x385   :  { %19365 = vmatmul.mubr.msk.f32.gmra.mrb[16].mxu1 %vm95_vm1, %v25599_v21  ;;  %20221 = vmatmul.mubr.msk.f32.gmra.mrb[44].mxu0 %vm95_vm1, %v16980_v46  ;;  %v17034_v21 = vld [vmem:[%s28350_s0 + $0x69] sm:$0xff]  ;;  %v15884_v46 = vld [vmem:[%s28350_s0 + $0x1bc] sm:$0xff] }
 0x386   :  { %19367 = vmatprep.mubr.msk.f32.mxu1 %vm95_vm1, %v25604_v28  ;;  %20223 = vmatprep.mubr.msk.f32.mxu0 %vm95_vm1, %v16981_v9  ;;  %v17035_v28 = vld [vmem:[%s28350_s0 + $0x79] sm:$0xff] }
 0x387   :  { %v26363_v9 = vld [vmem:[%s28351_s1 + $0x5c] sm:$0xf] }
 0x389   :  { %19368 = vmatmul.mubr.msk.f32.gmra.mrb[18].mxu1 %vm95_vm1, %v25619_v35  ;;  %20224 = vmatmul.mubr.msk.f32.gmra.mrb[46].mxu0 %vm95_vm1, %v16982_v61  ;;  %v15881_v35 = vld [vmem:[%s28350_s0 + $0x19c] sm:$0xff]  ;;  %v17040_v61 = vld [vmem:[%s28350_s0 + $0xb1] sm:$0xff] }
 0x38a   :  { %19370 = vmatprep.mubr.msk.f32.mxu1 %vm95_vm1, %v25624_v44  ;;  %20228 = vmatprep.mubr.msk.f32.mxu0 %vm95_vm1, %v17033_v41  ;;  %v17036_v44 = vld [vmem:[%s28350_s0 + $0x81] sm:$0xff] }
 0x38b   :  { %v17041_v41 = vld [vmem:[%s28350_s0 + $0xc1] sm:$0xff] }
 0x38d   :  { %19371 = vmatmul.mubr.msk.f32.gmra.mrb[20].mxu1 %vm95_vm1, %v25637_v55  ;;  %20229 = vmatmul.mubr.msk.f32.vlgmr.msra.gmra.mrb[0].mxu0 %vm95_vm1, %v17034_v21  ;;  %v17037_v55 = vld [vmem:[%s28350_s0 + $0x91] sm:$0xff]  ;;  %v17042_v21 = vld [vmem:[%s28350_s0 + $0xc9] sm:$0xff] }
 0x38e   :  { %20301 = vmatpush3.msk.msra.mxu0 %vm240_vm0, %v25921_v48  ;;  %19373 = vmatprep.mubr.msk.f32.mxu1 %vm95_vm1, %v25642_v59  ;;  %v15882_v59 = vld [vmem:[%s28350_s0 + $0x1a4] sm:$0xff]  ;;  %v17038_v48 = vld [vmem:[%s28350_s0 + $0x99] sm:$0xff] }
 0x38f   :  { %20231 = vmatprep.mubr.msk.f32.mxu0 %vm95_vm1, %v17035_v28  ;;  %20374 = vmatprep.subr.msk.mxu0 %vm240_vm0, %v26363_v9  ;;  %v17043_v28 = vld [vmem:[%s28350_s0 + $0xd9] sm:$0xff] }
 0x391   :  { %19374 = vmatmul.mubr.msk.f32.gmra.mrb[22].mxu1 %vm95_vm1, %v25655_v11  ;;  %20232 = vmatmul.mubr.msk.f32.gmra.mrb[2].mxu0 %vm95_vm1, %v17036_v44  ;;  %v17039_v11 = vld [vmem:[%s28350_s0 + $0xa9] sm:$0xff]  ;;  %v17045_v44 = vld [vmem:[%s28350_s0 + $0xf1] sm:$0xff] }
 0x392   :  { %19376 = vmatprep.mubr.msk.f32.mxu1 %vm95_vm1, %v15881_v35  ;;  %20234 = vmatprep.mubr.msk.f32.mxu0 %vm95_vm1, %v17037_v55  ;;  %v26574_v35 = vld [vmem:[%s28350_s0 + $0x219] sm:$0xff]  ;;  %v26582_v55 = vld [vmem:[%s28350_s0 + $0x229] sm:$0xff] }
 0x395   :  { %19377 = vmatmul.mubr.msk.f32.gmra.mrb[24].mxu1 %vm95_vm1, %v15882_v59  ;;  %20235 = vmatmul.mubr.msk.f32.gmra.mrb[4].mxu0 %vm95_vm1, %v17038_v48  ;;  %v15958_v59 = vld [vmem:[%s28350_s0 + $0x50] sm:$0xff] }
 0x396   :  { %19379 = vmatprep.mubr.msk.f32.mxu1 %vm95_vm1, %v15883_v23  ;;  %20237 = vmatprep.mubr.msk.f32.mxu0 %vm95_vm1, %v17039_v11  ;;  %v26596_v48 = vld [vmem:[%s28350_s0 + $0x231] sm:$0xff]  ;;  %v26601_v23 = vld [vmem:[%s28350_s0 + $0x241] sm:$0xff]  ;;  %v26615_v11 = vld [vmem:[%s28350_s0 + $0x249] sm:$0xff] }
 0x399   :  { %19380 = vmatmul.mubr.msk.f32.gmra.mrb[26].mxu1 %vm95_vm1, %v15884_v46  ;;  %20238 = vmatmul.mubr.msk.f32.gmra.mrb[6].mxu0 %vm95_vm1, %v17040_v61  ;;  %v28499_v46 = vld [vmem:[#allocation8_spill] sm:$0xff]  ;;  %v26633_v61 = vld [vmem:[%s28350_s0 + $0x261] sm:$0xff] }
 0x39a   :  { %19382 = vmatprep.mubr.msk.f32.mxu1 %vm95_vm1, %v25685_v7  ;;  %20240 = vmatprep.mubr.msk.f32.mxu0 %vm95_vm1, %v17041_v41  ;;  %v17044_v7 = vld [vmem:[%s28350_s0 + $0xe1] sm:$0xff]  ;;  %v26638_v41 = vld [vmem:[%s28350_s0 + $0x271] sm:$0xff] }
 0x39d   :  { %19383 = vmatmul.mubr.msk.f32.gmra.mrb[28].mxu1 %vm95_vm1, %v25697_v6  ;;  %20241 = vmatmul.mubr.msk.f32.gmra.mrb[8].mxu0 %vm95_vm1, %v17042_v21  ;;  %v17046_v6 = vld [vmem:[%s28350_s0 + $0xf9] sm:$0xff]  ;;  %v28501_v21 = vld [vmem:[#allocation10_spill] sm:$0xff] }
 0x39e   :  { %19385 = vmatprep.mubr.msk.f32.mxu1 %vm95_vm1, %v25702_v15  ;;  %20243 = vmatprep.mubr.msk.f32.mxu0 %vm95_vm1, %v17043_v28  ;;  %v17047_v15 = vld [vmem:[%s28350_s0 + $0x109] sm:$0xff]  ;;  %v28502_v28 = vld [vmem:[#allocation16_spill] sm:$0xff] }
 0x3a1   :  { %19386 = vmatmul.mubr.msk.f32.gmra.mrb[30].mxu1 %vm95_vm1, %v25715_v4  ;;  %20244 = vmatmul.mubr.msk.f32.gmra.mrb[10].mxu0 %vm95_vm1, %v17044_v7  ;;  %v17048_v4 = vld [vmem:[%s28350_s0 + $0x111] sm:$0xff]  ;;  %v26651_v7 = vld [vmem:[%s28350_s0 + $0x279] sm:$0xff] }
 0x3a2   :  { %19388 = vmatprep.mubr.msk.f32.mxu1 %vm95_vm1, %v25723_v19  ;;  %20246 = vmatprep.mubr.msk.f32.mxu0 %vm95_vm1, %v17045_v44  ;;  %v26461_v19 = vld [vmem:[%s28350_s0 + $0x121] sm:$0xff]  ;;  %v26656_v44 = vld [vmem:[%s28350_s0 + $0x289] sm:$0xff] }
 0x3a5   :  { %19389 = vmatmul.mubr.msk.f32.gmra.mrb[32].mxu1 %vm95_vm1, %v25738_v63  ;;  %20247 = vmatmul.mubr.msk.f32.gmra.mrb[12].mxu0 %vm95_vm1, %v17046_v6  ;;  %v26473_v63 = vld [vmem:[%s28350_s0 + $0x129] sm:$0xff]  ;;  %v28503_v6 = vld [vmem:[#allocation17_spill] sm:$0xff] }
 0x3a6   :  { %19391 = vmatprep.mubr.msk.f32.mxu1 %vm95_vm1, %v25746_v1  ;;  %20249 = vmatprep.mubr.msk.f32.mxu0 %vm95_vm1, %v17047_v15  ;;  %v26478_v1 = vld [vmem:[%s28350_s0 + $0x139] sm:$0xff]  ;;  %v26669_v15 = vld [vmem:[%s28350_s0 + $0x291] sm:$0xff] }
 0x3a9   :  { %19392 = vmatmul.mubr.msk.f32.gmra.mrb[34].mxu1 %vm95_vm1, %v25760_v32  ;;  %20250 = vmatmul.mubr.msk.f32.gmra.mrb[14].mxu0 %vm95_vm1, %v17048_v4  ;;  %v26491_v32 = vld [vmem:[%s28350_s0 + $0x141] sm:$0xff] }
 0x3aa   :  { %19394 = vmatprep.mubr.msk.f32.mxu1 %vm95_vm1, %v25765_v36  ;;  %20252 = vmatprep.mubr.msk.f32.mxu0 %vm95_vm1, %v26461_v19  ;;  %v17053_v36 = vld [vmem:[%s28350_s0 + $0x151] sm:$0xff]  ;;  %v26674_v4 = vld [vmem:[%s28350_s0 + $0x2a1] sm:$0xff] }
 0x3ad   :  { %19395 = vmatmul.mubr.msk.f32.gmra.mrb[36].mxu1 %vm95_vm1, %v25779_v40  ;;  %20253 = vmatmul.mubr.msk.f32.gmra.mrb[16].mxu0 %vm95_vm1, %v26473_v63  ;;  %v17054_v40 = vld [vmem:[%s28350_s0 + $0x159] sm:$0xff] }
 0x3ae   :  { %19397 = vmatprep.mubr.msk.f32.mxu1 %vm95_vm1, %v25784_v17  ;;  %20255 = vmatprep.mubr.msk.f32.mxu0 %vm95_vm1, %v26478_v1  ;;  %v17055_v17 = vld [vmem:[%s28350_s0 + $0x169] sm:$0xff] }
 0x3b1   :  { %19398 = vmatmul.mubr.msk.f32.gmra.mrb[38].mxu1 %vm95_vm1, %v25797_v30  ;;  %20256 = vmatmul.mubr.msk.f32.gmra.mrb[18].mxu0 %vm95_vm1, %v26491_v32  ;;  %v17056_v30 = vld [vmem:[%s28350_s0 + $0x171] sm:$0xff] }
 0x3b2   :  { %19400 = vmatprep.mubr.msk.f32.mxu1 %vm95_vm1, %v25802_v60  ;;  %20258 = vmatprep.mubr.msk.f32.mxu0 %vm95_vm1, %v17053_v36  ;;  %v26521_v60 = vld [vmem:[%s28350_s0 + $0x1e1] sm:$0xff]  ;;  %v26692_v36 = vld [vmem:[%s28350_s0 + $0x2b9] sm:$0xff] }
 0x3b5   :  { %19401 = vmatmul.mubr.msk.f32.gmra.mrb[40].mxu1 %vm95_vm1, %v25815_v8  ;;  %20259 = vmatmul.mubr.msk.f32.gmra.mrb[20].mxu0 %vm95_vm1, %v17054_v40  ;;  %v26533_v8 = vld [vmem:[%s28350_s0 + $0x1e9] sm:$0xff]  ;;  %v26705_v40 = vld [vmem:[%s28350_s0 + $0x2c1] sm:$0xff] }
 0x3b6   :  { %19403 = vmatprep.mubr.msk.f32.mxu1 %vm95_vm1, %v25820_v10  ;;  %20261 = vmatprep.mubr.msk.f32.mxu0 %vm95_vm1, %v17055_v17  ;;  %v26538_v10 = vld [vmem:[%s28350_s0 + $0x1f9] sm:$0xff]  ;;  %v17077_v17 = vld [vmem:[%s28350_s0 + $0x2d1] sm:$0xff] }
 0x3b9   :  { %19404 = vmatmul.mubr.msk.f32.gmra.mrb[42].mxu1 %vm95_vm1, %v25833_v27  ;;  %20262 = vmatmul.mubr.msk.f32.gmra.mrb[22].mxu0 %vm95_vm1, %v17056_v30  ;;  %v26551_v27 = vld [vmem:[%s28350_s0 + $0x201] sm:$0xff]  ;;  %v28506_v30 = vld [vmem:[#allocation12_spill] sm:$0xff] }
 0x3ba   :  { %19406 = vmatprep.mubr.msk.f32.mxu1 %vm95_vm1, %v25838_v38  ;;  %20264 = vmatprep.mubr.msk.f32.mxu0 %vm95_vm1, %v26521_v60  ;;  %v15955_v38 = vld [vmem:[%s28350_s0 + $0x30] sm:$0xff] }
 0x3bd   :  { %19407 = vmatmul.mubr.msk.f32.gmra.mrb[44].mxu1 %vm95_vm1, %v25851_v42  ;;  %20265 = vmatmul.mubr.msk.f32.gmra.mrb[24].mxu0 %vm95_vm1, %v26533_v8  ;;  %v26559_v42 = vld [vmem:[%s28350_s0 + $0x211] sm:$0xff] }
 0x3be   :  { %19409 = vmatprep.mubr.msk.f32.mxu1 %vm95_vm1, %v25856_v43  ;;  %20267 = vmatprep.mubr.msk.f32.mxu0 %vm95_vm1, %v26538_v10  ;;  %v15956_v43 = vld [vmem:[%s28350_s0 + $0x38] sm:$0xff] }
 0x3c1   :  { %19410 = vmatmul.mubr.msk.f32.gmra.mrb[46].mxu1 %vm95_vm1, %v25869_v49  ;;  %20268 = vmatmul.mubr.msk.f32.gmra.mrb[26].mxu0 %vm95_vm1, %v26551_v27  ;;  %v15957_v49 = vld [vmem:[%s28350_s0 + $0x48] sm:$0xff] }
 0x3c2   :  { %19414 = vmatprep.mubr.msk.f32.mxu1 %vm95_vm1, %v15955_v38  ;;  %20270 = vmatprep.mubr.msk.f32.mxu0 %vm95_vm1, %v26559_v42  ;;  %v17078_v38 = vld [vmem:[%s28350_s0 + $0x2d9] sm:$0xff] }
 0x3c5   :  { %19415 = vmatmul.mubr.msk.f32.vlgmr.msra.gmra.mrb[0].mxu1 %vm95_vm1, %v15956_v43  ;;  %20271 = vmatmul.mubr.msk.f32.gmra.mrb[28].mxu0 %vm95_vm1, %v26574_v35  ;;  %v17079_v43 = vld [vmem:[%s28350_s0 + $0x2e9] sm:$0xff] }
 0x3c6   :  { %19417 = vmatprep.mubr.msk.f32.mxu1 %vm95_vm1, %v15957_v49  ;;  %20273 = vmatprep.mubr.msk.f32.mxu0 %vm95_vm1, %v26582_v55  ;;  %v17131_v49 = vld [vmem:[%s28350_s0 + $0x62] sm:$0xff] }
 0x3c7   :  { %20704 = vmatpush3.msk.msra.mxu1 %vm240_vm0, %v26214_v20  ;;  %v26620_v20 = vld [vmem:[%s28350_s0 + $0x259] sm:$0xff] }
 0x3c9   :  { %19418 = vmatmul.mubr.msk.f32.gmra.mrb[2].mxu1 %vm95_vm1, %v15958_v59  ;;  %20274 = vmatmul.mubr.msk.f32.gmra.mrb[30].mxu0 %vm95_vm1, %v26596_v48  ;;  %v26750_v59 = vld [vmem:[%s28351_s1 + $0x60] sm:$0xf] }
 0x3ca   :  { %19420 = vmatprep.mubr.msk.f32.mxu1 %vm95_vm1, %v25899_v45  ;;  %20276 = vmatprep.mubr.msk.f32.mxu0 %vm95_vm1, %v26601_v23  ;;  %v28500_v45 = vld [vmem:[#allocation9_spill] sm:$0xff] }
 0x3cd   :  { %19421 = vmatmul.mubr.msk.f32.gmra.mrb[4].mxu1 %vm95_vm1, %v28499_v46  ;;  %20277 = vmatmul.mubr.msk.f32.gmra.mrb[32].mxu0 %vm95_vm1, %v26615_v11  ;;  %v15981_v46 = vld [vmem:[%s28350_s0 + $0x1c8] sm:$0xff] }
 0x3ce   :  { %19423 = vmatprep.mubr.msk.f32.mxu1 %vm95_vm1, %v28500_v45  ;;  %20279 = vmatprep.mubr.msk.f32.mxu0 %vm95_vm1, %v26620_v20  ;;  %v15982_v45 = vld [vmem:[%s28350_s0 + $0x1d0] sm:$0xff] }
 0x3d1   :  { %19424 = vmatmul.mubr.msk.f32.gmra.mrb[6].mxu1 %vm95_vm1, %v28501_v21  ;;  %20280 = vmatmul.mubr.msk.f32.gmra.mrb[34].mxu0 %vm95_vm1, %v26633_v61  ;;  %v17138_v21 = vld [vmem:[%s28350_s0 + $0xb2] sm:$0xff] }
 0x3d2   :  { %19426 = vmatprep.mubr.msk.f32.mxu1 %vm95_vm1, %v28502_v28  ;;  %20282 = vmatprep.mubr.msk.f32.mxu0 %vm95_vm1, %v26638_v41  ;;  %v17139_v28 = vld [vmem:[%s28350_s0 + $0xc2] sm:$0xff] }
 0x3d5   :  { %19427 = vmatmul.mubr.msk.f32.gmra.mrb[8].mxu1 %vm95_vm1, %v25961_v3  ;;  %20283 = vmatmul.mubr.msk.f32.gmra.mrb[36].mxu0 %vm95_vm1, %v26651_v7  ;;  %v26687_v3 = vld [vmem:[%s28350_s0 + $0x2a9] sm:$0xff] }
 0x3d6   :  { %19429 = vmatprep.mubr.msk.f32.mxu1 %vm95_vm1, %v28503_v6  ;;  %20285 = vmatprep.mubr.msk.f32.mxu0 %vm95_vm1, %v26656_v44  ;;  %v17140_v6 = vld [vmem:[%s28350_s0 + $0xca] sm:$0xff] }
 0x3d9   :  { %19430 = vmatmul.mubr.msk.f32.gmra.mrb[10].mxu1 %vm95_vm1, %v25983_v33  ;;  %20286 = vmatmul.mubr.msk.f32.gmra.mrb[38].mxu0 %vm95_vm1, %v26669_v15  ;;  %v28504_v33 = vld [vmem:[#allocation18_spill] sm:$0xff] }
 0x3da   :  { %19432 = vmatprep.mubr.msk.f32.mxu1 %vm95_vm1, %v25988_v47  ;;  %20288 = vmatprep.mubr.msk.f32.mxu0 %vm95_vm1, %v26674_v4  ;;  %v28505_v47 = vld [vmem:[#allocation11_spill] sm:$0xff] }
 0x3dd   :  { %19433 = vmatmul.mubr.msk.f32.gmra.mrb[12].mxu1 %vm95_vm1, %v28504_v33  ;;  %20289 = vmatmul.mubr.msk.f32.gmra.mrb[40].mxu0 %vm95_vm1, %v26687_v3  ;;  %v17141_v33 = vld [vmem:[%s28350_s0 + $0xda] sm:$0xff] }
 0x3de   :  { %19435 = vmatprep.mubr.msk.f32.mxu1 %vm95_vm1, %v28505_v47  ;;  %20291 = vmatprep.mubr.msk.f32.mxu0 %vm95_vm1, %v26692_v36  ;;  %v17143_v47 = vld [vmem:[%s28350_s0 + $0xf2] sm:$0xff] }
 0x3e1   :  { %19436 = vmatmul.mubr.msk.f32.gmra.mrb[14].mxu1 %vm95_vm1, %v26018_v29  ;;  %20292 = vmatmul.mubr.msk.f32.gmra.mrb[42].mxu0 %vm95_vm1, %v26705_v40  ;;  %v17080_v29 = vld [vmem:[%s28350_s0 + $0x2f1] sm:$0xff] }
 0x3e2   :  { %19438 = vmatprep.mubr.msk.f32.mxu1 %vm95_vm1, %v28506_v30  ;;  %20294 = vmatprep.mubr.msk.f32.mxu0 %vm95_vm1, %v17077_v17  ;;  %v17147_v17 = vld [vmem:[%s28350_s0 + $0x122] sm:$0xff]  ;;  %v17149_v30 = vld [vmem:[%s28350_s0 + $0x13a] sm:$0xff] }
 0x3e5   :  { %19439 = vmatmul.mubr.msk.f32.gmra.mrb[16].mxu1 %vm95_vm1, %v26041_v57  ;;  %20295 = vmatmul.mubr.msk.f32.gmra.mrb[44].mxu0 %vm95_vm1, %v17078_v38  ;;  %v17132_v57 = vld [vmem:[%s28350_s0 + $0x6a] sm:$0xff]  ;;  %v17159_v38 = vld [vmem:[%s28350_s0 + $0x212] sm:$0xff] }
 0x3e6   :  { %19441 = vmatprep.mubr.msk.f32.mxu1 %vm95_vm1, %v26046_v16  ;;  %20297 = vmatprep.mubr.msk.f32.mxu0 %vm95_vm1, %v17079_v43  ;;  %v17133_v16 = vld [vmem:[%s28350_s0 + $0x7a] sm:$0xff]  ;;  %v17161_v43 = vld [vmem:[%s28350_s0 + $0x22a] sm:$0xff] }
 0x3e9   :  { %19442 = vmatmul.mubr.msk.f32.gmra.mrb[18].mxu1 %vm95_vm1, %v26061_v18  ;;  %20298 = vmatmul.mubr.msk.f32.gmra.mrb[46].mxu0 %vm95_vm1, %v17080_v29  ;;  %v15979_v18 = vld [vmem:[%s28350_s0 + $0x1b0] sm:$0xff]  ;;  %v17163_v29 = vld [vmem:[%s28350_s0 + $0x242] sm:$0xff] }
 0x3ea   :  { %19444 = vmatprep.mubr.msk.f32.mxu1 %vm95_vm1, %v26066_v37  ;;  %20302 = vmatprep.mubr.msk.f32.mxu0 %vm95_vm1, %v17131_v49  ;;  %v17134_v37 = vld [vmem:[%s28350_s0 + $0x82] sm:$0xff] }
 0x3eb   :  { %v16079_v49 = vld [vmem:[%s28350_s0 + $0x1c9] sm:$0xff] }
 0x3ed   :  { %19445 = vmatmul.mubr.msk.f32.gmra.mrb[20].mxu1 %vm95_vm1, %v26079_v39  ;;  %20303 = vmatmul.mubr.msk.f32.vlgmr.msra.gmra.mrb[0].mxu0 %vm95_vm1, %v17132_v57  ;;  %v17135_v39 = vld [vmem:[%s28350_s0 + $0x92] sm:$0xff] }
 0x3ee   :  { %20375 = vmatpush3.msk.msra.mxu0 %vm240_vm0, %v26363_v9  ;;  %19447 = vmatprep.mubr.msk.f32.mxu1 %vm95_vm1, %v26084_v51  ;;  %v15980_v51 = vld [vmem:[%s28350_s0 + $0x1b8] sm:$0xff] }
 0x3ef   :  { %20305 = vmatprep.mubr.msk.f32.mxu0 %vm95_vm1, %v17133_v16  ;;  %20448 = vmatprep.subr.msk.mxu0 %vm240_vm0, %v26750_v59  ;;  %v17136_v9 = vld [vmem:[%s28350_s0 + $0x9a] sm:$0xff]  ;;  %v16080_v57 = vld [vmem:[%s28350_s0 + $0x1d1] sm:$0xff]  ;;  %v17166_v16 = vld [vmem:[%s28350_s0 + $0x262] sm:$0xff] }
 0x3f1   :  { %19448 = vmatmul.mubr.msk.f32.gmra.mrb[22].mxu1 %vm95_vm1, %v26097_v58  ;;  %20306 = vmatmul.mubr.msk.f32.gmra.mrb[2].mxu0 %vm95_vm1, %v17134_v37  ;;  %v17137_v58 = vld [vmem:[%s28350_s0 + $0xaa] sm:$0xff]  ;;  %v17167_v37 = vld [vmem:[%s28350_s0 + $0x272] sm:$0xff] }
 0x3f2   :  { %19450 = vmatprep.mubr.msk.f32.mxu1 %vm95_vm1, %v15979_v18  ;;  %20308 = vmatprep.mubr.msk.f32.mxu0 %vm95_vm1, %v17135_v39  ;;  %v17168_v18 = vld [vmem:[%s28350_s0 + $0x27a] sm:$0xff]  ;;  %v17169_v39 = vld [vmem:[%s28350_s0 + $0x28a] sm:$0xff] }
 0x3f5   :  { %19451 = vmatmul.mubr.msk.f32.gmra.mrb[24].mxu1 %vm95_vm1, %v15980_v51  ;;  %20309 = vmatmul.mubr.msk.f32.gmra.mrb[4].mxu0 %vm95_vm1, %v17136_v9  ;;  %v17171_v51 = vld [vmem:[%s28350_s0 + $0x2a2] sm:$0xff] }
 0x3f6   :  { %19453 = vmatprep.mubr.msk.f32.mxu1 %vm95_vm1, %v15981_v46  ;;  %20311 = vmatprep.mubr.msk.f32.mxu0 %vm95_vm1, %v17137_v58  ;;  %v17242_v9 = vld [vmem:[%s28350_s0 + $0xfb] sm:$0xff]  ;;  %v17243_v46 = vld [vmem:[%s28350_s0 + $0x10b] sm:$0xff]  ;;  %v17244_v58 = vld [vmem:[%s28350_s0 + $0x113] sm:$0xff] }
 0x3f9   :  { %19454 = vmatmul.mubr.msk.f32.gmra.mrb[26].mxu1 %vm95_vm1, %v15982_v45  ;;  %20312 = vmatmul.mubr.msk.f32.gmra.mrb[6].mxu0 %vm95_vm1, %v17138_v21  ;;  %v17245_v45 = vld [vmem:[%s28350_s0 + $0x123] sm:$0xff]  ;;  %v17246_v21 = vld [vmem:[%s28350_s0 + $0x12b] sm:$0xff] }
 0x3fa   :  { %19456 = vmatprep.mubr.msk.f32.mxu1 %vm95_vm1, %v26127_v54  ;;  %20314 = vmatprep.mubr.msk.f32.mxu0 %vm95_vm1, %v17139_v28  ;;  %v17142_v54 = vld [vmem:[%s28350_s0 + $0xe2] sm:$0xff] }
 0x3fb   :  { %v17247_v28 = vld [vmem:[%s28350_s0 + $0x13b] sm:$0xff] }
 0x3fd   :  { %19457 = vmatmul.mubr.msk.f32.gmra.mrb[28].mxu1 %vm95_vm1, %v26139_v24  ;;  %20315 = vmatmul.mubr.msk.f32.gmra.mrb[8].mxu0 %vm95_vm1, %v17140_v6  ;;  %v17144_v24 = vld [vmem:[%s28350_s0 + $0xfa] sm:$0xff]  ;;  %v17248_v6 = vld [vmem:[%s28350_s0 + $0x143] sm:$0xff] }
 0x3fe   :  { %19459 = vmatprep.mubr.msk.f32.mxu1 %vm95_vm1, %v26144_v34  ;;  %20317 = vmatprep.mubr.msk.f32.mxu0 %vm95_vm1, %v17141_v33  ;;  %v17145_v34 = vld [vmem:[%s28350_s0 + $0x10a] sm:$0xff]  ;;  %v17249_v33 = vld [vmem:[%s28350_s0 + $0x153] sm:$0xff] }
 0x401   :  { %19460 = vmatmul.mubr.msk.f32.gmra.mrb[30].mxu1 %vm95_vm1, %v26157_v5  ;;  %20318 = vmatmul.mubr.msk.f32.gmra.mrb[10].mxu0 %vm95_vm1, %v17142_v54  ;;  %v28507_v5 = vld [vmem:[#allocation19_spill] sm:$0xff]  ;;  %v17250_v54 = vld [vmem:[%s28350_s0 + $0x15b] sm:$0xff] }
 0x402   :  { %19462 = vmatprep.mubr.msk.f32.mxu1 %vm95_vm1, %v26165_v22  ;;  %20320 = vmatprep.mubr.msk.f32.mxu0 %vm95_vm1, %v17143_v47  ;;  %v17146_v22 = vld [vmem:[%s28350_s0 + $0x112] sm:$0xff] }
 0x403   :  { %v17251_v47 = vld [vmem:[%s28350_s0 + $0x16b] sm:$0xff] }
 0x405   :  { %19463 = vmatmul.mubr.msk.f32.gmra.mrb[32].mxu1 %vm95_vm1, %v26180_v31  ;;  %20321 = vmatmul.mubr.msk.f32.gmra.mrb[12].mxu0 %vm95_vm1, %v17144_v24  ;;  %v17148_v31 = vld [vmem:[%s28350_s0 + $0x12a] sm:$0xff]  ;;  %v17252_v24 = vld [vmem:[%s28350_s0 + $0x173] sm:$0xff] }
 0x406   :  { %19465 = vmatprep.mubr.msk.f32.mxu1 %vm95_vm1, %v28507_v5  ;;  %20323 = vmatprep.mubr.msk.f32.mxu0 %vm95_vm1, %v17145_v34  ;;  %v17253_v34 = vld [vmem:[%s28350_s0 + $0x1e3] sm:$0xff]  ;;  %v17254_v5 = vld [vmem:[%s28350_s0 + $0x1eb] sm:$0xff] }
 0x409   :  { %19466 = vmatmul.mubr.msk.f32.gmra.mrb[34].mxu1 %vm95_vm1, %v26202_v12  ;;  %20324 = vmatmul.mubr.msk.f32.gmra.mrb[14].mxu0 %vm95_vm1, %v17146_v22  ;;  %v17150_v12 = vld [vmem:[%s28350_s0 + $0x142] sm:$0xff] }
 0x40a   :  { %19468 = vmatprep.mubr.msk.f32.mxu1 %vm95_vm1, %v26207_v0  ;;  %20326 = vmatprep.mubr.msk.f32.mxu0 %vm95_vm1, %v17147_v17  ;;  %v17151_v0 = vld [vmem:[%s28350_s0 + $0x152] sm:$0xff]  ;;  %v17255_v22 = vld [vmem:[%s28350_s0 + $0x1fb] sm:$0xff]  ;;  %v17256_v17 = vld [vmem:[%s28350_s0 + $0x203] sm:$0xff] }
 0x40d   :  { %19469 = vmatmul.mubr.msk.f32.gmra.mrb[36].mxu1 %vm95_vm1, %v26228_v52  ;;  %20327 = vmatmul.mubr.msk.f32.gmra.mrb[16].mxu0 %vm95_vm1, %v17148_v31  ;;  %v17153_v52 = vld [vmem:[%s28350_s0 + $0x16a] sm:$0xff]  ;;  %v17257_v31 = vld [vmem:[%s28350_s0 + $0x213] sm:$0xff] }
 0x40e   :  { %19471 = vmatprep.mubr.msk.f32.mxu1 %vm95_vm1, %v26233_v25  ;;  %20329 = vmatprep.mubr.msk.f32.mxu0 %vm95_vm1, %v17149_v30  ;;  %v17152_v25 = vld [vmem:[%s28350_s0 + $0x15a] sm:$0xff] }
 0x40f   :  { %v17258_v30 = vld [vmem:[%s28350_s0 + $0x21b] sm:$0xff] }
 0x411   :  { %19472 = vmatmul.mubr.msk.f32.gmra.mrb[38].mxu1 %vm95_vm1, %v26246_v62  ;;  %20330 = vmatmul.mubr.msk.f32.gmra.mrb[18].mxu0 %vm95_vm1, %v17150_v12  ;;  %v17154_v62 = vld [vmem:[%s28350_s0 + $0x172] sm:$0xff] }
 0x412   :  { %19474 = vmatprep.mubr.msk.f32.mxu1 %vm95_vm1, %v26251_v13  ;;  %20332 = vmatprep.mubr.msk.f32.mxu0 %vm95_vm1, %v17151_v0  ;;  %v17155_v13 = vld [vmem:[%s28350_s0 + $0x1e2] sm:$0xff]  ;;  %v17259_v12 = vld [vmem:[%s28350_s0 + $0x22b] sm:$0xff]  ;;  %v17260_v0 = vld [vmem:[%s28350_s0 + $0x233] sm:$0xff] }
 0x415   :  { %19475 = vmatmul.mubr.msk.f32.gmra.mrb[40].mxu1 %vm95_vm1, %v26264_v50  ;;  %20333 = vmatmul.mubr.msk.f32.gmra.mrb[20].mxu0 %vm95_vm1, %v17152_v25  ;;  %v17156_v50 = vld [vmem:[%s28350_s0 + $0x1ea] sm:$0xff] }
 0x416   :  { %19477 = vmatprep.mubr.msk.f32.mxu1 %vm95_vm1, %v26269_v53  ;;  %20335 = vmatprep.mubr.msk.f32.mxu0 %vm95_vm1, %v17153_v52  ;;  %v17157_v53 = vld [vmem:[%s28350_s0 + $0x1fa] sm:$0xff]  ;;  %v17261_v25 = vld [vmem:[%s28350_s0 + $0x243] sm:$0xff]  ;;  %v17262_v52 = vld [vmem:[%s28350_s0 + $0x24b] sm:$0xff] }
 0x419   :  { %19478 = vmatmul.mubr.msk.f32.gmra.mrb[42].mxu1 %vm95_vm1, %v26282_v56  ;;  %20336 = vmatmul.mubr.msk.f32.gmra.mrb[22].mxu0 %vm95_vm1, %v17154_v62  ;;  %v28508_v56 = vld [vmem:[#allocation13_spill] sm:$0xff] }
 0x41a   :  { %19480 = vmatprep.mubr.msk.f32.mxu1 %vm95_vm1, %v26287_v2  ;;  %20338 = vmatprep.mubr.msk.f32.mxu0 %vm95_vm1, %v17155_v13  ;;  %v17158_v2 = vld [vmem:[%s28350_s0 + $0x202] sm:$0xff] }
 0x41b   :  { %v17263_v62 = vld [vmem:[%s28350_s0 + $0x25b] sm:$0xff]  ;;  %v17264_v13 = vld [vmem:[%s28350_s0 + $0x263] sm:$0xff] }
 0x41d   :  { %19481 = vmatmul.mubr.msk.f32.gmra.mrb[44].mxu1 %vm95_vm1, %v26300_v14  ;;  %20339 = vmatmul.mubr.msk.f32.gmra.mrb[24].mxu0 %vm95_vm1, %v17156_v50  ;;  %v17160_v14 = vld [vmem:[%s28350_s0 + $0x21a] sm:$0xff] }
 0x41e   :  { %19483 = vmatprep.mubr.msk.f32.mxu1 %vm95_vm1, %v28508_v56  ;;  %20341 = vmatprep.mubr.msk.f32.mxu0 %vm95_vm1, %v17157_v53  ;;  %v17265_v50 = vld [vmem:[%s28350_s0 + $0x273] sm:$0xff]  ;;  %v17266_v53 = vld [vmem:[%s28350_s0 + $0x27b] sm:$0xff]  ;;  %v17267_v56 = vld [vmem:[%s28350_s0 + $0x28b] sm:$0xff] }
 0x421   :  { %19484 = vmatmul.mubr.msk.f32.gmra.mrb[46].mxu1 %vm95_vm1, %v26318_v26  ;;  %20342 = vmatmul.mubr.msk.f32.gmra.mrb[26].mxu0 %vm95_vm1, %v17158_v2  ;;  %v17162_v26 = vld [vmem:[%s28350_s0 + $0x232] sm:$0xff] }
 0x422   :  { %19518 = vmatprep.mubr.msk.f32.mxu1 %vm95_vm1, %v26461_v19  ;;  %20344 = vmatprep.mubr.msk.f32.mxu0 %vm95_vm1, %v17159_v38  ;;  %v16077_v19 = vld [vmem:[%s28350_s0 + $0x1b1] sm:$0xff]  ;;  %v17269_v38 = vld [vmem:[%s28350_s0 + $0x2a3] sm:$0xff] }
 0x423   :  { %v17268_v2 = vld [vmem:[%s28350_s0 + $0x293] sm:$0xff] }
 0x425   :  { %19519 = vmatmul.mubr.msk.f32.vlgmr.msra.gmra.mrb[20].mxu1 %vm95_vm1, %v26473_v63  ;;  %20345 = vmatmul.mubr.msk.f32.gmra.mrb[28].mxu0 %vm95_vm1, %v17160_v14  ;;  %v16078_v63 = vld [vmem:[%s28350_s0 + $0x1b9] sm:$0xff] }
 0x426   :  { %19521 = vmatprep.mubr.msk.f32.mxu1 %vm95_vm1, %v26478_v1  ;;  %20347 = vmatprep.mubr.msk.f32.mxu0 %vm95_vm1, %v17161_v43  ;;  %v17164_v1 = vld [vmem:[%s28350_s0 + $0x24a] sm:$0xff] }
 0x429   :  { %19522 = vmatmul.mubr.msk.f32.gmra.mrb[22].mxu1 %vm95_vm1, %v26491_v32  ;;  %20348 = vmatmul.mubr.msk.f32.gmra.mrb[30].mxu0 %vm95_vm1, %v17162_v26  ;;  %v17165_v32 = vld [vmem:[%s28350_s0 + $0x25a] sm:$0xff]  ;;  %v17270_v26 = vld [vmem:[%s28350_s0 + $0x2ab] sm:$0xff] }
 0x42a   :  { %19524 = vmatprep.mubr.msk.f32.mxu1 %vm95_vm1, %v16077_v19  ;;  %20350 = vmatprep.mubr.msk.f32.mxu0 %vm95_vm1, %v17163_v29  ;;  %v17271_v19 = vld [vmem:[%s28350_s0 + $0x2bb] sm:$0xff] }
 0x42d   :  { %19525 = vmatmul.mubr.msk.f32.gmra.mrb[24].mxu1 %vm95_vm1, %v16078_v63  ;;  %20351 = vmatmul.mubr.msk.f32.gmra.mrb[32].mxu0 %vm95_vm1, %v17164_v1  ;;  %v17272_v1 = vld [vmem:[%s28350_s0 + $0x2c3] sm:$0xff] }
 0x42e   :  { %19527 = vmatprep.mubr.msk.f32.mxu1 %vm95_vm1, %v16079_v49  ;;  %20353 = vmatprep.mubr.msk.f32.mxu0 %vm95_vm1, %v17165_v32  ;;  %v17273_v49 = vld [vmem:[%s28350_s0 + $0x2d3] sm:$0xff] }
 0x431   :  { %19528 = vmatmul.mubr.msk.f32.gmra.mrb[26].mxu1 %vm95_vm1, %v16080_v57  ;;  %20354 = vmatmul.mubr.msk.f32.gmra.mrb[34].mxu0 %vm95_vm1, %v17166_v16  ;;  %v17274_v16 = vld [vmem:[%s28350_s0 + $0x2db] sm:$0xff] }
 0x432   :  { %19530 = vmatprep.mubr.msk.f32.mxu1 %vm95_vm1, %v26521_v60  ;;  %20356 = vmatprep.mubr.msk.f32.mxu0 %vm95_vm1, %v17167_v37  ;;  %v17170_v60 = vld [vmem:[%s28350_s0 + $0x292] sm:$0xff] }
 0x433   :  { %v17275_v37 = vld [vmem:[%s28350_s0 + $0x2eb] sm:$0xff] }
 0x435   :  { %19531 = vmatmul.mubr.msk.f32.gmra.mrb[28].mxu1 %vm95_vm1, %v26533_v8  ;;  %20357 = vmatmul.mubr.msk.f32.gmra.mrb[36].mxu0 %vm95_vm1, %v17168_v18  ;;  %v17172_v8 = vld [vmem:[%s28350_s0 + $0x2aa] sm:$0xff] }
 0x436   :  { %19533 = vmatprep.mubr.msk.f32.mxu1 %vm95_vm1, %v26538_v10  ;;  %20359 = vmatprep.mubr.msk.f32.mxu0 %vm95_vm1, %v17169_v39  ;;  %v17173_v10 = vld [vmem:[%s28350_s0 + $0x2ba] sm:$0xff] }
 0x439   :  { %19534 = vmatmul.mubr.msk.f32.gmra.mrb[30].mxu1 %vm95_vm1, %v26551_v27  ;;  %20360 = vmatmul.mubr.msk.f32.gmra.mrb[38].mxu0 %vm95_vm1, %v17170_v60  ;;  %v17174_v27 = vld [vmem:[%s28350_s0 + $0x2c2] sm:$0xff]  ;;  %v17276_v60 = vld [vmem:[%s28350_s0 + $0x2f3] sm:$0xff] }
 0x43a   :  { %19536 = vmatprep.mubr.msk.f32.mxu1 %vm95_vm1, %v26559_v42  ;;  %20362 = vmatprep.mubr.msk.f32.mxu0 %vm95_vm1, %v17171_v51  ;;  %v17175_v42 = vld [vmem:[%s28350_s0 + $0x2d2] sm:$0xff]  ;;  %v17327_v51 = vld [vmem:[%s28350_s0 + $0x64] sm:$0xff] }
 0x43d   :  { %19537 = vmatmul.mubr.msk.f32.gmra.mrb[32].mxu1 %vm95_vm1, %v26574_v35  ;;  %20363 = vmatmul.mubr.msk.f32.gmra.mrb[40].mxu0 %vm95_vm1, %v17172_v8  ;;  %v17176_v35 = vld [vmem:[%s28350_s0 + $0x2da] sm:$0xff] }
 0x43e   :  { %19539 = vmatprep.mubr.msk.f32.mxu1 %vm95_vm1, %v26582_v55  ;;  %20365 = vmatprep.mubr.msk.f32.mxu0 %vm95_vm1, %v17173_v10  ;;  %v17177_v55 = vld [vmem:[%s28350_s0 + $0x2ea] sm:$0xff] }
 0x441   :  { %19540 = vmatmul.mubr.msk.f32.gmra.mrb[34].mxu1 %vm95_vm1, %v26596_v48  ;;  %20366 = vmatmul.mubr.msk.f32.gmra.mrb[42].mxu0 %vm95_vm1, %v17174_v27  ;;  %v17178_v48 = vld [vmem:[%s28350_s0 + $0x2f2] sm:$0xff] }
 0x442   :  { %19542 = vmatprep.mubr.msk.f32.mxu1 %vm95_vm1, %v26601_v23  ;;  %20368 = vmatprep.mubr.msk.f32.mxu0 %vm95_vm1, %v17175_v42  ;;  %v17229_v23 = vld [vmem:[%s28350_s0 + $0x63] sm:$0xff]  ;;  %v17328_v27 = vld [vmem:[%s28350_s0 + $0x6c] sm:$0xff] }
 0x443   :  { %v17329_v42 = vld [vmem:[%s28350_s0 + $0x7c] sm:$0xff] }
 0x445   :  { %19543 = vmatmul.mubr.msk.f32.gmra.mrb[36].mxu1 %vm95_vm1, %v26615_v11  ;;  %20369 = vmatmul.mubr.msk.f32.gmra.mrb[44].mxu0 %vm95_vm1, %v17176_v35  ;;  %v17230_v11 = vld [vmem:[%s28350_s0 + $0x6b] sm:$0xff] }
 0x446   :  { %19545 = vmatprep.mubr.msk.f32.mxu1 %vm95_vm1, %v26620_v20  ;;  %20371 = vmatprep.mubr.msk.f32.mxu0 %vm95_vm1, %v17177_v55  ;;  %v17231_v20 = vld [vmem:[%s28350_s0 + $0x7b] sm:$0xff] }
 0x449   :  { %19546 = vmatmul.mubr.msk.f32.gmra.mrb[38].mxu1 %vm95_vm1, %v26633_v61  ;;  %20372 = vmatmul.mubr.msk.f32.gmra.mrb[46].mxu0 %vm95_vm1, %v17178_v48  ;;  %v17232_v61 = vld [vmem:[%s28350_s0 + $0x83] sm:$0xff] }
 0x44a   :  { %19548 = vmatprep.mubr.msk.f32.mxu1 %vm95_vm1, %v26638_v41  ;;  %20376 = vmatprep.mubr.msk.f32.mxu0 %vm95_vm1, %v17229_v23  ;;  %v17233_v41 = vld [vmem:[%s28350_s0 + $0x93] sm:$0xff]  ;;  %v17330_v48 = vld [vmem:[%s28350_s0 + $0x84] sm:$0xff] }
 0x44b   :  { %v17331_v23 = vld [vmem:[%s28350_s0 + $0x94] sm:$0xff] }
 0x44d   :  { %19549 = vmatmul.mubr.msk.f32.gmra.mrb[40].mxu1 %vm95_vm1, %v26651_v7  ;;  %20377 = vmatmul.mubr.msk.f32.vlgmr.msra.gmra.mrb[0].mxu0 %vm95_vm1, %v17230_v11  ;;  %v17234_v7 = vld [vmem:[%s28350_s0 + $0x9b] sm:$0xff] }
 0x44e   :  { %20449 = vmatpush3.msk.msra.mxu0 %vm240_vm0, %v26750_v59  ;;  %19551 = vmatprep.mubr.msk.f32.mxu1 %vm95_vm1, %v26656_v44  ;;  %v17235_v44 = vld [vmem:[%s28350_s0 + $0xab] sm:$0xff]  ;;  %v17241_v59 = vld [vmem:[%s28350_s0 + $0xf3] sm:$0xff]  ;;  %vm14219_vm0 = vcmask 785408  }
 0x44f   :  { %20379 = vmatprep.mubr.msk.f32.mxu0 %vm95_vm1, %v17231_v20 }
 0x451   :  { %19552 = vmatmul.mubr.msk.f32.gmra.mrb[42].mxu1 %vm95_vm1, %v26669_v15  ;;  %20380 = vmatmul.mubr.msk.f32.gmra.mrb[2].mxu0 %vm95_vm1, %v17232_v61  ;;  %v17236_v15 = vld [vmem:[%s28350_s0 + $0xb3] sm:$0xff]  ;;  %v17332_v61 = vld [vmem:[%s28350_s0 + $0x9c] sm:$0xff] }
 0x452   :  { %19554 = vmatprep.mubr.msk.f32.mxu1 %vm95_vm1, %v26674_v4  ;;  %20382 = vmatprep.mubr.msk.f32.mxu0 %vm95_vm1, %v17233_v41  ;;  %v17237_v4 = vld [vmem:[%s28350_s0 + $0xc3] sm:$0xff]  ;;  %v17333_v41 = vld [vmem:[%s28350_s0 + $0xac] sm:$0xff] }
 0x455   :  { %19555 = vmatmul.mubr.msk.f32.gmra.mrb[44].mxu1 %vm95_vm1, %v26687_v3  ;;  %20383 = vmatmul.mubr.msk.f32.gmra.mrb[4].mxu0 %vm95_vm1, %v17234_v7  ;;  %v17238_v3 = vld [vmem:[%s28350_s0 + $0xcb] sm:$0xff] }
 0x456   :  { %19557 = vmatprep.mubr.msk.f32.mxu1 %vm95_vm1, %v26692_v36  ;;  %20385 = vmatprep.mubr.msk.f32.mxu0 %vm95_vm1, %v17235_v44  ;;  %v17239_v36 = vld [vmem:[%s28350_s0 + $0xdb] sm:$0xff] }
 0x459   :  { %19558 = vmatmul.mubr.msk.f32.gmra.mrb[46].mxu1 %vm95_vm1, %v26705_v40  ;;  %20386 = vmatmul.mubr.msk.f32.gmra.mrb[6].mxu0 %vm95_vm1, %v17236_v15  ;;  %v17240_v40 = vld [vmem:[%s28350_s0 + $0xe3] sm:$0xff]  ;;  %v17334_v15 = vld [vmem:[%s28350_s0 + $0xb4] sm:$0xff] }
 0x45a   :  { %20388 = vmatprep.mubr.msk.f32.mxu0 %vm95_vm1, %v17237_v4  ;;  %v17335_v4 = vld [vmem:[%s28350_s0 + $0xc4] sm:$0xff] }
 0x45d   :  { %20389 = vmatmul.mubr.msk.f32.gmra.mrb[8].mxu0 %vm95_vm1, %v17238_v3 }
 0x45e   :  { %20391 = vmatprep.mubr.msk.f32.mxu0 %vm95_vm1, %v17239_v36 }
 0x461   :  { %20392 = vmatmul.mubr.msk.f32.gmra.mrb[10].mxu0 %vm95_vm1, %v17240_v40  ;;  %v17336_v40 = vld [vmem:[%s28350_s0 + $0xcc] sm:$0xff] }
 0x462   :  { %20394 = vmatprep.mubr.msk.f32.mxu0 %vm95_vm1, %v17241_v59  ;;  %v17337_v59 = vld [vmem:[%s28350_s0 + $0xdc] sm:$0xff] }
 0x465   :  { %20395 = vmatmul.mubr.msk.f32.gmra.mrb[12].mxu0 %vm95_vm1, %v17242_v9 }
 0x466   :  { %20397 = vmatprep.mubr.msk.f32.mxu0 %vm95_vm1, %v17243_v46 }
 0x469   :  { %20398 = vmatmul.mubr.msk.f32.gmra.mrb[14].mxu0 %vm95_vm1, %v17244_v58  ;;  %v17338_v58 = vld [vmem:[%s28350_s0 + $0xe4] sm:$0xff] }
 0x46a   :  { %20400 = vmatprep.mubr.msk.f32.mxu0 %vm95_vm1, %v17245_v45  ;;  %v17339_v45 = vld [vmem:[%s28350_s0 + $0xf4] sm:$0xff] }
 0x46d   :  { %20401 = vmatmul.mubr.msk.f32.gmra.mrb[16].mxu0 %vm95_vm1, %v17246_v21  ;;  %v17340_v21 = vld [vmem:[%s28350_s0 + $0xfc] sm:$0xff] }
 0x46e   :  { %20403 = vmatprep.mubr.msk.f32.mxu0 %vm95_vm1, %v17247_v28  ;;  %v17341_v28 = vld [vmem:[%s28350_s0 + $0x10c] sm:$0xff] }
 0x471   :  { %20404 = vmatmul.mubr.msk.f32.gmra.mrb[18].mxu0 %vm95_vm1, %v17248_v6  ;;  %v17342_v6 = vld [vmem:[%s28350_s0 + $0x114] sm:$0xff] }
 0x472   :  { %20406 = vmatprep.mubr.msk.f32.mxu0 %vm95_vm1, %v17249_v33  ;;  %v17343_v33 = vld [vmem:[%s28350_s0 + $0x124] sm:$0xff] }
 0x475   :  { %20407 = vmatmul.mubr.msk.f32.gmra.mrb[20].mxu0 %vm95_vm1, %v17250_v54  ;;  %v17344_v54 = vld [vmem:[%s28350_s0 + $0x12c] sm:$0xff] }
 0x476   :  { %20409 = vmatprep.mubr.msk.f32.mxu0 %vm95_vm1, %v17251_v47  ;;  %v17345_v47 = vld [vmem:[%s28350_s0 + $0x13c] sm:$0xff] }
 0x479   :  { %20410 = vmatmul.mubr.msk.f32.gmra.mrb[22].mxu0 %vm95_vm1, %v17252_v24  ;;  %v17346_v24 = vld [vmem:[%s28350_s0 + $0x144] sm:$0xff] }
 0x47a   :  { %20412 = vmatprep.mubr.msk.f32.mxu0 %vm95_vm1, %v17253_v34  ;;  %v17347_v34 = vld [vmem:[%s28350_s0 + $0x154] sm:$0xff] }
 0x47d   :  { %20413 = vmatmul.mubr.msk.f32.gmra.mrb[24].mxu0 %vm95_vm1, %v17254_v5  ;;  %v17348_v5 = vld [vmem:[%s28350_s0 + $0x15c] sm:$0xff] }
 0x47e   :  { %20415 = vmatprep.mubr.msk.f32.mxu0 %vm95_vm1, %v17255_v22  ;;  %v17349_v22 = vld [vmem:[%s28350_s0 + $0x16c] sm:$0xff] }
 0x481   :  { %20416 = vmatmul.mubr.msk.f32.gmra.mrb[26].mxu0 %vm95_vm1, %v17256_v17  ;;  %v17350_v17 = vld [vmem:[%s28350_s0 + $0x174] sm:$0xff] }
 0x482   :  { %20418 = vmatprep.mubr.msk.f32.mxu0 %vm95_vm1, %v17257_v31  ;;  %v17351_v31 = vld [vmem:[%s28350_s0 + $0x1e4] sm:$0xff] }
 0x485   :  { %20419 = vmatmul.mubr.msk.f32.gmra.mrb[28].mxu0 %vm95_vm1, %v17258_v30  ;;  %v17352_v30 = vld [vmem:[%s28350_s0 + $0x1ec] sm:$0xff] }
 0x486   :  { %20421 = vmatprep.mubr.msk.f32.mxu0 %vm95_vm1, %v17259_v12  ;;  %v17353_v12 = vld [vmem:[%s28350_s0 + $0x1fc] sm:$0xff] }
 0x489   :  { %20422 = vmatmul.mubr.msk.f32.gmra.mrb[30].mxu0 %vm95_vm1, %v17260_v0  ;;  %v17354_v0 = vld [vmem:[%s28350_s0 + $0x204] sm:$0xff] }
 0x48a   :  { %20424 = vmatprep.mubr.msk.f32.mxu0 %vm95_vm1, %v17261_v25  ;;  %v17355_v25 = vld [vmem:[%s28350_s0 + $0x214] sm:$0xff] }
 0x48d   :  { %20425 = vmatmul.mubr.msk.f32.gmra.mrb[32].mxu0 %vm95_vm1, %v17262_v52  ;;  %v17356_v52 = vld [vmem:[%s28350_s0 + $0x21c] sm:$0xff] }
 0x48e   :  { %20427 = vmatprep.mubr.msk.f32.mxu0 %vm95_vm1, %v17263_v62  ;;  %v17357_v62 = vld [vmem:[%s28350_s0 + $0x22c] sm:$0xff] }
 0x491   :  { %20428 = vmatmul.mubr.msk.f32.gmra.mrb[34].mxu0 %vm95_vm1, %v17264_v13  ;;  %v17358_v13 = vld [vmem:[%s28350_s0 + $0x234] sm:$0xff] }
 0x492   :  { %20430 = vmatprep.mubr.msk.f32.mxu0 %vm95_vm1, %v17265_v50  ;;  %v17359_v50 = vld [vmem:[%s28350_s0 + $0x244] sm:$0xff] }
 0x495   :  { %20431 = vmatmul.mubr.msk.f32.gmra.mrb[36].mxu0 %vm95_vm1, %v17266_v53  ;;  %v17360_v53 = vld [vmem:[%s28350_s0 + $0x24c] sm:$0xff] }
 0x496   :  { %20433 = vmatprep.mubr.msk.f32.mxu0 %vm95_vm1, %v17267_v56  ;;  %v17361_v56 = vld [vmem:[%s28350_s0 + $0x25c] sm:$0xff] }
 0x498   :  { %v27228_v14 = vpop.f32.mrb[0].mxu1 }
 0x499   :  { %v27230_v43 = vpop.f32.mrb[1].mxu1  ;;  %20434 = vmatmul.mubr.msk.f32.gmra.mrb[38].mxu0 %vm95_vm1, %v17268_v2  ;;  %v17362_v2 = vld [vmem:[%s28350_s0 + $0x264] sm:$0xff] }
 0x49a   :  { %20436 = vmatprep.mubr.msk.f32.mxu0 %vm95_vm1, %v17269_v38  ;;  %v17363_v38 = vld [vmem:[%s28350_s0 + $0x274] sm:$0xff] }
 0x49c   :  { %v27240_v29 = vpop.f32.mrb[2].mxu1 }
 0x49d   :  { %v27242_v63 = vpop.f32.mrb[3].mxu1  ;;  %20437 = vmatmul.mubr.msk.f32.gmra.mrb[40].mxu0 %vm95_vm1, %v17270_v26  ;;  %v17364_v26 = vld [vmem:[%s28350_s0 + $0x27c] sm:$0xff] }
 0x49e   :  { %20439 = vmatprep.mubr.msk.f32.mxu0 %vm95_vm1, %v17271_v19  ;;  %v17365_v19 = vld [vmem:[%s28350_s0 + $0x28c] sm:$0xff] }
 0x4a0   :  { %v27252_v32 = vpop.f32.mrb[4].mxu1 }
 0x4a1   :  { %v27254_v57 = vpop.f32.mrb[5].mxu1  ;;  %20440 = vmatmul.mubr.msk.f32.gmra.mrb[42].mxu0 %vm95_vm1, %v17272_v1  ;;  %v17366_v1 = vld [vmem:[%s28350_s0 + $0x294] sm:$0xff] }
 0x4a2   :  { %20442 = vmatprep.mubr.msk.f32.mxu0 %vm95_vm1, %v17273_v49  ;;  %v17367_v49 = vld [vmem:[%s28350_s0 + $0x2a4] sm:$0xff] }
 0x4a4   :  { %v27264_v18 = vpop.f32.mrb[6].mxu1 }
 0x4a5   :  { %v27266_v39 = vpop.f32.mrb[7].mxu1  ;;  %20443 = vmatmul.mubr.msk.f32.gmra.mrb[44].mxu0 %vm95_vm1, %v17274_v16 }
 0x4a6   :  { %20445 = vmatprep.mubr.msk.f32.mxu0 %vm95_vm1, %v17275_v37 }
 0x4a8   :  { %v27276_v8 = vpop.f32.mrb[8].mxu1 }
 0x4a9   :  { %v27278_v10 = vpop.f32.mrb[9].mxu1  ;;  %20446 = vmatmul.mubr.msk.f32.gmra.mrb[46].mxu0 %vm95_vm1, %v17276_v60  ;;  %v17368_v60 = vld [vmem:[%s28350_s0 + $0x2ac] sm:$0xff] }
 0x4aa   :  { %20450 = vmatprep.mubr.msk.f32.mxu0 %vm95_vm1, %v17327_v51  ;;  %v17369_v51 = vld [vmem:[%s28350_s0 + $0x2bc] sm:$0xff] }
 0x4ac   :  { %v27288_v35 = vpop.f32.mrb[10].mxu1 }
 0x4ad   :  { %v27290_v55 = vpop.f32.mrb[11].mxu1  ;;  %20451 = vmatmul.mubr.msk.f32.vlgmr.msra.gmra.mrb[0].mxu0 %vm95_vm1, %v17328_v27 }
 0x4ae   :  { %20453 = vmatprep.mubr.msk.f32.mxu0 %vm95_vm1, %v17329_v42 }
 0x4b0   :  { %v27300_v11 = vpop.f32.mrb[12].mxu1 }
 0x4b1   :  { %v27302_v20 = vpop.f32.mrb[13].mxu1  ;;  %20454 = vmatmul.mubr.msk.f32.gmra.mrb[2].mxu0 %vm95_vm1, %v17330_v48  ;;  %v17370_v48 = vld [vmem:[%s28350_s0 + $0x2c4] sm:$0xff] }
 0x4b2   :  { %20456 = vmatprep.mubr.msk.f32.mxu0 %vm95_vm1, %v17331_v23  ;;  %v17371_v23 = vld [vmem:[%s28350_s0 + $0x2d4] sm:$0xff] }
 0x4b4   :  { %v27312_v7 = vpop.f32.mrb[14].mxu1 }
 0x4b5   :  { %v27314_v44 = vpop.f32.mrb[15].mxu1  ;;  %20457 = vmatmul.mubr.msk.f32.gmra.mrb[4].mxu0 %vm95_vm1, %v17332_v61 }
 0x4b6   :  { %20459 = vmatprep.mubr.msk.f32.mxu0 %vm95_vm1, %v17333_v41 }
 0x4b8   :  { %v27324_v3 = vpop.f32.mrb[16].mxu1 }
 0x4b9   :  { %v27326_v36 = vpop.f32.mrb[17].mxu1  ;;  %20460 = vmatmul.mubr.msk.f32.gmra.mrb[6].mxu0 %vm95_vm1, %v17334_v15  ;;  %v17372_v15 = vld [vmem:[%s28350_s0 + $0x2dc] sm:$0xff] }
 0x4ba   :  { %20462 = vmatprep.mubr.msk.f32.mxu0 %vm95_vm1, %v17335_v4  ;;  %v17373_v4 = vld [vmem:[%s28350_s0 + $0x2ec] sm:$0xff] }
 0x4bc   :  { %v27336_v9 = vpop.f32.mrb[18].mxu1 }
 0x4bd   :  { %v27338_v46 = vpop.f32.mrb[19].mxu1  ;;  %20463 = vmatmul.mubr.msk.f32.gmra.mrb[8].mxu0 %vm95_vm1, %v17336_v40 }
 0x4be   :  { %20465 = vmatprep.mubr.msk.f32.mxu0 %vm95_vm1, %v17337_v59 }
 0x4c1   :  { %20466 = vmatmul.mubr.msk.f32.gmra.mrb[10].mxu0 %vm95_vm1, %v17338_v58  ;;  %v17374_v58 = vld [vmem:[%s28350_s0 + $0x2f4] sm:$0xff]  ;;  %s21960_s0 = smov 80  }
 0x4c2   :  { %20468 = vmatprep.mubr.msk.f32.mxu0 %vm95_vm1, %v17339_v45 }
 0x4c5   :  { %20469 = vmatmul.mubr.msk.f32.gmra.mrb[12].mxu0 %vm95_vm1, %v17340_v21 }
 0x4c6   :  { %20471 = vmatprep.mubr.msk.f32.mxu0 %vm95_vm1, %v17341_v28 }
 0x4c9   :  { %20472 = vmatmul.mubr.msk.f32.gmra.mrb[14].mxu0 %vm95_vm1, %v17342_v6 }
 0x4ca   :  { %20474 = vmatprep.mubr.msk.f32.mxu0 %vm95_vm1, %v17343_v33 }
 0x4cd   :  { %20475 = vmatmul.mubr.msk.f32.gmra.mrb[16].mxu0 %vm95_vm1, %v17344_v54 }
 0x4ce   :  { %20477 = vmatprep.mubr.msk.f32.mxu0 %vm95_vm1, %v17345_v47 }
 0x4d1   :  { %20478 = vmatmul.mubr.msk.f32.gmra.mrb[18].mxu0 %vm95_vm1, %v17346_v24 }
 0x4d2   :  { %20480 = vmatprep.mubr.msk.f32.mxu0 %vm95_vm1, %v17347_v34 }
 0x4d5   :  { %20481 = vmatmul.mubr.msk.f32.gmra.mrb[20].mxu0 %vm95_vm1, %v17348_v5 }
 0x4d6   :  { %20483 = vmatprep.mubr.msk.f32.mxu0 %vm95_vm1, %v17349_v22 }
 0x4d9   :  { %20484 = vmatmul.mubr.msk.f32.gmra.mrb[22].mxu0 %vm95_vm1, %v17350_v17 }
 0x4da   :  { %20486 = vmatprep.mubr.msk.f32.mxu0 %vm95_vm1, %v17351_v31 }
 0x4dd   :  { %20487 = vmatmul.mubr.msk.f32.gmra.mrb[24].mxu0 %vm95_vm1, %v17352_v30 }
 0x4de   :  { %20489 = vmatprep.mubr.msk.f32.mxu0 %vm95_vm1, %v17353_v12 }
 0x4e1   :  { %20490 = vmatmul.mubr.msk.f32.gmra.mrb[26].mxu0 %vm95_vm1, %v17354_v0 }
 0x4e2   :  { %20492 = vmatprep.mubr.msk.f32.mxu0 %vm95_vm1, %v17355_v25 }
 0x4e5   :  { %20493 = vmatmul.mubr.msk.f32.gmra.mrb[28].mxu0 %vm95_vm1, %v17356_v52 }
 0x4e6   :  { %20495 = vmatprep.mubr.msk.f32.mxu0 %vm95_vm1, %v17357_v62 }
 0x4e9   :  { %20496 = vmatmul.mubr.msk.f32.gmra.mrb[30].mxu0 %vm95_vm1, %v17358_v13 }
 0x4ea   :  { %20498 = vmatprep.mubr.msk.f32.mxu0 %vm95_vm1, %v17359_v50  ;;  %v27549_v50 = vld [vmem:[%s28352_s2] ss:$0 sm:$0xff]  ;;  %s21952_s2 = smov 24  }
 0x4ed   :  { %20499 = vmatmul.mubr.msk.f32.gmra.mrb[32].mxu0 %vm95_vm1, %v17360_v53  ;;  %v20705_v53 = vadd.f32 %v27228_v14, %v27549_v50  ;;  %v20713_v14 = vadd.f32 %v27252_v32, %v27549_v50  ;;  %v20719_v32 = vadd.f32 %v27549_v50, %v27266_v39  ;;  %v20723_v39 = vadd.f32 %v27549_v50, %v27278_v10 }
 0x4ee   :  { %20501 = vmatprep.mubr.msk.f32.mxu0 %vm95_vm1, %v17361_v56  ;;  %v20707_v56 = vadd.f32 %v27549_v50, %v27230_v43  ;;  %v20715_v43 = vadd.f32 %v27549_v50, %v27254_v57 }
 0x4f1   :  { %20502 = vmatmul.mubr.msk.f32.gmra.mrb[34].mxu0 %vm95_vm1, %v17362_v2 }
 0x4f2   :  { %20504 = vmatprep.mubr.msk.f32.mxu0 %vm95_vm1, %v17363_v38 }
 0x4f5   :  { %20505 = vmatmul.mubr.msk.f32.gmra.mrb[36].mxu0 %vm95_vm1, %v17364_v26 }
 0x4f6   :  { %20507 = vmatprep.mubr.msk.f32.mxu0 %vm95_vm1, %v17365_v19 }
 0x4f8   :  { %v27460_v16 = vpop.f32.mrb[20].mxu1 }
 0x4f9   :  { %v27462_v37 = vpop.f32.mrb[21].mxu1  ;;  %20508 = vmatmul.mubr.msk.f32.gmra.mrb[38].mxu0 %vm95_vm1, %v17366_v1  ;;  %v20709_v1 = vadd.f32 %v27240_v29, %v27549_v50 }
 0x4fa   :  { %20510 = vmatprep.mubr.msk.f32.mxu0 %vm95_vm1, %v17367_v49  ;;  %v20711_v49 = vadd.f32 %v27549_v50, %v27242_v63 }
 0x4fc   :  { %v27472_v27 = vpop.f32.mrb[22].mxu1 }
 0x4fd   :  { %v27474_v42 = vpop.f32.mrb[23].mxu1  ;;  %20511 = vmatmul.mubr.msk.f32.gmra.mrb[40].mxu0 %vm95_vm1, %v17368_v60 }
 0x4fe   :  { %20513 = vmatprep.mubr.msk.f32.mxu0 %vm95_vm1, %v17369_v51 }
 0x500   :  { %v27484_v61 = vpop.f32.mrb[24].mxu1 }
 0x501   :  { %v27486_v41 = vpop.f32.mrb[25].mxu1  ;;  %20514 = vmatmul.mubr.msk.f32.gmra.mrb[42].mxu0 %vm95_vm1, %v17370_v48 }
 0x502   :  { %20516 = vmatprep.mubr.msk.f32.mxu0 %vm95_vm1, %v17371_v23 }
 0x504   :  { %v27496_v40 = vpop.f32.mrb[26].mxu1 }
 0x505   :  { %v27498_v59 = vpop.f32.mrb[27].mxu1  ;;  %20517 = vmatmul.mubr.msk.f32.gmra.mrb[44].mxu0 %vm95_vm1, %v17372_v15 }
 0x506   :  { %20519 = vmatprep.mubr.msk.f32.mxu0 %vm95_vm1, %v17373_v4 }
 0x508   :  { %v27505_v45 = vpop.f32.mrb[28].mxu1 }
 0x509   :  { %v27507_v21 = vpop.f32.mrb[29].mxu1  ;;  %20520 = vmatmul.mubr.msk.f32.gmra.mrb[46].mxu0 %vm95_vm1, %v17374_v58  ;;  %vm14221_vm1 = vcmask 850944  }
 0x50c   :  { %v27510_v28 = vpop.f32.mrb[30].mxu1 }
 0x50d   :  { %v27512_v6 = vpop.f32.mrb[31].mxu1 }
 0x510   :  { %v27514_v33 = vpop.f32.mrb[32].mxu1 }
 0x511   :  { %v27516_v54 = vpop.f32.mrb[33].mxu1 }
 0x514   :  { %v27518_v47 = vpop.f32.mrb[34].mxu1 }
 0x515   :  { %v27520_v24 = vpop.f32.mrb[35].mxu1 }
 0x518   :  { %v27522_v34 = vpop.f32.mrb[36].mxu1 }
 0x519   :  { %v27524_v5 = vpop.f32.mrb[37].mxu1 }
 0x51c   :  { %v27526_v22 = vpop.f32.mrb[38].mxu1 }
 0x51d   :  { %v27528_v17 = vpop.f32.mrb[39].mxu1 }
 0x520   :  { %v27530_v31 = vpop.f32.mrb[40].mxu1 }
 0x521   :  { %v27532_v30 = vpop.f32.mrb[41].mxu1 }
 0x524   :  { %v27534_v12 = vpop.f32.mrb[42].mxu1 }
 0x525   :  { %v27536_v0 = vpop.f32.mrb[43].mxu1 }
 0x528   :  { %v27538_v25 = vpop.f32.mrb[44].mxu1 }
 0x529   :  { %v27540_v52 = vpop.f32.mrb[45].mxu1 }
 0x52c   :  { %v27542_v62 = vpop.f32.mrb[46].mxu1 }
 0x52d   :  { %v27544_v13 = vpop.f32.mrb[47].mxu1 }
 0x52e   :  { %28509 = vst [vmem:[#allocation14_spill] sm:$0xff] %v27544_v13 }
 0x580   :  { %v20452_v2 = vpop.f32.mrb[0].mxu0 }
 0x581   :  { %v20706_v38 = vadd.f32 %v20705_v53, %v20452_v2  ;;  %v13514_v26 = vpop.f32.mrb[1].mxu0 }
 0x582   :  { %v20708_v19 = vadd.f32 %v20707_v56, %v13514_v26 }
 0x583   :  { %v13802_v15 = vmax.f32 %v20706_v38, 0.0 }
 0x584   :  { %v20455_v60 = vpop.f32.mrb[2].mxu0  ;;  %v13801_v58 = vmax.f32 %v20708_v19, 0.0 }
 0x585   :  { %v20710_v51 = vadd.f32 %v20709_v1, %v20455_v60  ;;  %v13524_v48 = vpop.f32.mrb[3].mxu0  ;;  %v20717_v1 = vadd.f32 %v27264_v18, %v27549_v50 }
 0x586   :  { %v20712_v23 = vadd.f32 %v20711_v49, %v13524_v48 }
 0x587   :  { %v13804_v4 = vmax.f32 %v20710_v51, 0.0 }
 0x588   :  { %v13803_v53 = vmax.f32 %v20712_v23, 0.0  ;;  %v20458_v56 = vpop.f32.mrb[4].mxu0 }
 0x589   :  { %v13850_v2 = vmax.f32 %v13802_v15, %v13804_v4  ;;  %v20714_v29 = vadd.f32 %v20713_v14, %v20458_v56  ;;  %v13534_v26 = vpop.f32.mrb[5].mxu0  ;;  %v20721_v14 = vadd.f32 %v27276_v8, %v27549_v50  ;;  %v20725_v8 = vadd.f32 %v27288_v35, %v27549_v50 }
 0x58a   :  { %v13849_v13 = vmax.f32 %v13801_v58, %v13803_v53  ;;  %v20716_v63 = vadd.f32 %v20715_v43, %v13534_v26 }
 0x58b   :  { %v13899_v49 = vrot.slane %v13850_v2, 1  ;;  %v13806_v15 = vmax.f32 %v20714_v29, 0.0 }
 0x58c   :  { %v13898_v38 = vrot.slane %v13849_v13, 1  ;;  %v20461_v60 = vpop.f32.mrb[6].mxu0  ;;  %v13805_v43 = vmax.f32 %v20716_v63, 0.0 }
 0x58d   :  { %v13959_v57 = vmax.f32 %v13850_v2, %v13899_v49  ;;  %v20718_v19 = vadd.f32 %v20717_v1, %v20461_v60  ;;  %v13544_v51 = vpop.f32.mrb[7].mxu0 }
 0x58e   :  { %v13900_v48 = vsel %vm13897_vm2, %v13898_v38, %v13899_v49  ;;  %v20720_v23 = vadd.f32 %v20719_v32, %v13544_v51  ;;  %v20729_v51 = vadd.f32 %v27300_v11, %v27549_v50  ;;  %v20733_v11 = vadd.f32 %v27312_v7, %v27549_v50 }
 0x58f   :  { %13985 = vst.msk [vmem:[#allocation2 + $0x8] sm:$0x7f] %vm13984_vm3, %v13959_v57  ;;  %v13958_v18 = vmax.f32 %v13849_v13, %v13900_v48  ;;  %v13808_v4 = vmax.f32 %v20718_v19, 0.0  ;;  %v20727_v13 = vadd.f32 %v27549_v50, %v27290_v55 }
 0x590   :  { %v13807_v58 = vmax.f32 %v20720_v23, 0.0  ;;  %v20464_v53 = vpop.f32.mrb[8].mxu0 }
 0x591   :  { %13983 = vst.msk [vmem:[#allocation2] sm:$0xff] %vm13982_vm4, %v13958_v18  ;;  %v13852_v56 = vmax.f32 %v13806_v15, %v13808_v4  ;;  %v20722_v2 = vadd.f32 %v20721_v14, %v20464_v53  ;;  %v13554_v26 = vpop.f32.mrb[9].mxu0  ;;  %v20731_v14 = vadd.f32 %v27549_v50, %v27302_v20 }
 0x592   :  { %v13851_v1 = vmax.f32 %v13805_v43, %v13807_v58  ;;  %v20724_v49 = vadd.f32 %v20723_v39, %v13554_v26 }
 0x593   :  { %v13902_v32 = vrot.slane %v13852_v56, 1  ;;  %v13810_v23 = vmax.f32 %v20722_v2, 0.0  ;;  %v20735_v2 = vadd.f32 %v27549_v50, %v27314_v44 }
 0x594   :  { %v13901_v29 = vrot.slane %v13851_v1, 1  ;;  %v20467_v38 = vpop.f32.mrb[10].mxu0  ;;  %v13809_v55 = vmax.f32 %v20724_v49, 0.0 }
 0x595   :  { %v13961_v10 = vmax.f32 %v13852_v56, %v13902_v32  ;;  %v20726_v63 = vadd.f32 %v20725_v8, %v20467_v38  ;;  %v13564_v60 = vpop.f32.mrb[11].mxu0 }
 0x596   :  { %v13903_v57 = vsel %vm13897_vm2, %v13901_v29, %v13902_v32  ;;  %v20728_v19 = vadd.f32 %v20727_v13, %v13564_v60  ;;  %v20737_v29 = vadd.f32 %v27324_v3, %v27549_v50  ;;  %v20741_v3 = vadd.f32 %v27336_v9, %v27549_v50 }
 0x597   :  { %13987 = vst.msk [vmem:[#allocation2 + $0x18] sm:$0x7f] %vm13984_vm3, %v13961_v10  ;;  %v13960_v48 = vmax.f32 %v13851_v1, %v13903_v57  ;;  %v13812_v35 = vmax.f32 %v20726_v63, 0.0  ;;  %v20739_v63 = vadd.f32 %v27549_v50, %v27326_v36 }
 0x598   :  { %v13811_v18 = vmax.f32 %v20728_v19, 0.0  ;;  %v20470_v15 = vpop.f32.mrb[12].mxu0 }
 0x599   :  { %13986 = vst.msk [vmem:[#allocation2 + $0x10] sm:$0xff] %vm13982_vm4, %v13960_v48  ;;  %v13854_v4 = vmax.f32 %v13810_v23, %v13812_v35  ;;  %v20730_v39 = vadd.f32 %v20729_v51, %v20470_v15  ;;  %v13574_v43 = vpop.f32.mrb[13].mxu0 }
 0x59a   :  { %v13853_v58 = vmax.f32 %v13809_v55, %v13811_v18  ;;  %v20732_v53 = vadd.f32 %v20731_v14, %v13574_v43  ;;  %v20743_v55 = vadd.f32 %v27549_v50, %v27338_v46 }
 0x59b   :  { %v13905_v56 = vrot.slane %v13854_v4, 1  ;;  %v13814_v10 = vmax.f32 %v20730_v39, 0.0 }
 0x59c   :  { %v13904_v26 = vrot.slane %v13853_v58, 1  ;;  %v20473_v1 = vpop.f32.mrb[14].mxu0  ;;  %v13813_v44 = vmax.f32 %v20732_v53, 0.0  ;;  %v20745_v53 = vadd.f32 %v27460_v16, %v27549_v50  ;;  %v20749_v16 = vadd.f32 %v27472_v27, %v27549_v50 }
 0x59d   :  { %v13963_v20 = vmax.f32 %v13854_v4, %v13905_v56  ;;  %v20734_v49 = vadd.f32 %v20733_v11, %v20473_v1  ;;  %v13584_v8 = vpop.f32.mrb[15].mxu0 }
 0x59e   :  { %v13906_v32 = vsel %vm13897_vm2, %v13904_v26, %v13905_v56  ;;  %v20736_v13 = vadd.f32 %v20735_v2, %v13584_v8  ;;  %v20747_v2 = vadd.f32 %v27549_v50, %v27462_v37 }
 0x59f   :  { %13989 = vst.msk [vmem:[#allocation2 + $0x28] sm:$0x7f] %vm13984_vm3, %v13963_v20  ;;  %v13962_v38 = vmax.f32 %v13853_v58, %v13906_v32  ;;  %v13816_v7 = vmax.f32 %v20734_v49, 0.0 }
 0x5a0   :  { %v13815_v60 = vmax.f32 %v20736_v13, 0.0  ;;  %v20476_v57 = vpop.f32.mrb[16].mxu0 }
 0x5a1   :  { %13988 = vst.msk [vmem:[#allocation2 + $0x20] sm:$0xff] %vm13982_vm4, %v13962_v38  ;;  %v13856_v19 = vmax.f32 %v13814_v10, %v13816_v7  ;;  %v20738_v51 = vadd.f32 %v20737_v29, %v20476_v57  ;;  %v13594_v48 = vpop.f32.mrb[17].mxu0  ;;  %v20751_v38 = vadd.f32 %v27549_v50, %v27474_v42 }
 0x5a2   :  { %v13855_v23 = vmax.f32 %v13813_v44, %v13815_v60  ;;  %v20740_v35 = vadd.f32 %v20739_v63, %v13594_v48 }
 0x5a3   :  { %v13908_v14 = vrot.slane %v13856_v19, 1  ;;  %v13818_v56 = vmax.f32 %v20738_v51, 0.0 }
 0x5a4   :  { %v13907_v18 = vrot.slane %v13855_v23, 1  ;;  %v20479_v15 = vpop.f32.mrb[18].mxu0  ;;  %v13817_v46 = vmax.f32 %v20740_v35, 0.0 }
 0x5a5   :  { %v13965_v36 = vmax.f32 %v13856_v19, %v13908_v14  ;;  %v20742_v4 = vadd.f32 %v20741_v3, %v20479_v15  ;;  %v13604_v39 = vpop.f32.mrb[19].mxu0  ;;  %v20753_v19 = vadd.f32 %v27484_v61, %v27549_v50  ;;  %v20757_v61 = vadd.f32 %v27496_v40, %v27549_v50 }
 0x5a6   :  { %v13909_v43 = vsel %vm13897_vm2, %v13907_v18, %v13908_v14  ;;  %v20744_v58 = vadd.f32 %v20743_v55, %v13604_v39  ;;  %v20759_v39 = vadd.f32 %v27549_v50, %v27498_v59 }
 0x5a7   :  { %13991 = vst.msk [vmem:[#allocation2 + $0x38] sm:$0x7f] %vm13984_vm3, %v13965_v36  ;;  %v13964_v11 = vmax.f32 %v13855_v23, %v13909_v43  ;;  %v13820_v9 = vmax.f32 %v20742_v4, 0.0  ;;  %v20755_v23 = vadd.f32 %v27549_v50, %v27486_v41 }
 0x5a8   :  { %v13819_v26 = vmax.f32 %v20744_v58, 0.0  ;;  %v20482_v1 = vpop.f32.mrb[20].mxu0 }
 0x5a9   :  { %13990 = vst.msk [vmem:[#allocation2 + $0x30] sm:$0xff] %vm13982_vm4, %v13964_v11  ;;  %v13858_v20 = vmax.f32 %v13818_v56, %v13820_v9  ;;  %v20746_v49 = vadd.f32 %v20745_v53, %v20482_v1  ;;  %v13614_v8 = vpop.f32.mrb[21].mxu0  ;;  %v20763_v1 = vadd.f32 %v27549_v50, %v27507_v21  ;;  %v20765_v21 = vadd.f32 %v27510_v28, %v27549_v50 }
 0x5aa   :  { %v13857_v32 = vmax.f32 %v13817_v46, %v13819_v26  ;;  %v20748_v13 = vadd.f32 %v20747_v2, %v13614_v8  ;;  %v20761_v2 = vadd.f32 %v27505_v45, %v27549_v50  ;;  %v14008_v45 = vld [vmem:[%s28353_s3] sm:$0xff]  ;;  %v20769_v28 = vadd.f32 %v27514_v33, %v27549_v50 }
 0x5ab   :  { %v13911_v29 = vrot.slane %v13858_v20, 1  ;;  %v13822_v48 = vmax.f32 %v20746_v49, 0.0 }
 0x5ac   :  { %v13910_v10 = vrot.slane %v13857_v32, 1  ;;  %v20485_v7 = vpop.f32.mrb[22].mxu0  ;;  %v13821_v42 = vmax.f32 %v20748_v13, 0.0 }
 0x5ad   :  { %v13967_v37 = vmax.f32 %v13858_v20, %v13911_v29  ;;  %v20750_v63 = vadd.f32 %v20749_v16, %v20485_v7  ;;  %v13624_v44 = vpop.f32.mrb[23].mxu0  ;;  %v21949_v7 = vmov 0.0|0.0  }
 0x5ae   :  { %v13912_v60 = vsel %vm13897_vm2, %v13910_v10, %v13911_v29  ;;  %v20752_v57 = vadd.f32 %v20751_v38, %v13624_v44  ;;  %v14009_v38 = vld [vmem:[%s28353_s3 + $0x8] sm:$0xff]  ;;  %20547 = vmatprep.subr.bf16.mxu1 %v21949_v7 }
 0x5af   :  { %13993 = vst.msk [vmem:[#allocation2 + $0x48] sm:$0x7f] %vm13984_vm3, %v13967_v37  ;;  %v13966_v51 = vmax.f32 %v13857_v32, %v13912_v60  ;;  %v13824_v27 = vmax.f32 %v20750_v63, 0.0  ;;  %v27638_v37 = vpack.c.bf16 %v14009_v38, %v14008_v45  ;;  %v20767_v63 = vadd.f32 %v27549_v50, %v27512_v6 }
 0x5b0   :  { %v13823_v35 = vmax.f32 %v20752_v57, 0.0  ;;  %v20488_v3 = vpop.f32.mrb[24].mxu0 }
 0x5b1   :  { %13992 = vst.msk [vmem:[#allocation2 + $0x40] sm:$0xff] %vm13982_vm4, %v13966_v51  ;;  %v13860_v14 = vmax.f32 %v13822_v48, %v13824_v27  ;;  %v20754_v55 = vadd.f32 %v20753_v19, %v20488_v3  ;;  %v13634_v18 = vpop.f32.mrb[25].mxu0  ;;  %20549 = vmatpush1.bf16.msra.mxu1 %v27638_v37 }
 0x5b2   :  { %v13859_v15 = vmax.f32 %v13821_v42, %v13823_v35  ;;  %v20756_v36 = vadd.f32 %v20755_v23, %v13634_v18  ;;  %20550 = vmatprep.subr.bf16.mxu1 %v21949_v7  ;;  %v20771_v35 = vadd.f32 %v27549_v50, %v27516_v54  ;;  %v14010_v18 = vld [vmem:[%s28353_s3 + $0x10] sm:$0xff] }
 0x5b3   :  { %v13914_v4 = vrot.slane %v13860_v14, 1  ;;  %v13826_v26 = vmax.f32 %v20754_v55, 0.0 }
 0x5b4   :  { %v13913_v43 = vrot.slane %v13859_v15, 1  ;;  %v20491_v58 = vpop.f32.mrb[26].mxu0  ;;  %v13825_v59 = vmax.f32 %v20756_v36, 0.0 }
 0x5b5   :  { %v13969_v41 = vmax.f32 %v13860_v14, %v13914_v4  ;;  %v20758_v53 = vadd.f32 %v20757_v61, %v20491_v58  ;;  %v13644_v11 = vpop.f32.mrb[27].mxu0 }
 0x5b6   :  { %v13915_v56 = vsel %vm13897_vm2, %v13913_v43, %v13914_v4  ;;  %v20760_v9 = vadd.f32 %v20759_v39, %v13644_v11  ;;  %v20773_v43 = vadd.f32 %v27518_v47, %v27549_v50  ;;  %v20777_v47 = vadd.f32 %v27522_v34, %v27549_v50 }
 0x5b7   :  { %13995 = vst.msk [vmem:[#allocation2 + $0x58] sm:$0x7f] %vm13984_vm3, %v13969_v41  ;;  %v13968_v46 = vmax.f32 %v13859_v15, %v13915_v56  ;;  %v13828_v40 = vmax.f32 %v20758_v53, 0.0  ;;  %v14011_v15 = vld [vmem:[%s28353_s3 + $0x18] sm:$0xff]  ;;  %v20775_v41 = vadd.f32 %v27549_v50, %v27520_v24  ;;  %v14012_v56 = vld [vmem:[%s28353_s3 + $0x20] sm:$0xff]  ;;  %v20779_v34 = vadd.f32 %v27549_v50, %v27524_v5 }
 0x5b8   :  { %v13827_v20 = vmax.f32 %v20760_v9, 0.0  ;;  %v20494_v49 = vpop.f32.mrb[28].mxu0  ;;  %v27657_v4 = vpack.c.bf16 %v14011_v15, %v14010_v18  ;;  %v14013_v9 = vld [vmem:[%s28353_s3 + $0x28] sm:$0xff]  ;;  %v14035_v5 = vld [vmem:[#allocation2 + $0x2] sm:$0x1] }
 0x5b9   :  { %13994 = vst.msk [vmem:[#allocation2 + $0x50] sm:$0xff] %vm13982_vm4, %v13968_v46  ;;  %v13862_v8 = vmax.f32 %v13826_v26, %v13828_v40  ;;  %v20762_v32 = vadd.f32 %v20761_v2, %v20494_v49  ;;  %v13654_v13 = vpop.f32.mrb[29].mxu0  ;;  %v27673_v40 = vpack.c.bf16 %v14013_v9, %v14012_v56 }
 0x5ba   :  { %v13861_v16 = vmax.f32 %v13825_v59, %v13827_v20  ;;  %v20764_v29 = vadd.f32 %v20763_v1, %v13654_v13  ;;  %20552 = vmatpush1.bf16.msra.mxu1 %v27657_v4  ;;  %v14041_v13 = vld [vmem:[#allocation2 + $0x8] sm:$0x1] }
 0x5bb   :  { %v13917_v10 = vrot.slane %v13862_v8, 1  ;;  %v13830_v42 = vmax.f32 %v20762_v32, 0.0  ;;  %20553 = vmatprep.subr.bf16.mxu1 %v21949_v7 }
 0x5bc   :  { %v13916_v44 = vrot.slane %v13861_v16, 1  ;;  %v20497_v60 = vpop.f32.mrb[30].mxu0  ;;  %v13829_v3 = vmax.f32 %v20764_v29, 0.0 }
 0x5bd   :  { %v13971_v57 = vmax.f32 %v13862_v8, %v13917_v10  ;;  %v20766_v19 = vadd.f32 %v20765_v21, %v20497_v60  ;;  %v13664_v51 = vpop.f32.mrb[31].mxu0 }
 0x5be   :  { %v13918_v48 = vsel %vm13897_vm2, %v13916_v44, %v13917_v10  ;;  %v20768_v27 = vadd.f32 %v20767_v63, %v13664_v51  ;;  %20555 = vmatpush1.bf16.msra.mxu1 %v27673_v40 }
 0x5bf   :  { %13997 = vst.msk [vmem:[#allocation2 + $0x68] sm:$0x7f] %vm13984_vm3, %v13971_v57  ;;  %v13970_v23 = vmax.f32 %v13861_v16, %v13918_v48  ;;  %v13832_v6 = vmax.f32 %v20766_v19, 0.0  ;;  %20556 = vmatprep.subr.bf16.mxu1 %v21949_v7 }
 0x5c0   :  { %v13831_v14 = vmax.f32 %v20768_v27, 0.0  ;;  %v20500_v55 = vpop.f32.mrb[32].mxu0 }
 0x5c1   :  { %13996 = vst.msk [vmem:[#allocation2 + $0x60] sm:$0xff] %vm13982_vm4, %v13970_v23  ;;  %v13864_v33 = vmax.f32 %v13830_v42, %v13832_v6  ;;  %v20770_v36 = vadd.f32 %v20769_v28, %v20500_v55  ;;  %v13674_v61 = vpop.f32.mrb[33].mxu0  ;;  %v14014_v28 = vld [vmem:[%s28353_s3 + $0x30] sm:$0xff]  ;;  %v14015_v23 = vld [vmem:[%s28353_s3 + $0x38] sm:$0xff]  ;;  %v20781_v42 = vadd.f32 %v27526_v22, %v27549_v50  ;;  %v20785_v55 = vadd.f32 %v27530_v31, %v27549_v50  ;;  %v14017_v31 = vld [vmem:[%s28353_s3 + $0x48] sm:$0xff] }
 0x5c2   :  { %v13863_v39 = vmax.f32 %v13829_v3, %v13831_v14  ;;  %v20772_v54 = vadd.f32 %v20771_v35, %v13674_v61  ;;  %v20783_v14 = vadd.f32 %v27549_v50, %v27528_v17  ;;  %v14016_v17 = vld [vmem:[%s28353_s3 + $0x40] sm:$0xff] }
 0x5c3   :  { %v13920_v58 = vrot.slane %v13864_v33, 1  ;;  %v13834_v1 = vmax.f32 %v20770_v36, 0.0 }
 0x5c4   :  { %v13919_v53 = vrot.slane %v13863_v39, 1  ;;  %v20503_v11 = vpop.f32.mrb[34].mxu0  ;;  %v13833_v8 = vmax.f32 %v20772_v54, 0.0  ;;  %v27707_v54 = vpack.c.bf16 %v14015_v23, %v14014_v28  ;;  %v14018_v28 = vld [vmem:[%s28353_s3 + $0x50] sm:$0xff]  ;;  %v20793_v23 = vadd.f32 %v27538_v25, %v27549_v50  ;;  %v14021_v25 = vld [vmem:[%s28353_s3 + $0x68] sm:$0xff] }
 0x5c5   :  { %v13973_v2 = vmax.f32 %v13864_v33, %v13920_v58  ;;  %v20774_v46 = vadd.f32 %v20773_v43, %v20503_v11  ;;  %v13684_v26 = vpop.f32.mrb[35].mxu0  ;;  %v14039_v33 = vld [vmem:[#allocation2 + $0x6] sm:$0x1]  ;;  %v14037_v11 = vld [vmem:[#allocation2 + $0x4] sm:$0x1] }
 0x5c6   :  { %v13921_v24 = vsel %vm13897_vm2, %v13919_v53, %v13920_v58  ;;  %v20776_v59 = vadd.f32 %v20775_v41, %v13684_v26  ;;  %v14042_v20 = vld [vmem:[#allocation2 + $0x68] sm:$0x1]  ;;  %20558 = vmatpush1.bf16.msra.mxu1 %v27707_v54  ;;  %v20787_v26 = vadd.f32 %v27549_v50, %v27532_v30  ;;  %v20789_v30 = vadd.f32 %v27534_v12, %v27549_v50 }
 0x5c7   :  { %13999 = vst.msk [vmem:[#allocation2 + $0x78] sm:$0x7f] %vm13984_vm3, %v13973_v2  ;;  %v13972_v49 = vmax.f32 %v13863_v39, %v13921_v24  ;;  %v13836_v32 = vmax.f32 %v20774_v46, 0.0  ;;  %v14116_v16 = vrot.slane %v14042_v20, 7  ;;  %20559 = vmatprep.subr.bf16.mxu1 %v21949_v7 }
 0x5c8   :  { %v13835_v29 = vmax.f32 %v20776_v59, 0.0  ;;  %v20506_v45 = vpop.f32.mrb[36].mxu0  ;;  %v14036_v38 = vld [vmem:[#allocation2 + $0x62] sm:$0x1]  ;;  %v14040_v21 = vld [vmem:[#allocation2 + $0x66] sm:$0x1] }
 0x5c9   :  { %13998 = vst.msk [vmem:[#allocation2 + $0x70] sm:$0xff] %vm13982_vm4, %v13972_v49  ;;  %v13866_v10 = vmax.f32 %v13834_v1, %v13836_v32  ;;  %v20778_v63 = vadd.f32 %v20777_v47, %v20506_v45  ;;  %v13694_v44 = vpop.f32.mrb[37].mxu0  ;;  %v27683_v60 = vsel %vm14090_vm5, %v14116_v16, %v14041_v13  ;;  %v14095_v57 = vrot.slane %v14036_v38, 7  ;;  %v14038_v19 = vld [vmem:[#allocation2 + $0x64] sm:$0x1] }
 0x5ca   :  { %v13865_v51 = vmax.f32 %v13833_v8, %v13835_v29  ;;  %v20780_v48 = vadd.f32 %v20779_v34, %v13694_v44  ;;  %14118 = vrot.lane.b32.xlu1 %v27683_v60, %s21950_s23  ;;  %v14109_v27 = vrot.slane %v14040_v21, 7  ;;  %v14102_v3 = vrot.slane %v14038_v19, 7  ;;  %v14046_v45 = vld [vmem:[#allocation2 + $0x12] sm:$0x1]  ;;  %v14052_v38 = vld [vmem:[#allocation2 + $0x18] sm:$0x1] }
 0x5cb   :  { %v13923_v6 = vrot.slane %v13866_v10, 1  ;;  %v27696_v35 = vsel %vm14090_vm5, %v14095_v57, %v14035_v5  ;;  %v13838_v58 = vmax.f32 %v20778_v63, 0.0  ;;  %v27728_v49 = vpack.c.bf16 %v14017_v31, %v14016_v17 }
 0x5cc   :  { %v13922_v18 = vrot.slane %v13865_v51, 1  ;;  %v20509_v15 = vpop.f32.mrb[38].mxu0  ;;  %14097 = vrot.lane.b32.xlu0 %v27696_v35, %s21951_s28  ;;  %v27705_v39 = vsel %vm14090_vm5, %v14109_v27, %v14039_v33  ;;  %v13837_v41 = vmax.f32 %v20780_v48, 0.0  ;;  %v27720_v2 = vsel %vm14090_vm5, %v14102_v3, %v14037_v11  ;;  %v14044_v3 = vld [vmem:[#allocation2 + $0x10] sm:$0x1] }
 0x5cd   :  { %v13975_v36 = vmax.f32 %v13866_v10, %v13923_v6  ;;  %v20782_v22 = vadd.f32 %v20781_v42, %v20509_v15  ;;  %v13704_v61 = vpop.f32.mrb[39].mxu0  ;;  %20561 = vmatpush1.bf16.msra.mxu1 %v27728_v49  ;;  %v20791_v19 = vadd.f32 %v27549_v50, %v27536_v0  ;;  %v14019_v0 = vld [vmem:[%s28353_s3 + $0x58] sm:$0xff] }
 0x5ce   :  { %v13924_v43 = vsel %vm13897_vm2, %v13922_v18, %v13923_v6  ;;  %v20784_v53 = vadd.f32 %v20783_v14, %v13704_v61  ;;  %14111 = vrot.lane.b32.xlu1 %v27705_v39, %s21952_s2  ;;  %v14053_v56 = vld [vmem:[#allocation2 + $0x78] sm:$0x1]  ;;  %20562 = vmatprep.subr.bf16.mxu1 %v21949_v7  ;;  %v20795_v61 = vadd.f32 %v27549_v50, %v27540_v52 }
 0x5cf   :  { %14001 = vst.msk [vmem:[#allocation2 + $0x88] sm:$0x7f] %vm13984_vm3, %v13975_v36  ;;  %v13974_v9 = vmax.f32 %v13865_v51, %v13924_v43  ;;  %v13840_v47 = vmax.f32 %v20782_v22, 0.0  ;;  %v14151_v46 = vrot.slane %v14053_v56, 7  ;;  %v14020_v22 = vld [vmem:[%s28353_s3 + $0x60] sm:$0xff] }
 0x5d0   :  { %v13839_v24 = vmax.f32 %v20784_v53, 0.0  ;;  %v20512_v1 = vpop.f32.mrb[40].mxu0  ;;  %14104 = vrot.lane.b32.xlu0 %v27720_v2, %s21953_s13  ;;  %v14047_v59 = vld [vmem:[#allocation2 + $0x72] sm:$0x1]  ;;  %v14045_v20 = vld [vmem:[#allocation2 + $0x70] sm:$0x1]  ;;  %v27774_v52 = vpack.c.bf16 %v14021_v25, %v14020_v22 }
 0x5d1   :  { %14000 = vst.msk [vmem:[#allocation2 + $0x80] sm:$0xff] %vm13982_vm4, %v13974_v9  ;;  %v13868_v8 = vmax.f32 %v13838_v58, %v13840_v47  ;;  %v20786_v32 = vadd.f32 %v20785_v55, %v20512_v1  ;;  %v13714_v13 = vpop.f32.mrb[41].mxu0  ;;  %v14130_v16 = vrot.slane %v14047_v59, 7  ;;  %v27737_v63 = vsel %vm14090_vm5, %v14151_v46, %v14052_v38  ;;  %v14049_v57 = vld [vmem:[#allocation2 + $0x74] sm:$0x1] }
 0x5d2   :  { %v13867_v34 = vmax.f32 %v13837_v41, %v13839_v24  ;;  %v20788_v29 = vadd.f32 %v20787_v26, %v13714_v13  ;;  %v14123_v44 = vrot.slane %v14045_v20, 7  ;;  %v14137_v14 = vrot.slane %v14049_v57, 7  ;;  %v14051_v36 = vld [vmem:[#allocation2 + $0x76] sm:$0x1]  ;;  %v14048_v47 = vld [vmem:[#allocation2 + $0x14] sm:$0x1] }
 0x5d3   :  { %v13926_v21 = vrot.slane %v13868_v8, 1  ;;  %v27734_v10 = vsel %vm14090_vm5, %v14130_v16, %v14046_v45  ;;  %v13842_v18 = vmax.f32 %v20786_v32, 0.0  ;;  %v27770_v58 = vpack.c.bf16 %v14019_v0, %v14018_v28  ;;  %v28510_v20 = vld [vmem:[#allocation14_spill] sm:$0xff]  ;;  %v14023_v45 = vld [vmem:[%s28353_s3 + $0x78] sm:$0xff] }
 0x5d4   :  { %v13925_v51 = vrot.slane %v13867_v34, 1  ;;  %v20515_v12 = vpop.f32.mrb[42].mxu0  ;;  %14132 = vrot.lane.b32.xlu1 %v27734_v10, %s21954_s14  ;;  %14153 = vrot.lane.b32.xlu0 %v27737_v63, %s21955_s15  ;;  %v27758_v33 = vsel %vm14090_vm5, %v14123_v44, %v14044_v3  ;;  %v13841_v17 = vmax.f32 %v20788_v29, 0.0  ;;  %v14144_v46 = vrot.slane %v14051_v36, 7  ;;  %v14022_v29 = vld [vmem:[%s28353_s3 + $0x70] sm:$0xff]  ;;  %v14025_v28 = vld [vmem:[%s28353_s3 + $0x88] sm:$0xff] }
 0x5d5   :  { %v13977_v48 = vmax.f32 %v13868_v8, %v13926_v21  ;;  %v20790_v5 = vadd.f32 %v20789_v30, %v20515_v12  ;;  %v13724_v27 = vpop.f32.mrb[43].mxu0  ;;  %20564 = vmatpush1.bf16.msra.mxu1 %v27770_v58  ;;  %v20797_v26 = vadd.f32 %v27542_v62, %v27549_v50  ;;  %v27779_v1 = vsel %vm14090_vm5, %v14137_v14, %v14048_v47  ;;  %v14050_v62 = vld [vmem:[#allocation2 + $0x16] sm:$0x1]  ;;  %v14074_v44 = vld [vmem:[#allocation2 + $0x38] sm:$0x1] }
 0x5d6   :  { %v13927_v42 = vsel %vm13897_vm2, %v13925_v51, %v13926_v21  ;;  %v20792_v6 = vadd.f32 %v20791_v19, %v13724_v27  ;;  %v14064_v59 = vld [vmem:[#allocation2 + $0x88] sm:$0x1]  ;;  %20565 = vmatprep.subr.bf16.mxu1 %v21949_v7  ;;  %v20799_v8 = vadd.f32 %v27549_v50, %v28510_v20  ;;  %v27794_v21 = vsel %vm14090_vm5, %v14144_v46, %v14050_v62  ;;  %v14024_v27 = vld [vmem:[%s28353_s3 + $0x80] sm:$0xff] }
 0x5d7   :  { %14003 = vst.msk [vmem:[#allocation2 + $0x98] sm:$0x7f] %vm13984_vm3, %v13977_v48  ;;  %v13976_v55 = vmax.f32 %v13867_v34, %v13927_v42  ;;  %v13844_v15 = vmax.f32 %v20790_v5, 0.0  ;;  %v14186_v19 = vrot.slane %v14064_v59, 7  ;;  %v27807_v3 = vpack.c.bf16 %v14023_v45, %v14022_v29  ;;  %v14063_v36 = vld [vmem:[#allocation2 + $0x28] sm:$0x1] }
 0x5d8   :  { %v13843_v31 = vmax.f32 %v20792_v6, 0.0  ;;  %v20518_v43 = vpop.f32.mrb[44].mxu0  ;;  %14125 = vrot.lane.b32.xlu0 %v27758_v33, %s21956_s24  ;;  %v14056_v6 = vld [vmem:[#allocation2 + $0x80] sm:$0x1]  ;;  %v27816_v25 = vpack.c.bf16 %v14025_v28, %v14024_v27  ;;  %v14060_v62 = vld [vmem:[#allocation2 + $0x84] sm:$0x1] }
 0x5d9   :  { %14002 = vst.msk [vmem:[#allocation2 + $0x90] sm:$0xff] %vm13982_vm4, %v13976_v55  ;;  %v13870_v41 = vmax.f32 %v13842_v18, %v13844_v15  ;;  %v20794_v53 = vadd.f32 %v20793_v23, %v20518_v43  ;;  %v13734_v11 = vpop.f32.mrb[45].mxu0  ;;  %20567 = vmatpush1.bf16.msra.mxu1 %v27774_v52  ;;  %v14026_v43 = vld [vmem:[%s28353_s3 + $0x90] sm:$0xff] }
 0x5da   :  { %v13869_v56 = vmax.f32 %v13841_v17, %v13843_v31  ;;  %v20796_v9 = vadd.f32 %v20795_v61, %v13734_v11  ;;  %20568 = vmatprep.subr.bf16.mxu1 %v21949_v7  ;;  %v27819_v17 = vsel %vm14090_vm5, %v14186_v19, %v14063_v36  ;;  %v14158_v31 = vrot.slane %v14056_v6, 7  ;;  %v14070_v11 = vld [vmem:[#allocation2 + $0x34] sm:$0x1] }
 0x5db   :  { %v13929_v24 = vrot.slane %v13870_v41, 1  ;;  %v13846_v12 = vmax.f32 %v20794_v53, 0.0  ;;  %v14172_v19 = vrot.slane %v14060_v62, 7  ;;  %v14085_v62 = vld [vmem:[#allocation2 + $0x48] sm:$0x1] }
 0x5dc   :  { %v13928_v32 = vrot.slane %v13869_v56, 1  ;;  %v20521_v13 = vpop.f32.mrb[46].mxu0  ;;  %14139 = vrot.lane.b32.xlu0 %v27779_v1, %s21957_s25  ;;  %v13845_v0 = vmax.f32 %v20796_v9, 0.0 }
 0x5dd   :  { %v13979_v16 = vmax.f32 %v13870_v41, %v13929_v24  ;;  %v20798_v30 = vadd.f32 %v20797_v26, %v20521_v13  ;;  %v13744_v34 = vpop.f32.mrb[47].mxu0  ;;  %20570 = vmatpush1.bf16.msra.mxu1 %v27807_v3  ;;  %v14027_v41 = vld [vmem:[%s28353_s3 + $0x98] sm:$0xff]  ;;  %v14028_v13 = vld [vmem:[%s28353_s3 + $0xa0] sm:$0xff] }
 0x5de   :  { %v13930_v50 = vsel %vm13897_vm2, %v13928_v32, %v13929_v24  ;;  %v20800_v38 = vadd.f32 %v20799_v8, %v13744_v34  ;;  %v14075_v57 = vld [vmem:[#allocation2 + $0x98] sm:$0x1]  ;;  %20571 = vmatprep.subr.bf16.mxu1 %v21949_v7  ;;  %v14055_v24 = vld [vmem:[#allocation2 + $0x20] sm:$0x1]  ;;  %v27837_v59 = vpack.c.bf16 %v14027_v41, %v14026_v43 }
 0x5df   :  { %14005 = vst.msk [vmem:[#allocation2 + $0xa8] sm:$0x7f] %vm13984_vm3, %v13979_v16  ;;  %v13978_v51 = vmax.f32 %v13869_v56, %v13930_v50  ;;  %v13848_v48 = vmax.f32 %v20798_v30, 0.0  ;;  %v14248_v5 = vrot.slane %v14075_v57, 7  ;;  %v14058_v56 = vld [vmem:[#allocation2 + $0x82] sm:$0x1]  ;;  %v27841_v8 = vsel %vm14090_vm5, %v14158_v31, %v14055_v24 }
 0x5e0   :  { %v13847_v23 = vmax.f32 %v20800_v38, 0.0  ;;  %14146 = vrot.lane.b32.xlu0 %v27794_v21, %s21958_s17  ;;  %v14071_v42 = vld [vmem:[#allocation2 + $0x94] sm:$0x1]  ;;  %v14073_v22 = vld [vmem:[#allocation2 + $0x96] sm:$0x1]  ;;  %v14165_v32 = vrot.slane %v14058_v56, 7 }
 0x5e1   :  { %14004 = vst.msk [vmem:[#allocation2 + $0xa0] sm:$0xff] %vm13982_vm4, %v13978_v51  ;;  %v13872_v14 = vmax.f32 %v13846_v12, %v13848_v48  ;;  %v27811_v55 = vsel %vm14090_vm5, %v14248_v5, %v14074_v44  ;;  %v14234_v18 = vrot.slane %v14071_v42, 7  ;;  %v14241_v46 = vrot.slane %v14073_v22, 7  ;;  %20573 = vmatpush1.bf16.msra.mxu1 %v27816_v25  ;;  %v14029_v16 = vld [vmem:[%s28353_s3 + $0xa8] sm:$0xff]  ;;  %v14072_v30 = vld [vmem:[#allocation2 + $0x36] sm:$0x1] }
 0x5e2   :  { %v13871_v15 = vmax.f32 %v13845_v0, %v13847_v23  ;;  %14250 = vrot.lane.b32.xlu1 %v27811_v55, %s21952_s2  ;;  %20574 = vmatprep.subr.bf16.mxu1 %v21949_v7  ;;  %v14057_v50 = vld [vmem:[#allocation2 + $0x22] sm:$0x1]  ;;  %v27859_v44 = vpack.c.bf16 %v14029_v16, %v14028_v13  ;;  %v14030_v51 = vld [vmem:[%s28353_s3 + $0xb0] sm:$0xff]  ;;  %v14031_v12 = vld [vmem:[%s28353_s3 + $0xb8] sm:$0xff] }
 0x5e3   :  { %v13932_v61 = vrot.slane %v13872_v14, 1  ;;  %v27831_v47 = vsel %vm14090_vm5, %v14234_v18, %v14070_v11  ;;  %v27854_v29 = vsel %vm14090_vm5, %v14241_v46, %v14072_v30  ;;  %v27862_v57 = vsel %vm14090_vm5, %v14165_v32, %v14057_v50  ;;  %v14077_v48 = vld [vmem:[#allocation2 + $0x40] sm:$0x1]  ;;  %v14062_v5 = vld [vmem:[#allocation2 + $0x86] sm:$0x1] }
 0x5e4   :  { %v13931_v53 = vrot.slane %v13871_v15, 1  ;;  %14188 = vrot.lane.b32.xlu0 %v27819_v17, %s21959_s22  ;;  %v14059_v0 = vld [vmem:[#allocation2 + $0x24] sm:$0x1]  ;;  %v27879_v42 = vpack.c.bf16 %v14031_v12, %v14030_v51  ;;  %v14079_v18 = vld [vmem:[#allocation2 + $0x42] sm:$0x1] }
 0x5e5   :  { %v13981_v9 = vmax.f32 %v13872_v14, %v13932_v61  ;;  %20576 = vmatpush1.bf16.msra.mxu1 %v27837_v59  ;;  %v27882_v6 = vsel %vm14090_vm5, %v14172_v19, %v14059_v0  ;;  %v14179_v14 = vrot.slane %v14062_v5, 7  ;;  %v27900_v11 = vld [vmem:[%s28353_s3 + $0xc0] sm:$0xff]  ;;  %s21965_s3 = smov 120   ;;  %v14370_v13 = vld [vmem:[#allocation2 + $0x6a] sm:$0x1] }
 0x5e6   :  { %v13933_v26 = vsel %vm13897_vm2, %v13931_v53, %v13932_v61  ;;  %14236 = vrot.lane.b32.xlu1 %v27831_v47, %s21951_s28  ;;  %20577 = vmatprep.subr.bf16.mxu1 %v21949_v7  ;;  %v14061_v61 = vld [vmem:[#allocation2 + $0x26] sm:$0x1]  ;;  %v21963_v53 = vmov 0.0   ;;  %v14081_v56 = vld [vmem:[#allocation2 + $0x44] sm:$0x1]  ;;  %vm14223_vm2 = vcmask 916480  }
 0x5e7   :  { %14007 = vst.msk [vmem:[#allocation2 + $0xb8] sm:$0x7f] %vm13984_vm3, %v13981_v9  ;;  %v13980_v20 = vmax.f32 %v13871_v15, %v13933_v26  ;;  %v14067_v15 = vld [vmem:[#allocation2 + $0x90] sm:$0x1]  ;;  %v27894_v43 = vsel %vm14090_vm5, %v14179_v14, %v14061_v61  ;;  %v14086_v24 = vld [vmem:[#allocation2 + $0xa8] sm:$0x1] }
 0x5e8   :  { %14160 = vrot.lane.b32.xlu0 %v27841_v8, %s21960_s0  ;;  %v14078_v34 = vld [vmem:[#allocation2 + $0xa0] sm:$0x1]  ;;  %v14080_v38 = vld [vmem:[#allocation2 + $0xa2] sm:$0x1]  ;;  %v14082_v23 = vld [vmem:[#allocation2 + $0xa4] sm:$0x1] }
 0x5e9   :  { %14006 = vst.msk [vmem:[#allocation2 + $0xb0] sm:$0xff] %vm13982_vm4, %v13980_v20  ;;  %v14255_v45 = vrot.slane %v14078_v34, 7  ;;  %v14262_v28 = vrot.slane %v14080_v38, 7  ;;  %20579 = vmatpush1.bf16.msra.mxu1 %v27859_v44  ;;  %v14269_v22 = vrot.slane %v14082_v23, 7  ;;  %v14084_v31 = vld [vmem:[#allocation2 + $0xa6] sm:$0x1] }
 0x5ea   :  { %14243 = vrot.lane.b32.xlu1 %v27854_v29, %s21953_s13  ;;  %20580 = vmatprep.subr.bf16.mxu1 %v21949_v7  ;;  %v14193_v41 = vrot.slane %v14067_v15, 7  ;;  %v14276_v46 = vrot.slane %v14084_v31, 7  ;;  %v14066_v26 = vld [vmem:[#allocation2 + $0x30] sm:$0x1]  ;;  %v14083_v32 = vld [vmem:[#allocation2 + $0x46] sm:$0x1] }
 0x5eb   :  { %v27874_v27 = vsel %vm14090_vm5, %v14255_v45, %v14077_v48  ;;  %v27888_v36 = vsel %vm14090_vm5, %v14262_v28, %v14079_v18  ;;  %v27905_v9 = vsel %vm14090_vm5, %v14269_v22, %v14081_v56  ;;  %v14283_v30 = vrot.slane %v14086_v24, 7  ;;  %v14369_v50 = vld [vmem:[#allocation2 + $0xa] sm:$0x1]  ;;  %v14372_v51 = vld [vmem:[#allocation2 + $0x7a] sm:$0x1] }
 0x5ec   :  { %14167 = vrot.lane.b32.xlu0 %v27862_v57, %s21961_s19  ;;  %v27911_v20 = vsel %vm14090_vm5, %v14193_v41, %v14066_v26  ;;  %v27917_v16 = vsel %vm14090_vm5, %v14276_v46, %v14083_v32  ;;  %v14391_v34 = vrot.slane %v14370_v13, 7  ;;  %v14371_v48 = vld [vmem:[#allocation2 + $0x1a] sm:$0x1]  ;;  %v14378_v28 = vld [vmem:[#allocation2 + $0xaa] sm:$0x1]  ;;  %vm14225_vm3 = vcmask 982016  }
 0x5ed   :  { %20582 = vmatpush1.bf16.msra.mxu1 %v27879_v42  ;;  %v27924_v45 = vsel %vm14090_vm5, %v14283_v30, %v14085_v62  ;;  %v14480_v0 = vrot.slane %v14378_v28, 7  ;;  %v14377_v23 = vld [vmem:[#allocation2 + $0x4a] sm:$0x1]  ;;  %v14069_v22 = vld [vmem:[#allocation2 + $0x92] sm:$0x1] }
 0x5ee   :  { %14257 = vrot.lane.b32.xlu1 %v27874_v27, %s21950_s23  ;;  %14347 = vmatprep.subr.mxu1 %v21963_v53  ;;  %v14392_v38 = vsel %vm14090_vm5, %v14391_v34, %v14369_v50  ;;  %v14374_v14 = vld [vmem:[#allocation2 + $0x8a] sm:$0x1]  ;;  %v14229_v41 = vrot.slane %v14069_v22, 7  ;;  %v14068_v56 = vld [vmem:[#allocation2 + $0x32] sm:$0x1] }
 0x5ef   :  { %v27971_v18 = vsel %vm14090_vm5, %v14480_v0, %v14377_v23  ;;  %v14429_v15 = vrot.slane %v14374_v14, 7  ;;  %v14373_v61 = vld [vmem:[#allocation2 + $0x2a] sm:$0x1]  ;;  %v14572_v23 = vld [vmem:[#allocation2 + $0x54] sm:$0x1] }
 0x5f0   :  { %14174 = vrot.lane.b32.xlu0 %v27882_v6, %s21962_s20  ;;  %v27987_v46 = vsel %vm14090_vm5, %v14229_v41, %v14068_v56  ;;  %v14569_v24 = vld [vmem:[#allocation2 + $0xb0] sm:$0x1]  ;;  %v14571_v34 = vld [vmem:[#allocation2 + $0xb2] sm:$0x1]  ;;  %v14575_v28 = vld [vmem:[#allocation2 + $0xb6] sm:$0x1] }
 0x5f1   :  { %14348 = vmatpush1.msra.mxu1 %v27900_v11  ;;  %v27980_v31 = vsel %vm14090_vm5, %v14429_v15, %v14373_v61  ;;  %v14651_v32 = vrot.slane %v14569_v24, 7  ;;  %v14658_v50 = vrot.slane %v14571_v34, 7  ;;  %v14672_v15 = vrot.slane %v14575_v28, 7  ;;  %v14034_v22 = vld [vmem:[#allocation2 + $0x60] sm:$0x1] }
 0x5f2   :  { %14264 = vrot.lane.b32.xlu1 %v27888_v36, %s21956_s24  ;;  %20583 = vmatprep.subr.bf16.mxu1 %v21949_v7  ;;  %v14577_v41 = vld [vmem:[#allocation2 + $0xb8] sm:$0x1]  ;;  %v14574_v24 = vld [vmem:[#allocation2 + $0x56] sm:$0x1] }
 0x5f3   :  { %v28038_v34 = vsel %vm14090_vm5, %v14672_v15, %v14574_v24 }
 0x5f4   :  { %14181 = vrot.lane.b32.xlu0 %v27894_v43, %s21964_s27 }
 0x5f6   :  { %14271 = vrot.lane.b32.xlu1 %v27905_v9, %s21954_s14 }
 0x5f8   :  { %14195 = vrot.lane.b32.xlu0 %v27911_v20, %s21965_s3 }
 0x5fa   :  { %14278 = vrot.lane.b32.xlu1 %v27917_v16, %s21957_s25 }
 0x5fc   :  { %14383 = vrot.lane.b32.xlu0 %v27705_v39, %s21953_s13  ;;  %v14376_v39 = vld [vmem:[#allocation2 + $0x9a] sm:$0x1] }
 0x5fd   :  { %v14461_v19 = vrot.slane %v14376_v39, 7  ;;  %v14573_v39 = vld [vmem:[#allocation2 + $0xb4] sm:$0x1] }
 0x5fe   :  { %14285 = vrot.lane.b32.xlu1 %v27924_v45, %s21958_s17 }
 0x600   :  { %14393 = vrot.lane.b32.xlu0 %v14392_v38, %s21950_s23 }
 0x602   :  { %14380 = vrot.lane.b32.xlu1 %v27720_v2, %s21951_s28  ;;  %v14375_v2 = vld [vmem:[#allocation2 + $0x3a] sm:$0x1] }
 0x603   :  { %v27945_v12 = vsel %vm14090_vm5, %v14461_v19, %v14375_v2  ;;  %v14570_v2 = vld [vmem:[#allocation2 + $0x52] sm:$0x1] }
 0x604   :  { %14399 = vrot.lane.b32.xlu0 %v27779_v1, %s21954_s14 }
 0x606   :  { %14386 = vrot.lane.b32.xlu1 %v27683_v60, %s21952_s2  ;;  %v14410_v60 = vrot.slane %v14372_v51, 7  ;;  %v28024_v51 = vsel %vm14090_vm5, %v14658_v50, %v14570_v2  ;;  %v14033_v50 = vld [vmem:[#allocation2] sm:$0x1]  ;;  %v14576_v2 = vld [vmem:[#allocation2 + $0x58] sm:$0x1] }
 0x608   :  { %14453 = vrot.lane.b32.xlu0 %v27854_v29, %s21951_s28  ;;  %v27954_v5 = vsel %vm14090_vm5, %v14410_v60, %v14371_v48  ;;  %v14665_v60 = vrot.slane %v14573_v39, 7 }
 0x60a   :  { %14396 = vrot.lane.b32.xlu1 %v27734_v10, %s21956_s24  ;;  %v28031_v14 = vsel %vm14090_vm5, %v14665_v60, %v14572_v23 }
 0x60c   :  { %14456 = vrot.lane.b32.xlu0 %v27811_v55, %s21953_s13 }
 0x60e   :  { %14402 = vrot.lane.b32.xlu1 %v27794_v21, %s21957_s25 }
 0x610   :  { %14463 = vrot.lane.b32.xlu0 %v27945_v12, %s21952_s2 }
 0x612   :  { %14405 = vrot.lane.b32.xlu1 %v27737_v63, %s21958_s17 }
 0x614   :  { %14475 = vrot.lane.b32.xlu0 %v27924_v45, %s21957_s25 }
 0x616   :  { %14412 = vrot.lane.b32.xlu1 %v27954_v5, %s21955_s15 }
 0x618   :  { %14466 = vrot.lane.b32.xlu0 %v27888_v36, %s21950_s23 }
 0x61a   :  { %14415 = vrot.lane.b32.xlu1 %v27862_v57, %s21960_s0 }
 0x61c   :  { %14469 = vrot.lane.b32.xlu0 %v27905_v9, %s21956_s24 }
 0x61e   :  { %14418 = vrot.lane.b32.xlu1 %v27882_v6, %s21961_s19 }
 0x620   :  { %14472 = vrot.lane.b32.xlu0 %v27917_v16, %s21954_s14 }
 0x622   :  { %14421 = vrot.lane.b32.xlu1 %v27894_v43, %s21962_s20 }
 0x624   :  { %14482 = vrot.lane.b32.xlu0 %v27971_v18, %s21958_s17 }
 0x626   :  { %14424 = vrot.lane.b32.xlu1 %v27819_v17, %s21964_s27 }
 0x628   :  { %14579 = vrot.lane.b32.xlu0 %v27734_v10, %s21951_s28 }
 0x62a   :  { %14431 = vrot.lane.b32.xlu1 %v27980_v31, %s21959_s22 }
 0x62c   :  { %14585 = vrot.lane.b32.xlu0 %v27794_v21, %s21952_s2 }
 0x62e   :  { %14434 = vrot.lane.b32.xlu1 %v27987_v46, %s21965_s3 }
 0x630   :  { %14591 = vrot.lane.b32.xlu0 %v27841_v8, %s21956_s24 }
 0x632   :  { %14582 = vrot.lane.b32.xlu1 %v27779_v1, %s21953_s13 }
 0x634   :  { %14597 = vrot.lane.b32.xlu0 %v27882_v6, %s21957_s25 }
 0x636   :  { %14588 = vrot.lane.b32.xlu1 %v27737_v63, %s21950_s23 }
 0x638   :  { %14600 = vrot.lane.b32.xlu0 %v27894_v43, %s21958_s17 }
 0x63a   :  { %14594 = vrot.lane.b32.xlu1 %v27862_v57, %s21954_s14 }
 0x63c   :  { %14603 = vrot.lane.b32.xlu0 %v27819_v17, %s21955_s15  ;;  %v14119_v13 = vpop.permute.xlu1 %14118 }
 0x63e   :  { %14646 = vrot.lane.b32.xlu1 %v27924_v45, %s21952_s2  ;;  %v14098_v8 = vpop.permute.xlu0 %14097 }
 0x640   :  { %14606 = vrot.lane.b32.xlu0 %v27911_v20, %s21960_s0  ;;  %v14568_v20 = vld [vmem:[#allocation2 + $0x50] sm:$0x1]  ;;  %v14112_v19 = vpop.permute.xlu1 %14111 }
 0x641   :  { %v14652_v62 = vsel %vm14090_vm5, %v14651_v32, %v14568_v20  ;;  %v14089_v32 = vrot.slane %v14034_v22, 7  ;;  %v14679_v20 = vrot.slane %v14577_v41, 7 }
 0x642   :  { %14640 = vrot.lane.b32.xlu1 %v27905_v9, %s21951_s28  ;;  %v14105_v26 = vpop.permute.xlu0 %14104 }
 0x643   :  { %v14680_v60 = vsel %vm14090_vm5, %v14679_v20, %v14576_v2 }
 0x644   :  { %14609 = vrot.lane.b32.xlu0 %v27987_v46, %s21961_s19 }
 0x646   :  { %14643 = vrot.lane.b32.xlu1 %v27917_v16, %s21953_s13  ;;  %v28015_v30 = vpop.permute.xlu0 %14153  ;;  %v14133_v0 = vpop.permute.xlu1 %14132 }
 0x648   :  { %14612 = vrot.lane.b32.xlu0 %v27831_v47, %s21962_s20 }
 0x64a   :  { %14653 = vrot.lane.b32.xlu1 %v14652_v62, %s21950_s23  ;;  %v14126_v38 = vpop.permute.xlu0 %14125 }
 0x64c   :  { %14615 = vrot.lane.b32.xlu0 %v27854_v29, %s21964_s27 }
 0x64e   :  { %14660 = vrot.lane.b32.xlu1 %v28024_v51, %s21956_s24  ;;  %v14140_v48 = vpop.permute.xlu0 %14139 }
 0x650   :  { %14618 = vrot.lane.b32.xlu0 %v27811_v55, %s21959_s22 }
 0x652   :  { %14667 = vrot.lane.b32.xlu1 %v28031_v14, %s21954_s14  ;;  %v14147_v61 = vpop.permute.xlu0 %14146 }
 0x654   :  { %v14251_v56 = vpop.permute.xlu1 %14250  ;;  %14621 = vrot.lane.b32.xlu0 %v27874_v27, %s21965_s3  ;;  %v14091_v27 = vsel %vm14090_vm5, %v14089_v32, %v14033_v50 }
 0x655   :  { %v14198_v28 = vsel %vm13982_vm4, %v14091_v27, %v14098_v8 }
 0x656   :  { %14674 = vrot.lane.b32.xlu1 %v28038_v34, %s21957_s25  ;;  %v28042_v62 = vpop.permute.xlu0 %14188  ;;  %v14200_v15 = vsel %vm14199_vm6, %v14198_v28, %v14105_v26 }
 0x657   :  { %v14202_v41 = vsel %vm14201_vm7, %v14200_v15, %v14112_v19 }
 0x658   :  { %v14237_v39 = vpop.permute.xlu1 %14236  ;;  %14772 = vrot.lane.b32.xlu0 %v27794_v21, %s21953_s13  ;;  %v14204_v8 = vsel %vm14203_vm8, %v14202_v41, %v14119_v13 }
 0x659   :  { %v14206_v26 = vsel %vm14205_vm9, %v14204_v8, %v14126_v38 }
 0x65a   :  { %14681 = vrot.lane.b32.xlu1 %v14680_v60, %s21958_s17  ;;  %v14161_v23 = vpop.permute.xlu0 %14160 }
 0x65c   :  { %v14244_v22 = vpop.permute.xlu1 %14243  ;;  %14778 = vrot.lane.b32.xlu0 %v27954_v5, %s21950_s23 }
 0x65e   :  { %14769 = vrot.lane.b32.xlu1 %v27779_v1, %s21951_s28  ;;  %v14168_v21 = vpop.permute.xlu0 %14167  ;;  %v14208_v1 = vsel %vm14207_vm10, %v14206_v26, %v14133_v0 }
 0x65f   :  { %v14210_v32 = vsel %vm14209_vm11, %v14208_v1, %v14140_v48 }
 0x660   :  { %v14258_v24 = vpop.permute.xlu1 %14257  ;;  %14784 = vrot.lane.b32.xlu0 %v27882_v6, %s21954_s14  ;;  %v14212_v13 = vsel %vm14211_vm12, %v14210_v32, %v14147_v61 }
 0x661   :  { %v14214_v48 = vsel %vm14213_vm13, %v14212_v13, %v28015_v30 }
 0x662   :  { %14775 = vrot.lane.b32.xlu1 %v27737_v63, %s21952_s2  ;;  %v14175_v5 = vpop.permute.xlu0 %14174  ;;  %v14288_v63 = vsel %vm13982_vm4, %v27987_v46, %v14237_v39  ;;  %v14216_v0 = vsel %vm14215_vm14, %v14214_v48, %v14161_v23 }
 0x663   :  { %v14218_v61 = vsel %vm14217_vm15, %v14216_v0, %v14168_v21 }
 0x664   :  { %v14265_v19 = vpop.permute.xlu1 %14264  ;;  %14830 = vrot.lane.b32.xlu0 %v27917_v16, %s21951_s28  ;;  %v14289_v16 = vsel %vm14199_vm6, %v14288_v63, %v14244_v22  ;;  %v14220_v30 = vsel %vm14219_vm0, %v14218_v61, %v14175_v5 }
 0x665   :  { %v14290_v20 = vsel %vm14201_vm7, %v14289_v16, %v14251_v56 }
 0x666   :  { %14781 = vrot.lane.b32.xlu1 %v27862_v57, %s21956_s24  ;;  %v14182_v6 = vpop.permute.xlu0 %14181 }
 0x668   :  { %v14272_v38 = vpop.permute.xlu1 %14271  ;;  %14833 = vrot.lane.b32.xlu0 %v27924_v45, %s21953_s13  ;;  %v14291_v45 = vsel %vm14203_vm8, %v14290_v20, %v14258_v24 }
 0x669   :  { %v14292_v39 = vsel %vm14205_vm9, %v14291_v45, %v14265_v19 }
 0x66a   :  { %14787 = vrot.lane.b32.xlu1 %v27894_v43, %s21957_s25  ;;  %v14196_v57 = vpop.permute.xlu0 %14195  ;;  %v14222_v43 = vsel %vm14221_vm1, %v14220_v30, %v14182_v6  ;;  %v14293_v56 = vsel %vm14207_vm10, %v14292_v39, %v14272_v38 }
 0x66b   :  { %v14224_v28 = vsel %vm14223_vm2, %v14222_v43, %v28042_v62 }
 0x66c   :  { %v14279_v50 = vpop.permute.xlu1 %14278  ;;  %14836 = vrot.lane.b32.xlu0 %v27971_v18, %s21952_s2  ;;  %v14226_v15 = vsel %vm14225_vm3, %v14224_v28, %v14196_v57 }
 0x66d   :  { %v14294_v27 = vsel %vm14209_vm11, %v14293_v56, %v14279_v50 }
 0x66e   :  { %14790 = vrot.lane.b32.xlu1 %v27819_v17, %s21958_s17  ;;  %v28089_v2 = vpop.permute.xlu0 %14383 }
 0x670   :  { %v14286_v18 = vpop.permute.xlu1 %14285  ;;  %14848 = vrot.lane.b32.xlu0 %v14680_v60, %s21957_s25 }
 0x671   :  { %v14295_v23 = vsel %vm14211_vm12, %v14294_v27, %v14286_v18 }
 0x672   :  { %17425 = vmatprep.mubr.msk.f32.mxu1 %vm14213_vm13, %v14295_v23  ;;  %14793 = vrot.lane.b32.xlu1 %v27980_v31, %s21955_s15  ;;  %v28101_v17 = vpop.permute.xlu0 %14393  ;;  %v14767_v31 = vld [vmem:[#allocation2 + $0xba] sm:$0x1] }
 0x673   :  { %14364 = vmatmul.mubr.f32.vlgmr.msra.gmra.mrb[48].mxu1 %v14226_v15  ;;  %v14853_v41 = vrot.slane %v14767_v31, 7 }
 0x674   :  { %20585 = vmatpush1.bf16.msra.mxu1 %v27638_v37  ;;  %v14381_v22 = vpop.permute.xlu1 %14380  ;;  %14839 = vrot.lane.b32.xlu0 %v28024_v51, %s21950_s23 }
 0x675   :  { %20586 = vmatprep.subr.bf16.mxu1 %v21949_v7  ;;  %v14437_v6 = vsel %vm13982_vm4, %v27696_v35, %v14381_v22 }
 0x676   :  { %14796 = vrot.lane.b32.xlu1 %v27987_v46, %s21960_s0  ;;  %v28109_v62 = vpop.permute.xlu0 %14399 }
 0x678   :  { %20588 = vmatpush1.bf16.msra.mxu1 %v27657_v4  ;;  %v14387_v60 = vpop.permute.xlu1 %14386  ;;  %14842 = vrot.lane.b32.xlu0 %v28031_v14, %s21956_s24  ;;  %v14766_v14 = vld [vmem:[#allocation2 + $0x5a] sm:$0x1] }
 0x679   :  { %20589 = vmatprep.subr.bf16.mxu1 %v21949_v7  ;;  %v14854_v24 = vsel %vm14090_vm5, %v14853_v41, %v14766_v14  ;;  %vm15199_vm5 = vcmask 74752  }
 0x67a   :  { %14799 = vrot.lane.b32.xlu1 %v27831_v47, %s21961_s19  ;;  %v14454_v51 = vpop.permute.xlu0 %14453 }
 0x67b   :  { %v14485_v1 = vsel %vm13982_vm4, %v27831_v47, %v14454_v51  ;;  %v14438_v47 = vsel %vm14199_vm6, %v14437_v6, %v28089_v2 }
 0x67c   :  { %20591 = vmatpush1.bf16.msra.mxu1 %v27673_v40  ;;  %v14397_v21 = vpop.permute.xlu1 %14396  ;;  %14845 = vrot.lane.b32.xlu0 %v28038_v34, %s21954_s14  ;;  %v14439_v0 = vsel %vm14201_vm7, %v14438_v47, %v14387_v60 }
 0x67d   :  { %20592 = vmatprep.subr.bf16.mxu1 %v21949_v7  ;;  %v14440_v50 = vsel %vm14203_vm8, %v14439_v0, %v28101_v17 }
 0x67e   :  { %14802 = vrot.lane.b32.xlu1 %v27854_v29, %s21962_s20  ;;  %v14457_v46 = vpop.permute.xlu0 %14456  ;;  %v14441_v30 = vsel %vm14205_vm9, %v14440_v50, %v14397_v21 }
 0x67f   :  { %v14442_v2 = vsel %vm14207_vm10, %v14441_v30, %v28109_v62 }
 0x680   :  { %20594 = vmatpush1.bf16.msra.mxu1 %v27707_v54  ;;  %v14403_v8 = vpop.permute.xlu1 %14402  ;;  %14855 = vrot.lane.b32.xlu0 %v14854_v24, %s21958_s17 }
 0x681   :  { %20595 = vmatprep.subr.bf16.mxu1 %v21949_v7  ;;  %v14443_v56 = vsel %vm14209_vm11, %v14442_v2, %v14403_v8 }
 0x682   :  { %14805 = vrot.lane.b32.xlu1 %v27811_v55, %s21964_s27  ;;  %v14464_v34 = vpop.permute.xlu0 %14463  ;;  %s15207_s27 = sshll.u32 %s21967_s26, 4  ;;  %s15208_s27 = int_to_ptr.vmem [resolvable:$true] %s15207_s27 }
 0x683   :  { %p21930_p1 = scmp.lt.s32.totalorder %s15208_s27, %s15208_s27 }
 0x684   :  { %20597 = vmatpush1.bf16.msra.mxu1 %v27728_v49  ;;  %v14406_v26 = vpop.permute.xlu1 %14405 }
 0x685   :  { %20598 = vmatprep.subr.bf16.mxu1 %v21949_v7  ;;  %v14444_v18 = vsel %vm14211_vm12, %v14443_v56, %v14406_v26 }
 0x686   :  { %14808 = vrot.lane.b32.xlu1 %v27945_v12, %s21959_s22  ;;  %v14476_v29 = vpop.permute.xlu0 %14475  ;;  %v14486_v12 = vsel %vm14199_vm6, %v14485_v1, %v14457_v46 }
 0x687   :  { %v14487_v13 = vsel %vm14201_vm7, %v14486_v12, %v14464_v34 }
 0x688   :  { %20600 = vmatpush1.bf16.msra.mxu1 %v27770_v58  ;;  %v14413_v5 = vpop.permute.xlu1 %14412 }
 0x689   :  { %20601 = vmatprep.subr.bf16.mxu1 %v21949_v7  ;;  %v14445_v28 = vsel %vm14213_vm13, %v14444_v18, %v14413_v5 }
 0x68a   :  { %14811 = vrot.lane.b32.xlu1 %v27888_v36, %s21965_s3  ;;  %v14467_v19 = vpop.permute.xlu0 %14466 }
 0x68b   :  { %v14488_v38 = vsel %vm14203_vm8, %v14487_v13, %v14467_v19 }
 0x68c   :  { %20603 = vmatpush1.bf16.msra.mxu1 %v27774_v52  ;;  %v14416_v55 = vpop.permute.xlu1 %14415 }
 0x68d   :  { %20604 = vmatprep.subr.bf16.mxu1 %v21949_v7  ;;  %v14446_v15 = vsel %vm14215_vm14, %v14445_v28, %v14416_v55 }
 0x68e   :  { %v14470_v32 = vpop.permute.xlu0 %14469 }
 0x68f   :  { %v14489_v16 = vsel %vm14205_vm9, %v14488_v38, %v14470_v32 }
 0x690   :  { %20606 = vmatpush1.bf16.msra.mxu1 %v27807_v3  ;;  %v14419_v63 = vpop.permute.xlu1 %14418 }
 0x691   :  { %20607 = vmatprep.subr.bf16.mxu1 %v21949_v7  ;;  %v14447_v17 = vsel %vm14217_vm15, %v14446_v15, %v14419_v63 }
 0x692   :  { %v14473_v48 = vpop.permute.xlu0 %14472 }
 0x693   :  { %v14490_v57 = vsel %vm14207_vm10, %v14489_v16, %v14473_v48 }
 0x694   :  { %20609 = vmatpush1.bf16.msra.mxu1 %v27816_v25  ;;  %v14422_v35 = vpop.permute.xlu1 %14421  ;;  %v14491_v61 = vsel %vm14209_vm11, %v14490_v57, %v14476_v29 }
 0x695   :  { %20610 = vmatprep.subr.bf16.mxu1 %v21949_v7  ;;  %v14448_v62 = vsel %vm14219_vm0, %v14447_v17, %v14422_v35 }
 0x696   :  { %v14483_v20 = vpop.permute.xlu0 %14482 }
 0x697   :  { %v14492_v45 = vsel %vm14211_vm12, %v14491_v61, %v14483_v20 }
 0x698   :  { %20612 = vmatpush1.bf16.msra.mxu1 %v27837_v59  ;;  %v14425_v39 = vpop.permute.xlu1 %14424  ;;  %17426 = vmatprep.mubr.msk.f32.mxu1 %vm14213_vm13, %v14492_v45 }
 0x699   :  { %20613 = vmatprep.subr.bf16.mxu1 %v21949_v7  ;;  %v14449_v60 = vsel %vm14221_vm1, %v14448_v62, %v14425_v39 }
 0x69a   :  { %v14580_v43 = vpop.permute.xlu0 %14579 }
 0x69b   :  { %v14624_v12 = vsel %vm13982_vm4, %v27758_v33, %v14580_v43 }
 0x69c   :  { %20615 = vmatpush1.bf16.msra.mxu1 %v27859_v44  ;;  %v14432_v27 = vpop.permute.xlu1 %14431 }
 0x69d   :  { %20616 = vmatprep.subr.bf16.mxu1 %v21949_v7  ;;  %v14450_v51 = vsel %vm14223_vm2, %v14449_v60, %v14432_v27 }
 0x69e   :  { %v14586_v23 = vpop.permute.xlu0 %14585 }
 0x6a0   :  { %20618 = vmatpush1.bf16.msra.mxu1 %v27879_v42  ;;  %v14435_v22 = vpop.permute.xlu1 %14434 }
 0x6a1   :  { %14544 = vmatprep.subr.mxu1 %v21963_v53  ;;  %v14451_v41 = vsel %vm14225_vm3, %v14450_v51, %v14435_v22 }
 0x6a2   :  { %v14592_v31 = vpop.permute.xlu0 %14591 }
 0x6a4   :  { %14545 = vmatpush1.msra.mxu1 %v27900_v11  ;;  %v14583_v21 = vpop.permute.xlu1 %14582 }
 0x6a5   :  { %14561 = vmatmul.mubr.f32.vlgmr.msra.gmra.mrb[50].mxu1 %v14451_v41  ;;  %20619 = vmatprep.subr.bf16.mxu1 %v21949_v7  ;;  %v14625_v13 = vsel %vm14199_vm6, %v14624_v12, %v14583_v21 }
 0x6a6   :  { %20621 = vmatpush1.bf16.msra.mxu1 %v27638_v37  ;;  %v14598_v46 = vpop.permute.xlu0 %14597  ;;  %v14626_v38 = vsel %vm14201_vm7, %v14625_v13, %v14586_v23 }
 0x6a7   :  { %20622 = vmatprep.subr.bf16.mxu1 %v21949_v7 }
 0x6a8   :  { %v14589_v14 = vpop.permute.xlu1 %14588 }
 0x6a9   :  { %v14627_v48 = vsel %vm14203_vm8, %v14626_v38, %v14589_v14 }
 0x6aa   :  { %20624 = vmatpush1.bf16.msra.mxu1 %v27657_v4  ;;  %v14601_v24 = vpop.permute.xlu0 %14600  ;;  %v14628_v0 = vsel %vm14205_vm9, %v14627_v48, %v14592_v31 }
 0x6ab   :  { %20625 = vmatprep.subr.bf16.mxu1 %v21949_v7 }
 0x6ac   :  { %v14595_v8 = vpop.permute.xlu1 %14594 }
 0x6ad   :  { %v14629_v61 = vsel %vm14207_vm10, %v14628_v0, %v14595_v8 }
 0x6ae   :  { %20627 = vmatpush1.bf16.msra.mxu1 %v27673_v40  ;;  %v14604_v34 = vpop.permute.xlu0 %14603  ;;  %v14630_v30 = vsel %vm14209_vm11, %v14629_v61, %v14598_v46 }
 0x6af   :  { %20628 = vmatprep.subr.bf16.mxu1 %v21949_v7  ;;  %v14631_v27 = vsel %vm14211_vm12, %v14630_v30, %v14601_v24 }
 0x6b0   :  { %v14647_v26 = vpop.permute.xlu1 %14646  ;;  %v14632_v23 = vsel %vm14213_vm13, %v14631_v27, %v14604_v34 }
 0x6b2   :  { %20630 = vmatpush1.bf16.msra.mxu1 %v27707_v54  ;;  %v14607_v29 = vpop.permute.xlu0 %14606 }
 0x6b3   :  { %20631 = vmatprep.subr.bf16.mxu1 %v21949_v7  ;;  %v14633_v17 = vsel %vm14215_vm14, %v14632_v23, %v14607_v29 }
 0x6b4   :  { %v14641_v5 = vpop.permute.xlu1 %14640 }
 0x6b5   :  { %v14684_v33 = vsel %vm13982_vm4, %v27888_v36, %v14641_v5 }
 0x6b6   :  { %20633 = vmatpush1.bf16.msra.mxu1 %v27728_v49  ;;  %v14610_v19 = vpop.permute.xlu0 %14609 }
 0x6b7   :  { %20634 = vmatprep.subr.bf16.mxu1 %v21949_v7  ;;  %v14634_v22 = vsel %vm14217_vm15, %v14633_v17, %v14610_v19 }
 0x6b8   :  { %v14644_v55 = vpop.permute.xlu1 %14643 }
 0x6b9   :  { %v14685_v57 = vsel %vm14199_vm6, %v14684_v33, %v14644_v55 }
 0x6ba   :  { %20636 = vmatpush1.bf16.msra.mxu1 %v27770_v58  ;;  %v14613_v1 = vpop.permute.xlu0 %14612  ;;  %v14686_v20 = vsel %vm14201_vm7, %v14685_v57, %v14647_v26 }
 0x6bb   :  { %20637 = vmatprep.subr.bf16.mxu1 %v21949_v7  ;;  %v14635_v60 = vsel %vm14219_vm0, %v14634_v22, %v14613_v1 }
 0x6bc   :  { %v14654_v32 = vpop.permute.xlu1 %14653 }
 0x6bd   :  { %v14687_v45 = vsel %vm14203_vm8, %v14686_v20, %v14654_v32 }
 0x6be   :  { %20639 = vmatpush1.bf16.msra.mxu1 %v27774_v52  ;;  %v14616_v6 = vpop.permute.xlu0 %14615 }
 0x6bf   :  { %20640 = vmatprep.subr.bf16.mxu1 %v21949_v7  ;;  %v14636_v31 = vsel %vm14221_vm1, %v14635_v60, %v14616_v6  ;;  %v15033_v60 = vld [vmem:[%s28357_s7 + $0x8] sm:$0xff] }
 0x6c0   :  { %v14661_v63 = vpop.permute.xlu1 %14660 }
 0x6c1   :  { %v14688_v36 = vsel %vm14205_vm9, %v14687_v45, %v14661_v63 }
 0x6c2   :  { %20642 = vmatpush1.bf16.msra.mxu1 %v27807_v3  ;;  %v14619_v16 = vpop.permute.xlu0 %14618 }
 0x6c3   :  { %20643 = vmatprep.subr.bf16.mxu1 %v21949_v7  ;;  %v14637_v41 = vsel %vm14223_vm2, %v14636_v31, %v14619_v16 }
 0x6c4   :  { %v14668_v47 = vpop.permute.xlu1 %14667 }
 0x6c5   :  { %v14689_v43 = vsel %vm14207_vm10, %v14688_v36, %v14668_v47 }
 0x6c6   :  { %20645 = vmatpush1.bf16.msra.mxu1 %v27816_v25  ;;  %v14622_v35 = vpop.permute.xlu0 %14621 }
 0x6c7   :  { %20646 = vmatprep.subr.bf16.mxu1 %v21949_v7  ;;  %v14638_v21 = vsel %vm14225_vm3, %v14637_v41, %v14622_v35 }
 0x6c8   :  { %v14675_v50 = vpop.permute.xlu1 %14674 }
 0x6c9   :  { %v14690_v2 = vsel %vm14209_vm11, %v14689_v43, %v14675_v50 }
 0x6ca   :  { %20648 = vmatpush1.bf16.msra.mxu1 %v27837_v59  ;;  %v28213_v39 = vpop.permute.xlu0 %14772 }
 0x6cb   :  { %20649 = vmatprep.subr.bf16.mxu1 %v21949_v7 }
 0x6cc   :  { %v14682_v56 = vpop.permute.xlu1 %14681 }
 0x6cd   :  { %v14691_v18 = vsel %vm14211_vm12, %v14690_v2, %v14682_v56 }
 0x6ce   :  { %20651 = vmatpush1.bf16.msra.mxu1 %v27859_v44  ;;  %v28221_v28 = vpop.permute.xlu0 %14778  ;;  %17427 = vmatprep.mubr.msk.f32.mxu1 %vm14213_vm13, %v14691_v18 }
 0x6cf   :  { %20652 = vmatprep.subr.bf16.mxu1 %v21949_v7 }
 0x6d0   :  { %v14770_v15 = vpop.permute.xlu1 %14769 }
 0x6d1   :  { %v14814_v38 = vsel %vm13982_vm4, %v27734_v10, %v14770_v15  ;;  %v17429_v15 = vld [vmem:[%s28354_s4] ss:$0 sm:$0xff] }
 0x6d2   :  { %20654 = vmatpush1.bf16.msra.mxu1 %v27879_v42  ;;  %v14785_v62 = vpop.permute.xlu0 %14784 }
 0x6d3   :  { %14743 = vmatprep.subr.mxu1 %v21963_v53 }
 0x6d4   :  { %v14776_v51 = vpop.permute.xlu1 %14775 }
 0x6d6   :  { %14744 = vmatpush1.msra.mxu1 %v27900_v11  ;;  %v14831_v46 = vpop.permute.xlu0 %14830 }
 0x6d7   :  { %14760 = vmatmul.mubr.f32.vlgmr.msra.gmra.mrb[52].mxu1 %v14638_v21  ;;  %20655 = vmatprep.subr.bf16.mxu1 %v21949_v7  ;;  %v15034_v21 = vld [vmem:[%s28357_s7 + $0x10] sm:$0xff] }
 0x6d8   :  { %20657 = vmatpush1.bf16.msra.mxu1 %v27638_v37  ;;  %v14782_v14 = vpop.permute.xlu1 %14781 }
 0x6d9   :  { %20658 = vmatprep.subr.bf16.mxu1 %v21949_v7 }
 0x6da   :  { %v14834_v24 = vpop.permute.xlu0 %14833 }
 0x6dc   :  { %20660 = vmatpush1.bf16.msra.mxu1 %v27657_v4  ;;  %v14788_v8 = vpop.permute.xlu1 %14787  ;;  %v14858_v4 = vsel %vm13982_vm4, %v27905_v9, %v14831_v46  ;;  %vm21966_vm4 = vmmov 0   ;;  %v15035_v46 = vld [vmem:[%s28357_s7 + $0x18] sm:$0xff] }
 0x6dd   :  { %20661 = vmatprep.subr.bf16.mxu1 %v21949_v7 }
 0x6de   :  { %v14837_v34 = vpop.permute.xlu0 %14836 }
 0x6e0   :  { %20663 = vmatpush1.bf16.msra.mxu1 %v27673_v40  ;;  %v14791_v26 = vpop.permute.xlu1 %14790  ;;  %v14859_v40 = vsel %vm14199_vm6, %v14858_v4, %v14834_v24  ;;  %v17430_v24 = vld [vmem:[%s28356_s6] ss:$0 sm:$0xff] }
 0x6e1   :  { %20664 = vmatprep.subr.bf16.mxu1 %v21949_v7  ;;  %v14860_v1 = vsel %vm14201_vm7, %v14859_v40, %v14837_v34 }
 0x6e2   :  { %v14849_v29 = vpop.permute.xlu0 %14848 }
 0x6e4   :  { %20666 = vmatpush1.bf16.msra.mxu1 %v27707_v54  ;;  %v14794_v5 = vpop.permute.xlu1 %14793 }
 0x6e5   :  { %20667 = vmatprep.subr.bf16.mxu1 %v21949_v7 }
 0x6e6   :  { %v14840_v37 = vpop.permute.xlu0 %14839 }
 0x6e7   :  { %v14861_v54 = vsel %vm14203_vm8, %v14860_v1, %v14840_v37 }
 0x6e8   :  { %20669 = vmatpush1.bf16.msra.mxu1 %v27728_v49  ;;  %v14797_v19 = vpop.permute.xlu1 %14796 }
 0x6e9   :  { %20670 = vmatprep.subr.bf16.mxu1 %v21949_v7 }
 0x6ea   :  { %v14843_v55 = vpop.permute.xlu0 %14842 }
 0x6eb   :  { %v14862_v49 = vsel %vm14205_vm9, %v14861_v54, %v14843_v55 }
 0x6ec   :  { %20672 = vmatpush1.bf16.msra.mxu1 %v27770_v58  ;;  %v14800_v32 = vpop.permute.xlu1 %14799 }
 0x6ed   :  { %20673 = vmatprep.subr.bf16.mxu1 %v21949_v7 }
 0x6ee   :  { %v14846_v12 = vpop.permute.xlu0 %14845 }
 0x6ef   :  { %v14863_v6 = vsel %vm14207_vm10, %v14862_v49, %v14846_v12 }
 0x6f0   :  { %20675 = vmatpush1.bf16.msra.mxu1 %v27774_v52  ;;  %v14864_v9 = vsel %vm14209_vm11, %v14863_v6, %v14849_v29  ;;  %v14803_v63 = vpop.permute.xlu1 %14802  ;;  %v14815_v52 = vsel %vm14199_vm6, %v14814_v38, %v28213_v39  ;;  %v14950_v39 = vld [vmem:[%s28355_s5 + $0x8] sm:$0xff] }
 0x6f1   :  { %20676 = vmatprep.subr.bf16.mxu1 %v21949_v7  ;;  %v14816_v16 = vsel %vm14201_vm7, %v14815_v52, %v14776_v51 }
 0x6f2   :  { %v14856_v13 = vpop.permute.xlu0 %14855  ;;  %v14817_v33 = vsel %vm14203_vm8, %v14816_v16, %v28221_v28 }
 0x6f3   :  { %v14865_v58 = vsel %vm14211_vm12, %v14864_v9, %v14856_v13  ;;  %v14818_v10 = vsel %vm14205_vm9, %v14817_v33, %v14782_v14  ;;  %v20698_v14 = vpack.c.bf16 %v15035_v46, %v15034_v21 }
 0x6f4   :  { %20678 = vmatpush1.bf16.msra.mxu1 %v27807_v3  ;;  %17428 = vmatprep.mubr.msk.f32.mxu1 %vm14213_vm13, %v14865_v58  ;;  %v14806_v48 = vpop.permute.xlu1 %14805  ;;  %v14819_v3 = vsel %vm14207_vm10, %v14818_v10, %v14785_v62  ;;  %v15032_v62 = vld [vmem:[%s28357_s7] sm:$0xff] }
 0x6f5   :  { %20679 = vmatprep.subr.bf16.mxu1 %v21949_v7  ;;  %v14820_v57 = vsel %vm14209_vm11, %v14819_v3, %v14788_v8  ;;  %v20695_v51 = vpack.c.bf16 %v15033_v60, %v15032_v62 }
 0x6f8   :  { %20681 = vmatpush1.bf16.msra.mxu1 %v27816_v25  ;;  %v14809_v47 = vpop.permute.xlu1 %14808  ;;  %v14821_v25 = vsel %vm14211_vm12, %v14820_v57, %v14791_v26 }
 0x6f9   :  { %20682 = vmatprep.subr.bf16.mxu1 %v21949_v7  ;;  %v14822_v0 = vsel %vm14213_vm13, %v14821_v25, %v14794_v5  ;;  %v15117_v5 = vld [vmem:[%s28359_s9] sm:$0xff] }
 0x6fa   :  { %v14823_v35 = vsel %vm14215_vm14, %v14822_v0, %v14797_v19  ;;  %v17432_v19 = vld [vmem:[%s28358_s8] ss:$0 sm:$0xff] }
 0x6fb   :  { %v14824_v61 = vsel %vm14217_vm15, %v14823_v35, %v14800_v32 }
 0x6fc   :  { %20684 = vmatpush1.bf16.msra.mxu1 %v27837_v59  ;;  %v14825_v59 = vsel %vm14219_vm0, %v14824_v61, %v14803_v63  ;;  %v14812_v20 = vpop.permute.xlu1 %14811 }
 0x6fd   :  { %20685 = vmatprep.subr.bf16.mxu1 %v21949_v7  ;;  %v14826_v50 = vsel %vm14221_vm1, %v14825_v59, %v14806_v48 }
 0x700   :  { %20687 = vmatpush1.bf16.msra.mxu1 %v27859_v44  ;;  %v14827_v44 = vsel %vm14223_vm2, %v14826_v50, %v14809_v47 }
 0x701   :  { %20688 = vmatprep.subr.bf16.mxu1 %v21949_v7  ;;  %v14828_v45 = vsel %vm14225_vm3, %v14827_v44, %v14812_v20 }
 0x704   :  { %20690 = vmatpush1.bf16.msra.mxu1 %v27879_v42  ;;  %v14949_v42 = vld [vmem:[%s28355_s5] sm:$0xff] }
 0x705   :  { %14917 = vmatprep.subr.mxu1 %v21963_v53  ;;  %v20692_v43 = vpack.c.bf16 %v14950_v39, %v14949_v42 }
 0x708   :  { %14918 = vmatpush1.msra.mxu1 %v27900_v11 }
 0x709   :  { %14934 = vmatmul.mubr.f32.vlgmr.msra.gmra.mrb[54].mxu1 %v14828_v45  ;;  %20691 = vmatprep.subr.bf16.mxu1 %v21949_v7 }
 0x70a   :  { %20526 = vmatprep.mubr.msk.f32.mxu1 %vm21966_vm4, %v21963_v53  ;;  %20693 = vmatpush3.bf16.msra.mxu1 %v20692_v43 }
 0x70b   :  { %20694 = vmatprep.subr.bf16.mxu1 %v21949_v7 }
 0x746   :  { %v14365_v30 = vpop.f32.mrb[48].mxu1 }
 0x747   :  { %v14367_v36 = vpop.f32.mrb[49].mxu1 }
 0x778   :  { %v14562_v11 = vpop.f32.mrb[50].mxu1 }
 0x779   :  { %v14566_v2 = vmax.f32 %v14365_v30, %v14562_v11  ;;  %v14564_v56 = vpop.f32.mrb[51].mxu1 }
 0x7aa   :  { %v14761_v27 = vpop.f32.mrb[52].mxu1 }
 0x7ab   :  { %v14765_v18 = vmax.f32 %v14566_v2, %v14761_v27  ;;  %v14763_v28 = vpop.f32.mrb[53].mxu1 }
 0x7dc   :  { %v14935_v23 = vpop.f32.mrb[54].mxu1 }
 0x7dd   :  { %v14939_v17 = vmax.f32 %v14765_v18, %v14935_v23  ;;  %v14937_v22 = vpop.f32.mrb[55].mxu1 }
 0x7df   :  { %v14947_v31 = vadd.f32 %v17429_v15, %v14939_v17 }
 0x7e1   :  { %v14948_v41 = vmax.f32 %v14947_v31, 0.0 }
 0x7e3   :  { %20527 = vmatmul.mubr.msk.f32.vlgmr.msra.gmra.mrb[56].mxu1 %vm14199_vm6, %v14948_v41 }
 0x7e4   :  { %20696 = vmatpush3.bf16.msra.mxu1 %v20695_v51  ;;  %20537 = vmatprep.mubr.msk.f32.mxu1 %vm21966_vm4, %v21963_v53 }
 0x7e5   :  { %20697 = vmatprep.subr.bf16.mxu1 %v21949_v7 }
 0x7e8   :  { %20699 = vmatpush3.bf16.msra.mxu1 %v20698_v14 }
 0x7e9   :  { %20700 = vmatprep.subr.bf16.mxu1 %v21949_v7  ;;  %v15118_v7 = vld [vmem:[%s28359_s9 + $0x8] sm:$0xff]  ;;  %s21925_s9 = scalar_lea.vmem %s15208_s27, 32 }
 0x7ea   :  { %v20701_v37 = vpack.c.bf16 %v15118_v7, %v15117_v5  ;;  %p21926_p0 = scmp.ne.s32.totalorder %s15208_s27, %s21925_s9  ;;  %p21931_p2 = scmp.lt.s32.totalorder %s21925_s9, %s21925_s9 }
 0x7ec   :  { %p21932_p3 = por %p21931_p2, %p21930_p1 }
 0x7ee   :  { %p21933_p4 = pnand %p21932_p3, %p21926_p0 }
 0x8b6   :  { %v15027_v8 = vpop.f32.mrb[56].mxu1 }
 0x8b7   :  { %v15028_v34 = vadd.f32 %v17430_v24, %v15027_v8  ;;  %v20528_v26 = vpop.f32.mrb[57].mxu1 }
 0x8b9   :  { %v15031_v29 = vmax.f32 %v15028_v34, 0.0 }
 0x8bb   :  { %20538 = vmatmul.mubr.msk.f32.vlgmr.msra.gmra.mrb[58].mxu1 %vm14203_vm8, %v15031_v29 }
 0x8bc   :  { %20544 = vmatprep.mubr.msk.f32.mxu1 %vm21966_vm4, %v21963_v53  ;;  %20702 = vmatpush3.bf16.msra.mxu1 %v20701_v37  ;;  %v17434_v53 = vld [vmem:[%s28360_s10] ss:$0 sm:$0xff] }
 0x98e   :  { %v15112_v4 = vpop.f32.mrb[58].mxu1 }
 0x98f   :  { %v15113_v55 = vadd.f32 %v17432_v19, %v15112_v4  ;;  %v20539_v40 = vpop.f32.mrb[59].mxu1 }
 0x991   :  { %v15116_v1 = vmax.f32 %v15113_v55, 0.0 }
 0x993   :  { %20545 = vmatmul.mubr.msk.f32.vlgmr.msra.gmra.mrb[60].mxu1 %vm14199_vm6, %v15116_v1 }
 0xa66   :  { %v15195_v54 = vpop.f32.mrb[60].mxu1 }
 0xa67   :  { %v15196_v32 = vadd.f32 %v17434_v53, %v15195_v54  ;;  %v20546_v49 = vpop.f32.mrb[61].mxu1 }
 0xa69   :  { %15200 = vst.msk [vmem:[#allocation3] sm:$0x3] %vm15199_vm5, %v15196_v32 }
 0xa6a   :  { %21936 = shalt.err (!%p21933_p4)
}
 0xa6b   :  { %s21937_s23 = scalar_lea.hbm %s28361_s11, 32 }
 0xa6c   :  { %p21938_p5 = scmp.ne.s32.totalorder %s28361_s11, %s21937_s23  ;;  %p21941_p6 = scmp.lt.u32.totalorder %s21937_s23, %s28361_s11 }
 0xa6e   :  { %p21943_p7 = pnand %p21941_p6, %p21938_p5 }
 0xa70   :  { %21946 = shalt.err (!%p21943_p7)
}
 0xa71   :  { %15210 = dma.vmem_to_hbm [thread:$0]  %s15208_s27, 32, %s28361_s11, [#allocation4]  }
 0xa72   :  { %21947 = dma.done.wait [#allocation4], 32  }
 0xa73   :  { %21948 = vsyncadd [#allocation4], 4294967264 }
 0xa74   :  { %15214 = vsyncpa [#allocation4], 1 }

</bundles_post_ra>
